<compile_context>
chip_gen: v6e
topology: v6e:2x2x1
jax: 0.10.0
libtpu: 0.0.40
codegen_flags: <defaults>
</compile_context>

<pallas_src>
import math
import jax
import jax.numpy as jnp
from jax.experimental import pallas as pl
from jax.experimental.pallas import tpu as pltpu


# ----------------------------------------------------------------------------
# Kernel 1: general matmul (+bias).  Full-array blocks (no HBM padding), bf16
# operands on the MXU, f32 accumulation.  M is tiled only when large so the
# grid stays at 1-2 ("parallel") steps for these small shapes.
# ----------------------------------------------------------------------------
def _matmul_bias_kernel(a_ref, b_ref, bias_ref, o_ref):
    o_ref[...] = jnp.dot(a_ref[...], b_ref[...],
                         preferred_element_type=jnp.float32) + bias_ref[...]


def pallas_matmul(a, b, bias=None):
    """out = a @ b (+ bias).  a:[M,K], b:[K,N], bias:[N] or None -> [M,N] f32."""
    M, K = a.shape
    K2, N = b.shape
    assert K == K2
    a = a.astype(jnp.bfloat16)
    b = b.astype(jnp.bfloat16)
    bias2d = (jnp.zeros((1, N), jnp.float32) if bias is None
              else bias.astype(jnp.float32).reshape(1, N))
    if M > 512:                                    # tile M only when worthwhile
        tm = 256
        Mp = ((M + tm - 1) // tm) * tm
        if Mp != M:
            a = jnp.pad(a, ((0, Mp - M), (0, 0)))
    else:
        tm, Mp = M, M
    out = pl.pallas_call(
        _matmul_bias_kernel,
        out_shape=jax.ShapeDtypeStruct((Mp, N), jnp.float32),
        grid=(Mp // tm,),
        in_specs=[pl.BlockSpec((tm, K), lambda i: (i, 0)),
                  pl.BlockSpec((K, N), lambda i: (0, 0)),
                  pl.BlockSpec((1, N), lambda i: (0, 0))],
        out_specs=pl.BlockSpec((tm, N), lambda i: (i, 0)),
        compiler_params=pltpu.CompilerParams(dimension_semantics=("parallel",)),
    )(a, b, bias2d)
    return out[:M] if Mp != M else out


# ----------------------------------------------------------------------------
# Kernel 2: fused FourierBlock  (DFT -> complex channel mixing -> iDFT).
# Layout: x[e, b*H+h, t];  W broadcast over batch: W[i, o, b*H+h, m].
# Grid over (b,h) tiles (parallel) -> 2 steps at the toy sizes.
# ----------------------------------------------------------------------------
def _fourier_block_kernel(x_ref, c_ref, s_ref, ci_ref, si_ref,
                          wr_ref, wi_ref, o_ref):
    E = x_ref.shape[0]
    c, s = c_ref[...], s_ref[...]
    ci, si = ci_ref[...], si_ref[...]
    xr, xi = [], []
    for i in range(E):                               # rfft (selected modes)
        xt = x_ref[i]                                # [bh, L]
        xr.append(jnp.dot(xt, c, preferred_element_type=jnp.float32))
        xi.append(jnp.dot(xt, s, preferred_element_type=jnp.float32))
    for o in range(E):                               # complex mixing on the VPU
        acc_r = jnp.zeros_like(xr[0])
        acc_i = jnp.zeros_like(xr[0])
        for i in range(E):
            wr = wr_ref[i, o]                        # [bh, M]
            wi = wi_ref[i, o]
            acc_r = acc_r + xr[i] * wr - xi[i] * wi
            acc_i = acc_i + xr[i] * wi + xi[i] * wr
        o_ref[o] = (jnp.dot(acc_r, ci, preferred_element_type=jnp.float32)
                    + jnp.dot(acc_i, si, preferred_element_type=jnp.float32))


# ----------------------------------------------------------------------------
# Kernel 3 / 4: fused FourierCrossAttention (scores, then output).  The complex
# tanh between them is done host-side (needs sin/cos).
# ----------------------------------------------------------------------------
def _fcross_scores_kernel(qx_ref, kx_ref, cq_ref, sq_ref, ck_ref, sk_ref,
                          sr_ref, si_ref):
    E = qx_ref.shape[0]
    cq, sq = cq_ref[...], sq_ref[...]
    ck, sk = ck_ref[...], sk_ref[...]
    acc_r = jnp.zeros(sr_ref.shape, jnp.float32)
    acc_i = jnp.zeros(si_ref.shape, jnp.float32)
    for e in range(E):
        qt, kt = qx_ref[e], kx_ref[e]
        qr = jnp.dot(qt, cq, preferred_element_type=jnp.float32)[:, :, None]
        qi = jnp.dot(qt, sq, preferred_element_type=jnp.float32)[:, :, None]
        kr = jnp.dot(kt, ck, preferred_element_type=jnp.float32)[:, None, :]
        ki = jnp.dot(kt, sk, preferred_element_type=jnp.float32)[:, None, :]
        acc_r = acc_r + qr * kr - qi * ki
        acc_i = acc_i + qr * ki + qi * kr
    sr_ref[...] = acc_r
    si_ref[...] = acc_i


def _fcross_out_kernel(kx_ref, tr_ref, ti_ref, ck_ref, sk_ref,
                       wr_ref, wi_ref, ciq_ref, siq_ref, o_ref):
    E = kx_ref.shape[0]
    ck, sk = ck_ref[...], sk_ref[...]
    ciq, siq = ciq_ref[...], siq_ref[...]
    tr, ti = tr_ref[...], ti_ref[...]                # [bh, Mq, Mkv]
    vr, vi = [], []
    for i in range(E):                               # V = K @ scores^T  (over y)
        kt = kx_ref[i]
        kr = jnp.dot(kt, ck, preferred_element_type=jnp.float32)[:, None, :]
        ki = jnp.dot(kt, sk, preferred_element_type=jnp.float32)[:, None, :]
        vr.append(jnp.sum(kr * tr - ki * ti, axis=-1))   # [bh, Mq]
        vi.append(jnp.sum(kr * ti + ki * tr, axis=-1))
    for o in range(E):                               # mixing with W, then iDFT
        acc_r = jnp.zeros_like(vr[0])
        acc_i = jnp.zeros_like(vr[0])
        for i in range(E):
            wr = wr_ref[i, o]
            wi = wi_ref[i, o]
            acc_r = acc_r + vr[i] * wr - vi[i] * wi
            acc_i = acc_i + vr[i] * wi + vi[i] * wr
        o_ref[o] = (jnp.dot(acc_r, ciq, preferred_element_type=jnp.float32)
                    + jnp.dot(acc_i, siq, preferred_element_type=jnp.float32))


# ----------------------------------------------------------------------------
# Glue ops (plain JAX) built on top of the Pallas kernels
# ----------------------------------------------------------------------------
def linear(x, w, b=None):
    shp = x.shape
    y = pallas_matmul(x.reshape(-1, shp[-1]), w, b)
    return y.reshape(*shp[:-1], w.shape[-1])


def moving_avg(x, k):
    pad = (k - 1) // 2
    front = jnp.repeat(x[:, :1, :], pad, axis=1)
    end = jnp.repeat(x[:, -1:, :], pad, axis=1)
    xp = jnp.concatenate([front, x, end], axis=1)
    csum = jnp.cumsum(xp, axis=1)
    csum = jnp.concatenate([jnp.zeros_like(csum[:, :1]), csum], axis=1)
    return (csum[:, k:, :] - csum[:, :-k, :]) / k


def series_decomp(x, k):
    mean = moving_avg(x, k)
    return x - mean, mean


def conv1d_circular3(x, w_flat):
    """Conv1d(kernel=3, padding=1, circular, no bias) as im2col matmul."""
    B, L, C = x.shape
    xp = jnp.concatenate([x[:, -1:, :], x, x[:, :1, :]], axis=1)
    cols = jnp.concatenate([xp[:, 0:L], xp[:, 1:L + 1], xp[:, 2:L + 2]], axis=-1)
    y = pallas_matmul(cols.reshape(B * L, 3 * C), w_flat)
    return y.reshape(B, L, -1)


def positional_embedding(L, d_model):
    pos = jnp.arange(L, dtype=jnp.float32)[:, None]
    div = jnp.exp(jnp.arange(0, d_model, 2, dtype=jnp.float32) *
                  (-math.log(10000.0) / d_model))
    pe = jnp.zeros((L, d_model), jnp.float32)
    pe = pe.at[:, 0::2].set(jnp.sin(pos * div))
    pe = pe.at[:, 1::2].set(jnp.cos(pos * div))
    return pe


def data_embedding(x, x_mark, token_w, temporal_w):
    val = conv1d_circular3(x, token_w)
    pe = positional_embedding(x.shape[1], token_w.shape[-1])[None]
    out = val + pe
    if x_mark is not None:
        out = out + linear(x_mark, temporal_w)
    return out                                   # dropout == identity in eval


def my_layernorm(x, gamma, beta, eps=1e-5):
    mu = jnp.mean(x, axis=-1, keepdims=True)
    var = jnp.mean((x - mu) ** 2, axis=-1, keepdims=True)
    xh = (x - mu) / jnp.sqrt(var + eps) * gamma + beta
    return xh - jnp.mean(xh, axis=1, keepdims=True)


def dft_mats(L, M):
    """rfft restricted to modes 0..M-1:  X = x @ (C + iS)."""
    t = jnp.arange(L, dtype=jnp.float32)[:, None]
    k = jnp.arange(M, dtype=jnp.float32)[None, :]
    ang = 2.0 * math.pi * t * k / L
    return jnp.cos(ang), -jnp.sin(ang)


def idft_mats(L, M):
    """irfft(n=L) of a spectrum nonzero only at modes 0..M-1 (M <= L//2)."""
    k = jnp.arange(M, dtype=jnp.float32)[:, None]
    t = jnp.arange(L, dtype=jnp.float32)[None, :]
    ang = 2.0 * math.pi * k * t / L
    scale = jnp.where(k == 0, 1.0, 2.0) / L
    return scale * jnp.cos(ang), -scale * jnp.sin(ang)


def complex_tanh(re, im):
    """tanh(re + i*im) = (sinh 2x + i sin 2y) / (cosh 2x + cos 2y), overflow-safe."""
    x2 = jnp.clip(2.0 * re, -40.0, 40.0)
    y2 = 2.0 * im
    den = jnp.cosh(x2) + jnp.cos(y2)
    return jnp.sinh(x2) / den, jnp.sin(y2) / den


def _bcast_w(w, B):
    """W[h,i,o,m] -> W[i,o,b*H+h,m] (broadcast over batch)."""
    H, E, _, M = w.shape
    wt = jnp.transpose(w, (1, 2, 0, 3))                       # [E, E, H, M]
    wt = jnp.broadcast_to(wt[:, :, None, :, :], (E, E, B, H, M))
    return wt.reshape(E, E, B * H, M).astype(jnp.float32)


def _bh_tile(BH):
    return 8 if (BH % 8 == 0 and BH > 8) else BH


# ----------------------------------------------------------------------------
# FEDformer attention blocks (fused Pallas kernels)
# ----------------------------------------------------------------------------
def fourier_block(q, wr, wi):
    """q:[B,L,H,E] -> out:[B,H,E,L] (FEDformer leaves it un-permuted)."""
    B, L, H, E = q.shape
    M = wr.shape[-1]
    BH = B * H
    x = jnp.transpose(q, (3, 0, 2, 1)).reshape(E, BH, L).astype(jnp.float32)
    C, S = dft_mats(L, M)
    Ci, Si = idft_mats(L, M)
    wr_b = _bcast_w(wr, B)
    wi_b = _bcast_w(wi, B)
    bh_t = _bh_tile(BH)
    out = pl.pallas_call(
        _fourier_block_kernel,
        out_shape=jax.ShapeDtypeStruct((E, BH, L), jnp.float32),
        grid=(BH // bh_t,),
        in_specs=[pl.BlockSpec((E, bh_t, L), lambda g: (0, g, 0)),
                  pl.BlockSpec((L, M), lambda g: (0, 0)),
                  pl.BlockSpec((L, M), lambda g: (0, 0)),
                  pl.BlockSpec((M, L), lambda g: (0, 0)),
                  pl.BlockSpec((M, L), lambda g: (0, 0)),
                  pl.BlockSpec((E, E, bh_t, M), lambda g: (0, 0, g, 0)),
                  pl.BlockSpec((E, E, bh_t, M), lambda g: (0, 0, g, 0))],
        out_specs=pl.BlockSpec((E, bh_t, L), lambda g: (0, g, 0)),
        compiler_params=pltpu.CompilerParams(dimension_semantics=("parallel",)),
    )(x, C, S, Ci, Si, wr_b, wi_b)
    return jnp.transpose(out.reshape(E, B, H, L), (1, 2, 0, 3))   # [B,H,E,L]


def fourier_cross_attention(q, k, wr, wi, in_ch, out_ch):
    """q:[B,Lq,H,E], k:[B,Lkv,H,E] -> [B,H,E,Lq]  (activation='tanh')."""
    B, Lq, H, E = q.shape
    Lkv = k.shape[1]
    Mq = wr.shape[-1]
    Mkv = Lkv // 2
    BH = B * H
    qx = jnp.transpose(q, (3, 0, 2, 1)).reshape(E, BH, Lq).astype(jnp.float32)
    kx = jnp.transpose(k, (3, 0, 2, 1)).reshape(E, BH, Lkv).astype(jnp.float32)
    Cq, Sq = dft_mats(Lq, Mq)
    Ck, Sk = dft_mats(Lkv, Mkv)
    Ciq, Siq = idft_mats(Lq, Mq)
    scale = 1.0 / (in_ch * out_ch)                 # fold /in_ch/out_ch into iDFT
    Ciq, Siq = Ciq * scale, Siq * scale
    wr_b = _bcast_w(wr, B)
    wi_b = _bcast_w(wi, B)
    bh_t = _bh_tile(BH)
    grid = (BH // bh_t,)

    sr, si = pl.pallas_call(
        _fcross_scores_kernel,
        out_shape=(jax.ShapeDtypeStruct((BH, Mq, Mkv), jnp.float32),
                   jax.ShapeDtypeStruct((BH, Mq, Mkv), jnp.float32)),
        grid=grid,
        in_specs=[pl.BlockSpec((E, bh_t, Lq), lambda g: (0, g, 0)),
                  pl.BlockSpec((E, bh_t, Lkv), lambda g: (0, g, 0)),
                  pl.BlockSpec((Lq, Mq), lambda g: (0, 0)),
                  pl.BlockSpec((Lq, Mq), lambda g: (0, 0)),
                  pl.BlockSpec((Lkv, Mkv), lambda g: (0, 0)),
                  pl.BlockSpec((Lkv, Mkv), lambda g: (0, 0))],
        out_specs=(pl.BlockSpec((bh_t, Mq, Mkv), lambda g: (g, 0, 0)),
                   pl.BlockSpec((bh_t, Mq, Mkv), lambda g: (g, 0, 0))),
        compiler_params=pltpu.CompilerParams(dimension_semantics=("parallel",)),
    )(qx, kx, Cq, Sq, Ck, Sk)

    # TODO(synk): complex tanh needs sin/cos; kept host-side between the fused kernels.
    tr, ti = complex_tanh(sr, si)

    out = pl.pallas_call(
        _fcross_out_kernel,
        out_shape=jax.ShapeDtypeStruct((E, BH, Lq), jnp.float32),
        grid=grid,
        in_specs=[pl.BlockSpec((E, bh_t, Lkv), lambda g: (0, g, 0)),
                  pl.BlockSpec((bh_t, Mq, Mkv), lambda g: (g, 0, 0)),
                  pl.BlockSpec((bh_t, Mq, Mkv), lambda g: (g, 0, 0)),
                  pl.BlockSpec((Lkv, Mkv), lambda g: (0, 0)),
                  pl.BlockSpec((Lkv, Mkv), lambda g: (0, 0)),
                  pl.BlockSpec((E, E, bh_t, Mq), lambda g: (0, 0, g, 0)),
                  pl.BlockSpec((E, E, bh_t, Mq), lambda g: (0, 0, g, 0)),
                  pl.BlockSpec((Mq, Lq), lambda g: (0, 0)),
                  pl.BlockSpec((Mq, Lq), lambda g: (0, 0))],
        out_specs=pl.BlockSpec((E, bh_t, Lq), lambda g: (0, g, 0)),
        compiler_params=pltpu.CompilerParams(dimension_semantics=("parallel",)),
    )(kx, tr, ti, Ck, Sk, wr_b, wi_b, Ciq, Siq)
    return jnp.transpose(out.reshape(E, B, H, Lq), (1, 2, 0, 3))  # [B,H,E,Lq]


# ----------------------------------------------------------------------------
# FEDformer layers
# ----------------------------------------------------------------------------
def encoder_layer(p, fw, x, cfg):
    H, k = cfg['n_heads'], cfg['moving_avg']
    B, L, _ = x.shape
    # FourierBlock only consumes Q (key/value projections are dead code).
    q = linear(x, p['attn']['wq'], p['attn']['bq']).reshape(B, L, H, -1)
    a = fourier_block(q, fw['wr'], fw['wi']).reshape(B, L, -1)   # raw .view(B,L,-1)
    x = x + linear(a, p['attn']['wo'], p['attn']['bo'])
    x, _ = series_decomp(x, k)
    y = jax.nn.gelu(linear(x, p['conv1']), approximate=False)
    y = linear(y, p['conv2'])
    res, _ = series_decomp(x + y, k)
    return res


def decoder_layer(p, self_fw, cross_fw, x, cross, cfg):
    H, k, d_model = cfg['n_heads'], cfg['moving_avg'], cfg['d_model']
    B, Lq, _ = x.shape
    Lkv = cross.shape[1]
    # self attention (FourierBlock; only Q used)
    q = linear(x, p['self_attn']['wq'], p['self_attn']['bq']).reshape(B, Lq, H, -1)
    sa = fourier_block(q, self_fw['wr'], self_fw['wi']).reshape(B, Lq, -1)
    x = x + linear(sa, p['self_attn']['wo'], p['self_attn']['bo'])
    x, trend1 = series_decomp(x, k)
    # cross attention (FourierCrossAttention; value projection unused)
    qc = linear(x, p['cross_attn']['wq'], p['cross_attn']['bq']).reshape(B, Lq, H, -1)
    kc = linear(cross, p['cross_attn']['wk'], p['cross_attn']['bk']).reshape(B, Lkv, H, -1)
    ca = fourier_cross_attention(qc, kc, cross_fw['wr'], cross_fw['wi'],
                                 d_model, d_model).reshape(B, Lq, -1)
    x = x + linear(ca, p['cross_attn']['wo'], p['cross_attn']['bo'])
    x, trend2 = series_decomp(x, k)
    y = jax.nn.gelu(linear(x, p['conv1']), approximate=False)
    y = linear(y, p['conv2'])
    x, trend3 = series_decomp(x + y, k)
    residual_trend = trend1 + trend2 + trend3
    residual_trend = conv1d_circular3(residual_trend, p['trend_w'])
    return x, residual_trend


def fedformer_forecast(params, cfg, x_enc, x_mark_enc, x_dec, x_mark_dec):
    pred_len, label_len = cfg['pred_len'], cfg['label_len']
    # decomposition init
    mean = jnp.repeat(jnp.mean(x_enc, axis=1, keepdims=True), pred_len, axis=1)
    seasonal_init, trend_init = series_decomp(x_enc, cfg['moving_avg'])
    trend_init = jnp.concatenate([trend_init[:, -label_len:, :], mean], axis=1)
    seasonal_init = jnp.pad(seasonal_init[:, -label_len:, :],
                            ((0, 0), (0, pred_len), (0, 0)))
    # embeddings
    enc_out = data_embedding(x_enc, x_mark_enc,
                             params['enc_token_w'], params['enc_temporal_w'])
    dec_out = data_embedding(seasonal_init, x_mark_dec,
                             params['dec_token_w'], params['dec_temporal_w'])
    # encoder (FourierBlock weights shared across layers, as in FEDformer)
    x = enc_out
    for lp in params['enc_layers']:
        x = encoder_layer(lp, params['enc_fourier'], x, cfg)
    enc_out = my_layernorm(x, params['enc_norm_g'], params['enc_norm_b'])
    # decoder
    x, trend = dec_out, trend_init
    for lp in params['dec_layers']:
        x, residual_trend = decoder_layer(lp, params['dec_self_fourier'],
                                          params['dec_cross_fourier'], x, enc_out, cfg)
        trend = trend + residual_trend
    x = my_layernorm(x, params['dec_norm_g'], params['dec_norm_b'])
    seasonal_part = linear(x, params['dec_proj_w'], params['dec_proj_b'])
    out = trend + seasonal_part
    return out[:, -pred_len:, :]


# ----------------------------------------------------------------------------
# Deterministic parameter init (shapes follow the PyTorch module __init__)
# ----------------------------------------------------------------------------
CFG = dict(task_name='long_term_forecast',
           seq_len=16, label_len=8, pred_len=8,
           enc_in=4, dec_in=4, c_out=4,
           d_model=32, n_heads=8, d_ff=64,
           e_layers=2, d_layers=1,
           moving_avg=5, dropout=0.1,
           embed='timeF', freq='h', activation='gelu', modes=32)


def init_params(key, cfg):
    d_model, d_ff = cfg['d_model'], cfg['d_ff']
    E = d_model // 8                    # FourierBlock hardcodes 8 heads
    enc_in, dec_in, c_out = cfg['enc_in'], cfg['dec_in'], cfg['c_out']
    mark_dim = 4                        # freq='h' timeF features
    L_dec = cfg['seq_len'] // 2 + cfg['pred_len']
    M_enc = min(cfg['modes'], cfg['seq_len'] // 2)
    M_dec = min(cfg['modes'], L_dec // 2)
    Mq = M_dec
    fscale = 1.0 / (d_model * d_model)

    keys = iter(jax.random.split(key, 64))
    nrm = lambda shape, s=0.05: s * jax.random.normal(next(keys), shape, jnp.float32)
    uni = lambda shape, s: s * jax.random.uniform(next(keys), shape, jnp.float32)

    def attn_proj():
        # wk/wv kept for structural fidelity; unused projections are skipped in fwd.
        return dict(wq=nrm((d_model, d_model)), bq=nrm((d_model,)),
                    wk=nrm((d_model, d_model)), bk=nrm((d_model,)),
                    wv=nrm((d_model, d_model)), bv=nrm((d_model,)),
                    wo=nrm((d_model, d_model)), bo=nrm((d_model,)))

    params = dict(
        enc_token_w=nrm((3 * enc_in, d_model)),
        dec_token_w=nrm((3 * dec_in, d_model)),
        enc_temporal_w=nrm((mark_dim, d_model)),
        dec_temporal_w=nrm((mark_dim, d_model)),
        enc_fourier=dict(wr=uni((8, E, E, M_enc), fscale),
                         wi=uni((8, E, E, M_enc), fscale)),
        dec_self_fourier=dict(wr=uni((8, E, E, M_dec), fscale),
                              wi=uni((8, E, E, M_dec), fscale)),
        dec_cross_fourier=dict(wr=uni((8, E, E, Mq), fscale),
                               wi=uni((8, E, E, Mq), fscale)),
        enc_layers=[dict(attn=attn_proj(),
                         conv1=nrm((d_model, d_ff)),
                         conv2=nrm((d_ff, d_model))) for _ in range(cfg['e_layers'])],
        dec_layers=[dict(self_attn=attn_proj(),
                         cross_attn=attn_proj(),
                         conv1=nrm((d_model, d_ff)),
                         conv2=nrm((d_ff, d_model)),
                         trend_w=nrm((3 * d_model, c_out))) for _ in range(cfg['d_layers'])],
        enc_norm_g=jnp.ones((d_model,), jnp.float32),
        enc_norm_b=jnp.zeros((d_model,), jnp.float32),
        dec_norm_g=jnp.ones((d_model,), jnp.float32),
        dec_norm_b=jnp.zeros((d_model,), jnp.float32),
        dec_proj_w=nrm((d_model, c_out)),
        dec_proj_b=nrm((c_out,)),
    )
    return params


if __name__ == "__main__":
    cfg = CFG
    key = jax.random.PRNGKey(0)
    kp, k1, k2, k3, k4 = jax.random.split(key, 5)
    params = init_params(kp, cfg)

    B = 2
    L_dec = cfg['label_len'] + cfg['pred_len']
    x_enc = jax.random.normal(k1, (B, cfg['seq_len'], cfg['enc_in']), jnp.float32)
    x_mark_enc = jax.random.normal(k2, (B, cfg['seq_len'], 4), jnp.float32)
    x_dec = jax.random.normal(k3, (B, L_dec, cfg['dec_in']), jnp.float32)   # unused by forecast
    x_mark_dec = jax.random.normal(k4, (B, L_dec, 4), jnp.float32)

    fwd = jax.jit(lambda p, a, b, c, d: fedformer_forecast(p, cfg, a, b, c, d))
    out = fwd(params, x_enc, x_mark_enc, x_dec, x_mark_dec)
    out = jax.block_until_ready(out)

    assert out.shape == (B, cfg['pred_len'], cfg['c_out']), out.shape
    assert bool(jnp.all(jnp.isfinite(out)))
    print("KERNEL_OK")
</pallas_src>

<mosaic_0001>
module attributes {stable_mosaic.version = 11 : i64} {
  func.func @_matmul_bias_kernel(%arg0: i32, %arg1: memref<32x4xbf16, #tpu.memory_space<vmem>>, %arg2: memref<4x32xbf16, #tpu.memory_space<vmem>>, %arg3: memref<1x32xf32, #tpu.memory_space<vmem>>, %arg4: memref<32x32xf32, #tpu.memory_space<vmem>>) attributes {dimension_semantics = [#tpu.dimension_semantics<parallel>], iteration_bounds = array<i64: 1>, scalar_prefetch = 0 : i64, scratch_operands = 0 : i64, tpu.core_type = #tpu.core_type<tc>, window_params = [{transform_indices = @transform_0, window_bounds = array<i64: 32, 4>}, {pipeline_mode = #tpu.pipeline_mode<synchronous>, transform_indices = @transform_1, window_bounds = array<i64: 4, 32>}, {pipeline_mode = #tpu.pipeline_mode<synchronous>, transform_indices = @transform_2, window_bounds = array<i64: 1, 32>}, {transform_indices = @transform_3, window_bounds = array<i64: 32, 32>}]} {
    %c0 = arith.constant 0 : index
    %c0_0 = arith.constant 0 : index
    %0 = vector.load %arg1[%c0, %c0_0] : memref<32x4xbf16, #tpu.memory_space<vmem>>, vector<32x4xbf16>
    %c0_1 = arith.constant 0 : index
    %c0_2 = arith.constant 0 : index
    %1 = vector.load %arg2[%c0_1, %c0_2] : memref<4x32xbf16, #tpu.memory_space<vmem>>, vector<4x32xbf16>
    %cst = arith.constant dense<0.000000e+00> : vector<32x32xf32>
    %2 = tpu.matmul %0, %1, %cst {dimension_numbers = #tpu.dot_dimension_numbers<[1], [0], [0], [1], [0, 0, 1, 1], [], []>} : vector<32x4xbf16>, vector<4x32xbf16>, vector<32x32xf32> -> vector<32x32xf32>
    %c0_3 = arith.constant 0 : index
    %c0_4 = arith.constant 0 : index
    %3 = vector.load %arg3[%c0_3, %c0_4] : memref<1x32xf32, #tpu.memory_space<vmem>>, vector<1x32xf32>
    %4 = vector.broadcast %3 : vector<1x32xf32> to vector<32x32xf32>
    %5 = arith.addf %2, %4 : vector<32x32xf32>
    %c0_5 = arith.constant 0 : index
    %c0_6 = arith.constant 0 : index
    %6 = vector.load %arg4[%c0_5, %c0_6] : memref<32x32xf32, #tpu.memory_space<vmem>>, vector<32x32xf32>
    tpu.vector_store %arg4[%c0_5, %c0_6], %5 {strides = array<i32>} : memref<32x32xf32, #tpu.memory_space<vmem>>, vector<32x32xf32>,
    return
  }
  func.func @transform_0(%arg0: i32) -> (i32, i32) {
    %c0_i32 = arith.constant 0 : i32
    %c0_i32_0 = arith.constant 0 : i32
    return %arg0, %c0_i32 : i32, i32
  }
  func.func @transform_1(%arg0: i32) -> (i32, i32) {
    %c0_i32 = arith.constant 0 : i32
    %c0_i32_0 = arith.constant 0 : i32
    %c0_i32_1 = arith.constant 0 : i32
    return %c0_i32, %c0_i32_0 : i32, i32
  }
  func.func @transform_2(%arg0: i32) -> (i32, i32) {
    %c0_i32 = arith.constant 0 : i32
    %c0_i32_0 = arith.constant 0 : i32
    %c0_i32_1 = arith.constant 0 : i32
    return %c0_i32, %c0_i32_0 : i32, i32
  }
  func.func @transform_3(%arg0: i32) -> (i32, i32) {
    %c0_i32 = arith.constant 0 : i32
    %c0_i32_0 = arith.constant 0 : i32
    return %arg0, %c0_i32 : i32, i32
  }
}

module attributes {stable_mosaic.version = 11 : i64} {
  func.func @_matmul_bias_kernel(%arg0: i32, %arg1: memref<32x12xbf16, #tpu.memory_space<vmem>>, %arg2: memref<12x32xbf16, #tpu.memory_space<vmem>>, %arg3: memref<1x32xf32, #tpu.memory_space<vmem>>, %arg4: memref<32x32xf32, #tpu.memory_space<vmem>>) attributes {dimension_semantics = [#tpu.dimension_semantics<parallel>], iteration_bounds = array<i64: 1>, scalar_prefetch = 0 : i64, scratch_operands = 0 : i64, tpu.core_type = #tpu.core_type<tc>, window_params = [{transform_indices = @transform_0, window_bounds = array<i64: 32, 12>}, {pipeline_mode = #tpu.pipeline_mode<synchronous>, transform_indices = @transform_1, window_bounds = array<i64: 12, 32>}, {pipeline_mode = #tpu.pipeline_mode<synchronous>, transform_indices = @transform_2, window_bounds = array<i64: 1, 32>}, {transform_indices = @transform_3, window_bounds = array<i64: 32, 32>}]} {
    %c0 = arith.constant 0 : index
    %c0_0 = arith.constant 0 : index
    %0 = vector.load %arg1[%c0, %c0_0] : memref<32x12xbf16, #tpu.memory_space<vmem>>, vector<32x12xbf16>
    %c0_1 = arith.constant 0 : index
    %c0_2 = arith.constant 0 : index
    %1 = vector.load %arg2[%c0_1, %c0_2] : memref<12x32xbf16, #tpu.memory_space<vmem>>, vector<12x32xbf16>
    %cst = arith.constant dense<0.000000e+00> : vector<32x32xf32>
    %2 = tpu.matmul %0, %1, %cst {dimension_numbers = #tpu.dot_dimension_numbers<[1], [0], [0], [1], [0, 0, 1, 1], [], []>} : vector<32x12xbf16>, vector<12x32xbf16>, vector<32x32xf32> -> vector<32x32xf32>
    %c0_3 = arith.constant 0 : index
    %c0_4 = arith.constant 0 : index
    %3 = vector.load %arg3[%c0_3, %c0_4] : memref<1x32xf32, #tpu.memory_space<vmem>>, vector<1x32xf32>
    %4 = vector.broadcast %3 : vector<1x32xf32> to vector<32x32xf32>
    %5 = arith.addf %2, %4 : vector<32x32xf32>
    %c0_5 = arith.constant 0 : index
    %c0_6 = arith.constant 0 : index
    %6 = vector.load %arg4[%c0_5, %c0_6] : memref<32x32xf32, #tpu.memory_space<vmem>>, vector<32x32xf32>
    tpu.vector_store %arg4[%c0_5, %c0_6], %5 {strides = array<i32>} : memref<32x32xf32, #tpu.memory_space<vmem>>, vector<32x32xf32>,
    return
  }
  func.func @transform_0(%arg0: i32) -> (i32, i32) {
    %c0_i32 = arith.constant 0 : i32
    %c0_i32_0 = arith.constant 0 : i32
    return %arg0, %c0_i32 : i32, i32
  }
  func.func @transform_1(%arg0: i32) -> (i32, i32) {
    %c0_i32 = arith.constant 0 : i32
    %c0_i32_0 = arith.constant 0 : i32
    %c0_i32_1 = arith.constant 0 : i32
    return %c0_i32, %c0_i32_0 : i32, i32
  }
  func.func @transform_2(%arg0: i32) -> (i32, i32) {
    %c0_i32 = arith.constant 0 : i32
    %c0_i32_0 = arith.constant 0 : i32
    %c0_i32_1 = arith.constant 0 : i32
    return %c0_i32, %c0_i32_0 : i32, i32
  }
  func.func @transform_3(%arg0: i32) -> (i32, i32) {
    %c0_i32 = arith.constant 0 : i32
    %c0_i32_0 = arith.constant 0 : i32
    return %arg0, %c0_i32 : i32, i32
  }
}

module attributes {stable_mosaic.version = 11 : i64} {
  func.func @_matmul_bias_kernel(%arg0: i32, %arg1: memref<32x32xbf16, #tpu.memory_space<vmem>>, %arg2: memref<32x32xbf16, #tpu.memory_space<vmem>>, %arg3: memref<1x32xf32, #tpu.memory_space<vmem>>, %arg4: memref<32x32xf32, #tpu.memory_space<vmem>>) attributes {dimension_semantics = [#tpu.dimension_semantics<parallel>], iteration_bounds = array<i64: 1>, scalar_prefetch = 0 : i64, scratch_operands = 0 : i64, tpu.core_type = #tpu.core_type<tc>, window_params = [{transform_indices = @transform_0, window_bounds = array<i64: 32, 32>}, {pipeline_mode = #tpu.pipeline_mode<synchronous>, transform_indices = @transform_1, window_bounds = array<i64: 32, 32>}, {pipeline_mode = #tpu.pipeline_mode<synchronous>, transform_indices = @transform_2, window_bounds = array<i64: 1, 32>}, {transform_indices = @transform_3, window_bounds = array<i64: 32, 32>}]} {
    %c0 = arith.constant 0 : index
    %c0_0 = arith.constant 0 : index
    %0 = vector.load %arg1[%c0, %c0_0] : memref<32x32xbf16, #tpu.memory_space<vmem>>, vector<32x32xbf16>
    %c0_1 = arith.constant 0 : index
    %c0_2 = arith.constant 0 : index
    %1 = vector.load %arg2[%c0_1, %c0_2] : memref<32x32xbf16, #tpu.memory_space<vmem>>, vector<32x32xbf16>
    %cst = arith.constant dense<0.000000e+00> : vector<32x32xf32>
    %2 = tpu.matmul %0, %1, %cst {dimension_numbers = #tpu.dot_dimension_numbers<[1], [0], [0], [1], [0, 0, 1, 1], [], []>} : vector<32x32xbf16>, vector<32x32xbf16>, vector<32x32xf32> -> vector<32x32xf32>
    %c0_3 = arith.constant 0 : index
    %c0_4 = arith.constant 0 : index
    %3 = vector.load %arg3[%c0_3, %c0_4] : memref<1x32xf32, #tpu.memory_space<vmem>>, vector<1x32xf32>
    %4 = vector.broadcast %3 : vector<1x32xf32> to vector<32x32xf32>
    %5 = arith.addf %2, %4 : vector<32x32xf32>
    %c0_5 = arith.constant 0 : index
    %c0_6 = arith.constant 0 : index
    %6 = vector.load %arg4[%c0_5, %c0_6] : memref<32x32xf32, #tpu.memory_space<vmem>>, vector<32x32xf32>
    tpu.vector_store %arg4[%c0_5, %c0_6], %5 {strides = array<i32>} : memref<32x32xf32, #tpu.memory_space<vmem>>, vector<32x32xf32>,
    return
  }
  func.func @transform_0(%arg0: i32) -> (i32, i32) {
    %c0_i32 = arith.constant 0 : i32
    %c0_i32_0 = arith.constant 0 : i32
    return %arg0, %c0_i32 : i32, i32
  }
  func.func @transform_1(%arg0: i32) -> (i32, i32) {
    %c0_i32 = arith.constant 0 : i32
    %c0_i32_0 = arith.constant 0 : i32
    %c0_i32_1 = arith.constant 0 : i32
    return %c0_i32, %c0_i32_0 : i32, i32
  }
  func.func @transform_2(%arg0: i32) -> (i32, i32) {
    %c0_i32 = arith.constant 0 : i32
    %c0_i32_0 = arith.constant 0 : i32
    %c0_i32_1 = arith.constant 0 : i32
    return %c0_i32, %c0_i32_0 : i32, i32
  }
  func.func @transform_3(%arg0: i32) -> (i32, i32) {
    %c0_i32 = arith.constant 0 : i32
    %c0_i32_0 = arith.constant 0 : i32
    return %arg0, %c0_i32 : i32, i32
  }
}

module attributes {stable_mosaic.version = 11 : i64} {
  func.func @_matmul_bias_kernel(%arg0: i32, %arg1: memref<32x32xbf16, #tpu.memory_space<vmem>>, %arg2: memref<32x64xbf16, #tpu.memory_space<vmem>>, %arg3: memref<1x64xf32, #tpu.memory_space<vmem>>, %arg4: memref<32x64xf32, #tpu.memory_space<vmem>>) attributes {dimension_semantics = [#tpu.dimension_semantics<parallel>], iteration_bounds = array<i64: 1>, scalar_prefetch = 0 : i64, scratch_operands = 0 : i64, tpu.core_type = #tpu.core_type<tc>, window_params = [{transform_indices = @transform_0, window_bounds = array<i64: 32, 32>}, {pipeline_mode = #tpu.pipeline_mode<synchronous>, transform_indices = @transform_1, window_bounds = array<i64: 32, 64>}, {pipeline_mode = #tpu.pipeline_mode<synchronous>, transform_indices = @transform_2, window_bounds = array<i64: 1, 64>}, {transform_indices = @transform_3, window_bounds = array<i64: 32, 64>}]} {
    %c0 = arith.constant 0 : index
    %c0_0 = arith.constant 0 : index
    %0 = vector.load %arg1[%c0, %c0_0] : memref<32x32xbf16, #tpu.memory_space<vmem>>, vector<32x32xbf16>
    %c0_1 = arith.constant 0 : index
    %c0_2 = arith.constant 0 : index
    %1 = vector.load %arg2[%c0_1, %c0_2] : memref<32x64xbf16, #tpu.memory_space<vmem>>, vector<32x64xbf16>
    %cst = arith.constant dense<0.000000e+00> : vector<32x64xf32>
    %2 = tpu.matmul %0, %1, %cst {dimension_numbers = #tpu.dot_dimension_numbers<[1], [0], [0], [1], [0, 0, 1, 1], [], []>} : vector<32x32xbf16>, vector<32x64xbf16>, vector<32x64xf32> -> vector<32x64xf32>
    %c0_3 = arith.constant 0 : index
    %c0_4 = arith.constant 0 : index
    %3 = vector.load %arg3[%c0_3, %c0_4] : memref<1x64xf32, #tpu.memory_space<vmem>>, vector<1x64xf32>
    %4 = vector.broadcast %3 : vector<1x64xf32> to vector<32x64xf32>
    %5 = arith.addf %2, %4 : vector<32x64xf32>
    %c0_5 = arith.constant 0 : index
    %c0_6 = arith.constant 0 : index
    %6 = vector.load %arg4[%c0_5, %c0_6] : memref<32x64xf32, #tpu.memory_space<vmem>>, vector<32x64xf32>
    tpu.vector_store %arg4[%c0_5, %c0_6], %5 {strides = array<i32>} : memref<32x64xf32, #tpu.memory_space<vmem>>, vector<32x64xf32>,
    return
  }
  func.func @transform_0(%arg0: i32) -> (i32, i32) {
    %c0_i32 = arith.constant 0 : i32
    %c0_i32_0 = arith.constant 0 : i32
    return %arg0, %c0_i32 : i32, i32
  }
  func.func @transform_1(%arg0: i32) -> (i32, i32) {
    %c0_i32 = arith.constant 0 : i32
    %c0_i32_0 = arith.constant 0 : i32
    %c0_i32_1 = arith.constant 0 : i32
    return %c0_i32, %c0_i32_0 : i32, i32
  }
  func.func @transform_2(%arg0: i32) -> (i32, i32) {
    %c0_i32 = arith.constant 0 : i32
    %c0_i32_0 = arith.constant 0 : i32
    %c0_i32_1 = arith.constant 0 : i32
    return %c0_i32, %c0_i32_0 : i32, i32
  }
  func.func @transform_3(%arg0: i32) -> (i32, i32) {
    %c0_i32 = arith.constant 0 : i32
    %c0_i32_0 = arith.constant 0 : i32
    return %arg0, %c0_i32 : i32, i32
  }
}

module attributes {stable_mosaic.version = 11 : i64} {
  func.func @_fourier_block_kernel(%arg0: i32, %arg1: memref<4x8x16xf32, #tpu.memory_space<vmem>>, %arg2: memref<16x8xf32, #tpu.memory_space<vmem>>, %arg3: memref<16x8xf32, #tpu.memory_space<vmem>>, %arg4: memref<8x16xf32, #tpu.memory_space<vmem>>, %arg5: memref<8x16xf32, #tpu.memory_space<vmem>>, %arg6: memref<4x4x8x8xf32, #tpu.memory_space<vmem>>, %arg7: memref<4x4x8x8xf32, #tpu.memory_space<vmem>>, %arg8: memref<4x8x16xf32, #tpu.memory_space<vmem>>) attributes {dimension_semantics = [#tpu.dimension_semantics<parallel>], iteration_bounds = array<i64: 2>, scalar_prefetch = 0 : i64, scratch_operands = 0 : i64, tpu.core_type = #tpu.core_type<tc>, window_params = [{transform_indices = @transform_0, window_bounds = array<i64: 4, 8, 16>}, {pipeline_mode = #tpu.pipeline_mode<synchronous>, transform_indices = @transform_1, window_bounds = array<i64: 16, 8>}, {pipeline_mode = #tpu.pipeline_mode<synchronous>, transform_indices = @transform_2, window_bounds = array<i64: 16, 8>}, {pipeline_mode = #tpu.pipeline_mode<synchronous>, transform_indices = @transform_3, window_bounds = array<i64: 8, 16>}, {pipeline_mode = #tpu.pipeline_mode<synchronous>, transform_indices = @transform_4, window_bounds = array<i64: 8, 16>}, {transform_indices = @transform_5, window_bounds = array<i64: 4, 4, 8, 8>}, {transform_indices = @transform_6, window_bounds = array<i64: 4, 4, 8, 8>}, {transform_indices = @transform_7, window_bounds = array<i64: 4, 8, 16>}]} {
    %c0 = arith.constant 0 : index
    %c0_0 = arith.constant 0 : index
    %0 = vector.load %arg2[%c0, %c0_0] : memref<16x8xf32, #tpu.memory_space<vmem>>, vector<16x8xf32>
    %c0_1 = arith.constant 0 : index
    %c0_2 = arith.constant 0 : index
    %1 = vector.load %arg3[%c0_1, %c0_2] : memref<16x8xf32, #tpu.memory_space<vmem>>, vector<16x8xf32>
    %c0_3 = arith.constant 0 : index
    %c0_4 = arith.constant 0 : index
    %2 = vector.load %arg4[%c0_3, %c0_4] : memref<8x16xf32, #tpu.memory_space<vmem>>, vector<8x16xf32>
    %c0_5 = arith.constant 0 : index
    %c0_6 = arith.constant 0 : index
    %3 = vector.load %arg5[%c0_5, %c0_6] : memref<8x16xf32, #tpu.memory_space<vmem>>, vector<8x16xf32>
    %c0_7 = arith.constant 0 : index
    %c0_8 = arith.constant 0 : index
    %c0_9 = arith.constant 0 : index
    %4 = vector.load %arg1[%c0_7, %c0_8, %c0_9] : memref<4x8x16xf32, #tpu.memory_space<vmem>>, vector<1x8x16xf32>
    %5 = vector.shape_cast %4 : vector<1x8x16xf32> to vector<8x16xf32>
    %cst = arith.constant dense<0.000000e+00> : vector<8x8xf32>
    %6 = tpu.matmul %5, %0, %cst {dimension_numbers = #tpu.dot_dimension_numbers<[1], [0], [0], [1], [0, 0, 1, 1], [], []>} : vector<8x16xf32>, vector<16x8xf32>, vector<8x8xf32> -> vector<8x8xf32>
    %cst_10 = arith.constant dense<0.000000e+00> : vector<8x8xf32>
    %7 = tpu.matmul %5, %1, %cst_10 {dimension_numbers = #tpu.dot_dimension_numbers<[1], [0], [0], [1], [0, 0, 1, 1], [], []>} : vector<8x16xf32>, vector<16x8xf32>, vector<8x8xf32> -> vector<8x8xf32>
    %c1 = arith.constant 1 : index
    %c0_11 = arith.constant 0 : index
    %c0_12 = arith.constant 0 : index
    %8 = vector.load %arg1[%c1, %c0_11, %c0_12] : memref<4x8x16xf32, #tpu.memory_space<vmem>>, vector<1x8x16xf32>
    %9 = vector.shape_cast %8 : vector<1x8x16xf32> to vector<8x16xf32>
    %cst_13 = arith.constant dense<0.000000e+00> : vector<8x8xf32>
    %10 = tpu.matmul %9, %0, %cst_13 {dimension_numbers = #tpu.dot_dimension_numbers<[1], [0], [0], [1], [0, 0, 1, 1], [], []>} : vector<8x16xf32>, vector<16x8xf32>, vector<8x8xf32> -> vector<8x8xf32>
    %cst_14 = arith.constant dense<0.000000e+00> : vector<8x8xf32>
    %11 = tpu.matmul %9, %1, %cst_14 {dimension_numbers = #tpu.dot_dimension_numbers<[1], [0], [0], [1], [0, 0, 1, 1], [], []>} : vector<8x16xf32>, vector<16x8xf32>, vector<8x8xf32> -> vector<8x8xf32>
    %c2 = arith.constant 2 : index
    %c0_15 = arith.constant 0 : index
    %c0_16 = arith.constant 0 : index
    %12 = vector.load %arg1[%c2, %c0_15, %c0_16] : memref<4x8x16xf32, #tpu.memory_space<vmem>>, vector<1x8x16xf32>
    %13 = vector.shape_cast %12 : vector<1x8x16xf32> to vector<8x16xf32>
    %cst_17 = arith.constant dense<0.000000e+00> : vector<8x8xf32>
    %14 = tpu.matmul %13, %0, %cst_17 {dimension_numbers = #tpu.dot_dimension_numbers<[1], [0], [0], [1], [0, 0, 1, 1], [], []>} : vector<8x16xf32>, vector<16x8xf32>, vector<8x8xf32> -> vector<8x8xf32>
    %cst_18 = arith.constant dense<0.000000e+00> : vector<8x8xf32>
    %15 = tpu.matmul %13, %1, %cst_18 {dimension_numbers = #tpu.dot_dimension_numbers<[1], [0], [0], [1], [0, 0, 1, 1], [], []>} : vector<8x16xf32>, vector<16x8xf32>, vector<8x8xf32> -> vector<8x8xf32>
    %c3 = arith.constant 3 : index
    %c0_19 = arith.constant 0 : index
    %c0_20 = arith.constant 0 : index
    %16 = vector.load %arg1[%c3, %c0_19, %c0_20] : memref<4x8x16xf32, #tpu.memory_space<vmem>>, vector<1x8x16xf32>
    %17 = vector.shape_cast %16 : vector<1x8x16xf32> to vector<8x16xf32>
    %cst_21 = arith.constant dense<0.000000e+00> : vector<8x8xf32>
    %18 = tpu.matmul %17, %0, %cst_21 {dimension_numbers = #tpu.dot_dimension_numbers<[1], [0], [0], [1], [0, 0, 1, 1], [], []>} : vector<8x16xf32>, vector<16x8xf32>, vector<8x8xf32> -> vector<8x8xf32>
    %cst_22 = arith.constant dense<0.000000e+00> : vector<8x8xf32>
    %19 = tpu.matmul %17, %1, %cst_22 {dimension_numbers = #tpu.dot_dimension_numbers<[1], [0], [0], [1], [0, 0, 1, 1], [], []>} : vector<8x16xf32>, vector<16x8xf32>, vector<8x8xf32> -> vector<8x8xf32>
    %cst_23 = arith.constant 0.000000e+00 : f32
    %20 = vector.broadcast %cst_23 : f32 to vector<8x8xf32>
    %cst_24 = arith.constant 0.000000e+00 : f32
    %21 = vector.broadcast %cst_24 : f32 to vector<8x8xf32>
    %c0_25 = arith.constant 0 : index
    %c0_26 = arith.constant 0 : index
    %c0_27 = arith.constant 0 : index
    %c0_28 = arith.constant 0 : index
    %22 = vector.load %arg6[%c0_25, %c0_26, %c0_27, %c0_28] : memref<4x4x8x8xf32, #tpu.memory_space<vmem>>, vector<1x1x8x8xf32>
    %23 = vector.shape_cast %22 : vector<1x1x8x8xf32> to vector<8x8xf32>
    %c0_29 = arith.constant 0 : index
    %c0_30 = arith.constant 0 : index
    %c0_31 = arith.constant 0 : index
    %c0_32 = arith.constant 0 : index
    %24 = vector.load %arg7[%c0_29, %c0_30, %c0_31, %c0_32] : memref<4x4x8x8xf32, #tpu.memory_space<vmem>>, vector<1x1x8x8xf32>
    %25 = vector.shape_cast %24 : vector<1x1x8x8xf32> to vector<8x8xf32>
    %26 = arith.mulf %6, %23 : vector<8x8xf32>
    %27 = arith.addf %20, %26 : vector<8x8xf32>
    %28 = arith.mulf %7, %25 : vector<8x8xf32>
    %29 = arith.subf %27, %28 : vector<8x8xf32>
    %30 = arith.mulf %6, %25 : vector<8x8xf32>
    %31 = arith.addf %21, %30 : vector<8x8xf32>
    %32 = arith.mulf %7, %23 : vector<8x8xf32>
    %33 = arith.addf %31, %32 : vector<8x8xf32>
    %c1_33 = arith.constant 1 : index
    %c0_34 = arith.constant 0 : index
    %c0_35 = arith.constant 0 : index
    %c0_36 = arith.constant 0 : index
    %34 = vector.load %arg6[%c1_33, %c0_34, %c0_35, %c0_36] : memref<4x4x8x8xf32, #tpu.memory_space<vmem>>, vector<1x1x8x8xf32>
    %35 = vector.shape_cast %34 : vector<1x1x8x8xf32> to vector<8x8xf32>
    %c1_37 = arith.constant 1 : index
    %c0_38 = arith.constant 0 : index
    %c0_39 = arith.constant 0 : index
    %c0_40 = arith.constant 0 : index
    %36 = vector.load %arg7[%c1_37, %c0_38, %c0_39, %c0_40] : memref<4x4x8x8xf32, #tpu.memory_space<vmem>>, vector<1x1x8x8xf32>
    %37 = vector.shape_cast %36 : vector<1x1x8x8xf32> to vector<8x8xf32>
    %38 = arith.mulf %10, %35 : vector<8x8xf32>
    %39 = arith.addf %29, %38 : vector<8x8xf32>
    %40 = arith.mulf %11, %37 : vector<8x8xf32>
    %41 = arith.subf %39, %40 : vector<8x8xf32>
    %42 = arith.mulf %10, %37 : vector<8x8xf32>
    %43 = arith.addf %33, %42 : vector<8x8xf32>
    %44 = arith.mulf %11, %35 : vector<8x8xf32>
    %45 = arith.addf %43, %44 : vector<8x8xf32>
    %c2_41 = arith.constant 2 : index
    %c0_42 = arith.constant 0 : index
    %c0_43 = arith.constant 0 : index
    %c0_44 = arith.constant 0 : index
    %46 = vector.load %arg6[%c2_41, %c0_42, %c0_43, %c0_44] : memref<4x4x8x8xf32, #tpu.memory_space<vmem>>, vector<1x1x8x8xf32>
    %47 = vector.shape_cast %46 : vector<1x1x8x8xf32> to vector<8x8xf32>
    %c2_45 = arith.constant 2 : index
    %c0_46 = arith.constant 0 : index
    %c0_47 = arith.constant 0 : index
    %c0_48 = arith.constant 0 : index
    %48 = vector.load %arg7[%c2_45, %c0_46, %c0_47, %c0_48] : memref<4x4x8x8xf32, #tpu.memory_space<vmem>>, vector<1x1x8x8xf32>
    %49 = vector.shape_cast %48 : vector<1x1x8x8xf32> to vector<8x8xf32>
    %50 = arith.mulf %14, %47 : vector<8x8xf32>
    %51 = arith.addf %41, %50 : vector<8x8xf32>
    %52 = arith.mulf %15, %49 : vector<8x8xf32>
    %53 = arith.subf %51, %52 : vector<8x8xf32>
    %54 = arith.mulf %14, %49 : vector<8x8xf32>
    %55 = arith.addf %45, %54 : vector<8x8xf32>
    %56 = arith.mulf %15, %47 : vector<8x8xf32>
    %57 = arith.addf %55, %56 : vector<8x8xf32>
    %c3_49 = arith.constant 3 : index
    %c0_50 = arith.constant 0 : index
    %c0_51 = arith.constant 0 : index
    %c0_52 = arith.constant 0 : index
    %58 = vector.load %arg6[%c3_49, %c0_50, %c0_51, %c0_52] : memref<4x4x8x8xf32, #tpu.memory_space<vmem>>, vector<1x1x8x8xf32>
    %59 = vector.shape_cast %58 : vector<1x1x8x8xf32> to vector<8x8xf32>
    %c3_53 = arith.constant 3 : index
    %c0_54 = arith.constant 0 : index
    %c0_55 = arith.constant 0 : index
    %c0_56 = arith.constant 0 : index
    %60 = vector.load %arg7[%c3_53, %c0_54, %c0_55, %c0_56] : memref<4x4x8x8xf32, #tpu.memory_space<vmem>>, vector<1x1x8x8xf32>
    %61 = vector.shape_cast %60 : vector<1x1x8x8xf32> to vector<8x8xf32>
    %62 = arith.mulf %18, %59 : vector<8x8xf32>
    %63 = arith.addf %53, %62 : vector<8x8xf32>
    %64 = arith.mulf %19, %61 : vector<8x8xf32>
    %65 = arith.subf %63, %64 : vector<8x8xf32>
    %66 = arith.mulf %18, %61 : vector<8x8xf32>
    %67 = arith.addf %57, %66 : vector<8x8xf32>
    %68 = arith.mulf %19, %59 : vector<8x8xf32>
    %69 = arith.addf %67, %68 : vector<8x8xf32>
    %cst_57 = arith.constant dense<0.000000e+00> : vector<8x16xf32>
    %70 = tpu.matmul %65, %2, %cst_57 {dimension_numbers = #tpu.dot_dimension_numbers<[1], [0], [0], [1], [0, 0, 1, 1], [], []>} : vector<8x8xf32>, vector<8x16xf32>, vector<8x16xf32> -> vector<8x16xf32>
    %cst_58 = arith.constant dense<0.000000e+00> : vector<8x16xf32>
    %71 = tpu.matmul %69, %3, %cst_58 {dimension_numbers = #tpu.dot_dimension_numbers<[1], [0], [0], [1], [0, 0, 1, 1], [], []>} : vector<8x8xf32>, vector<8x16xf32>, vector<8x16xf32> -> vector<8x16xf32>
    %72 = arith.addf %70, %71 : vector<8x16xf32>
    %c0_59 = arith.constant 0 : index
    %c0_60 = arith.constant 0 : index
    %c0_61 = arith.constant 0 : index
    %73 = vector.load %arg8[%c0_59, %c0_60, %c0_61] : memref<4x8x16xf32, #tpu.memory_space<vmem>>, vector<1x8x16xf32>
    %74 = vector.shape_cast %73 : vector<1x8x16xf32> to vector<8x16xf32>
    %75 = vector.shape_cast %72 : vector<8x16xf32> to vector<1x8x16xf32>
    tpu.vector_store %arg8[%c0_59, %c0_60, %c0_61], %75 {strides = array<i32>} : memref<4x8x16xf32, #tpu.memory_space<vmem>>, vector<1x8x16xf32>,
    %cst_62 = arith.constant 0.000000e+00 : f32
    %76 = vector.broadcast %cst_62 : f32 to vector<8x8xf32>
    %cst_63 = arith.constant 0.000000e+00 : f32
    %77 = vector.broadcast %cst_63 : f32 to vector<8x8xf32>
    %c0_64 = arith.constant 0 : index
    %c1_65 = arith.constant 1 : index
    %c0_66 = arith.constant 0 : index
    %c0_67 = arith.constant 0 : index
    %78 = vector.load %arg6[%c0_64, %c1_65, %c0_66, %c0_67] : memref<4x4x8x8xf32, #tpu.memory_space<vmem>>, vector<1x1x8x8xf32>
    %79 = vector.shape_cast %78 : vector<1x1x8x8xf32> to vector<8x8xf32>
    %c0_68 = arith.constant 0 : index
    %c1_69 = arith.constant 1 : index
    %c0_70 = arith.constant 0 : index
    %c0_71 = arith.constant 0 : index
    %80 = vector.load %arg7[%c0_68, %c1_69, %c0_70, %c0_71] : memref<4x4x8x8xf32, #tpu.memory_space<vmem>>, vector<1x1x8x8xf32>
    %81 = vector.shape_cast %80 : vector<1x1x8x8xf32> to vector<8x8xf32>
    %82 = arith.mulf %6, %79 : vector<8x8xf32>
    %83 = arith.addf %76, %82 : vector<8x8xf32>
    %84 = arith.mulf %7, %81 : vector<8x8xf32>
    %85 = arith.subf %83, %84 : vector<8x8xf32>
    %86 = arith.mulf %6, %81 : vector<8x8xf32>
    %87 = arith.addf %77, %86 : vector<8x8xf32>
    %88 = arith.mulf %7, %79 : vector<8x8xf32>
    %89 = arith.addf %87, %88 : vector<8x8xf32>
    %c1_72 = arith.constant 1 : index
    %c1_73 = arith.constant 1 : index
    %c0_74 = arith.constant 0 : index
    %c0_75 = arith.constant 0 : index
    %90 = vector.load %arg6[%c1_72, %c1_73, %c0_74, %c0_75] : memref<4x4x8x8xf32, #tpu.memory_space<vmem>>, vector<1x1x8x8xf32>
    %91 = vector.shape_cast %90 : vector<1x1x8x8xf32> to vector<8x8xf32>
    %c1_76 = arith.constant 1 : index
    %c1_77 = arith.constant 1 : index
    %c0_78 = arith.constant 0 : index
    %c0_79 = arith.constant 0 : index
    %92 = vector.load %arg7[%c1_76, %c1_77, %c0_78, %c0_79] : memref<4x4x8x8xf32, #tpu.memory_space<vmem>>, vector<1x1x8x8xf32>
    %93 = vector.shape_cast %92 : vector<1x1x8x8xf32> to vector<8x8xf32>
    %94 = arith.mulf %10, %91 : vector<8x8xf32>
    %95 = arith.addf %85, %94 : vector<8x8xf32>
    %96 = arith.mulf %11, %93 : vector<8x8xf32>
    %97 = arith.subf %95, %96 : vector<8x8xf32>
    %98 = arith.mulf %10, %93 : vector<8x8xf32>
    %99 = arith.addf %89, %98 : vector<8x8xf32>
    %100 = arith.mulf %11, %91 : vector<8x8xf32>
    %101 = arith.addf %99, %100 : vector<8x8xf32>
    %c2_80 = arith.constant 2 : index
    %c1_81 = arith.constant 1 : index
    %c0_82 = arith.constant 0 : index
    %c0_83 = arith.constant 0 : index
    %102 = vector.load %arg6[%c2_80, %c1_81, %c0_82, %c0_83] : memref<4x4x8x8xf32, #tpu.memory_space<vmem>>, vector<1x1x8x8xf32>
    %103 = vector.shape_cast %102 : vector<1x1x8x8xf32> to vector<8x8xf32>
    %c2_84 = arith.constant 2 : index
    %c1_85 = arith.constant 1 : index
    %c0_86 = arith.constant 0 : index
    %c0_87 = arith.constant 0 : index
    %104 = vector.load %arg7[%c2_84, %c1_85, %c0_86, %c0_87] : memref<4x4x8x8xf32, #tpu.memory_space<vmem>>, vector<1x1x8x8xf32>
    %105 = vector.shape_cast %104 : vector<1x1x8x8xf32> to vector<8x8xf32>
    %106 = arith.mulf %14, %103 : vector<8x8xf32>
    %107 = arith.addf %97, %106 : vector<8x8xf32>
    %108 = arith.mulf %15, %105 : vector<8x8xf32>
    %109 = arith.subf %107, %108 : vector<8x8xf32>
    %110 = arith.mulf %14, %105 : vector<8x8xf32>
    %111 = arith.addf %101, %110 : vector<8x8xf32>
    %112 = arith.mulf %15, %103 : vector<8x8xf32>
    %113 = arith.addf %111, %112 : vector<8x8xf32>
    %c3_88 = arith.constant 3 : index
    %c1_89 = arith.constant 1 : index
    %c0_90 = arith.constant 0 : index
    %c0_91 = arith.constant 0 : index
    %114 = vector.load %arg6[%c3_88, %c1_89, %c0_90, %c0_91] : memref<4x4x8x8xf32, #tpu.memory_space<vmem>>, vector<1x1x8x8xf32>
    %115 = vector.shape_cast %114 : vector<1x1x8x8xf32> to vector<8x8xf32>
    %c3_92 = arith.constant 3 : index
    %c1_93 = arith.constant 1 : index
    %c0_94 = arith.constant 0 : index
    %c0_95 = arith.constant 0 : index
    %116 = vector.load %arg7[%c3_92, %c1_93, %c0_94, %c0_95] : memref<4x4x8x8xf32, #tpu.memory_space<vmem>>, vector<1x1x8x8xf32>
    %117 = vector.shape_cast %116 : vector<1x1x8x8xf32> to vector<8x8xf32>
    %118 = arith.mulf %18, %115 : vector<8x8xf32>
    %119 = arith.addf %109, %118 : vector<8x8xf32>
    %120 = arith.mulf %19, %117 : vector<8x8xf32>
    %121 = arith.subf %119, %120 : vector<8x8xf32>
    %122 = arith.mulf %18, %117 : vector<8x8xf32>
    %123 = arith.addf %113, %122 : vector<8x8xf32>
    %124 = arith.mulf %19, %115 : vector<8x8xf32>
    %125 = arith.addf %123, %124 : vector<8x8xf32>
    %cst_96 = arith.constant dense<0.000000e+00> : vector<8x16xf32>
    %126 = tpu.matmul %121, %2, %cst_96 {dimension_numbers = #tpu.dot_dimension_numbers<[1], [0], [0], [1], [0, 0, 1, 1], [], []>} : vector<8x8xf32>, vector<8x16xf32>, vector<8x16xf32> -> vector<8x16xf32>
    %cst_97 = arith.constant dense<0.000000e+00> : vector<8x16xf32>
    %127 = tpu.matmul %125, %3, %cst_97 {dimension_numbers = #tpu.dot_dimension_numbers<[1], [0], [0], [1], [0, 0, 1, 1], [], []>} : vector<8x8xf32>, vector<8x16xf32>, vector<8x16xf32> -> vector<8x16xf32>
    %128 = arith.addf %126, %127 : vector<8x16xf32>
    %c1_98 = arith.constant 1 : index
    %c0_99 = arith.constant 0 : index
    %c0_100 = arith.constant 0 : index
    %129 = vector.load %arg8[%c1_98, %c0_99, %c0_100] : memref<4x8x16xf32, #tpu.memory_space<vmem>>, vector<1x8x16xf32>
    %130 = vector.shape_cast %129 : vector<1x8x16xf32> to vector<8x16xf32>
    %131 = vector.shape_cast %128 : vector<8x16xf32> to vector<1x8x16xf32>
    tpu.vector_store %arg8[%c1_98, %c0_99, %c0_100], %131 {strides = array<i32>} : memref<4x8x16xf32, #tpu.memory_space<vmem>>, vector<1x8x16xf32>,
    %cst_101 = arith.constant 0.000000e+00 : f32
    %132 = vector.broadcast %cst_101 : f32 to vector<8x8xf32>
    %cst_102 = arith.constant 0.000000e+00 : f32
    %133 = vector.broadcast %cst_102 : f32 to vector<8x8xf32>
    %c0_103 = arith.constant 0 : index
    %c2_104 = arith.constant 2 : index
    %c0_105 = arith.constant 0 : index
    %c0_106 = arith.constant 0 : index
    %134 = vector.load %arg6[%c0_103, %c2_104, %c0_105, %c0_106] : memref<4x4x8x8xf32, #tpu.memory_space<vmem>>, vector<1x1x8x8xf32>
    %135 = vector.shape_cast %134 : vector<1x1x8x8xf32> to vector<8x8xf32>
    %c0_107 = arith.constant 0 : index
    %c2_108 = arith.constant 2 : index
    %c0_109 = arith.constant 0 : index
    %c0_110 = arith.constant 0 : index
    %136 = vector.load %arg7[%c0_107, %c2_108, %c0_109, %c0_110] : memref<4x4x8x8xf32, #tpu.memory_space<vmem>>, vector<1x1x8x8xf32>
    %137 = vector.shape_cast %136 : vector<1x1x8x8xf32> to vector<8x8xf32>
    %138 = arith.mulf %6, %135 : vector<8x8xf32>
    %139 = arith.addf %132, %138 : vector<8x8xf32>
    %140 = arith.mulf %7, %137 : vector<8x8xf32>
    %141 = arith.subf %139, %140 : vector<8x8xf32>
    %142 = arith.mulf %6, %137 : vector<8x8xf32>
    %143 = arith.addf %133, %142 : vector<8x8xf32>
    %144 = arith.mulf %7, %135 : vector<8x8xf32>
    %145 = arith.addf %143, %144 : vector<8x8xf32>
    %c1_111 = arith.constant 1 : index
    %c2_112 = arith.constant 2 : index
    %c0_113 = arith.constant 0 : index
    %c0_114 = arith.constant 0 : index
    %146 = vector.load %arg6[%c1_111, %c2_112, %c0_113, %c0_114] : memref<4x4x8x8xf32, #tpu.memory_space<vmem>>, vector<1x1x8x8xf32>
    %147 = vector.shape_cast %146 : vector<1x1x8x8xf32> to vector<8x8xf32>
    %c1_115 = arith.constant 1 : index
    %c2_116 = arith.constant 2 : index
    %c0_117 = arith.constant 0 : index
    %c0_118 = arith.constant 0 : index
    %148 = vector.load %arg7[%c1_115, %c2_116, %c0_117, %c0_118] : memref<4x4x8x8xf32, #tpu.memory_space<vmem>>, vector<1x1x8x8xf32>
    %149 = vector.shape_cast %148 : vector<1x1x8x8xf32> to vector<8x8xf32>
    %150 = arith.mulf %10, %147 : vector<8x8xf32>
    %151 = arith.addf %141, %150 : vector<8x8xf32>
    %152 = arith.mulf %11, %149 : vector<8x8xf32>
    %153 = arith.subf %151, %152 : vector<8x8xf32>
    %154 = arith.mulf %10, %149 : vector<8x8xf32>
    %155 = arith.addf %145, %154 : vector<8x8xf32>
    %156 = arith.mulf %11, %147 : vector<8x8xf32>
    %157 = arith.addf %155, %156 : vector<8x8xf32>
    %c2_119 = arith.constant 2 : index
    %c2_120 = arith.constant 2 : index
    %c0_121 = arith.constant 0 : index
    %c0_122 = arith.constant 0 : index
    %158 = vector.load %arg6[%c2_119, %c2_120, %c0_121, %c0_122] : memref<4x4x8x8xf32, #tpu.memory_space<vmem>>, vector<1x1x8x8xf32>
    %159 = vector.shape_cast %158 : vector<1x1x8x8xf32> to vector<8x8xf32>
    %c2_123 = arith.constant 2 : index
    %c2_124 = arith.constant 2 : index
    %c0_125 = arith.constant 0 : index
    %c0_126 = arith.constant 0 : index
    %160 = vector.load %arg7[%c2_123, %c2_124, %c0_125, %c0_126] : memref<4x4x8x8xf32, #tpu.memory_space<vmem>>, vector<1x1x8x8xf32>
    %161 = vector.shape_cast %160 : vector<1x1x8x8xf32> to vector<8x8xf32>
    %162 = arith.mulf %14, %159 : vector<8x8xf32>
    %163 = arith.addf %153, %162 : vector<8x8xf32>
    %164 = arith.mulf %15, %161 : vector<8x8xf32>
    %165 = arith.subf %163, %164 : vector<8x8xf32>
    %166 = arith.mulf %14, %161 : vector<8x8xf32>
    %167 = arith.addf %157, %166 : vector<8x8xf32>
    %168 = arith.mulf %15, %159 : vector<8x8xf32>
    %169 = arith.addf %167, %168 : vector<8x8xf32>
    %c3_127 = arith.constant 3 : index
    %c2_128 = arith.constant 2 : index
    %c0_129 = arith.constant 0 : index
    %c0_130 = arith.constant 0 : index
    %170 = vector.load %arg6[%c3_127, %c2_128, %c0_129, %c0_130] : memref<4x4x8x8xf32, #tpu.memory_space<vmem>>, vector<1x1x8x8xf32>
    %171 = vector.shape_cast %170 : vector<1x1x8x8xf32> to vector<8x8xf32>
    %c3_131 = arith.constant 3 : index
    %c2_132 = arith.constant 2 : index
    %c0_133 = arith.constant 0 : index
    %c0_134 = arith.constant 0 : index
    %172 = vector.load %arg7[%c3_131, %c2_132, %c0_133, %c0_134] : memref<4x4x8x8xf32, #tpu.memory_space<vmem>>, vector<1x1x8x8xf32>
    %173 = vector.shape_cast %172 : vector<1x1x8x8xf32> to vector<8x8xf32>
    %174 = arith.mulf %18, %171 : vector<8x8xf32>
    %175 = arith.addf %165, %174 : vector<8x8xf32>
    %176 = arith.mulf %19, %173 : vector<8x8xf32>
    %177 = arith.subf %175, %176 : vector<8x8xf32>
    %178 = arith.mulf %18, %173 : vector<8x8xf32>
    %179 = arith.addf %169, %178 : vector<8x8xf32>
    %180 = arith.mulf %19, %171 : vector<8x8xf32>
    %181 = arith.addf %179, %180 : vector<8x8xf32>
    %cst_135 = arith.constant dense<0.000000e+00> : vector<8x16xf32>
    %182 = tpu.matmul %177, %2, %cst_135 {dimension_numbers = #tpu.dot_dimension_numbers<[1], [0], [0], [1], [0, 0, 1, 1], [], []>} : vector<8x8xf32>, vector<8x16xf32>, vector<8x16xf32> -> vector<8x16xf32>
    %cst_136 = arith.constant dense<0.000000e+00> : vector<8x16xf32>
    %183 = tpu.matmul %181, %3, %cst_136 {dimension_numbers = #tpu.dot_dimension_numbers<[1], [0], [0], [1], [0, 0, 1, 1], [], []>} : vector<8x8xf32>, vector<8x16xf32>, vector<8x16xf32> -> vector<8x16xf32>
    %184 = arith.addf %182, %183 : vector<8x16xf32>
    %c2_137 = arith.constant 2 : index
    %c0_138 = arith.constant 0 : index
    %c0_139 = arith.constant 0 : index
    %185 = vector.load %arg8[%c2_137, %c0_138, %c0_139] : memref<4x8x16xf32, #tpu.memory_space<vmem>>, vector<1x8x16xf32>
    %186 = vector.shape_cast %185 : vector<1x8x16xf32> to vector<8x16xf32>
    %187 = vector.shape_cast %184 : vector<8x16xf32> to vector<1x8x16xf32>
    tpu.vector_store %arg8[%c2_137, %c0_138, %c0_139], %187 {strides = array<i32>} : memref<4x8x16xf32, #tpu.memory_space<vmem>>, vector<1x8x16xf32>,
    %cst_140 = arith.constant 0.000000e+00 : f32
    %188 = vector.broadcast %cst_140 : f32 to vector<8x8xf32>
    %cst_141 = arith.constant 0.000000e+00 : f32
    %189 = vector.broadcast %cst_141 : f32 to vector<8x8xf32>
    %c0_142 = arith.constant 0 : index
    %c3_143 = arith.constant 3 : index
    %c0_144 = arith.constant 0 : index
    %c0_145 = arith.constant 0 : index
    %190 = vector.load %arg6[%c0_142, %c3_143, %c0_144, %c0_145] : memref<4x4x8x8xf32, #tpu.memory_space<vmem>>, vector<1x1x8x8xf32>
    %191 = vector.shape_cast %190 : vector<1x1x8x8xf32> to vector<8x8xf32>
    %c0_146 = arith.constant 0 : index
    %c3_147 = arith.constant 3 : index
    %c0_148 = arith.constant 0 : index
    %c0_149 = arith.constant 0 : index
    %192 = vector.load %arg7[%c0_146, %c3_147, %c0_148, %c0_149] : memref<4x4x8x8xf32, #tpu.memory_space<vmem>>, vector<1x1x8x8xf32>
    %193 = vector.shape_cast %192 : vector<1x1x8x8xf32> to vector<8x8xf32>
    %194 = arith.mulf %6, %191 : vector<8x8xf32>
    %195 = arith.addf %188, %194 : vector<8x8xf32>
    %196 = arith.mulf %7, %193 : vector<8x8xf32>
    %197 = arith.subf %195, %196 : vector<8x8xf32>
    %198 = arith.mulf %6, %193 : vector<8x8xf32>
    %199 = arith.addf %189, %198 : vector<8x8xf32>
    %200 = arith.mulf %7, %191 : vector<8x8xf32>
    %201 = arith.addf %199, %200 : vector<8x8xf32>
    %c1_150 = arith.constant 1 : index
    %c3_151 = arith.constant 3 : index
    %c0_152 = arith.constant 0 : index
    %c0_153 = arith.constant 0 : index
    %202 = vector.load %arg6[%c1_150, %c3_151, %c0_152, %c0_153] : memref<4x4x8x8xf32, #tpu.memory_space<vmem>>, vector<1x1x8x8xf32>
    %203 = vector.shape_cast %202 : vector<1x1x8x8xf32> to vector<8x8xf32>
    %c1_154 = arith.constant 1 : index
    %c3_155 = arith.constant 3 : index
    %c0_156 = arith.constant 0 : index
    %c0_157 = arith.constant 0 : index
    %204 = vector.load %arg7[%c1_154, %c3_155, %c0_156, %c0_157] : memref<4x4x8x8xf32, #tpu.memory_space<vmem>>, vector<1x1x8x8xf32>
    %205 = vector.shape_cast %204 : vector<1x1x8x8xf32> to vector<8x8xf32>
    %206 = arith.mulf %10, %203 : vector<8x8xf32>
    %207 = arith.addf %197, %206 : vector<8x8xf32>
    %208 = arith.mulf %11, %205 : vector<8x8xf32>
    %209 = arith.subf %207, %208 : vector<8x8xf32>
    %210 = arith.mulf %10, %205 : vector<8x8xf32>
    %211 = arith.addf %201, %210 : vector<8x8xf32>
    %212 = arith.mulf %11, %203 : vector<8x8xf32>
    %213 = arith.addf %211, %212 : vector<8x8xf32>
    %c2_158 = arith.constant 2 : index
    %c3_159 = arith.constant 3 : index
    %c0_160 = arith.constant 0 : index
    %c0_161 = arith.constant 0 : index
    %214 = vector.load %arg6[%c2_158, %c3_159, %c0_160, %c0_161] : memref<4x4x8x8xf32, #tpu.memory_space<vmem>>, vector<1x1x8x8xf32>
    %215 = vector.shape_cast %214 : vector<1x1x8x8xf32> to vector<8x8xf32>
    %c2_162 = arith.constant 2 : index
    %c3_163 = arith.constant 3 : index
    %c0_164 = arith.constant 0 : index
    %c0_165 = arith.constant 0 : index
    %216 = vector.load %arg7[%c2_162, %c3_163, %c0_164, %c0_165] : memref<4x4x8x8xf32, #tpu.memory_space<vmem>>, vector<1x1x8x8xf32>
    %217 = vector.shape_cast %216 : vector<1x1x8x8xf32> to vector<8x8xf32>
    %218 = arith.mulf %14, %215 : vector<8x8xf32>
    %219 = arith.addf %209, %218 : vector<8x8xf32>
    %220 = arith.mulf %15, %217 : vector<8x8xf32>
    %221 = arith.subf %219, %220 : vector<8x8xf32>
    %222 = arith.mulf %14, %217 : vector<8x8xf32>
    %223 = arith.addf %213, %222 : vector<8x8xf32>
    %224 = arith.mulf %15, %215 : vector<8x8xf32>
    %225 = arith.addf %223, %224 : vector<8x8xf32>
    %c3_166 = arith.constant 3 : index
    %c3_167 = arith.constant 3 : index
    %c0_168 = arith.constant 0 : index
    %c0_169 = arith.constant 0 : index
    %226 = vector.load %arg6[%c3_166, %c3_167, %c0_168, %c0_169] : memref<4x4x8x8xf32, #tpu.memory_space<vmem>>, vector<1x1x8x8xf32>
    %227 = vector.shape_cast %226 : vector<1x1x8x8xf32> to vector<8x8xf32>
    %c3_170 = arith.constant 3 : index
    %c3_171 = arith.constant 3 : index
    %c0_172 = arith.constant 0 : index
    %c0_173 = arith.constant 0 : index
    %228 = vector.load %arg7[%c3_170, %c3_171, %c0_172, %c0_173] : memref<4x4x8x8xf32, #tpu.memory_space<vmem>>, vector<1x1x8x8xf32>
    %229 = vector.shape_cast %228 : vector<1x1x8x8xf32> to vector<8x8xf32>
    %230 = arith.mulf %18, %227 : vector<8x8xf32>
    %231 = arith.addf %221, %230 : vector<8x8xf32>
    %232 = arith.mulf %19, %229 : vector<8x8xf32>
    %233 = arith.subf %231, %232 : vector<8x8xf32>
    %234 = arith.mulf %18, %229 : vector<8x8xf32>
    %235 = arith.addf %225, %234 : vector<8x8xf32>
    %236 = arith.mulf %19, %227 : vector<8x8xf32>
    %237 = arith.addf %235, %236 : vector<8x8xf32>
    %cst_174 = arith.constant dense<0.000000e+00> : vector<8x16xf32>
    %238 = tpu.matmul %233, %2, %cst_174 {dimension_numbers = #tpu.dot_dimension_numbers<[1], [0], [0], [1], [0, 0, 1, 1], [], []>} : vector<8x8xf32>, vector<8x16xf32>, vector<8x16xf32> -> vector<8x16xf32>
    %cst_175 = arith.constant dense<0.000000e+00> : vector<8x16xf32>
    %239 = tpu.matmul %237, %3, %cst_175 {dimension_numbers = #tpu.dot_dimension_numbers<[1], [0], [0], [1], [0, 0, 1, 1], [], []>} : vector<8x8xf32>, vector<8x16xf32>, vector<8x16xf32> -> vector<8x16xf32>
    %240 = arith.addf %238, %239 : vector<8x16xf32>
    %c3_176 = arith.constant 3 : index
    %c0_177 = arith.constant 0 : index
    %c0_178 = arith.constant 0 : index
    %241 = vector.load %arg8[%c3_176, %c0_177, %c0_178] : memref<4x8x16xf32, #tpu.memory_space<vmem>>, vector<1x8x16xf32>
    %242 = vector.shape_cast %241 : vector<1x8x16xf32> to vector<8x16xf32>
    %243 = vector.shape_cast %240 : vector<8x16xf32> to vector<1x8x16xf32>
    tpu.vector_store %arg8[%c3_176, %c0_177, %c0_178], %243 {strides = array<i32>} : memref<4x8x16xf32, #tpu.memory_space<vmem>>, vector<1x8x16xf32>,
    return
  }
  func.func @transform_0(%arg0: i32) -> (i32, i32, i32) {
    %c0_i32 = arith.constant 0 : i32
    %c0_i32_0 = arith.constant 0 : i32
    %c0_i32_1 = arith.constant 0 : i32
    return %c0_i32, %arg0, %c0_i32_0 : i32, i32, i32
  }
  func.func @transform_1(%arg0: i32) -> (i32, i32) {
    %c0_i32 = arith.constant 0 : i32
    %c0_i32_0 = arith.constant 0 : i32
    %c0_i32_1 = arith.constant 0 : i32
    return %c0_i32, %c0_i32_0 : i32, i32
  }
  func.func @transform_2(%arg0: i32) -> (i32, i32) {
    %c0_i32 = arith.constant 0 : i32
    %c0_i32_0 = arith.constant 0 : i32
    %c0_i32_1 = arith.constant 0 : i32
    return %c0_i32, %c0_i32_0 : i32, i32
  }
  func.func @transform_3(%arg0: i32) -> (i32, i32) {
    %c0_i32 = arith.constant 0 : i32
    %c0_i32_0 = arith.constant 0 : i32
    %c0_i32_1 = arith.constant 0 : i32
    return %c0_i32, %c0_i32_0 : i32, i32
  }
  func.func @transform_4(%arg0: i32) -> (i32, i32) {
    %c0_i32 = arith.constant 0 : i32
    %c0_i32_0 = arith.constant 0 : i32
    %c0_i32_1 = arith.constant 0 : i32
    return %c0_i32, %c0_i32_0 : i32, i32
  }
  func.func @transform_5(%arg0: i32) -> (i32, i32, i32, i32) {
    %c0_i32 = arith.constant 0 : i32
    %c0_i32_0 = arith.constant 0 : i32
    %c0_i32_1 = arith.constant 0 : i32
    %c0_i32_2 = arith.constant 0 : i32
    return %c0_i32, %c0_i32_0, %arg0, %c0_i32_1 : i32, i32, i32, i32
  }
  func.func @transform_6(%arg0: i32) -> (i32, i32, i32, i32) {
    %c0_i32 = arith.constant 0 : i32
    %c0_i32_0 = arith.constant 0 : i32
    %c0_i32_1 = arith.constant 0 : i32
    %c0_i32_2 = arith.constant 0 : i32
    return %c0_i32, %c0_i32_0, %arg0, %c0_i32_1 : i32, i32, i32, i32
  }
  func.func @transform_7(%arg0: i32) -> (i32, i32, i32) {
    %c0_i32 = arith.constant 0 : i32
    %c0_i32_0 = arith.constant 0 : i32
    %c0_i32_1 = arith.constant 0 : i32
    return %c0_i32, %arg0, %c0_i32_0 : i32, i32, i32
  }
}

module attributes {stable_mosaic.version = 11 : i64} {
  func.func @_matmul_bias_kernel(%arg0: i32, %arg1: memref<32x64xbf16, #tpu.memory_space<vmem>>, %arg2: memref<64x32xbf16, #tpu.memory_space<vmem>>, %arg3: memref<1x32xf32, #tpu.memory_space<vmem>>, %arg4: memref<32x32xf32, #tpu.memory_space<vmem>>) attributes {dimension_semantics = [#tpu.dimension_semantics<parallel>], iteration_bounds = array<i64: 1>, scalar_prefetch = 0 : i64, scratch_operands = 0 : i64, tpu.core_type = #tpu.core_type<tc>, window_params = [{transform_indices = @transform_0, window_bounds = array<i64: 32, 64>}, {pipeline_mode = #tpu.pipeline_mode<synchronous>, transform_indices = @transform_1, window_bounds = array<i64: 64, 32>}, {pipeline_mode = #tpu.pipeline_mode<synchronous>, transform_indices = @transform_2, window_bounds = array<i64: 1, 32>}, {transform_indices = @transform_3, window_bounds = array<i64: 32, 32>}]} {
    %c0 = arith.constant 0 : index
    %c0_0 = arith.constant 0 : index
    %0 = vector.load %arg1[%c0, %c0_0] : memref<32x64xbf16, #tpu.memory_space<vmem>>, vector<32x64xbf16>
    %c0_1 = arith.constant 0 : index
    %c0_2 = arith.constant 0 : index
    %1 = vector.load %arg2[%c0_1, %c0_2] : memref<64x32xbf16, #tpu.memory_space<vmem>>, vector<64x32xbf16>
    %cst = arith.constant dense<0.000000e+00> : vector<32x32xf32>
    %2 = tpu.matmul %0, %1, %cst {dimension_numbers = #tpu.dot_dimension_numbers<[1], [0], [0], [1], [0, 0, 1, 1], [], []>} : vector<32x64xbf16>, vector<64x32xbf16>, vector<32x32xf32> -> vector<32x32xf32>
    %c0_3 = arith.constant 0 : index
    %c0_4 = arith.constant 0 : index
    %3 = vector.load %arg3[%c0_3, %c0_4] : memref<1x32xf32, #tpu.memory_space<vmem>>, vector<1x32xf32>
    %4 = vector.broadcast %3 : vector<1x32xf32> to vector<32x32xf32>
    %5 = arith.addf %2, %4 : vector<32x32xf32>
    %c0_5 = arith.constant 0 : index
    %c0_6 = arith.constant 0 : index
    %6 = vector.load %arg4[%c0_5, %c0_6] : memref<32x32xf32, #tpu.memory_space<vmem>>, vector<32x32xf32>
    tpu.vector_store %arg4[%c0_5, %c0_6], %5 {strides = array<i32>} : memref<32x32xf32, #tpu.memory_space<vmem>>, vector<32x32xf32>,
    return
  }
  func.func @transform_0(%arg0: i32) -> (i32, i32) {
    %c0_i32 = arith.constant 0 : i32
    %c0_i32_0 = arith.constant 0 : i32
    return %arg0, %c0_i32 : i32, i32
  }
  func.func @transform_1(%arg0: i32) -> (i32, i32) {
    %c0_i32 = arith.constant 0 : i32
    %c0_i32_0 = arith.constant 0 : i32
    %c0_i32_1 = arith.constant 0 : i32
    return %c0_i32, %c0_i32_0 : i32, i32
  }
  func.func @transform_2(%arg0: i32) -> (i32, i32) {
    %c0_i32 = arith.constant 0 : i32
    %c0_i32_0 = arith.constant 0 : i32
    %c0_i32_1 = arith.constant 0 : i32
    return %c0_i32, %c0_i32_0 : i32, i32
  }
  func.func @transform_3(%arg0: i32) -> (i32, i32) {
    %c0_i32 = arith.constant 0 : i32
    %c0_i32_0 = arith.constant 0 : i32
    return %arg0, %c0_i32 : i32, i32
  }
}

module attributes {stable_mosaic.version = 11 : i64} {
  func.func @_fcross_scores_kernel(%arg0: i32, %arg1: memref<4x8x16xf32, #tpu.memory_space<vmem>>, %arg2: memref<4x8x16xf32, #tpu.memory_space<vmem>>, %arg3: memref<16x8xf32, #tpu.memory_space<vmem>>, %arg4: memref<16x8xf32, #tpu.memory_space<vmem>>, %arg5: memref<16x8xf32, #tpu.memory_space<vmem>>, %arg6: memref<16x8xf32, #tpu.memory_space<vmem>>, %arg7: memref<8x8x8xf32, #tpu.memory_space<vmem>>, %arg8: memref<8x8x8xf32, #tpu.memory_space<vmem>>) attributes {dimension_semantics = [#tpu.dimension_semantics<parallel>], iteration_bounds = array<i64: 2>, scalar_prefetch = 0 : i64, scratch_operands = 0 : i64, tpu.core_type = #tpu.core_type<tc>, window_params = [{transform_indices = @transform_0, window_bounds = array<i64: 4, 8, 16>}, {transform_indices = @transform_1, window_bounds = array<i64: 4, 8, 16>}, {pipeline_mode = #tpu.pipeline_mode<synchronous>, transform_indices = @transform_2, window_bounds = array<i64: 16, 8>}, {pipeline_mode = #tpu.pipeline_mode<synchronous>, transform_indices = @transform_3, window_bounds = array<i64: 16, 8>}, {pipeline_mode = #tpu.pipeline_mode<synchronous>, transform_indices = @transform_4, window_bounds = array<i64: 16, 8>}, {pipeline_mode = #tpu.pipeline_mode<synchronous>, transform_indices = @transform_5, window_bounds = array<i64: 16, 8>}, {transform_indices = @transform_6, window_bounds = array<i64: 8, 8, 8>}, {transform_indices = @transform_7, window_bounds = array<i64: 8, 8, 8>}]} {
    %c0 = arith.constant 0 : index
    %c0_0 = arith.constant 0 : index
    %0 = vector.load %arg3[%c0, %c0_0] : memref<16x8xf32, #tpu.memory_space<vmem>>, vector<16x8xf32>
    %c0_1 = arith.constant 0 : index
    %c0_2 = arith.constant 0 : index
    %1 = vector.load %arg4[%c0_1, %c0_2] : memref<16x8xf32, #tpu.memory_space<vmem>>, vector<16x8xf32>
    %c0_3 = arith.constant 0 : index
    %c0_4 = arith.constant 0 : index
    %2 = vector.load %arg5[%c0_3, %c0_4] : memref<16x8xf32, #tpu.memory_space<vmem>>, vector<16x8xf32>
    %c0_5 = arith.constant 0 : index
    %c0_6 = arith.constant 0 : index
    %3 = vector.load %arg6[%c0_5, %c0_6] : memref<16x8xf32, #tpu.memory_space<vmem>>, vector<16x8xf32>
    %cst = arith.constant 0.000000e+00 : f32
    %4 = vector.broadcast %cst : f32 to vector<8x8x8xf32>
    %cst_7 = arith.constant 0.000000e+00 : f32
    %5 = vector.broadcast %cst_7 : f32 to vector<8x8x8xf32>
    %c0_8 = arith.constant 0 : index
    %c0_9 = arith.constant 0 : index
    %c0_10 = arith.constant 0 : index
    %6 = vector.load %arg1[%c0_8, %c0_9, %c0_10] : memref<4x8x16xf32, #tpu.memory_space<vmem>>, vector<1x8x16xf32>
    %7 = vector.shape_cast %6 : vector<1x8x16xf32> to vector<8x16xf32>
    %c0_11 = arith.constant 0 : index
    %c0_12 = arith.constant 0 : index
    %c0_13 = arith.constant 0 : index
    %8 = vector.load %arg2[%c0_11, %c0_12, %c0_13] : memref<4x8x16xf32, #tpu.memory_space<vmem>>, vector<1x8x16xf32>
    %9 = vector.shape_cast %8 : vector<1x8x16xf32> to vector<8x16xf32>
    %cst_14 = arith.constant dense<0.000000e+00> : vector<8x8xf32>
    %10 = tpu.matmul %7, %0, %cst_14 {dimension_numbers = #tpu.dot_dimension_numbers<[1], [0], [0], [1], [0, 0, 1, 1], [], []>} : vector<8x16xf32>, vector<16x8xf32>, vector<8x8xf32> -> vector<8x8xf32>
    %11 = vector.shape_cast %10 : vector<8x8xf32> to vector<8x8x1xf32>
    %cst_15 = arith.constant dense<0.000000e+00> : vector<8x8xf32>
    %12 = tpu.matmul %7, %1, %cst_15 {dimension_numbers = #tpu.dot_dimension_numbers<[1], [0], [0], [1], [0, 0, 1, 1], [], []>} : vector<8x16xf32>, vector<16x8xf32>, vector<8x8xf32> -> vector<8x8xf32>
    %13 = vector.shape_cast %12 : vector<8x8xf32> to vector<8x8x1xf32>
    %cst_16 = arith.constant dense<0.000000e+00> : vector<8x8xf32>
    %14 = tpu.matmul %9, %2, %cst_16 {dimension_numbers = #tpu.dot_dimension_numbers<[1], [0], [0], [1], [0, 0, 1, 1], [], []>} : vector<8x16xf32>, vector<16x8xf32>, vector<8x8xf32> -> vector<8x8xf32>
    %15 = vector.shape_cast %14 : vector<8x8xf32> to vector<8x1x8xf32>
    %cst_17 = arith.constant dense<0.000000e+00> : vector<8x8xf32>
    %16 = tpu.matmul %9, %3, %cst_17 {dimension_numbers = #tpu.dot_dimension_numbers<[1], [0], [0], [1], [0, 0, 1, 1], [], []>} : vector<8x16xf32>, vector<16x8xf32>, vector<8x8xf32> -> vector<8x8xf32>
    %17 = vector.shape_cast %16 : vector<8x8xf32> to vector<8x1x8xf32>
    %18 = vector.broadcast %11 : vector<8x8x1xf32> to vector<8x8x8xf32>
    %19 = vector.broadcast %15 : vector<8x1x8xf32> to vector<8x8x8xf32>
    %20 = arith.mulf %18, %19 : vector<8x8x8xf32>
    %21 = arith.addf %4, %20 : vector<8x8x8xf32>
    %22 = vector.broadcast %13 : vector<8x8x1xf32> to vector<8x8x8xf32>
    %23 = vector.broadcast %17 : vector<8x1x8xf32> to vector<8x8x8xf32>
    %24 = arith.mulf %22, %23 : vector<8x8x8xf32>
    %25 = arith.subf %21, %24 : vector<8x8x8xf32>
    %26 = vector.broadcast %11 : vector<8x8x1xf32> to vector<8x8x8xf32>
    %27 = vector.broadcast %17 : vector<8x1x8xf32> to vector<8x8x8xf32>
    %28 = arith.mulf %26, %27 : vector<8x8x8xf32>
    %29 = arith.addf %5, %28 : vector<8x8x8xf32>
    %30 = vector.broadcast %13 : vector<8x8x1xf32> to vector<8x8x8xf32>
    %31 = vector.broadcast %15 : vector<8x1x8xf32> to vector<8x8x8xf32>
    %32 = arith.mulf %30, %31 : vector<8x8x8xf32>
    %33 = arith.addf %29, %32 : vector<8x8x8xf32>
    %c1 = arith.constant 1 : index
    %c0_18 = arith.constant 0 : index
    %c0_19 = arith.constant 0 : index
    %34 = vector.load %arg1[%c1, %c0_18, %c0_19] : memref<4x8x16xf32, #tpu.memory_space<vmem>>, vector<1x8x16xf32>
    %35 = vector.shape_cast %34 : vector<1x8x16xf32> to vector<8x16xf32>
    %c1_20 = arith.constant 1 : index
    %c0_21 = arith.constant 0 : index
    %c0_22 = arith.constant 0 : index
    %36 = vector.load %arg2[%c1_20, %c0_21, %c0_22] : memref<4x8x16xf32, #tpu.memory_space<vmem>>, vector<1x8x16xf32>
    %37 = vector.shape_cast %36 : vector<1x8x16xf32> to vector<8x16xf32>
    %cst_23 = arith.constant dense<0.000000e+00> : vector<8x8xf32>
    %38 = tpu.matmul %35, %0, %cst_23 {dimension_numbers = #tpu.dot_dimension_numbers<[1], [0], [0], [1], [0, 0, 1, 1], [], []>} : vector<8x16xf32>, vector<16x8xf32>, vector<8x8xf32> -> vector<8x8xf32>
    %39 = vector.shape_cast %38 : vector<8x8xf32> to vector<8x8x1xf32>
    %cst_24 = arith.constant dense<0.000000e+00> : vector<8x8xf32>
    %40 = tpu.matmul %35, %1, %cst_24 {dimension_numbers = #tpu.dot_dimension_numbers<[1], [0], [0], [1], [0, 0, 1, 1], [], []>} : vector<8x16xf32>, vector<16x8xf32>, vector<8x8xf32> -> vector<8x8xf32>
    %41 = vector.shape_cast %40 : vector<8x8xf32> to vector<8x8x1xf32>
    %cst_25 = arith.constant dense<0.000000e+00> : vector<8x8xf32>
    %42 = tpu.matmul %37, %2, %cst_25 {dimension_numbers = #tpu.dot_dimension_numbers<[1], [0], [0], [1], [0, 0, 1, 1], [], []>} : vector<8x16xf32>, vector<16x8xf32>, vector<8x8xf32> -> vector<8x8xf32>
    %43 = vector.shape_cast %42 : vector<8x8xf32> to vector<8x1x8xf32>
    %cst_26 = arith.constant dense<0.000000e+00> : vector<8x8xf32>
    %44 = tpu.matmul %37, %3, %cst_26 {dimension_numbers = #tpu.dot_dimension_numbers<[1], [0], [0], [1], [0, 0, 1, 1], [], []>} : vector<8x16xf32>, vector<16x8xf32>, vector<8x8xf32> -> vector<8x8xf32>
    %45 = vector.shape_cast %44 : vector<8x8xf32> to vector<8x1x8xf32>
    %46 = vector.broadcast %39 : vector<8x8x1xf32> to vector<8x8x8xf32>
    %47 = vector.broadcast %43 : vector<8x1x8xf32> to vector<8x8x8xf32>
    %48 = arith.mulf %46, %47 : vector<8x8x8xf32>
    %49 = arith.addf %25, %48 : vector<8x8x8xf32>
    %50 = vector.broadcast %41 : vector<8x8x1xf32> to vector<8x8x8xf32>
    %51 = vector.broadcast %45 : vector<8x1x8xf32> to vector<8x8x8xf32>
    %52 = arith.mulf %50, %51 : vector<8x8x8xf32>
    %53 = arith.subf %49, %52 : vector<8x8x8xf32>
    %54 = vector.broadcast %39 : vector<8x8x1xf32> to vector<8x8x8xf32>
    %55 = vector.broadcast %45 : vector<8x1x8xf32> to vector<8x8x8xf32>
    %56 = arith.mulf %54, %55 : vector<8x8x8xf32>
    %57 = arith.addf %33, %56 : vector<8x8x8xf32>
    %58 = vector.broadcast %41 : vector<8x8x1xf32> to vector<8x8x8xf32>
    %59 = vector.broadcast %43 : vector<8x1x8xf32> to vector<8x8x8xf32>
    %60 = arith.mulf %58, %59 : vector<8x8x8xf32>
    %61 = arith.addf %57, %60 : vector<8x8x8xf32>
    %c2 = arith.constant 2 : index
    %c0_27 = arith.constant 0 : index
    %c0_28 = arith.constant 0 : index
    %62 = vector.load %arg1[%c2, %c0_27, %c0_28] : memref<4x8x16xf32, #tpu.memory_space<vmem>>, vector<1x8x16xf32>
    %63 = vector.shape_cast %62 : vector<1x8x16xf32> to vector<8x16xf32>
    %c2_29 = arith.constant 2 : index
    %c0_30 = arith.constant 0 : index
    %c0_31 = arith.constant 0 : index
    %64 = vector.load %arg2[%c2_29, %c0_30, %c0_31] : memref<4x8x16xf32, #tpu.memory_space<vmem>>, vector<1x8x16xf32>
    %65 = vector.shape_cast %64 : vector<1x8x16xf32> to vector<8x16xf32>
    %cst_32 = arith.constant dense<0.000000e+00> : vector<8x8xf32>
    %66 = tpu.matmul %63, %0, %cst_32 {dimension_numbers = #tpu.dot_dimension_numbers<[1], [0], [0], [1], [0, 0, 1, 1], [], []>} : vector<8x16xf32>, vector<16x8xf32>, vector<8x8xf32> -> vector<8x8xf32>
    %67 = vector.shape_cast %66 : vector<8x8xf32> to vector<8x8x1xf32>
    %cst_33 = arith.constant dense<0.000000e+00> : vector<8x8xf32>
    %68 = tpu.matmul %63, %1, %cst_33 {dimension_numbers = #tpu.dot_dimension_numbers<[1], [0], [0], [1], [0, 0, 1, 1], [], []>} : vector<8x16xf32>, vector<16x8xf32>, vector<8x8xf32> -> vector<8x8xf32>
    %69 = vector.shape_cast %68 : vector<8x8xf32> to vector<8x8x1xf32>
    %cst_34 = arith.constant dense<0.000000e+00> : vector<8x8xf32>
    %70 = tpu.matmul %65, %2, %cst_34 {dimension_numbers = #tpu.dot_dimension_numbers<[1], [0], [0], [1], [0, 0, 1, 1], [], []>} : vector<8x16xf32>, vector<16x8xf32>, vector<8x8xf32> -> vector<8x8xf32>
    %71 = vector.shape_cast %70 : vector<8x8xf32> to vector<8x1x8xf32>
    %cst_35 = arith.constant dense<0.000000e+00> : vector<8x8xf32>
    %72 = tpu.matmul %65, %3, %cst_35 {dimension_numbers = #tpu.dot_dimension_numbers<[1], [0], [0], [1], [0, 0, 1, 1], [], []>} : vector<8x16xf32>, vector<16x8xf32>, vector<8x8xf32> -> vector<8x8xf32>
    %73 = vector.shape_cast %72 : vector<8x8xf32> to vector<8x1x8xf32>
    %74 = vector.broadcast %67 : vector<8x8x1xf32> to vector<8x8x8xf32>
    %75 = vector.broadcast %71 : vector<8x1x8xf32> to vector<8x8x8xf32>
    %76 = arith.mulf %74, %75 : vector<8x8x8xf32>
    %77 = arith.addf %53, %76 : vector<8x8x8xf32>
    %78 = vector.broadcast %69 : vector<8x8x1xf32> to vector<8x8x8xf32>
    %79 = vector.broadcast %73 : vector<8x1x8xf32> to vector<8x8x8xf32>
    %80 = arith.mulf %78, %79 : vector<8x8x8xf32>
    %81 = arith.subf %77, %80 : vector<8x8x8xf32>
    %82 = vector.broadcast %67 : vector<8x8x1xf32> to vector<8x8x8xf32>
    %83 = vector.broadcast %73 : vector<8x1x8xf32> to vector<8x8x8xf32>
    %84 = arith.mulf %82, %83 : vector<8x8x8xf32>
    %85 = arith.addf %61, %84 : vector<8x8x8xf32>
    %86 = vector.broadcast %69 : vector<8x8x1xf32> to vector<8x8x8xf32>
    %87 = vector.broadcast %71 : vector<8x1x8xf32> to vector<8x8x8xf32>
    %88 = arith.mulf %86, %87 : vector<8x8x8xf32>
    %89 = arith.addf %85, %88 : vector<8x8x8xf32>
    %c3 = arith.constant 3 : index
    %c0_36 = arith.constant 0 : index
    %c0_37 = arith.constant 0 : index
    %90 = vector.load %arg1[%c3, %c0_36, %c0_37] : memref<4x8x16xf32, #tpu.memory_space<vmem>>, vector<1x8x16xf32>
    %91 = vector.shape_cast %90 : vector<1x8x16xf32> to vector<8x16xf32>
    %c3_38 = arith.constant 3 : index
    %c0_39 = arith.constant 0 : index
    %c0_40 = arith.constant 0 : index
    %92 = vector.load %arg2[%c3_38, %c0_39, %c0_40] : memref<4x8x16xf32, #tpu.memory_space<vmem>>, vector<1x8x16xf32>
    %93 = vector.shape_cast %92 : vector<1x8x16xf32> to vector<8x16xf32>
    %cst_41 = arith.constant dense<0.000000e+00> : vector<8x8xf32>
    %94 = tpu.matmul %91, %0, %cst_41 {dimension_numbers = #tpu.dot_dimension_numbers<[1], [0], [0], [1], [0, 0, 1, 1], [], []>} : vector<8x16xf32>, vector<16x8xf32>, vector<8x8xf32> -> vector<8x8xf32>
    %95 = vector.shape_cast %94 : vector<8x8xf32> to vector<8x8x1xf32>
    %cst_42 = arith.constant dense<0.000000e+00> : vector<8x8xf32>
    %96 = tpu.matmul %91, %1, %cst_42 {dimension_numbers = #tpu.dot_dimension_numbers<[1], [0], [0], [1], [0, 0, 1, 1], [], []>} : vector<8x16xf32>, vector<16x8xf32>, vector<8x8xf32> -> vector<8x8xf32>
    %97 = vector.shape_cast %96 : vector<8x8xf32> to vector<8x8x1xf32>
    %cst_43 = arith.constant dense<0.000000e+00> : vector<8x8xf32>
    %98 = tpu.matmul %93, %2, %cst_43 {dimension_numbers = #tpu.dot_dimension_numbers<[1], [0], [0], [1], [0, 0, 1, 1], [], []>} : vector<8x16xf32>, vector<16x8xf32>, vector<8x8xf32> -> vector<8x8xf32>
    %99 = vector.shape_cast %98 : vector<8x8xf32> to vector<8x1x8xf32>
    %cst_44 = arith.constant dense<0.000000e+00> : vector<8x8xf32>
    %100 = tpu.matmul %93, %3, %cst_44 {dimension_numbers = #tpu.dot_dimension_numbers<[1], [0], [0], [1], [0, 0, 1, 1], [], []>} : vector<8x16xf32>, vector<16x8xf32>, vector<8x8xf32> -> vector<8x8xf32>
    %101 = vector.shape_cast %100 : vector<8x8xf32> to vector<8x1x8xf32>
    %102 = vector.broadcast %95 : vector<8x8x1xf32> to vector<8x8x8xf32>
    %103 = vector.broadcast %99 : vector<8x1x8xf32> to vector<8x8x8xf32>
    %104 = arith.mulf %102, %103 : vector<8x8x8xf32>
    %105 = arith.addf %81, %104 : vector<8x8x8xf32>
    %106 = vector.broadcast %97 : vector<8x8x1xf32> to vector<8x8x8xf32>
    %107 = vector.broadcast %101 : vector<8x1x8xf32> to vector<8x8x8xf32>
    %108 = arith.mulf %106, %107 : vector<8x8x8xf32>
    %109 = arith.subf %105, %108 : vector<8x8x8xf32>
    %110 = vector.broadcast %95 : vector<8x8x1xf32> to vector<8x8x8xf32>
    %111 = vector.broadcast %101 : vector<8x1x8xf32> to vector<8x8x8xf32>
    %112 = arith.mulf %110, %111 : vector<8x8x8xf32>
    %113 = arith.addf %89, %112 : vector<8x8x8xf32>
    %114 = vector.broadcast %97 : vector<8x8x1xf32> to vector<8x8x8xf32>
    %115 = vector.broadcast %99 : vector<8x1x8xf32> to vector<8x8x8xf32>
    %116 = arith.mulf %114, %115 : vector<8x8x8xf32>
    %117 = arith.addf %113, %116 : vector<8x8x8xf32>
    %c0_45 = arith.constant 0 : index
    %c0_46 = arith.constant 0 : index
    %c0_47 = arith.constant 0 : index
    %118 = vector.load %arg7[%c0_45, %c0_46, %c0_47] : memref<8x8x8xf32, #tpu.memory_space<vmem>>, vector<8x8x8xf32>
    tpu.vector_store %arg7[%c0_45, %c0_46, %c0_47], %109 {strides = array<i32>} : memref<8x8x8xf32, #tpu.memory_space<vmem>>, vector<8x8x8xf32>,
    %c0_48 = arith.constant 0 : index
    %c0_49 = arith.constant 0 : index
    %c0_50 = arith.constant 0 : index
    %119 = vector.load %arg8[%c0_48, %c0_49, %c0_50] : memref<8x8x8xf32, #tpu.memory_space<vmem>>, vector<8x8x8xf32>
    tpu.vector_store %arg8[%c0_48, %c0_49, %c0_50], %117 {strides = array<i32>} : memref<8x8x8xf32, #tpu.memory_space<vmem>>, vector<8x8x8xf32>,
    return
  }
  func.func @transform_0(%arg0: i32) -> (i32, i32, i32) {
    %c0_i32 = arith.constant 0 : i32
    %c0_i32_0 = arith.constant 0 : i32
    %c0_i32_1 = arith.constant 0 : i32
    return %c0_i32, %arg0, %c0_i32_0 : i32, i32, i32
  }
  func.func @transform_1(%arg0: i32) -> (i32, i32, i32) {
    %c0_i32 = arith.constant 0 : i32
    %c0_i32_0 = arith.constant 0 : i32
    %c0_i32_1 = arith.constant 0 : i32
    return %c0_i32, %arg0, %c0_i32_0 : i32, i32, i32
  }
  func.func @transform_2(%arg0: i32) -> (i32, i32) {
    %c0_i32 = arith.constant 0 : i32
    %c0_i32_0 = arith.constant 0 : i32
    %c0_i32_1 = arith.constant 0 : i32
    return %c0_i32, %c0_i32_0 : i32, i32
  }
  func.func @transform_3(%arg0: i32) -> (i32, i32) {
    %c0_i32 = arith.constant 0 : i32
    %c0_i32_0 = arith.constant 0 : i32
    %c0_i32_1 = arith.constant 0 : i32
    return %c0_i32, %c0_i32_0 : i32, i32
  }
  func.func @transform_4(%arg0: i32) -> (i32, i32) {
    %c0_i32 = arith.constant 0 : i32
    %c0_i32_0 = arith.constant 0 : i32
    %c0_i32_1 = arith.constant 0 : i32
    return %c0_i32, %c0_i32_0 : i32, i32
  }
  func.func @transform_5(%arg0: i32) -> (i32, i32) {
    %c0_i32 = arith.constant 0 : i32
    %c0_i32_0 = arith.constant 0 : i32
    %c0_i32_1 = arith.constant 0 : i32
    return %c0_i32, %c0_i32_0 : i32, i32
  }
  func.func @transform_6(%arg0: i32) -> (i32, i32, i32) {
    %c0_i32 = arith.constant 0 : i32
    %c0_i32_0 = arith.constant 0 : i32
    %c0_i32_1 = arith.constant 0 : i32
    return %arg0, %c0_i32, %c0_i32_0 : i32, i32, i32
  }
  func.func @transform_7(%arg0: i32) -> (i32, i32, i32) {
    %c0_i32 = arith.constant 0 : i32
    %c0_i32_0 = arith.constant 0 : i32
    %c0_i32_1 = arith.constant 0 : i32
    return %arg0, %c0_i32, %c0_i32_0 : i32, i32, i32
  }
}

module attributes {stable_mosaic.version = 11 : i64} {
  func.func @_fcross_out_kernel(%arg0: i32, %arg1: memref<4x8x16xf32, #tpu.memory_space<vmem>>, %arg2: memref<8x8x8xf32, #tpu.memory_space<vmem>>, %arg3: memref<8x8x8xf32, #tpu.memory_space<vmem>>, %arg4: memref<16x8xf32, #tpu.memory_space<vmem>>, %arg5: memref<16x8xf32, #tpu.memory_space<vmem>>, %arg6: memref<4x4x8x8xf32, #tpu.memory_space<vmem>>, %arg7: memref<4x4x8x8xf32, #tpu.memory_space<vmem>>, %arg8: memref<8x16xf32, #tpu.memory_space<vmem>>, %arg9: memref<8x16xf32, #tpu.memory_space<vmem>>, %arg10: memref<4x8x16xf32, #tpu.memory_space<vmem>>) attributes {dimension_semantics = [#tpu.dimension_semantics<parallel>], iteration_bounds = array<i64: 2>, scalar_prefetch = 0 : i64, scratch_operands = 0 : i64, tpu.core_type = #tpu.core_type<tc>, window_params = [{transform_indices = @transform_0, window_bounds = array<i64: 4, 8, 16>}, {transform_indices = @transform_1, window_bounds = array<i64: 8, 8, 8>}, {transform_indices = @transform_2, window_bounds = array<i64: 8, 8, 8>}, {pipeline_mode = #tpu.pipeline_mode<synchronous>, transform_indices = @transform_3, window_bounds = array<i64: 16, 8>}, {pipeline_mode = #tpu.pipeline_mode<synchronous>, transform_indices = @transform_4, window_bounds = array<i64: 16, 8>}, {transform_indices = @transform_5, window_bounds = array<i64: 4, 4, 8, 8>}, {transform_indices = @transform_6, window_bounds = array<i64: 4, 4, 8, 8>}, {pipeline_mode = #tpu.pipeline_mode<synchronous>, transform_indices = @transform_7, window_bounds = array<i64: 8, 16>}, {pipeline_mode = #tpu.pipeline_mode<synchronous>, transform_indices = @transform_8, window_bounds = array<i64: 8, 16>}, {transform_indices = @transform_9, window_bounds = array<i64: 4, 8, 16>}]} {
    %c0 = arith.constant 0 : index
    %c0_0 = arith.constant 0 : index
    %0 = vector.load %arg4[%c0, %c0_0] : memref<16x8xf32, #tpu.memory_space<vmem>>, vector<16x8xf32>
    %c0_1 = arith.constant 0 : index
    %c0_2 = arith.constant 0 : index
    %1 = vector.load %arg5[%c0_1, %c0_2] : memref<16x8xf32, #tpu.memory_space<vmem>>, vector<16x8xf32>
    %c0_3 = arith.constant 0 : index
    %c0_4 = arith.constant 0 : index
    %2 = vector.load %arg8[%c0_3, %c0_4] : memref<8x16xf32, #tpu.memory_space<vmem>>, vector<8x16xf32>
    %c0_5 = arith.constant 0 : index
    %c0_6 = arith.constant 0 : index
    %3 = vector.load %arg9[%c0_5, %c0_6] : memref<8x16xf32, #tpu.memory_space<vmem>>, vector<8x16xf32>
    %c0_7 = arith.constant 0 : index
    %c0_8 = arith.constant 0 : index
    %c0_9 = arith.constant 0 : index
    %4 = vector.load %arg2[%c0_7, %c0_8, %c0_9] : memref<8x8x8xf32, #tpu.memory_space<vmem>>, vector<8x8x8xf32>
    %c0_10 = arith.constant 0 : index
    %c0_11 = arith.constant 0 : index
    %c0_12 = arith.constant 0 : index
    %5 = vector.load %arg3[%c0_10, %c0_11, %c0_12] : memref<8x8x8xf32, #tpu.memory_space<vmem>>, vector<8x8x8xf32>
    %c0_13 = arith.constant 0 : index
    %c0_14 = arith.constant 0 : index
    %c0_15 = arith.constant 0 : index
    %6 = vector.load %arg1[%c0_13, %c0_14, %c0_15] : memref<4x8x16xf32, #tpu.memory_space<vmem>>, vector<1x8x16xf32>
    %7 = vector.shape_cast %6 : vector<1x8x16xf32> to vector<8x16xf32>
    %cst = arith.constant dense<0.000000e+00> : vector<8x8xf32>
    %8 = tpu.matmul %7, %0, %cst {dimension_numbers = #tpu.dot_dimension_numbers<[1], [0], [0], [1], [0, 0, 1, 1], [], []>} : vector<8x16xf32>, vector<16x8xf32>, vector<8x8xf32> -> vector<8x8xf32>
    %9 = vector.shape_cast %8 : vector<8x8xf32> to vector<8x1x8xf32>
    %cst_16 = arith.constant dense<0.000000e+00> : vector<8x8xf32>
    %10 = tpu.matmul %7, %1, %cst_16 {dimension_numbers = #tpu.dot_dimension_numbers<[1], [0], [0], [1], [0, 0, 1, 1], [], []>} : vector<8x16xf32>, vector<16x8xf32>, vector<8x8xf32> -> vector<8x8xf32>
    %11 = vector.shape_cast %10 : vector<8x8xf32> to vector<8x1x8xf32>
    %12 = vector.broadcast %9 : vector<8x1x8xf32> to vector<8x8x8xf32>
    %13 = arith.mulf %12, %4 : vector<8x8x8xf32>
    %14 = vector.broadcast %11 : vector<8x1x8xf32> to vector<8x8x8xf32>
    %15 = arith.mulf %14, %5 : vector<8x8x8xf32>
    %16 = arith.subf %13, %15 : vector<8x8x8xf32>
    %cst_17 = arith.constant dense<0.000000e+00> : vector<8x8xf32>
    %17 = vector.multi_reduction <add>, %16, %cst_17 [2] : vector<8x8x8xf32> to vector<8x8xf32>
    %18 = vector.broadcast %9 : vector<8x1x8xf32> to vector<8x8x8xf32>
    %19 = arith.mulf %18, %5 : vector<8x8x8xf32>
    %20 = vector.broadcast %11 : vector<8x1x8xf32> to vector<8x8x8xf32>
    %21 = arith.mulf %20, %4 : vector<8x8x8xf32>
    %22 = arith.addf %19, %21 : vector<8x8x8xf32>
    %cst_18 = arith.constant dense<0.000000e+00> : vector<8x8xf32>
    %23 = vector.multi_reduction <add>, %22, %cst_18 [2] : vector<8x8x8xf32> to vector<8x8xf32>
    %c1 = arith.constant 1 : index
    %c0_19 = arith.constant 0 : index
    %c0_20 = arith.constant 0 : index
    %24 = vector.load %arg1[%c1, %c0_19, %c0_20] : memref<4x8x16xf32, #tpu.memory_space<vmem>>, vector<1x8x16xf32>
    %25 = vector.shape_cast %24 : vector<1x8x16xf32> to vector<8x16xf32>
    %cst_21 = arith.constant dense<0.000000e+00> : vector<8x8xf32>
    %26 = tpu.matmul %25, %0, %cst_21 {dimension_numbers = #tpu.dot_dimension_numbers<[1], [0], [0], [1], [0, 0, 1, 1], [], []>} : vector<8x16xf32>, vector<16x8xf32>, vector<8x8xf32> -> vector<8x8xf32>
    %27 = vector.shape_cast %26 : vector<8x8xf32> to vector<8x1x8xf32>
    %cst_22 = arith.constant dense<0.000000e+00> : vector<8x8xf32>
    %28 = tpu.matmul %25, %1, %cst_22 {dimension_numbers = #tpu.dot_dimension_numbers<[1], [0], [0], [1], [0, 0, 1, 1], [], []>} : vector<8x16xf32>, vector<16x8xf32>, vector<8x8xf32> -> vector<8x8xf32>
    %29 = vector.shape_cast %28 : vector<8x8xf32> to vector<8x1x8xf32>
    %30 = vector.broadcast %27 : vector<8x1x8xf32> to vector<8x8x8xf32>
    %31 = arith.mulf %30, %4 : vector<8x8x8xf32>
    %32 = vector.broadcast %29 : vector<8x1x8xf32> to vector<8x8x8xf32>
    %33 = arith.mulf %32, %5 : vector<8x8x8xf32>
    %34 = arith.subf %31, %33 : vector<8x8x8xf32>
    %cst_23 = arith.constant dense<0.000000e+00> : vector<8x8xf32>
    %35 = vector.multi_reduction <add>, %34, %cst_23 [2] : vector<8x8x8xf32> to vector<8x8xf32>
    %36 = vector.broadcast %27 : vector<8x1x8xf32> to vector<8x8x8xf32>
    %37 = arith.mulf %36, %5 : vector<8x8x8xf32>
    %38 = vector.broadcast %29 : vector<8x1x8xf32> to vector<8x8x8xf32>
    %39 = arith.mulf %38, %4 : vector<8x8x8xf32>
    %40 = arith.addf %37, %39 : vector<8x8x8xf32>
    %cst_24 = arith.constant dense<0.000000e+00> : vector<8x8xf32>
    %41 = vector.multi_reduction <add>, %40, %cst_24 [2] : vector<8x8x8xf32> to vector<8x8xf32>
    %c2 = arith.constant 2 : index
    %c0_25 = arith.constant 0 : index
    %c0_26 = arith.constant 0 : index
    %42 = vector.load %arg1[%c2, %c0_25, %c0_26] : memref<4x8x16xf32, #tpu.memory_space<vmem>>, vector<1x8x16xf32>
    %43 = vector.shape_cast %42 : vector<1x8x16xf32> to vector<8x16xf32>
    %cst_27 = arith.constant dense<0.000000e+00> : vector<8x8xf32>
    %44 = tpu.matmul %43, %0, %cst_27 {dimension_numbers = #tpu.dot_dimension_numbers<[1], [0], [0], [1], [0, 0, 1, 1], [], []>} : vector<8x16xf32>, vector<16x8xf32>, vector<8x8xf32> -> vector<8x8xf32>
    %45 = vector.shape_cast %44 : vector<8x8xf32> to vector<8x1x8xf32>
    %cst_28 = arith.constant dense<0.000000e+00> : vector<8x8xf32>
    %46 = tpu.matmul %43, %1, %cst_28 {dimension_numbers = #tpu.dot_dimension_numbers<[1], [0], [0], [1], [0, 0, 1, 1], [], []>} : vector<8x16xf32>, vector<16x8xf32>, vector<8x8xf32> -> vector<8x8xf32>
    %47 = vector.shape_cast %46 : vector<8x8xf32> to vector<8x1x8xf32>
    %48 = vector.broadcast %45 : vector<8x1x8xf32> to vector<8x8x8xf32>
    %49 = arith.mulf %48, %4 : vector<8x8x8xf32>
    %50 = vector.broadcast %47 : vector<8x1x8xf32> to vector<8x8x8xf32>
    %51 = arith.mulf %50, %5 : vector<8x8x8xf32>
    %52 = arith.subf %49, %51 : vector<8x8x8xf32>
    %cst_29 = arith.constant dense<0.000000e+00> : vector<8x8xf32>
    %53 = vector.multi_reduction <add>, %52, %cst_29 [2] : vector<8x8x8xf32> to vector<8x8xf32>
    %54 = vector.broadcast %45 : vector<8x1x8xf32> to vector<8x8x8xf32>
    %55 = arith.mulf %54, %5 : vector<8x8x8xf32>
    %56 = vector.broadcast %47 : vector<8x1x8xf32> to vector<8x8x8xf32>
    %57 = arith.mulf %56, %4 : vector<8x8x8xf32>
    %58 = arith.addf %55, %57 : vector<8x8x8xf32>
    %cst_30 = arith.constant dense<0.000000e+00> : vector<8x8xf32>
    %59 = vector.multi_reduction <add>, %58, %cst_30 [2] : vector<8x8x8xf32> to vector<8x8xf32>
    %c3 = arith.constant 3 : index
    %c0_31 = arith.constant 0 : index
    %c0_32 = arith.constant 0 : index
    %60 = vector.load %arg1[%c3, %c0_31, %c0_32] : memref<4x8x16xf32, #tpu.memory_space<vmem>>, vector<1x8x16xf32>
    %61 = vector.shape_cast %60 : vector<1x8x16xf32> to vector<8x16xf32>
    %cst_33 = arith.constant dense<0.000000e+00> : vector<8x8xf32>
    %62 = tpu.matmul %61, %0, %cst_33 {dimension_numbers = #tpu.dot_dimension_numbers<[1], [0], [0], [1], [0, 0, 1, 1], [], []>} : vector<8x16xf32>, vector<16x8xf32>, vector<8x8xf32> -> vector<8x8xf32>
    %63 = vector.shape_cast %62 : vector<8x8xf32> to vector<8x1x8xf32>
    %cst_34 = arith.constant dense<0.000000e+00> : vector<8x8xf32>
    %64 = tpu.matmul %61, %1, %cst_34 {dimension_numbers = #tpu.dot_dimension_numbers<[1], [0], [0], [1], [0, 0, 1, 1], [], []>} : vector<8x16xf32>, vector<16x8xf32>, vector<8x8xf32> -> vector<8x8xf32>
    %65 = vector.shape_cast %64 : vector<8x8xf32> to vector<8x1x8xf32>
    %66 = vector.broadcast %63 : vector<8x1x8xf32> to vector<8x8x8xf32>
    %67 = arith.mulf %66, %4 : vector<8x8x8xf32>
    %68 = vector.broadcast %65 : vector<8x1x8xf32> to vector<8x8x8xf32>
    %69 = arith.mulf %68, %5 : vector<8x8x8xf32>
    %70 = arith.subf %67, %69 : vector<8x8x8xf32>
    %cst_35 = arith.constant dense<0.000000e+00> : vector<8x8xf32>
    %71 = vector.multi_reduction <add>, %70, %cst_35 [2] : vector<8x8x8xf32> to vector<8x8xf32>
    %72 = vector.broadcast %63 : vector<8x1x8xf32> to vector<8x8x8xf32>
    %73 = arith.mulf %72, %5 : vector<8x8x8xf32>
    %74 = vector.broadcast %65 : vector<8x1x8xf32> to vector<8x8x8xf32>
    %75 = arith.mulf %74, %4 : vector<8x8x8xf32>
    %76 = arith.addf %73, %75 : vector<8x8x8xf32>
    %cst_36 = arith.constant dense<0.000000e+00> : vector<8x8xf32>
    %77 = vector.multi_reduction <add>, %76, %cst_36 [2] : vector<8x8x8xf32> to vector<8x8xf32>
    %cst_37 = arith.constant 0.000000e+00 : f32
    %78 = vector.broadcast %cst_37 : f32 to vector<8x8xf32>
    %cst_38 = arith.constant 0.000000e+00 : f32
    %79 = vector.broadcast %cst_38 : f32 to vector<8x8xf32>
    %c0_39 = arith.constant 0 : index
    %c0_40 = arith.constant 0 : index
    %c0_41 = arith.constant 0 : index
    %c0_42 = arith.constant 0 : index
    %80 = vector.load %arg6[%c0_39, %c0_40, %c0_41, %c0_42] : memref<4x4x8x8xf32, #tpu.memory_space<vmem>>, vector<1x1x8x8xf32>
    %81 = vector.shape_cast %80 : vector<1x1x8x8xf32> to vector<8x8xf32>
    %c0_43 = arith.constant 0 : index
    %c0_44 = arith.constant 0 : index
    %c0_45 = arith.constant 0 : index
    %c0_46 = arith.constant 0 : index
    %82 = vector.load %arg7[%c0_43, %c0_44, %c0_45, %c0_46] : memref<4x4x8x8xf32, #tpu.memory_space<vmem>>, vector<1x1x8x8xf32>
    %83 = vector.shape_cast %82 : vector<1x1x8x8xf32> to vector<8x8xf32>
    %84 = arith.mulf %17, %81 : vector<8x8xf32>
    %85 = arith.addf %78, %84 : vector<8x8xf32>
    %86 = arith.mulf %23, %83 : vector<8x8xf32>
    %87 = arith.subf %85, %86 : vector<8x8xf32>
    %88 = arith.mulf %17, %83 : vector<8x8xf32>
    %89 = arith.addf %79, %88 : vector<8x8xf32>
    %90 = arith.mulf %23, %81 : vector<8x8xf32>
    %91 = arith.addf %89, %90 : vector<8x8xf32>
    %c1_47 = arith.constant 1 : index
    %c0_48 = arith.constant 0 : index
    %c0_49 = arith.constant 0 : index
    %c0_50 = arith.constant 0 : index
    %92 = vector.load %arg6[%c1_47, %c0_48, %c0_49, %c0_50] : memref<4x4x8x8xf32, #tpu.memory_space<vmem>>, vector<1x1x8x8xf32>
    %93 = vector.shape_cast %92 : vector<1x1x8x8xf32> to vector<8x8xf32>
    %c1_51 = arith.constant 1 : index
    %c0_52 = arith.constant 0 : index
    %c0_53 = arith.constant 0 : index
    %c0_54 = arith.constant 0 : index
    %94 = vector.load %arg7[%c1_51, %c0_52, %c0_53, %c0_54] : memref<4x4x8x8xf32, #tpu.memory_space<vmem>>, vector<1x1x8x8xf32>
    %95 = vector.shape_cast %94 : vector<1x1x8x8xf32> to vector<8x8xf32>
    %96 = arith.mulf %35, %93 : vector<8x8xf32>
    %97 = arith.addf %87, %96 : vector<8x8xf32>
    %98 = arith.mulf %41, %95 : vector<8x8xf32>
    %99 = arith.subf %97, %98 : vector<8x8xf32>
    %100 = arith.mulf %35, %95 : vector<8x8xf32>
    %101 = arith.addf %91, %100 : vector<8x8xf32>
    %102 = arith.mulf %41, %93 : vector<8x8xf32>
    %103 = arith.addf %101, %102 : vector<8x8xf32>
    %c2_55 = arith.constant 2 : index
    %c0_56 = arith.constant 0 : index
    %c0_57 = arith.constant 0 : index
    %c0_58 = arith.constant 0 : index
    %104 = vector.load %arg6[%c2_55, %c0_56, %c0_57, %c0_58] : memref<4x4x8x8xf32, #tpu.memory_space<vmem>>, vector<1x1x8x8xf32>
    %105 = vector.shape_cast %104 : vector<1x1x8x8xf32> to vector<8x8xf32>
    %c2_59 = arith.constant 2 : index
    %c0_60 = arith.constant 0 : index
    %c0_61 = arith.constant 0 : index
    %c0_62 = arith.constant 0 : index
    %106 = vector.load %arg7[%c2_59, %c0_60, %c0_61, %c0_62] : memref<4x4x8x8xf32, #tpu.memory_space<vmem>>, vector<1x1x8x8xf32>
    %107 = vector.shape_cast %106 : vector<1x1x8x8xf32> to vector<8x8xf32>
    %108 = arith.mulf %53, %105 : vector<8x8xf32>
    %109 = arith.addf %99, %108 : vector<8x8xf32>
    %110 = arith.mulf %59, %107 : vector<8x8xf32>
    %111 = arith.subf %109, %110 : vector<8x8xf32>
    %112 = arith.mulf %53, %107 : vector<8x8xf32>
    %113 = arith.addf %103, %112 : vector<8x8xf32>
    %114 = arith.mulf %59, %105 : vector<8x8xf32>
    %115 = arith.addf %113, %114 : vector<8x8xf32>
    %c3_63 = arith.constant 3 : index
    %c0_64 = arith.constant 0 : index
    %c0_65 = arith.constant 0 : index
    %c0_66 = arith.constant 0 : index
    %116 = vector.load %arg6[%c3_63, %c0_64, %c0_65, %c0_66] : memref<4x4x8x8xf32, #tpu.memory_space<vmem>>, vector<1x1x8x8xf32>
    %117 = vector.shape_cast %116 : vector<1x1x8x8xf32> to vector<8x8xf32>
    %c3_67 = arith.constant 3 : index
    %c0_68 = arith.constant 0 : index
    %c0_69 = arith.constant 0 : index
    %c0_70 = arith.constant 0 : index
    %118 = vector.load %arg7[%c3_67, %c0_68, %c0_69, %c0_70] : memref<4x4x8x8xf32, #tpu.memory_space<vmem>>, vector<1x1x8x8xf32>
    %119 = vector.shape_cast %118 : vector<1x1x8x8xf32> to vector<8x8xf32>
    %120 = arith.mulf %71, %117 : vector<8x8xf32>
    %121 = arith.addf %111, %120 : vector<8x8xf32>
    %122 = arith.mulf %77, %119 : vector<8x8xf32>
    %123 = arith.subf %121, %122 : vector<8x8xf32>
    %124 = arith.mulf %71, %119 : vector<8x8xf32>
    %125 = arith.addf %115, %124 : vector<8x8xf32>
    %126 = arith.mulf %77, %117 : vector<8x8xf32>
    %127 = arith.addf %125, %126 : vector<8x8xf32>
    %cst_71 = arith.constant dense<0.000000e+00> : vector<8x16xf32>
    %128 = tpu.matmul %123, %2, %cst_71 {dimension_numbers = #tpu.dot_dimension_numbers<[1], [0], [0], [1], [0, 0, 1, 1], [], []>} : vector<8x8xf32>, vector<8x16xf32>, vector<8x16xf32> -> vector<8x16xf32>
    %cst_72 = arith.constant dense<0.000000e+00> : vector<8x16xf32>
    %129 = tpu.matmul %127, %3, %cst_72 {dimension_numbers = #tpu.dot_dimension_numbers<[1], [0], [0], [1], [0, 0, 1, 1], [], []>} : vector<8x8xf32>, vector<8x16xf32>, vector<8x16xf32> -> vector<8x16xf32>
    %130 = arith.addf %128, %129 : vector<8x16xf32>
    %c0_73 = arith.constant 0 : index
    %c0_74 = arith.constant 0 : index
    %c0_75 = arith.constant 0 : index
    %131 = vector.load %arg10[%c0_73, %c0_74, %c0_75] : memref<4x8x16xf32, #tpu.memory_space<vmem>>, vector<1x8x16xf32>
    %132 = vector.shape_cast %131 : vector<1x8x16xf32> to vector<8x16xf32>
    %133 = vector.shape_cast %130 : vector<8x16xf32> to vector<1x8x16xf32>
    tpu.vector_store %arg10[%c0_73, %c0_74, %c0_75], %133 {strides = array<i32>} : memref<4x8x16xf32, #tpu.memory_space<vmem>>, vector<1x8x16xf32>,
    %cst_76 = arith.constant 0.000000e+00 : f32
    %134 = vector.broadcast %cst_76 : f32 to vector<8x8xf32>
    %cst_77 = arith.constant 0.000000e+00 : f32
    %135 = vector.broadcast %cst_77 : f32 to vector<8x8xf32>
    %c0_78 = arith.constant 0 : index
    %c1_79 = arith.constant 1 : index
    %c0_80 = arith.constant 0 : index
    %c0_81 = arith.constant 0 : index
    %136 = vector.load %arg6[%c0_78, %c1_79, %c0_80, %c0_81] : memref<4x4x8x8xf32, #tpu.memory_space<vmem>>, vector<1x1x8x8xf32>
    %137 = vector.shape_cast %136 : vector<1x1x8x8xf32> to vector<8x8xf32>
    %c0_82 = arith.constant 0 : index
    %c1_83 = arith.constant 1 : index
    %c0_84 = arith.constant 0 : index
    %c0_85 = arith.constant 0 : index
    %138 = vector.load %arg7[%c0_82, %c1_83, %c0_84, %c0_85] : memref<4x4x8x8xf32, #tpu.memory_space<vmem>>, vector<1x1x8x8xf32>
    %139 = vector.shape_cast %138 : vector<1x1x8x8xf32> to vector<8x8xf32>
    %140 = arith.mulf %17, %137 : vector<8x8xf32>
    %141 = arith.addf %134, %140 : vector<8x8xf32>
    %142 = arith.mulf %23, %139 : vector<8x8xf32>
    %143 = arith.subf %141, %142 : vector<8x8xf32>
    %144 = arith.mulf %17, %139 : vector<8x8xf32>
    %145 = arith.addf %135, %144 : vector<8x8xf32>
    %146 = arith.mulf %23, %137 : vector<8x8xf32>
    %147 = arith.addf %145, %146 : vector<8x8xf32>
    %c1_86 = arith.constant 1 : index
    %c1_87 = arith.constant 1 : index
    %c0_88 = arith.constant 0 : index
    %c0_89 = arith.constant 0 : index
    %148 = vector.load %arg6[%c1_86, %c1_87, %c0_88, %c0_89] : memref<4x4x8x8xf32, #tpu.memory_space<vmem>>, vector<1x1x8x8xf32>
    %149 = vector.shape_cast %148 : vector<1x1x8x8xf32> to vector<8x8xf32>
    %c1_90 = arith.constant 1 : index
    %c1_91 = arith.constant 1 : index
    %c0_92 = arith.constant 0 : index
    %c0_93 = arith.constant 0 : index
    %150 = vector.load %arg7[%c1_90, %c1_91, %c0_92, %c0_93] : memref<4x4x8x8xf32, #tpu.memory_space<vmem>>, vector<1x1x8x8xf32>
    %151 = vector.shape_cast %150 : vector<1x1x8x8xf32> to vector<8x8xf32>
    %152 = arith.mulf %35, %149 : vector<8x8xf32>
    %153 = arith.addf %143, %152 : vector<8x8xf32>
    %154 = arith.mulf %41, %151 : vector<8x8xf32>
    %155 = arith.subf %153, %154 : vector<8x8xf32>
    %156 = arith.mulf %35, %151 : vector<8x8xf32>
    %157 = arith.addf %147, %156 : vector<8x8xf32>
    %158 = arith.mulf %41, %149 : vector<8x8xf32>
    %159 = arith.addf %157, %158 : vector<8x8xf32>
    %c2_94 = arith.constant 2 : index
    %c1_95 = arith.constant 1 : index
    %c0_96 = arith.constant 0 : index
    %c0_97 = arith.constant 0 : index
    %160 = vector.load %arg6[%c2_94, %c1_95, %c0_96, %c0_97] : memref<4x4x8x8xf32, #tpu.memory_space<vmem>>, vector<1x1x8x8xf32>
    %161 = vector.shape_cast %160 : vector<1x1x8x8xf32> to vector<8x8xf32>
    %c2_98 = arith.constant 2 : index
    %c1_99 = arith.constant 1 : index
    %c0_100 = arith.constant 0 : index
    %c0_101 = arith.constant 0 : index
    %162 = vector.load %arg7[%c2_98, %c1_99, %c0_100, %c0_101] : memref<4x4x8x8xf32, #tpu.memory_space<vmem>>, vector<1x1x8x8xf32>
    %163 = vector.shape_cast %162 : vector<1x1x8x8xf32> to vector<8x8xf32>
    %164 = arith.mulf %53, %161 : vector<8x8xf32>
    %165 = arith.addf %155, %164 : vector<8x8xf32>
    %166 = arith.mulf %59, %163 : vector<8x8xf32>
    %167 = arith.subf %165, %166 : vector<8x8xf32>
    %168 = arith.mulf %53, %163 : vector<8x8xf32>
    %169 = arith.addf %159, %168 : vector<8x8xf32>
    %170 = arith.mulf %59, %161 : vector<8x8xf32>
    %171 = arith.addf %169, %170 : vector<8x8xf32>
    %c3_102 = arith.constant 3 : index
    %c1_103 = arith.constant 1 : index
    %c0_104 = arith.constant 0 : index
    %c0_105 = arith.constant 0 : index
    %172 = vector.load %arg6[%c3_102, %c1_103, %c0_104, %c0_105] : memref<4x4x8x8xf32, #tpu.memory_space<vmem>>, vector<1x1x8x8xf32>
    %173 = vector.shape_cast %172 : vector<1x1x8x8xf32> to vector<8x8xf32>
    %c3_106 = arith.constant 3 : index
    %c1_107 = arith.constant 1 : index
    %c0_108 = arith.constant 0 : index
    %c0_109 = arith.constant 0 : index
    %174 = vector.load %arg7[%c3_106, %c1_107, %c0_108, %c0_109] : memref<4x4x8x8xf32, #tpu.memory_space<vmem>>, vector<1x1x8x8xf32>
    %175 = vector.shape_cast %174 : vector<1x1x8x8xf32> to vector<8x8xf32>
    %176 = arith.mulf %71, %173 : vector<8x8xf32>
    %177 = arith.addf %167, %176 : vector<8x8xf32>
    %178 = arith.mulf %77, %175 : vector<8x8xf32>
    %179 = arith.subf %177, %178 : vector<8x8xf32>
    %180 = arith.mulf %71, %175 : vector<8x8xf32>
    %181 = arith.addf %171, %180 : vector<8x8xf32>
    %182 = arith.mulf %77, %173 : vector<8x8xf32>
    %183 = arith.addf %181, %182 : vector<8x8xf32>
    %cst_110 = arith.constant dense<0.000000e+00> : vector<8x16xf32>
    %184 = tpu.matmul %179, %2, %cst_110 {dimension_numbers = #tpu.dot_dimension_numbers<[1], [0], [0], [1], [0, 0, 1, 1], [], []>} : vector<8x8xf32>, vector<8x16xf32>, vector<8x16xf32> -> vector<8x16xf32>
    %cst_111 = arith.constant dense<0.000000e+00> : vector<8x16xf32>
    %185 = tpu.matmul %183, %3, %cst_111 {dimension_numbers = #tpu.dot_dimension_numbers<[1], [0], [0], [1], [0, 0, 1, 1], [], []>} : vector<8x8xf32>, vector<8x16xf32>, vector<8x16xf32> -> vector<8x16xf32>
    %186 = arith.addf %184, %185 : vector<8x16xf32>
    %c1_112 = arith.constant 1 : index
    %c0_113 = arith.constant 0 : index
    %c0_114 = arith.constant 0 : index
    %187 = vector.load %arg10[%c1_112, %c0_113, %c0_114] : memref<4x8x16xf32, #tpu.memory_space<vmem>>, vector<1x8x16xf32>
    %188 = vector.shape_cast %187 : vector<1x8x16xf32> to vector<8x16xf32>
    %189 = vector.shape_cast %186 : vector<8x16xf32> to vector<1x8x16xf32>
    tpu.vector_store %arg10[%c1_112, %c0_113, %c0_114], %189 {strides = array<i32>} : memref<4x8x16xf32, #tpu.memory_space<vmem>>, vector<1x8x16xf32>,
    %cst_115 = arith.constant 0.000000e+00 : f32
    %190 = vector.broadcast %cst_115 : f32 to vector<8x8xf32>
    %cst_116 = arith.constant 0.000000e+00 : f32
    %191 = vector.broadcast %cst_116 : f32 to vector<8x8xf32>
    %c0_117 = arith.constant 0 : index
    %c2_118 = arith.constant 2 : index
    %c0_119 = arith.constant 0 : index
    %c0_120 = arith.constant 0 : index
    %192 = vector.load %arg6[%c0_117, %c2_118, %c0_119, %c0_120] : memref<4x4x8x8xf32, #tpu.memory_space<vmem>>, vector<1x1x8x8xf32>
    %193 = vector.shape_cast %192 : vector<1x1x8x8xf32> to vector<8x8xf32>
    %c0_121 = arith.constant 0 : index
    %c2_122 = arith.constant 2 : index
    %c0_123 = arith.constant 0 : index
    %c0_124 = arith.constant 0 : index
    %194 = vector.load %arg7[%c0_121, %c2_122, %c0_123, %c0_124] : memref<4x4x8x8xf32, #tpu.memory_space<vmem>>, vector<1x1x8x8xf32>
    %195 = vector.shape_cast %194 : vector<1x1x8x8xf32> to vector<8x8xf32>
    %196 = arith.mulf %17, %193 : vector<8x8xf32>
    %197 = arith.addf %190, %196 : vector<8x8xf32>
    %198 = arith.mulf %23, %195 : vector<8x8xf32>
    %199 = arith.subf %197, %198 : vector<8x8xf32>
    %200 = arith.mulf %17, %195 : vector<8x8xf32>
    %201 = arith.addf %191, %200 : vector<8x8xf32>
    %202 = arith.mulf %23, %193 : vector<8x8xf32>
    %203 = arith.addf %201, %202 : vector<8x8xf32>
    %c1_125 = arith.constant 1 : index
    %c2_126 = arith.constant 2 : index
    %c0_127 = arith.constant 0 : index
    %c0_128 = arith.constant 0 : index
    %204 = vector.load %arg6[%c1_125, %c2_126, %c0_127, %c0_128] : memref<4x4x8x8xf32, #tpu.memory_space<vmem>>, vector<1x1x8x8xf32>
    %205 = vector.shape_cast %204 : vector<1x1x8x8xf32> to vector<8x8xf32>
    %c1_129 = arith.constant 1 : index
    %c2_130 = arith.constant 2 : index
    %c0_131 = arith.constant 0 : index
    %c0_132 = arith.constant 0 : index
    %206 = vector.load %arg7[%c1_129, %c2_130, %c0_131, %c0_132] : memref<4x4x8x8xf32, #tpu.memory_space<vmem>>, vector<1x1x8x8xf32>
    %207 = vector.shape_cast %206 : vector<1x1x8x8xf32> to vector<8x8xf32>
    %208 = arith.mulf %35, %205 : vector<8x8xf32>
    %209 = arith.addf %199, %208 : vector<8x8xf32>
    %210 = arith.mulf %41, %207 : vector<8x8xf32>
    %211 = arith.subf %209, %210 : vector<8x8xf32>
    %212 = arith.mulf %35, %207 : vector<8x8xf32>
    %213 = arith.addf %203, %212 : vector<8x8xf32>
    %214 = arith.mulf %41, %205 : vector<8x8xf32>
    %215 = arith.addf %213, %214 : vector<8x8xf32>
    %c2_133 = arith.constant 2 : index
    %c2_134 = arith.constant 2 : index
    %c0_135 = arith.constant 0 : index
    %c0_136 = arith.constant 0 : index
    %216 = vector.load %arg6[%c2_133, %c2_134, %c0_135, %c0_136] : memref<4x4x8x8xf32, #tpu.memory_space<vmem>>, vector<1x1x8x8xf32>
    %217 = vector.shape_cast %216 : vector<1x1x8x8xf32> to vector<8x8xf32>
    %c2_137 = arith.constant 2 : index
    %c2_138 = arith.constant 2 : index
    %c0_139 = arith.constant 0 : index
    %c0_140 = arith.constant 0 : index
    %218 = vector.load %arg7[%c2_137, %c2_138, %c0_139, %c0_140] : memref<4x4x8x8xf32, #tpu.memory_space<vmem>>, vector<1x1x8x8xf32>
    %219 = vector.shape_cast %218 : vector<1x1x8x8xf32> to vector<8x8xf32>
    %220 = arith.mulf %53, %217 : vector<8x8xf32>
    %221 = arith.addf %211, %220 : vector<8x8xf32>
    %222 = arith.mulf %59, %219 : vector<8x8xf32>
    %223 = arith.subf %221, %222 : vector<8x8xf32>
    %224 = arith.mulf %53, %219 : vector<8x8xf32>
    %225 = arith.addf %215, %224 : vector<8x8xf32>
    %226 = arith.mulf %59, %217 : vector<8x8xf32>
    %227 = arith.addf %225, %226 : vector<8x8xf32>
    %c3_141 = arith.constant 3 : index
    %c2_142 = arith.constant 2 : index
    %c0_143 = arith.constant 0 : index
    %c0_144 = arith.constant 0 : index
    %228 = vector.load %arg6[%c3_141, %c2_142, %c0_143, %c0_144] : memref<4x4x8x8xf32, #tpu.memory_space<vmem>>, vector<1x1x8x8xf32>
    %229 = vector.shape_cast %228 : vector<1x1x8x8xf32> to vector<8x8xf32>
    %c3_145 = arith.constant 3 : index
    %c2_146 = arith.constant 2 : index
    %c0_147 = arith.constant 0 : index
    %c0_148 = arith.constant 0 : index
    %230 = vector.load %arg7[%c3_145, %c2_146, %c0_147, %c0_148] : memref<4x4x8x8xf32, #tpu.memory_space<vmem>>, vector<1x1x8x8xf32>
    %231 = vector.shape_cast %230 : vector<1x1x8x8xf32> to vector<8x8xf32>
    %232 = arith.mulf %71, %229 : vector<8x8xf32>
    %233 = arith.addf %223, %232 : vector<8x8xf32>
    %234 = arith.mulf %77, %231 : vector<8x8xf32>
    %235 = arith.subf %233, %234 : vector<8x8xf32>
    %236 = arith.mulf %71, %231 : vector<8x8xf32>
    %237 = arith.addf %227, %236 : vector<8x8xf32>
    %238 = arith.mulf %77, %229 : vector<8x8xf32>
    %239 = arith.addf %237, %238 : vector<8x8xf32>
    %cst_149 = arith.constant dense<0.000000e+00> : vector<8x16xf32>
    %240 = tpu.matmul %235, %2, %cst_149 {dimension_numbers = #tpu.dot_dimension_numbers<[1], [0], [0], [1], [0, 0, 1, 1], [], []>} : vector<8x8xf32>, vector<8x16xf32>, vector<8x16xf32> -> vector<8x16xf32>
    %cst_150 = arith.constant dense<0.000000e+00> : vector<8x16xf32>
    %241 = tpu.matmul %239, %3, %cst_150 {dimension_numbers = #tpu.dot_dimension_numbers<[1], [0], [0], [1], [0, 0, 1, 1], [], []>} : vector<8x8xf32>, vector<8x16xf32>, vector<8x16xf32> -> vector<8x16xf32>
    %242 = arith.addf %240, %241 : vector<8x16xf32>
    %c2_151 = arith.constant 2 : index
    %c0_152 = arith.constant 0 : index
    %c0_153 = arith.constant 0 : index
    %243 = vector.load %arg10[%c2_151, %c0_152, %c0_153] : memref<4x8x16xf32, #tpu.memory_space<vmem>>, vector<1x8x16xf32>
    %244 = vector.shape_cast %243 : vector<1x8x16xf32> to vector<8x16xf32>
    %245 = vector.shape_cast %242 : vector<8x16xf32> to vector<1x8x16xf32>
    tpu.vector_store %arg10[%c2_151, %c0_152, %c0_153], %245 {strides = array<i32>} : memref<4x8x16xf32, #tpu.memory_space<vmem>>, vector<1x8x16xf32>,
    %cst_154 = arith.constant 0.000000e+00 : f32
    %246 = vector.broadcast %cst_154 : f32 to vector<8x8xf32>
    %cst_155 = arith.constant 0.000000e+00 : f32
    %247 = vector.broadcast %cst_155 : f32 to vector<8x8xf32>
    %c0_156 = arith.constant 0 : index
    %c3_157 = arith.constant 3 : index
    %c0_158 = arith.constant 0 : index
    %c0_159 = arith.constant 0 : index
    %248 = vector.load %arg6[%c0_156, %c3_157, %c0_158, %c0_159] : memref<4x4x8x8xf32, #tpu.memory_space<vmem>>, vector<1x1x8x8xf32>
    %249 = vector.shape_cast %248 : vector<1x1x8x8xf32> to vector<8x8xf32>
    %c0_160 = arith.constant 0 : index
    %c3_161 = arith.constant 3 : index
    %c0_162 = arith.constant 0 : index
    %c0_163 = arith.constant 0 : index
    %250 = vector.load %arg7[%c0_160, %c3_161, %c0_162, %c0_163] : memref<4x4x8x8xf32, #tpu.memory_space<vmem>>, vector<1x1x8x8xf32>
    %251 = vector.shape_cast %250 : vector<1x1x8x8xf32> to vector<8x8xf32>
    %252 = arith.mulf %17, %249 : vector<8x8xf32>
    %253 = arith.addf %246, %252 : vector<8x8xf32>
    %254 = arith.mulf %23, %251 : vector<8x8xf32>
    %255 = arith.subf %253, %254 : vector<8x8xf32>
    %256 = arith.mulf %17, %251 : vector<8x8xf32>
    %257 = arith.addf %247, %256 : vector<8x8xf32>
    %258 = arith.mulf %23, %249 : vector<8x8xf32>
    %259 = arith.addf %257, %258 : vector<8x8xf32>
    %c1_164 = arith.constant 1 : index
    %c3_165 = arith.constant 3 : index
    %c0_166 = arith.constant 0 : index
    %c0_167 = arith.constant 0 : index
    %260 = vector.load %arg6[%c1_164, %c3_165, %c0_166, %c0_167] : memref<4x4x8x8xf32, #tpu.memory_space<vmem>>, vector<1x1x8x8xf32>
    %261 = vector.shape_cast %260 : vector<1x1x8x8xf32> to vector<8x8xf32>
    %c1_168 = arith.constant 1 : index
    %c3_169 = arith.constant 3 : index
    %c0_170 = arith.constant 0 : index
    %c0_171 = arith.constant 0 : index
    %262 = vector.load %arg7[%c1_168, %c3_169, %c0_170, %c0_171] : memref<4x4x8x8xf32, #tpu.memory_space<vmem>>, vector<1x1x8x8xf32>
    %263 = vector.shape_cast %262 : vector<1x1x8x8xf32> to vector<8x8xf32>
    %264 = arith.mulf %35, %261 : vector<8x8xf32>
    %265 = arith.addf %255, %264 : vector<8x8xf32>
    %266 = arith.mulf %41, %263 : vector<8x8xf32>
    %267 = arith.subf %265, %266 : vector<8x8xf32>
    %268 = arith.mulf %35, %263 : vector<8x8xf32>
    %269 = arith.addf %259, %268 : vector<8x8xf32>
    %270 = arith.mulf %41, %261 : vector<8x8xf32>
    %271 = arith.addf %269, %270 : vector<8x8xf32>
    %c2_172 = arith.constant 2 : index
    %c3_173 = arith.constant 3 : index
    %c0_174 = arith.constant 0 : index
    %c0_175 = arith.constant 0 : index
    %272 = vector.load %arg6[%c2_172, %c3_173, %c0_174, %c0_175] : memref<4x4x8x8xf32, #tpu.memory_space<vmem>>, vector<1x1x8x8xf32>
    %273 = vector.shape_cast %272 : vector<1x1x8x8xf32> to vector<8x8xf32>
    %c2_176 = arith.constant 2 : index
    %c3_177 = arith.constant 3 : index
    %c0_178 = arith.constant 0 : index
    %c0_179 = arith.constant 0 : index
    %274 = vector.load %arg7[%c2_176, %c3_177, %c0_178, %c0_179] : memref<4x4x8x8xf32, #tpu.memory_space<vmem>>, vector<1x1x8x8xf32>
    %275 = vector.shape_cast %274 : vector<1x1x8x8xf32> to vector<8x8xf32>
    %276 = arith.mulf %53, %273 : vector<8x8xf32>
    %277 = arith.addf %267, %276 : vector<8x8xf32>
    %278 = arith.mulf %59, %275 : vector<8x8xf32>
    %279 = arith.subf %277, %278 : vector<8x8xf32>
    %280 = arith.mulf %53, %275 : vector<8x8xf32>
    %281 = arith.addf %271, %280 : vector<8x8xf32>
    %282 = arith.mulf %59, %273 : vector<8x8xf32>
    %283 = arith.addf %281, %282 : vector<8x8xf32>
    %c3_180 = arith.constant 3 : index
    %c3_181 = arith.constant 3 : index
    %c0_182 = arith.constant 0 : index
    %c0_183 = arith.constant 0 : index
    %284 = vector.load %arg6[%c3_180, %c3_181, %c0_182, %c0_183] : memref<4x4x8x8xf32, #tpu.memory_space<vmem>>, vector<1x1x8x8xf32>
    %285 = vector.shape_cast %284 : vector<1x1x8x8xf32> to vector<8x8xf32>
    %c3_184 = arith.constant 3 : index
    %c3_185 = arith.constant 3 : index
    %c0_186 = arith.constant 0 : index
    %c0_187 = arith.constant 0 : index
    %286 = vector.load %arg7[%c3_184, %c3_185, %c0_186, %c0_187] : memref<4x4x8x8xf32, #tpu.memory_space<vmem>>, vector<1x1x8x8xf32>
    %287 = vector.shape_cast %286 : vector<1x1x8x8xf32> to vector<8x8xf32>
    %288 = arith.mulf %71, %285 : vector<8x8xf32>
    %289 = arith.addf %279, %288 : vector<8x8xf32>
    %290 = arith.mulf %77, %287 : vector<8x8xf32>
    %291 = arith.subf %289, %290 : vector<8x8xf32>
    %292 = arith.mulf %71, %287 : vector<8x8xf32>
    %293 = arith.addf %283, %292 : vector<8x8xf32>
    %294 = arith.mulf %77, %285 : vector<8x8xf32>
    %295 = arith.addf %293, %294 : vector<8x8xf32>
    %cst_188 = arith.constant dense<0.000000e+00> : vector<8x16xf32>
    %296 = tpu.matmul %291, %2, %cst_188 {dimension_numbers = #tpu.dot_dimension_numbers<[1], [0], [0], [1], [0, 0, 1, 1], [], []>} : vector<8x8xf32>, vector<8x16xf32>, vector<8x16xf32> -> vector<8x16xf32>
    %cst_189 = arith.constant dense<0.000000e+00> : vector<8x16xf32>
    %297 = tpu.matmul %295, %3, %cst_189 {dimension_numbers = #tpu.dot_dimension_numbers<[1], [0], [0], [1], [0, 0, 1, 1], [], []>} : vector<8x8xf32>, vector<8x16xf32>, vector<8x16xf32> -> vector<8x16xf32>
    %298 = arith.addf %296, %297 : vector<8x16xf32>
    %c3_190 = arith.constant 3 : index
    %c0_191 = arith.constant 0 : index
    %c0_192 = arith.constant 0 : index
    %299 = vector.load %arg10[%c3_190, %c0_191, %c0_192] : memref<4x8x16xf32, #tpu.memory_space<vmem>>, vector<1x8x16xf32>
    %300 = vector.shape_cast %299 : vector<1x8x16xf32> to vector<8x16xf32>
    %301 = vector.shape_cast %298 : vector<8x16xf32> to vector<1x8x16xf32>
    tpu.vector_store %arg10[%c3_190, %c0_191, %c0_192], %301 {strides = array<i32>} : memref<4x8x16xf32, #tpu.memory_space<vmem>>, vector<1x8x16xf32>,
    return
  }
  func.func @transform_0(%arg0: i32) -> (i32, i32, i32) {
    %c0_i32 = arith.constant 0 : i32
    %c0_i32_0 = arith.constant 0 : i32
    %c0_i32_1 = arith.constant 0 : i32
    return %c0_i32, %arg0, %c0_i32_0 : i32, i32, i32
  }
  func.func @transform_1(%arg0: i32) -> (i32, i32, i32) {
    %c0_i32 = arith.constant 0 : i32
    %c0_i32_0 = arith.constant 0 : i32
    %c0_i32_1 = arith.constant 0 : i32
    return %arg0, %c0_i32, %c0_i32_0 : i32, i32, i32
  }
  func.func @transform_2(%arg0: i32) -> (i32, i32, i32) {
    %c0_i32 = arith.constant 0 : i32
    %c0_i32_0 = arith.constant 0 : i32
    %c0_i32_1 = arith.constant 0 : i32
    return %arg0, %c0_i32, %c0_i32_0 : i32, i32, i32
  }
  func.func @transform_3(%arg0: i32) -> (i32, i32) {
    %c0_i32 = arith.constant 0 : i32
    %c0_i32_0 = arith.constant 0 : i32
    %c0_i32_1 = arith.constant 0 : i32
    return %c0_i32, %c0_i32_0 : i32, i32
  }
  func.func @transform_4(%arg0: i32) -> (i32, i32) {
    %c0_i32 = arith.constant 0 : i32
    %c0_i32_0 = arith.constant 0 : i32
    %c0_i32_1 = arith.constant 0 : i32
    return %c0_i32, %c0_i32_0 : i32, i32
  }
  func.func @transform_5(%arg0: i32) -> (i32, i32, i32, i32) {
    %c0_i32 = arith.constant 0 : i32
    %c0_i32_0 = arith.constant 0 : i32
    %c0_i32_1 = arith.constant 0 : i32
    %c0_i32_2 = arith.constant 0 : i32
    return %c0_i32, %c0_i32_0, %arg0, %c0_i32_1 : i32, i32, i32, i32
  }
  func.func @transform_6(%arg0: i32) -> (i32, i32, i32, i32) {
    %c0_i32 = arith.constant 0 : i32
    %c0_i32_0 = arith.constant 0 : i32
    %c0_i32_1 = arith.constant 0 : i32
    %c0_i32_2 = arith.constant 0 : i32
    return %c0_i32, %c0_i32_0, %arg0, %c0_i32_1 : i32, i32, i32, i32
  }
  func.func @transform_7(%arg0: i32) -> (i32, i32) {
    %c0_i32 = arith.constant 0 : i32
    %c0_i32_0 = arith.constant 0 : i32
    %c0_i32_1 = arith.constant 0 : i32
    return %c0_i32, %c0_i32_0 : i32, i32
  }
  func.func @transform_8(%arg0: i32) -> (i32, i32) {
    %c0_i32 = arith.constant 0 : i32
    %c0_i32_0 = arith.constant 0 : i32
    %c0_i32_1 = arith.constant 0 : i32
    return %c0_i32, %c0_i32_0 : i32, i32
  }
  func.func @transform_9(%arg0: i32) -> (i32, i32, i32) {
    %c0_i32 = arith.constant 0 : i32
    %c0_i32_0 = arith.constant 0 : i32
    %c0_i32_1 = arith.constant 0 : i32
    return %c0_i32, %arg0, %c0_i32_0 : i32, i32, i32
  }
}

module attributes {stable_mosaic.version = 11 : i64} {
  func.func @_matmul_bias_kernel(%arg0: i32, %arg1: memref<32x32xbf16, #tpu.memory_space<vmem>>, %arg2: memref<32x4xbf16, #tpu.memory_space<vmem>>, %arg3: memref<1x4xf32, #tpu.memory_space<vmem>>, %arg4: memref<32x4xf32, #tpu.memory_space<vmem>>) attributes {dimension_semantics = [#tpu.dimension_semantics<parallel>], iteration_bounds = array<i64: 1>, scalar_prefetch = 0 : i64, scratch_operands = 0 : i64, tpu.core_type = #tpu.core_type<tc>, window_params = [{transform_indices = @transform_0, window_bounds = array<i64: 32, 32>}, {pipeline_mode = #tpu.pipeline_mode<synchronous>, transform_indices = @transform_1, window_bounds = array<i64: 32, 4>}, {pipeline_mode = #tpu.pipeline_mode<synchronous>, transform_indices = @transform_2, window_bounds = array<i64: 1, 4>}, {transform_indices = @transform_3, window_bounds = array<i64: 32, 4>}]} {
    %c0 = arith.constant 0 : index
    %c0_0 = arith.constant 0 : index
    %0 = vector.load %arg1[%c0, %c0_0] : memref<32x32xbf16, #tpu.memory_space<vmem>>, vector<32x32xbf16>
    %c0_1 = arith.constant 0 : index
    %c0_2 = arith.constant 0 : index
    %1 = vector.load %arg2[%c0_1, %c0_2] : memref<32x4xbf16, #tpu.memory_space<vmem>>, vector<32x4xbf16>
    %cst = arith.constant dense<0.000000e+00> : vector<32x4xf32>
    %2 = tpu.matmul %0, %1, %cst {dimension_numbers = #tpu.dot_dimension_numbers<[1], [0], [0], [1], [0, 0, 1, 1], [], []>} : vector<32x32xbf16>, vector<32x4xbf16>, vector<32x4xf32> -> vector<32x4xf32>
    %c0_3 = arith.constant 0 : index
    %c0_4 = arith.constant 0 : index
    %3 = vector.load %arg3[%c0_3, %c0_4] : memref<1x4xf32, #tpu.memory_space<vmem>>, vector<1x4xf32>
    %4 = vector.broadcast %3 : vector<1x4xf32> to vector<32x4xf32>
    %5 = arith.addf %2, %4 : vector<32x4xf32>
    %c0_5 = arith.constant 0 : index
    %c0_6 = arith.constant 0 : index
    %6 = vector.load %arg4[%c0_5, %c0_6] : memref<32x4xf32, #tpu.memory_space<vmem>>, vector<32x4xf32>
    tpu.vector_store %arg4[%c0_5, %c0_6], %5 {strides = array<i32>} : memref<32x4xf32, #tpu.memory_space<vmem>>, vector<32x4xf32>,
    return
  }
  func.func @transform_0(%arg0: i32) -> (i32, i32) {
    %c0_i32 = arith.constant 0 : i32
    %c0_i32_0 = arith.constant 0 : i32
    return %arg0, %c0_i32 : i32, i32
  }
  func.func @transform_1(%arg0: i32) -> (i32, i32) {
    %c0_i32 = arith.constant 0 : i32
    %c0_i32_0 = arith.constant 0 : i32
    %c0_i32_1 = arith.constant 0 : i32
    return %c0_i32, %c0_i32_0 : i32, i32
  }
  func.func @transform_2(%arg0: i32) -> (i32, i32) {
    %c0_i32 = arith.constant 0 : i32
    %c0_i32_0 = arith.constant 0 : i32
    %c0_i32_1 = arith.constant 0 : i32
    return %c0_i32, %c0_i32_0 : i32, i32
  }
  func.func @transform_3(%arg0: i32) -> (i32, i32) {
    %c0_i32 = arith.constant 0 : i32
    %c0_i32_0 = arith.constant 0 : i32
    return %arg0, %c0_i32 : i32, i32
  }
}

module attributes {stable_mosaic.version = 11 : i64} {
  func.func @_matmul_bias_kernel(%arg0: i32, %arg1: memref<32x96xbf16, #tpu.memory_space<vmem>>, %arg2: memref<96x4xbf16, #tpu.memory_space<vmem>>, %arg3: memref<1x4xf32, #tpu.memory_space<vmem>>, %arg4: memref<32x4xf32, #tpu.memory_space<vmem>>) attributes {dimension_semantics = [#tpu.dimension_semantics<parallel>], iteration_bounds = array<i64: 1>, scalar_prefetch = 0 : i64, scratch_operands = 0 : i64, tpu.core_type = #tpu.core_type<tc>, window_params = [{transform_indices = @transform_0, window_bounds = array<i64: 32, 96>}, {pipeline_mode = #tpu.pipeline_mode<synchronous>, transform_indices = @transform_1, window_bounds = array<i64: 96, 4>}, {pipeline_mode = #tpu.pipeline_mode<synchronous>, transform_indices = @transform_2, window_bounds = array<i64: 1, 4>}, {transform_indices = @transform_3, window_bounds = array<i64: 32, 4>}]} {
    %c0 = arith.constant 0 : index
    %c0_0 = arith.constant 0 : index
    %0 = vector.load %arg1[%c0, %c0_0] : memref<32x96xbf16, #tpu.memory_space<vmem>>, vector<32x96xbf16>
    %c0_1 = arith.constant 0 : index
    %c0_2 = arith.constant 0 : index
    %1 = vector.load %arg2[%c0_1, %c0_2] : memref<96x4xbf16, #tpu.memory_space<vmem>>, vector<96x4xbf16>
    %cst = arith.constant dense<0.000000e+00> : vector<32x4xf32>
    %2 = tpu.matmul %0, %1, %cst {dimension_numbers = #tpu.dot_dimension_numbers<[1], [0], [0], [1], [0, 0, 1, 1], [], []>} : vector<32x96xbf16>, vector<96x4xbf16>, vector<32x4xf32> -> vector<32x4xf32>
    %c0_3 = arith.constant 0 : index
    %c0_4 = arith.constant 0 : index
    %3 = vector.load %arg3[%c0_3, %c0_4] : memref<1x4xf32, #tpu.memory_space<vmem>>, vector<1x4xf32>
    %4 = vector.broadcast %3 : vector<1x4xf32> to vector<32x4xf32>
    %5 = arith.addf %2, %4 : vector<32x4xf32>
    %c0_5 = arith.constant 0 : index
    %c0_6 = arith.constant 0 : index
    %6 = vector.load %arg4[%c0_5, %c0_6] : memref<32x4xf32, #tpu.memory_space<vmem>>, vector<32x4xf32>
    tpu.vector_store %arg4[%c0_5, %c0_6], %5 {strides = array<i32>} : memref<32x4xf32, #tpu.memory_space<vmem>>, vector<32x4xf32>,
    return
  }
  func.func @transform_0(%arg0: i32) -> (i32, i32) {
    %c0_i32 = arith.constant 0 : i32
    %c0_i32_0 = arith.constant 0 : i32
    return %arg0, %c0_i32 : i32, i32
  }
  func.func @transform_1(%arg0: i32) -> (i32, i32) {
    %c0_i32 = arith.constant 0 : i32
    %c0_i32_0 = arith.constant 0 : i32
    %c0_i32_1 = arith.constant 0 : i32
    return %c0_i32, %c0_i32_0 : i32, i32
  }
  func.func @transform_2(%arg0: i32) -> (i32, i32) {
    %c0_i32 = arith.constant 0 : i32
    %c0_i32_0 = arith.constant 0 : i32
    %c0_i32_1 = arith.constant 0 : i32
    return %c0_i32, %c0_i32_0 : i32, i32
  }
  func.func @transform_3(%arg0: i32) -> (i32, i32) {
    %c0_i32 = arith.constant 0 : i32
    %c0_i32_0 = arith.constant 0 : i32
    return %arg0, %c0_i32 : i32, i32
  }
}

</mosaic_0001>

<bundles_post_ra>
// kernel: _lambda_.29
= control target key start
LH: loop header
LB: loop body
LE: loop exit
PB: predicated region body
PF: predicated region fallthrough
CT: control target
= control target key end

     0   :  { %vm44_vm0 = vcmask 1041408   ;;  %vm37_vm1 = vcmask 31744   ;;  %vm97_vm2 = vcmask 261120   ;;  %s167_s1 = inlined_call_operand.vmem [shape: bf16[4,32], index: 1, kind: input, shape index: {}]   ;;  %s168_s0 = inlined_call_operand.vmem [shape: bf16[32,4], index: 0, kind: input, shape index: {}]   ;;  %s169_s2 = inlined_call_operand.vmem [shape: f32[1,32], index: 2, kind: input, shape index: {}]   ;;  %s170_s3 = inlined_call_operand.vmem [shape: f32[32,32], index: 3, kind: output, shape index: {}]  }
   0x1   :  { %v19_v0 = vld [vmem:[%s167_s1] sm:$0x3]  ;;  %v122_v3 = vld [vmem:[%s168_s0 + $0x8] sm:$0xff]  }
   0x2   :  { %120 = vmatprep.subr.msk.bf16.mxu0 %vm44_vm0, %v19_v0  ;;  %v46_v1 = vsel %vm44_vm0, %v19_v0, 0  ;;  %v121_v2 = vld [vmem:[%s168_s0] sm:$0xff]  }
   0x3   :  { %115 = vmatpush3.bf16.msra.mxu0 %v46_v1  ;;  %116 = vmatprep.mubr.msk.bf16.mxu0 %vm37_vm1, %v121_v2  ;;  %v106_v4 = vld [vmem:[%s169_s2] ss:$0 sm:$0xff] }
   0x6   :  { %117 = vmatmul.mubr.msk.bf16.vlgmr.msra.gmra.mxu0 %vm37_vm1, %v122_v3 }
  0xc6   :  { %v118_v5 = vpop.f32.mrf.mxu0 }
  0xc7   :  { %v91_v6 = vadd.f32 %v118_v5, %v106_v4 }
  0xc8   :  { %v82_v7 = vpop.f32.mrf.mxu0 }
  0xc9   :  { %100 = vst.msk [vmem:[%s170_s3 + $0x10] sm:$0xff] %vm97_vm2, %v91_v6  ;;  %v83_v8 = vadd.f32 %v106_v4, %v82_v7 }
  0xca   :  { %v119_v9 = vpop.f32.mrf.mxu0 }
  0xcb   :  { %98 = vst.msk [vmem:[%s170_s3] sm:$0xff] %vm97_vm2, %v83_v8  ;;  %v94_v10 = vadd.f32 %v119_v9, %v106_v4 }
  0xcc   :  { %v85_v11 = vpop.f32.mrf.mxu0 }
  0xcd   :  { %101 = vst.msk [vmem:[%s170_s3 + $0x18] sm:$0xff] %vm97_vm2, %v94_v10  ;;  %v86_v12 = vadd.f32 %v106_v4, %v85_v11 }
  0xcf   :  { %99 = vst.msk [vmem:[%s170_s3 + $0x8] sm:$0xff] %vm97_vm2, %v86_v12 }

// kernel: _lambda_.28
= control target key start
LH: loop header
LB: loop body
LE: loop exit
PB: predicated region body
PF: predicated region fallthrough
CT: control target
= control target key end

     0   :  { %vm50_vm0 = vcmask 1045504   ;;  %vm43_vm1 = vcmask 97280   ;;  %vm103_vm2 = vcmask 261120   ;;  %s175_s1 = inlined_call_operand.vmem [shape: bf16[12,32], index: 1, kind: input, shape index: {}]   ;;  %s176_s0 = inlined_call_operand.vmem [shape: bf16[32,12], index: 0, kind: input, shape index: {}]   ;;  %s177_s2 = inlined_call_operand.vmem [shape: f32[1,32], index: 2, kind: input, shape index: {}]   ;;  %s178_s3 = inlined_call_operand.vmem [shape: f32[32,32], index: 3, kind: output, shape index: {}]  }
   0x1   :  { %v128_v0 = vld [vmem:[%s175_s1] sm:$0x3f]   ;;  %v130_v3 = vld [vmem:[%s176_s0 + $0x8] sm:$0xff]  }
   0x2   :  { %v129_v1 = vld [vmem:[%s176_s0] sm:$0xff]   ;;  %127 = vmatprep.subr.msk.bf16.mxu0 %vm50_vm0, %v128_v0  ;;  %v52_v2 = vsel %vm50_vm0, %v128_v0, 0 }
   0x3   :  { %122 = vmatpush3.bf16.msra.mxu0 %v52_v2  ;;  %123 = vmatprep.mubr.msk.bf16.mxu0 %vm43_vm1, %v129_v1  ;;  %v112_v4 = vld [vmem:[%s177_s2] ss:$0 sm:$0xff] }
   0x6   :  { %124 = vmatmul.mubr.msk.bf16.vlgmr.msra.gmra.mxu0 %vm43_vm1, %v130_v3 }
  0xc6   :  { %v125_v5 = vpop.f32.mrf.mxu0 }
  0xc7   :  { %v97_v6 = vadd.f32 %v125_v5, %v112_v4 }
  0xc8   :  { %v88_v7 = vpop.f32.mrf.mxu0 }
  0xc9   :  { %106 = vst.msk [vmem:[%s178_s3 + $0x10] sm:$0xff] %vm103_vm2, %v97_v6  ;;  %v89_v8 = vadd.f32 %v112_v4, %v88_v7 }
  0xca   :  { %v126_v9 = vpop.f32.mrf.mxu0 }
  0xcb   :  { %104 = vst.msk [vmem:[%s178_s3] sm:$0xff] %vm103_vm2, %v89_v8  ;;  %v100_v10 = vadd.f32 %v126_v9, %v112_v4 }
  0xcc   :  { %v91_v11 = vpop.f32.mrf.mxu0 }
  0xcd   :  { %107 = vst.msk [vmem:[%s178_s3 + $0x18] sm:$0xff] %vm103_vm2, %v100_v10  ;;  %v92_v12 = vadd.f32 %v112_v4, %v91_v11 }
  0xcf   :  { %105 = vst.msk [vmem:[%s178_s3 + $0x8] sm:$0xff] %vm103_vm2, %v92_v12 }

// kernel: _lambda_.40
= control target key start
LH: loop header
LB: loop body
LE: loop exit
PB: predicated region body
PF: predicated region fallthrough
CT: control target
= control target key end

     0   :  { %vm52_vm0 = vcmask 261120   ;;  %s192_s1 = inlined_call_operand.vmem [shape: bf16[32,32], index: 1, kind: input, shape index: {}]   ;;  %s193_s0 = inlined_call_operand.vmem [shape: bf16[32,32], index: 0, kind: input, shape index: {}]   ;;  %s194_s2 = inlined_call_operand.vmem [shape: f32[1,32], index: 2, kind: input, shape index: {}]   ;;  %s195_s3 = inlined_call_operand.vmem [shape: f32[32,32], index: 3, kind: output, shape index: {}]  }
   0x1   :  { %v135_v0 = vld [vmem:[%s192_s1 + $0x8] sm:$0xff]   ;;  %v136_v1 = vld [vmem:[%s192_s1] sm:$0xff]  }
   0x2   :  { %127 = vmatprep.subr.bf16.mxu0 %v135_v0  ;;  %v137_v2 = vld [vmem:[%s193_s0] sm:$0xff]   ;;  %v138_v3 = vld [vmem:[%s193_s0 + $0x8] sm:$0xff]  }
   0x3   :  { %128 = vmatpush3.bf16.msra.mxu0 %v135_v0  ;;  %131 = vmatprep.mubr.msk.bf16.mxu0 %vm52_vm0, %v137_v2  ;;  %v116_v4 = vld [vmem:[%s194_s2] ss:$0 sm:$0xff] }
   0x4   :  { %129 = vmatprep.subr.bf16.mxu0 %v136_v1 }
   0x7   :  { %130 = vmatpush3.bf16.msra.mxu0 %v136_v1 }
   0xa   :  { %132 = vmatmul.mubr.msk.bf16.vlgmr.msra.gmra.mxu0 %vm52_vm0, %v138_v3 }
  0xca   :  { %v133_v5 = vpop.f32.mrf.mxu0 }
  0xcb   :  { %v102_v6 = vadd.f32 %v133_v5, %v116_v4 }
  0xcc   :  { %v93_v7 = vpop.f32.mrf.mxu0 }
  0xcd   :  { %110 = vst.msk [vmem:[%s195_s3 + $0x10] sm:$0xff] %vm52_vm0, %v102_v6  ;;  %v94_v8 = vadd.f32 %v116_v4, %v93_v7 }
  0xce   :  { %v134_v9 = vpop.f32.mrf.mxu0 }
  0xcf   :  { %108 = vst.msk [vmem:[%s195_s3] sm:$0xff] %vm52_vm0, %v94_v8  ;;  %v105_v10 = vadd.f32 %v134_v9, %v116_v4 }
  0xd0   :  { %v96_v11 = vpop.f32.mrf.mxu0 }
  0xd1   :  { %111 = vst.msk [vmem:[%s195_s3 + $0x18] sm:$0xff] %vm52_vm0, %v105_v10  ;;  %v97_v12 = vadd.f32 %v116_v4, %v96_v11 }
  0xd3   :  { %109 = vst.msk [vmem:[%s195_s3 + $0x8] sm:$0xff] %vm52_vm0, %v97_v12 }

// kernel: _lambda_.33
= control target key start
LH: loop header
LB: loop body
LE: loop exit
PB: predicated region body
PF: predicated region fallthrough
CT: control target
= control target key end

     0   :  { %vm52_vm0 = vcmask 261120   ;;  %vm108_vm1 = vcmask 523264   ;;  %s187_s1 = inlined_call_operand.vmem [shape: bf16[32,64], index: 1, kind: input, shape index: {}]   ;;  %s188_s0 = inlined_call_operand.vmem [shape: bf16[32,32], index: 0, kind: input, shape index: {}]   ;;  %s189_s2 = inlined_call_operand.vmem [shape: f32[1,64], index: 2, kind: input, shape index: {}]   ;;  %s190_s3 = inlined_call_operand.vmem [shape: f32[32,64], index: 3, kind: output, shape index: {}]  }
   0x1   :  { %v136_v0 = vld [vmem:[%s187_s1 + $0x8] sm:$0xff]   ;;  %v137_v1 = vld [vmem:[%s187_s1] sm:$0xff]  }
   0x2   :  { %128 = vmatprep.subr.bf16.mxu0 %v136_v0  ;;  %v138_v2 = vld [vmem:[%s188_s0] sm:$0xff]   ;;  %v139_v3 = vld [vmem:[%s188_s0 + $0x8] sm:$0xff]  }
   0x3   :  { %129 = vmatpush3.bf16.msra.mxu0 %v136_v0  ;;  %132 = vmatprep.mubr.msk.bf16.mxu0 %vm52_vm0, %v138_v2  ;;  %v117_v4 = vld [vmem:[%s189_s2] ss:$0 sm:$0xff] }
   0x4   :  { %130 = vmatprep.subr.bf16.mxu0 %v137_v1 }
   0x7   :  { %131 = vmatpush3.bf16.msra.mxu0 %v137_v1 }
   0xa   :  { %133 = vmatmul.mubr.msk.bf16.vlgmr.msra.gmra.mxu0 %vm52_vm0, %v139_v3 }
  0xca   :  { %v134_v5 = vpop.f32.mrf.mxu0 }
  0xcb   :  { %v102_v6 = vadd.f32 %v134_v5, %v117_v4 }
  0xcc   :  { %v93_v7 = vpop.f32.mrf.mxu0 }
  0xcd   :  { %111 = vst.msk [vmem:[%s190_s3 + $0x10] sm:$0xff] %vm108_vm1, %v102_v6  ;;  %v94_v8 = vadd.f32 %v117_v4, %v93_v7 }
  0xce   :  { %v135_v9 = vpop.f32.mrf.mxu0 }
  0xcf   :  { %109 = vst.msk [vmem:[%s190_s3] sm:$0xff] %vm108_vm1, %v94_v8  ;;  %v105_v10 = vadd.f32 %v135_v9, %v117_v4 }
  0xd0   :  { %v96_v11 = vpop.f32.mrf.mxu0 }
  0xd1   :  { %112 = vst.msk [vmem:[%s190_s3 + $0x18] sm:$0xff] %vm108_vm1, %v105_v10  ;;  %v97_v12 = vadd.f32 %v117_v4, %v96_v11 }
  0xd3   :  { %110 = vst.msk [vmem:[%s190_s3 + $0x8] sm:$0xff] %vm108_vm1, %v97_v12 }

// kernel: _lambda_.34
= control target key start
LH: loop header
LB: loop body
LE: loop exit
PB: predicated region body
PF: predicated region fallthrough
CT: control target
= control target key end

     0   :  { %vm68_vm0 = vcmask 523264   ;;  %vm124_vm1 = vcmask 261120   ;;  %s219_s1 = inlined_call_operand.vmem [shape: bf16[64,32], index: 1, kind: input, shape index: {}]   ;;  %s220_s0 = inlined_call_operand.vmem [shape: bf16[32,64], index: 0, kind: input, shape index: {}]   ;;  %s221_s2 = inlined_call_operand.vmem [shape: f32[1,32], index: 2, kind: input, shape index: {}]   ;;  %s222_s3 = inlined_call_operand.vmem [shape: f32[32,32], index: 3, kind: output, shape index: {}]  }
   0x1   :  { %v160_v0 = vld [vmem:[%s219_s1 + $0x18] sm:$0xff]   ;;  %v161_v1 = vld [vmem:[%s219_s1 + $0x10] sm:$0xff]   ;;  %v162_v2 = vld [vmem:[%s219_s1 + $0x8] sm:$0xff]  }
   0x2   :  { %148 = vmatprep.subr.bf16.mxu0 %v160_v0  ;;  %v164_v3 = vld [vmem:[%s220_s0] sm:$0xff]   ;;  %v165_v5 = vld [vmem:[%s220_s0 + $0x8] sm:$0xff]  }
   0x3   :  { %149 = vmatpush3.bf16.msra.mxu0 %v160_v0  ;;  %156 = vmatprep.mubr.msk.bf16.mxu0 %vm68_vm0, %v164_v3  ;;  %v163_v4 = vld [vmem:[%s219_s1] sm:$0xff]  }
   0x4   :  { %150 = vmatprep.subr.bf16.mxu0 %v161_v1  ;;  %v133_v6 = vld [vmem:[%s221_s2] ss:$0 sm:$0xff] }
   0x7   :  { %151 = vmatpush3.bf16.msra.mxu0 %v161_v1 }
   0x8   :  { %152 = vmatprep.subr.bf16.mxu0 %v162_v2 }
   0xb   :  { %153 = vmatpush3.bf16.msra.mxu0 %v162_v2 }
   0xc   :  { %154 = vmatprep.subr.bf16.mxu0 %v163_v4 }
   0xf   :  { %155 = vmatpush3.bf16.msra.mxu0 %v163_v4 }
  0x12   :  { %157 = vmatmul.mubr.msk.bf16.vlgmr.msra.gmra.mxu0 %vm68_vm0, %v165_v5 }
  0xd2   :  { %v158_v7 = vpop.f32.mrf.mxu0 }
  0xd3   :  { %v118_v8 = vadd.f32 %v158_v7, %v133_v6 }
  0xd4   :  { %v109_v9 = vpop.f32.mrf.mxu0 }
  0xd5   :  { %127 = vst.msk [vmem:[%s222_s3 + $0x10] sm:$0xff] %vm124_vm1, %v118_v8  ;;  %v110_v10 = vadd.f32 %v133_v6, %v109_v9 }
  0xd6   :  { %v159_v11 = vpop.f32.mrf.mxu0 }
  0xd7   :  { %125 = vst.msk [vmem:[%s222_s3] sm:$0xff] %vm124_vm1, %v110_v10  ;;  %v121_v12 = vadd.f32 %v159_v11, %v133_v6 }
  0xd8   :  { %v112_v13 = vpop.f32.mrf.mxu0 }
  0xd9   :  { %128 = vst.msk [vmem:[%s222_s3 + $0x18] sm:$0xff] %vm124_vm1, %v121_v12  ;;  %v113_v14 = vadd.f32 %v133_v6, %v112_v13 }
  0xdb   :  { %126 = vst.msk [vmem:[%s222_s3 + $0x8] sm:$0xff] %vm124_vm1, %v113_v14 }

// kernel: _lambda_.41
= control target key start
LH: loop header
LB: loop body
LE: loop exit
PB: predicated region body
PF: predicated region fallthrough
CT: control target
= control target key end

     0   :  { %s2363_s24 = smov 0   ;;  %s2365_s25 = smov 0   ;;  %s2708_s0 = inlined_call_operand.vmem [shape: f32[4,16,16], index: 0, kind: input, shape index: {}]   ;;  %s2709_s1 = inlined_call_operand.vmem [shape: f32[16,8], index: 1, kind: input, shape index: {}]   ;;  %s2710_s2 = inlined_call_operand.vmem [shape: f32[16,8], index: 2, kind: input, shape index: {}]   ;;  %s2711_s3 = inlined_call_operand.vmem [shape: f32[8,16], index: 3, kind: input, shape index: {}]   ;;  %s2712_s4 = inlined_call_operand.vmem [shape: f32[8,16], index: 4, kind: input, shape index: {}]   ;;  %s2713_s5 = inlined_call_operand.vmem [shape: f32[4,4,16,8], index: 5, kind: input, shape index: {}]   ;;  %s2714_s6 = inlined_call_operand.vmem [shape: f32[4,4,16,8], index: 6, kind: input, shape index: {}]   ;;  %s2715_s7 = inlined_call_operand.vmem [shape: f32[4,16,16], index: 7, kind: output, shape index: {}]  }
   0x1   :  { %s2367_s26 = smov 0  }
   0x2 LB: > { %s2064_s27 = sadd.s32 4294967295, %s2319_s26   ;;  %s2380_s28 = sadd.s32 1, %s2319_s26   ;;  %s2319_s26 = sphi %s2367_s26, %s2720_s26   ;;  %s2315_s25 = sphi %s2365_s25, %s2719_s25   ;;  %s2311_s24 = sphi %s2363_s24, %s2718_s24  }
   0x3   : > { %s21_s29 = ssub.s32 %s2319_s26, %s2380_s28  ;;  %s24_s30 = sadd.s32 1, %s2315_s25 }
   0x4   : > { %p22_p0 = scmp.eq.s32.totalorder %s21_s29, 0  ;;  %p31_p1 = scmp.ne.s32.totalorder %s2315_s25, %s2311_s24 }
   0x5   : > { %p32_p2 = scmp.eq.s32.totalorder %s2319_s26, 0  ;;  %p197_p3 = scmp.eq.s32.totalorder %s2064_s27, 1 }
   0x6   : > { %s2391_s8 = scalar_select %p22_p0, %s2315_s25, %s24_s30  }
   0x7   : > { %p2393_p4 = por %p32_p2, %p31_p1  ;;  %p2397_p5 = por %p197_p3, %p31_p1 }
   0x8   : > { %p2067_p6 = scmp.ge.s32.totalorder %s2319_s26, 2 }
   0xa   : > { %231 = sbr.rel (%p2067_p6) target bundleno = 45 (0x2d), region = 32 }
   0xf   : > { %234 = sbr.rel (!%p2393_p4) target bundleno = 21 (0x15), region = 36  ;;  %s236_s11 = sand.u32 (%p2393_p4), 1, %s2315_s25  }
  0x10   : > { %s2069_s12 = sshll.u32 (%p2393_p4), %s2319_s26, 3  ;;  %s2068_s13 = sshll.u32 (%p2393_p4), %s236_s11, 5 }
  0x11   : > { %s240_s16 = scalar_lea.vmem (%p2393_p4), %s2708_s0, %s2069_s12  ;;  %s238_s17 = scalar_lea.vmem (%p2393_p4), [#allocation2], %s2068_s13 }
  0x12   : > { %v275_v0 = vld [vmem:[%s240_s16] sm:$0xff] (%p2393_p4)  ;;  %v277_v1 = vld [vmem:[%s240_s16 + $0x10] sm:$0xff] (%p2393_p4) }
  0x13   : > { %v279_v2 = vld [vmem:[%s240_s16 + $0x20] sm:$0xff] (%p2393_p4)  ;;  %276 = vst [vmem:[%s238_s17] sm:$0xff] (%p2393_p4), %v275_v0  ;;  %278 = vst [vmem:[%s238_s17 + $0x8] sm:$0xff] (%p2393_p4), %v277_v1  ;;  %v281_v3 = vld [vmem:[%s240_s16 + $0x30] sm:$0xff] (%p2393_p4) }
  0x14   : > { %280 = vst [vmem:[%s238_s17 + $0x10] sm:$0xff] %v279_v2  ;;  %282 = vst [vmem:[%s238_s17 + $0x18] sm:$0xff] %v281_v3 }
  0x15 PF: > { %288 = sbr.rel (!%p2393_p4) target bundleno = 33 (0x21), region = 74  ;;  %s290_s18 = sand.u32 (%p2393_p4), 1, %s2315_s25  }
  0x16   : > { %s2071_s19 = sshll.u32 (%p2393_p4), %s2319_s26, 3  ;;  %s2070_s20 = sshll.u32 (%p2393_p4), %s290_s18, 7 }
  0x17   : > { %s2416_s23 = scalar_lea.vmem (%p2393_p4), %s2713_s5, %s2071_s19  ;;  %s292_s29 = scalar_lea.vmem (%p2393_p4), [#allocation3], %s2070_s20 }
  0x18   : > { %v353_v4 = vld [vmem:[%s2416_s23] sm:$0xff] (%p2393_p4)  ;;  %v355_v5 = vld [vmem:[%s2416_s23 + $0x10] sm:$0xff] (%p2393_p4) }
  0x19   : > { %v357_v6 = vld [vmem:[%s2416_s23 + $0x20] sm:$0xff] (%p2393_p4)  ;;  %354 = vst [vmem:[%s292_s29] sm:$0xff] (%p2393_p4), %v353_v4  ;;  %356 = vst [vmem:[%s292_s29 + $0x8] sm:$0xff] (%p2393_p4), %v355_v5  ;;  %v359_v7 = vld [vmem:[%s2416_s23 + $0x30] sm:$0xff] (%p2393_p4) }
  0x1a   : > { %358 = vst [vmem:[%s292_s29 + $0x10] sm:$0xff] %v357_v6  ;;  %v361_v8 = vld [vmem:[%s2416_s23 + $0x40] sm:$0xff]  ;;  %v363_v9 = vld [vmem:[%s2416_s23 + $0x50] sm:$0xff]  ;;  %360 = vst [vmem:[%s292_s29 + $0x18] sm:$0xff] %v359_v7 }
  0x1b   : > { %362 = vst [vmem:[%s292_s29 + $0x20] sm:$0xff] %v361_v8  ;;  %364 = vst [vmem:[%s292_s29 + $0x28] sm:$0xff] %v363_v9  ;;  %v365_v10 = vld [vmem:[%s2416_s23 + $0x60] sm:$0xff]  ;;  %v367_v11 = vld [vmem:[%s2416_s23 + $0x70] sm:$0xff] }
  0x1c   : > { %v369_v12 = vld [vmem:[%s2416_s23 + $0x80] sm:$0xff]  ;;  %366 = vst [vmem:[%s292_s29 + $0x30] sm:$0xff] %v365_v10  ;;  %368 = vst [vmem:[%s292_s29 + $0x38] sm:$0xff] %v367_v11  ;;  %v371_v13 = vld [vmem:[%s2416_s23 + $0x90] sm:$0xff] }
  0x1d   : > { %370 = vst [vmem:[%s292_s29 + $0x40] sm:$0xff] %v369_v12  ;;  %v373_v14 = vld [vmem:[%s2416_s23 + $0xa0] sm:$0xff]  ;;  %v375_v15 = vld [vmem:[%s2416_s23 + $0xb0] sm:$0xff]  ;;  %372 = vst [vmem:[%s292_s29 + $0x48] sm:$0xff] %v371_v13 }
  0x1e   : > { %374 = vst [vmem:[%s292_s29 + $0x50] sm:$0xff] %v373_v14  ;;  %376 = vst [vmem:[%s292_s29 + $0x58] sm:$0xff] %v375_v15  ;;  %v377_v16 = vld [vmem:[%s2416_s23 + $0xc0] sm:$0xff]  ;;  %v379_v17 = vld [vmem:[%s2416_s23 + $0xd0] sm:$0xff] }
  0x1f   : > { %v381_v18 = vld [vmem:[%s2416_s23 + $0xe0] sm:$0xff]  ;;  %378 = vst [vmem:[%s292_s29 + $0x60] sm:$0xff] %v377_v16  ;;  %380 = vst [vmem:[%s292_s29 + $0x68] sm:$0xff] %v379_v17  ;;  %v383_v19 = vld [vmem:[%s2416_s23 + $0xf0] sm:$0xff] }
  0x20   : > { %382 = vst [vmem:[%s292_s29 + $0x70] sm:$0xff] %v381_v18  ;;  %384 = vst [vmem:[%s292_s29 + $0x78] sm:$0xff] %v383_v19 }
  0x21 PF: > { %390 = sbr.rel (!%p2393_p4) target bundleno = 45 (0x2d), region = 112  ;;  %s392_s30 = sand.u32 (%p2393_p4), 1, %s2315_s25  }
  0x22   : > { %s2073_s11 = sshll.u32 (%p2393_p4), %s2319_s26, 3  ;;  %s2072_s12 = sshll.u32 (%p2393_p4), %s392_s30, 7 }
  0x23   : > { %s2441_s15 = scalar_lea.vmem (%p2393_p4), %s2714_s6, %s2073_s11  ;;  %s394_s9 = scalar_lea.vmem (%p2393_p4), [#allocation4], %s2072_s12 }
  0x24   : > { %v455_v20 = vld [vmem:[%s2441_s15] sm:$0xff] (%p2393_p4)  ;;  %v457_v21 = vld [vmem:[%s2441_s15 + $0x10] sm:$0xff] (%p2393_p4) }
  0x25   : > { %v459_v22 = vld [vmem:[%s2441_s15 + $0x20] sm:$0xff] (%p2393_p4)  ;;  %456 = vst [vmem:[%s394_s9] sm:$0xff] (%p2393_p4), %v455_v20  ;;  %458 = vst [vmem:[%s394_s9 + $0x8] sm:$0xff] (%p2393_p4), %v457_v21  ;;  %v461_v23 = vld [vmem:[%s2441_s15 + $0x30] sm:$0xff] (%p2393_p4) }
  0x26   : > { %460 = vst [vmem:[%s394_s9 + $0x10] sm:$0xff] %v459_v22  ;;  %v463_v24 = vld [vmem:[%s2441_s15 + $0x40] sm:$0xff]  ;;  %v465_v25 = vld [vmem:[%s2441_s15 + $0x50] sm:$0xff]  ;;  %462 = vst [vmem:[%s394_s9 + $0x18] sm:$0xff] %v461_v23 }
  0x27   : > { %464 = vst [vmem:[%s394_s9 + $0x20] sm:$0xff] %v463_v24  ;;  %466 = vst [vmem:[%s394_s9 + $0x28] sm:$0xff] %v465_v25  ;;  %v467_v26 = vld [vmem:[%s2441_s15 + $0x60] sm:$0xff]  ;;  %v469_v27 = vld [vmem:[%s2441_s15 + $0x70] sm:$0xff] }
  0x28   : > { %v471_v28 = vld [vmem:[%s2441_s15 + $0x80] sm:$0xff]  ;;  %468 = vst [vmem:[%s394_s9 + $0x30] sm:$0xff] %v467_v26  ;;  %470 = vst [vmem:[%s394_s9 + $0x38] sm:$0xff] %v469_v27  ;;  %v473_v29 = vld [vmem:[%s2441_s15 + $0x90] sm:$0xff] }
  0x29   : > { %472 = vst [vmem:[%s394_s9 + $0x40] sm:$0xff] %v471_v28  ;;  %v475_v30 = vld [vmem:[%s2441_s15 + $0xa0] sm:$0xff]  ;;  %v477_v31 = vld [vmem:[%s2441_s15 + $0xb0] sm:$0xff]  ;;  %474 = vst [vmem:[%s394_s9 + $0x48] sm:$0xff] %v473_v29 }
  0x2a   : > { %476 = vst [vmem:[%s394_s9 + $0x50] sm:$0xff] %v475_v30  ;;  %478 = vst [vmem:[%s394_s9 + $0x58] sm:$0xff] %v477_v31  ;;  %v479_v32 = vld [vmem:[%s2441_s15 + $0xc0] sm:$0xff]  ;;  %v481_v33 = vld [vmem:[%s2441_s15 + $0xd0] sm:$0xff] }
  0x2b   : > { %v483_v34 = vld [vmem:[%s2441_s15 + $0xe0] sm:$0xff]  ;;  %480 = vst [vmem:[%s394_s9 + $0x60] sm:$0xff] %v479_v32  ;;  %482 = vst [vmem:[%s394_s9 + $0x68] sm:$0xff] %v481_v33  ;;  %v485_v35 = vld [vmem:[%s2441_s15 + $0xf0] sm:$0xff] }
  0x2c   : > { %484 = vst [vmem:[%s394_s9 + $0x70] sm:$0xff] %v483_v34  ;;  %486 = vst [vmem:[%s394_s9 + $0x78] sm:$0xff] %v485_v35 }
  0x2d PF: > { %p2074_p7 = scmp.ge.s32.totalorder %s2319_s26, 1  ;;  %p491_p8 = scmp.lt.s32.totalorder %s2319_s26, 3 }
  0x2f   : > { %p492_p9 = pnand %p2074_p7, %p491_p8 }
  0x30   : > { %s498_s20 = sand.u32 (!%p492_p9), 1, %s2311_s24  }
  0x31   : > { %495 = sbr.rel (%p492_p9) target bundleno = 493 (0x1ed), region = 150  ;;  %s2475_s23 = sshll.u32 (!%p492_p9), %s498_s20, 5 }
  0x32   : > { %s2484_s11 = scalar_lea.vmem (!%p492_p9), [#allocation2], %s2475_s23  ;;  %s2076_s9 = sshll.u32 (!%p492_p9), %s498_s20, 7 }
  0x33   : > { %s2547_s16 = scalar_lea.vmem (!%p492_p9), [#allocation3], %s2076_s9  ;;  %s2550_s17 = scalar_lea.vmem (!%p492_p9), [#allocation4], %s2076_s9 }
  0x34   : > { %s549_s24 = scalar_lea.vmem (!%p492_p9), [#allocation5], %s2475_s23 }
  0x36   : > { %v551_v36 = vld [vmem:[%s2709_s1 + $0x8] sm:$0xff]  ;;  %v2321_v38 = vmov 0.0   ;;  %v550_v39 = vld [vmem:[%s2709_s1] sm:$0xff]  ;;  %vm557_vm0 = vcmask 130048   ;;  %vm2322_vm1 = vmmov 0   ;;  %v2084_v43 = vld [vmem:[%s2484_s11 + $0x10] sm:$0xff] }
  0x37   : > { %v553_v37 = vld [vmem:[%s2710_s2 + $0x8] sm:$0xff]  ;;  %2175 = vmatprep.subr.mxu0 %v2321_v38  ;;  %2182 = vmatprep.subr.mxu1 %v2321_v38  ;;  %v552_v40 = vld [vmem:[%s2710_s2] sm:$0xff]  ;;  %v2087_v44 = vld [vmem:[%s2484_s11 + $0x18] sm:$0xff]  ;;  %vm1182_vm2 = vcmask 64512   ;;  %s2132_s18 = sshll.u32 (%p2397_p5), %s2064_s27, 3 }
  0x38   : > { %2176 = vmatpush3.msra.mxu0 %v551_v36  ;;  %2183 = vmatpush3.msra.mxu1 %v553_v37  ;;  %v556_v41 = vld [vmem:[%s2484_s11] sm:$0xff]  ;;  %v2081_v42 = vld [vmem:[%s2484_s11 + $0x8] sm:$0xff]  ;;  %v2109_v51 = vld [vmem:[%s2547_s16 + $0x10] sm:$0xff]  ;;  %s1926_s21 = scalar_lea.vmem (%p2397_p5), %s2715_s7, %s2132_s18 }
  0x39   : > { %2177 = vmatprep.subr.mxu0 %v2321_v38  ;;  %2179 = vmatprep.mubr.msk.f32.mxu0 %vm2322_vm1, %v2321_v38  ;;  %v2534_v45 = vld [vmem:[%s2712_s4] sm:$0xff]  ;;  %v2098_v49 = vld [vmem:[%s2547_s16 + $0x8] sm:$0xff]  ;;  %v2110_v52 = vld [vmem:[%s2550_s17 + $0x10] sm:$0xff] }
  0x3a   : > { %2178 = vmatpush3.msra.mxu0 %v550_v39  ;;  %2184 = vmatprep.subr.mxu1 %v2321_v38  ;;  %v2539_v46 = vld [vmem:[%s2711_s3] sm:$0xff]  ;;  %v2099_v50 = vld [vmem:[%s2550_s17 + $0x8] sm:$0xff]  ;;  %v2120_v56 = vld [vmem:[%s2547_s16 + $0x18] sm:$0xff] }
  0x3b   : > { %2180 = vmatmul.mubr.msk.f32.vlgmr.msra.gmra.mxu0 %vm557_vm0, %v556_v41  ;;  %2185 = vmatpush3.msra.mxu1 %v552_v40  ;;  %v1136_v47 = vld [vmem:[%s2547_s16] sm:$0xff]  ;;  %v2121_v57 = vld [vmem:[%s2550_s17 + $0x18] sm:$0xff]  ;;  %v2100_v11 = vld [vmem:[%s2547_s16 + $0x28] sm:$0xff] }
  0x3c   : > { %2186 = vmatprep.mubr.msk.f32.mxu1 %vm2322_vm1, %v2321_v38  ;;  %2189 = vmatprep.subr.mxu0 %v2321_v38  ;;  %v1137_v48 = vld [vmem:[%s2550_s17] sm:$0xff]  ;;  %v2101_v12 = vld [vmem:[%s2550_s17 + $0x28] sm:$0xff]  ;;  %v2111_v13 = vld [vmem:[%s2547_s16 + $0x30] sm:$0xff] }
  0x3d   : > { %2187 = vmatmul.mubr.msk.f32.vlgmr.msra.gmra.mxu1 %vm557_vm0, %v556_v41  ;;  %2190 = vmatpush3.msra.mxu0 %v551_v36  ;;  %v2090_v4 = vld [vmem:[%s2547_s16 + $0x20] sm:$0xff]  ;;  %v2112_v18 = vld [vmem:[%s2550_s17 + $0x30] sm:$0xff]  ;;  %v2566_v19 = vld [vmem:[%s2547_s16 + $0x38] sm:$0xff] }
  0x3e   : > { %2196 = vmatprep.subr.mxu1 %v2321_v38  ;;  %2191 = vmatprep.subr.mxu0 %v2321_v38  ;;  %v2091_v5 = vld [vmem:[%s2550_s17 + $0x20] sm:$0xff]  ;;  %v2123_v20 = vld [vmem:[%s2550_s17 + $0x38] sm:$0xff] }
  0x3f   : > { %2197 = vmatpush3.msra.mxu1 %v553_v37  ;;  %2192 = vmatpush3.msra.mxu0 %v550_v39 }
  0x40   : > { %2193 = vmatprep.mubr.msk.f32.mxu0 %vm2322_vm1, %v2321_v38  ;;  %2198 = vmatprep.subr.mxu1 %v2321_v38 }
  0x41   : > { %2194 = vmatmul.mubr.msk.f32.vlgmr.msra.gmra.mxu0 %vm557_vm0, %v2081_v42  ;;  %2199 = vmatpush3.msra.mxu1 %v552_v40 }
  0x42   : > { %2200 = vmatprep.mubr.msk.f32.mxu1 %vm2322_vm1, %v2321_v38  ;;  %2203 = vmatprep.subr.mxu0 %v2321_v38 }
  0x43   : > { %2201 = vmatmul.mubr.msk.f32.vlgmr.msra.gmra.mxu1 %vm557_vm0, %v2081_v42  ;;  %2204 = vmatpush3.msra.mxu0 %v551_v36 }
  0x44   : > { %2210 = vmatprep.subr.mxu1 %v2321_v38  ;;  %2205 = vmatprep.subr.mxu0 %v2321_v38 }
  0x45   : > { %2211 = vmatpush3.msra.mxu1 %v553_v37  ;;  %2206 = vmatpush3.msra.mxu0 %v550_v39 }
  0x46   : > { %2207 = vmatprep.mubr.msk.f32.mxu0 %vm2322_vm1, %v2321_v38  ;;  %2212 = vmatprep.subr.mxu1 %v2321_v38 }
  0x47   : > { %2208 = vmatmul.mubr.msk.f32.vlgmr.msra.gmra.mxu0 %vm557_vm0, %v2084_v43  ;;  %2213 = vmatpush3.msra.mxu1 %v552_v40 }
  0x48   : > { %2214 = vmatprep.mubr.msk.f32.mxu1 %vm2322_vm1, %v2321_v38  ;;  %2217 = vmatprep.subr.mxu0 %v2321_v38 }
  0x49   : > { %2215 = vmatmul.mubr.msk.f32.vlgmr.msra.gmra.mxu1 %vm557_vm0, %v2084_v43  ;;  %2218 = vmatpush3.msra.mxu0 %v551_v36 }
  0x4a   : > { %2224 = vmatprep.subr.mxu1 %v2321_v38  ;;  %2219 = vmatprep.subr.mxu0 %v2321_v38 }
  0x4b   : > { %2225 = vmatpush3.msra.mxu1 %v553_v37  ;;  %2220 = vmatpush3.msra.mxu0 %v550_v39 }
  0x4c   : > { %2221 = vmatprep.mubr.msk.f32.mxu0 %vm2322_vm1, %v2321_v38  ;;  %2226 = vmatprep.subr.mxu1 %v2321_v38 }
  0x4d   : > { %2222 = vmatmul.mubr.msk.f32.vlgmr.msra.gmra.mxu0 %vm557_vm0, %v2087_v44  ;;  %2227 = vmatpush3.msra.mxu1 %v552_v40 }
  0x4e   : > { %2228 = vmatprep.mubr.msk.f32.mxu1 %vm2322_vm1, %v2321_v38  ;;  %2231 = vmatprep.subr.mxu0 %v2321_v38 }
  0x4f   : > { %2229 = vmatmul.mubr.msk.f32.vlgmr.msra.gmra.mxu1 %vm557_vm0, %v2087_v44  ;;  %2236 = vmatprep.subr.mxu1 %v2321_v38 }
  0x50   : > { %2233 = vmatprep.mubr.msk.f32.mxu0 %vm2322_vm1, %v2321_v38  ;;  %2238 = vmatprep.mubr.msk.f32.mxu1 %vm2322_vm1, %v2321_v38 }
  0x51   : > { %2232 = vmatpush3.msra.mxu0 %v2534_v45  ;;  %2237 = vmatpush3.msra.mxu1 %v2539_v46 }
  0x52   : > { %2241 = vmatprep.subr.mxu0 %v2321_v38  ;;  %2246 = vmatprep.subr.mxu1 %v2321_v38 }
  0xfb   : > { %v627_v53 = vpop.f32.mrf.mxu0 }
  0xfc   : > { %v1138_v54 = vmul.f32 %v1136_v47, %v627_v53  ;;  %v1142_v55 = vmul.f32 %v1137_v48, %v627_v53  ;;  %v1334_v58 = vmul.f32 %v2098_v49, %v627_v53  ;;  %v1338_v59 = vmul.f32 %v2099_v50, %v627_v53 }
  0xfd   : > { %v1530_v60 = vmul.f32 %v2109_v51, %v627_v53  ;;  %v1534_v61 = vmul.f32 %v2110_v52, %v627_v53  ;;  %v697_v62 = vpop.f32.mrf.mxu1  ;;  %v2181_v63 = vpop.f32.mrf.mxu0  ;;  %v1726_v6 = vmul.f32 %v2120_v56, %v627_v53  ;;  %v1730_v7 = vmul.f32 %v2121_v57, %v627_v53 }
  0xfe   : > { %v1140_v0 = vmul.f32 %v1137_v48, %v697_v62  ;;  %v1144_v1 = vmul.f32 %v1136_v47, %v697_v62  ;;  %v1336_v2 = vmul.f32 %v2099_v50, %v697_v62  ;;  %v1340_v3 = vmul.f32 %v2098_v49, %v697_v62  ;;  %v2093_v48 = vld [vmem:[%s2550_s17 + $0x40] sm:$0xff]  ;;  %v2103_v49 = vld [vmem:[%s2550_s17 + $0x48] sm:$0xff]  ;;  %v2577_v50 = vld [vmem:[%s2550_s17 + $0x50] sm:$0xff] }
  0xff   : > { %v1532_v8 = vmul.f32 %v2110_v52, %v697_v62  ;;  %v1536_v9 = vmul.f32 %v2109_v51, %v697_v62  ;;  %v2188_v10 = vpop.f32.mrf.mxu1  ;;  %v1728_v16 = vmul.f32 %v2121_v57, %v697_v62  ;;  %v1732_v17 = vmul.f32 %v2120_v56, %v697_v62 }
 0x100   : > { %v1141_v14 = vsub.f32 %v1138_v54, %v1140_v0  ;;  %v1145_v15 = vadd.f32 %v1144_v1, %v1142_v55  ;;  %v1337_v21 = vsub.f32 %v1334_v58, %v1336_v2  ;;  %v1341_v22 = vadd.f32 %v1340_v3, %v1338_v59  ;;  %v2092_v55 = vld [vmem:[%s2547_s16 + $0x40] sm:$0xff]  ;;  %v2102_v1 = vld [vmem:[%s2547_s16 + $0x48] sm:$0xff] }
 0x101   : > { %v1533_v23 = vsub.f32 %v1530_v60, %v1532_v8  ;;  %v1537_v24 = vadd.f32 %v1536_v9, %v1534_v61  ;;  %v772_v25 = vpop.f32.mrf.mxu0  ;;  %v1729_v36 = vsub.f32 %v1726_v6, %v1728_v16  ;;  %v1733_v37 = vadd.f32 %v1732_v17, %v1730_v7  ;;  %v2094_v9 = vld [vmem:[%s2547_s16 + $0x60] sm:$0xff] }
 0x102   : > { %v1150_v26 = vmul.f32 %v2090_v4, %v772_v25  ;;  %v1154_v27 = vmul.f32 %v2091_v5, %v772_v25  ;;  %v1346_v28 = vmul.f32 %v2100_v11, %v772_v25  ;;  %v1350_v29 = vmul.f32 %v2101_v12, %v772_v25  ;;  %v2095_v16 = vld [vmem:[%s2550_s17 + $0x60] sm:$0xff] }
 0x103   : > { %v1542_v30 = vmul.f32 %v2111_v13, %v772_v25  ;;  %v1546_v31 = vmul.f32 %v2112_v18, %v772_v25  ;;  %v1738_v32 = vmul.f32 %v2566_v19, %v772_v25  ;;  %v1742_v33 = vmul.f32 %v2123_v20, %v772_v25  ;;  %v2570_v34 = vpop.f32.mrf.mxu1  ;;  %v2195_v35 = vpop.f32.mrf.mxu0 }
 0x104   : > { %v1151_v39 = vadd.f32 %v1150_v26, %v1141_v14  ;;  %v1155_v40 = vadd.f32 %v1154_v27, %v1145_v15  ;;  %v1347_v41 = vadd.f32 %v1346_v28, %v1337_v21  ;;  %v1351_v42 = vadd.f32 %v1350_v29, %v1341_v22  ;;  %v2105_v21 = vld [vmem:[%s2550_s17 + $0x68] sm:$0xff]  ;;  %v2116_v26 = vld [vmem:[%s2550_s17 + $0x70] sm:$0xff] }
 0x105   : > { %v2572_v43 = vadd.f32 %v1542_v30, %v1533_v23  ;;  %v1547_v44 = vadd.f32 %v1546_v31, %v1537_v24  ;;  %v2202_v47 = vpop.f32.mrf.mxu1  ;;  %v1152_v51 = vmul.f32 %v2091_v5, %v2570_v34  ;;  %v1156_v52 = vmul.f32 %v2090_v4, %v2570_v34 }
 0x106   : > { %v1348_v53 = vmul.f32 %v2101_v12, %v2570_v34  ;;  %v1352_v54 = vmul.f32 %v2100_v11, %v2570_v34  ;;  %v2584_v56 = vadd.f32 %v1738_v32, %v1729_v36  ;;  %v2586_v57 = vadd.f32 %v1742_v33, %v1733_v37  ;;  %v2125_v47 = vld [vmem:[%s2550_s17 + $0x58] sm:$0xff] }
 0x107   : > { %v2589_v58 = vmul.f32 %v2112_v18, %v2570_v34  ;;  %v1548_v59 = vmul.f32 %v2111_v13, %v2570_v34  ;;  %v2592_v60 = vpop.f32.mrf.mxu0  ;;  %v2595_v61 = vmul.f32 %v2123_v20, %v2570_v34  ;;  %v1157_v4 = vadd.f32 %v1156_v52, %v1155_v40  ;;  %v2113_v13 = vld [vmem:[%s2547_s16 + $0x50] sm:$0xff]  ;;  %v2104_v20 = vld [vmem:[%s2547_s16 + $0x68] sm:$0xff] }
 0x108   : > { %v1166_v62 = vmul.f32 %v2093_v48, %v2592_v60  ;;  %v1362_v63 = vmul.f32 %v2103_v49, %v2592_v60  ;;  %v1558_v0 = vmul.f32 %v2577_v50, %v2592_v60  ;;  %v1153_v5 = vsub.f32 %v1151_v39, %v1152_v51 }
 0x109   : > { %v2602_v2 = vpop.f32.mrf.mxu1  ;;  %v2209_v3 = vpop.f32.mrf.mxu0  ;;  %v1162_v6 = vmul.f32 %v2092_v55, %v2592_v60  ;;  %v1353_v7 = vadd.f32 %v1352_v54, %v1351_v42  ;;  %v1349_v12 = vsub.f32 %v1347_v41, %v1348_v53  ;;  %v1358_v22 = vmul.f32 %v2102_v1, %v2592_v60 }
 0x10a   : > { %v1168_v8 = vmul.f32 %v2092_v55, %v2602_v2  ;;  %v1164_v10 = vmul.f32 %v2093_v48, %v2602_v2  ;;  %v1364_v11 = vmul.f32 %v2102_v1, %v2602_v2  ;;  %v1167_v15 = vadd.f32 %v1166_v62, %v1157_v4  ;;  %v2115_v62 = vld [vmem:[%s2547_s16 + $0x70] sm:$0xff] }
 0x10b   : > { %v2216_v14 = vpop.f32.mrf.mxu1  ;;  %v1163_v17 = vadd.f32 %v1162_v6, %v1153_v5  ;;  %v1363_v18 = vadd.f32 %v1362_v63, %v1353_v7  ;;  %v1360_v23 = vmul.f32 %v2103_v49, %v2602_v2  ;;  %v1549_v24 = vadd.f32 %v1548_v59, %v1547_v44 }
 0x10c   : > { %v1560_v25 = vmul.f32 %v2113_v13, %v2602_v2  ;;  %v1545_v27 = vsub.f32 %v2572_v43, %v2589_v58  ;;  %v1169_v29 = vadd.f32 %v1168_v8, %v1167_v15  ;;  %v1359_v32 = vadd.f32 %v1358_v22, %v1349_v12 }
 0x10d   : > { %v2619_v28 = vpop.f32.mrf.mxu0  ;;  %v1165_v30 = vsub.f32 %v1163_v17, %v1164_v10  ;;  %v1365_v31 = vadd.f32 %v1364_v11, %v1363_v18  ;;  %v1559_v42 = vadd.f32 %v1558_v0, %v1549_v24  ;;  %v1554_v44 = vmul.f32 %v2113_v13, %v2592_v60  ;;  %v2124_v10 = vld [vmem:[%s2547_s16 + $0x58] sm:$0xff] }
 0x10e   : > { %v1178_v33 = vmul.f32 %v2095_v16, %v2619_v28  ;;  %v1174_v35 = vmul.f32 %v2094_v9, %v2619_v28  ;;  %v1374_v36 = vmul.f32 %v2105_v21, %v2619_v28  ;;  %v1370_v37 = vmul.f32 %v2104_v20, %v2619_v28 }
 0x10f   : > { %v2625_v39 = vpop.f32.mrf.mxu1  ;;  %v2223_v40 = vpop.f32.mrf.mxu0  ;;  %v1361_v41 = vsub.f32 %v1359_v32, %v1360_v23  ;;  %v1570_v43 = vmul.f32 %v2116_v26, %v2619_v28  ;;  %v1744_v53 = vmul.f32 %v2566_v19, %v2570_v34  ;;  %v1561_v3 = vadd.f32 %v1560_v25, %v1559_v42  ;;  %v2127_v34 = vld [vmem:[%s2550_s17 + $0x78] sm:$0xff] }
 0x110   : > { %v1179_v48 = vadd.f32 %v1178_v33, %v1169_v29  ;;  %v1180_v49 = vmul.f32 %v2094_v9, %v2625_v39  ;;  %v1175_v51 = vadd.f32 %v1174_v35, %v1165_v30  ;;  %v1176_v52 = vmul.f32 %v2095_v16, %v2625_v39 }
 0x111   : > { %v2230_v54 = vpop.f32.mrf.mxu1  ;;  %v1375_v55 = vadd.f32 %v1374_v36, %v1365_v31  ;;  %v1376_v58 = vmul.f32 %v2104_v20, %v2625_v39  ;;  %v1371_v59 = vadd.f32 %v1370_v37, %v1361_v41  ;;  %v1372_v1 = vmul.f32 %v2105_v21, %v2625_v39 }
 0x112   : > { %v1181_v63 = vadd.f32 %v1180_v49, %v1179_v48  ;;  %v1177_v0 = vsub.f32 %v1175_v51, %v1176_v52  ;;  %v1754_v4 = vmul.f32 %v2125_v47, %v2592_v60  ;;  %v1572_v5 = vmul.f32 %v2115_v62, %v2625_v39 }
 0x113   : > { %v1555_v6 = vadd.f32 %v1554_v44, %v1545_v27  ;;  %v1556_v19 = vmul.f32 %v2577_v50, %v2602_v2  ;;  %v1377_v7 = vadd.f32 %v1376_v58, %v1375_v55  ;;  %v1571_v8 = vadd.f32 %v1570_v43, %v1561_v3 }
 0x114   : > { %2234 = vmatmul.mubr.msk.f32.vlgmr.msra.gmra.mxu0 %vm1182_vm2, %v1181_v63  ;;  %2239 = vmatmul.mubr.msk.f32.vlgmr.msra.gmra.mxu1 %vm1182_vm2, %v1177_v0  ;;  %v1566_v9 = vmul.f32 %v2115_v62, %v2619_v28  ;;  %v1745_v12 = vadd.f32 %v1744_v53, %v2586_v57  ;;  %v1756_v50 = vmul.f32 %v2124_v10, %v2602_v2  ;;  %v2126_v57 = vld [vmem:[%s2547_s16 + $0x78] sm:$0xff] }
 0x115   : > { %2242 = vmatpush3.msra.mxu0 %v2534_v45  ;;  %2247 = vmatpush3.msra.mxu1 %v2539_v46  ;;  %v1557_v11 = vsub.f32 %v1555_v6, %v1556_v19  ;;  %v1373_v13 = vsub.f32 %v1371_v59, %v1372_v1  ;;  %v1568_v14 = vmul.f32 %v2116_v26, %v2625_v39 }
 0x116   : > { %2243 = vmatprep.mubr.msk.f32.mxu0 %vm2322_vm1, %v2321_v38  ;;  %2248 = vmatprep.mubr.msk.f32.mxu1 %vm2322_vm1, %v2321_v38  ;;  %v1766_v15 = vmul.f32 %v2127_v34, %v2619_v28  ;;  %v1755_v17 = vadd.f32 %v1754_v4, %v1745_v12  ;;  %v1741_v18 = vsub.f32 %v2584_v56, %v2595_v61 }
 0x117   : > { %2251 = vmatprep.subr.mxu0 %v2321_v38  ;;  %2256 = vmatprep.subr.mxu1 %v2321_v38  ;;  %v1567_v16 = vadd.f32 %v1566_v9, %v1557_v11  ;;  %v1750_v20 = vmul.f32 %v2124_v10, %v2592_v60  ;;  %v1752_v21 = vmul.f32 %v2125_v47, %v2602_v2 }
 0x118   : > { %2244 = vmatmul.mubr.msk.f32.vlgmr.msra.gmra.mxu0 %vm1182_vm2, %v1377_v7  ;;  %2249 = vmatmul.mubr.msk.f32.vlgmr.msra.gmra.mxu1 %vm1182_vm2, %v1373_v13  ;;  %v1573_v22 = vadd.f32 %v1572_v5, %v1571_v8  ;;  %v1757_v23 = vadd.f32 %v1756_v50, %v1755_v17  ;;  %v1768_v24 = vmul.f32 %v2126_v57, %v2625_v39 }
 0x119   : > { %2252 = vmatpush3.msra.mxu0 %v2534_v45  ;;  %2257 = vmatpush3.msra.mxu1 %v2539_v46  ;;  %v1569_v56 = vsub.f32 %v1567_v16, %v1568_v14  ;;  %v1751_v61 = vadd.f32 %v1750_v20, %v1741_v18  ;;  %v1762_v60 = vmul.f32 %v2126_v57, %v2619_v28 }
 0x11a   : > { %2253 = vmatprep.mubr.msk.f32.mxu0 %vm2322_vm1, %v2321_v38  ;;  %2258 = vmatprep.mubr.msk.f32.mxu1 %vm2322_vm1, %v2321_v38  ;;  %v1767_v2 = vadd.f32 %v1766_v15, %v1757_v23  ;;  %v1764_v26 = vmul.f32 %v2127_v34, %v2625_v39 }
 0x11b   : > { %2261 = vmatprep.subr.mxu0 %v2321_v38  ;;  %2266 = vmatprep.subr.mxu1 %v2321_v38  ;;  %v1753_v25 = vsub.f32 %v1751_v61, %v1752_v21 }
 0x11c   : > { %2254 = vmatmul.mubr.msk.f32.vlgmr.msra.gmra.mxu0 %vm1182_vm2, %v1573_v22  ;;  %2259 = vmatmul.mubr.msk.f32.vlgmr.msra.gmra.mxu1 %vm1182_vm2, %v1569_v56  ;;  %v1769_v27 = vadd.f32 %v1768_v24, %v1767_v2 }
 0x11d   : > { %2262 = vmatpush3.msra.mxu0 %v2534_v45  ;;  %2267 = vmatpush3.msra.mxu1 %v2539_v46  ;;  %v1763_v28 = vadd.f32 %v1762_v60, %v1753_v25 }
 0x11e   : > { %2263 = vmatprep.mubr.msk.f32.mxu0 %vm2322_vm1, %v2321_v38  ;;  %2268 = vmatprep.mubr.msk.f32.mxu1 %vm2322_vm1, %v2321_v38 }
 0x11f   : > { %v1765_v29 = vsub.f32 %v1763_v28, %v1764_v26 }
 0x120   : > { %2264 = vmatmul.mubr.msk.f32.vlgmr.msra.gmra.mxu0 %vm1182_vm2, %v1769_v27 }
 0x121   : > { %2269 = vmatmul.mubr.msk.f32.vlgmr.msra.gmra.mxu1 %vm1182_vm2, %v1765_v29 }
 0x1d4   : > { %v1252_v30 = vpop.f32.mrf.mxu0  ;;  %v1325_v31 = vpop.f32.mrf.mxu1 }
 0x1d5   : > { %v1326_v32 = vadd.f32 %v1325_v31, %v1252_v30 }
 0x1d6   : > { %v2235_v33 = vpop.f32.mrf.mxu0  ;;  %v2240_v45 = vpop.f32.mrf.mxu1 }
 0x1d7   : > { %1329 = vst.msk [vmem:[%s549_s24] sm:$0xff] %vm557_vm0, %v1326_v32 }
 0x1d8   : > { %v1447_v46 = vpop.f32.mrf.mxu0  ;;  %v1520_v35 = vpop.f32.mrf.mxu1 }
 0x1d9   : > { %v1521_v36 = vadd.f32 %v1520_v35, %v1447_v46 }
 0x1da   : > { %v2245_v37 = vpop.f32.mrf.mxu0  ;;  %v2250_v38 = vpop.f32.mrf.mxu1 }
 0x1db   : > { %2108 = vst.msk [vmem:[%s549_s24 + $0x8] sm:$0xff] %vm557_vm0, %v1521_v36 }
 0x1dc   : > { %v1643_v39 = vpop.f32.mrf.mxu0  ;;  %v1716_v40 = vpop.f32.mrf.mxu1 }
 0x1dd   : > { %v1717_v41 = vadd.f32 %v1716_v40, %v1643_v39 }
 0x1de   : > { %v2255_v42 = vpop.f32.mrf.mxu0  ;;  %v2260_v43 = vpop.f32.mrf.mxu1  ;;  %v1961_v52 = vld [vmem:[%s549_s24] sm:$0xff] (%p2397_p5) }
 0x1df   : > { %2119 = vst.msk [vmem:[%s549_s24 + $0x10] sm:$0xff] %vm557_vm0, %v1717_v41  ;;  %1962 = vst [vmem:[%s1926_s21] sm:$0xff] (%p2397_p5), %v1961_v52 }
 0x1e0   : > { %v1839_v44 = vpop.f32.mrf.mxu0  ;;  %1924 = sbr.rel (!%p2397_p5) target bundleno = 493 (0x1ed), region = 166 }
 0x1e1   : > { %v1912_v47 = vpop.f32.mrf.mxu1 }
 0x1e2   : > { %v2265_v48 = vpop.f32.mrf.mxu0  ;;  %v1913_v49 = vadd.f32 %v1912_v47, %v1839_v44  ;;  %v1963_v53 = vld [vmem:[%s549_s24 + $0x8] sm:$0xff] (%p2397_p5) }
 0x1e3   : > { %v2270_v51 = vpop.f32.mrf.mxu1  ;;  %1964 = vst [vmem:[%s1926_s21 + $0x10] sm:$0xff] (%p2397_p5), %v1963_v53 }
 0x1e4   : > { %2130 = vst.msk [vmem:[%s549_s24 + $0x18] sm:$0xff] %vm557_vm0, %v1913_v49 }
 0x1e6   : > { %v1965_v54 = vld [vmem:[%s549_s24 + $0x10] sm:$0xff] }
 0x1e7   : > { %1966 = vst [vmem:[%s1926_s21 + $0x20] sm:$0xff] %v1965_v54 }
 0x1eb   : > { %v1967_v55 = vld [vmem:[%s549_s24 + $0x18] sm:$0xff] }
 0x1ec   : > { %1968 = vst [vmem:[%s1926_s21 + $0x30] sm:$0xff] %v1967_v55 }
 0x1ed PF: > { %p14_p10 = scmp.ge.s32.totalorder %s2380_s28, 4   ;;  %s2718_s24 = smov %s2315_s25 }
 0x1ee   : > { %s2719_s25 = smov %s2391_s8  ;;  %s2720_s26 = smov %s2380_s28 }
 0x1ef   :  { %16 = sbr.rel (!%p14_p10) target bundleno = 2 (0x2), region = 287 }

// kernel: _lambda_.51
= control target key start
LH: loop header
LB: loop body
LE: loop exit
PB: predicated region body
PF: predicated region fallthrough
CT: control target
= control target key end

     0   :  { %vm52_vm0 = vcmask 261120   ;;  %vm108_vm1 = vcmask 31744   ;;  %s187_s1 = inlined_call_operand.vmem [shape: bf16[32,4], index: 1, kind: input, shape index: {}]   ;;  %s188_s0 = inlined_call_operand.vmem [shape: bf16[32,32], index: 0, kind: input, shape index: {}]   ;;  %s189_s2 = inlined_call_operand.vmem [shape: f32[1,4], index: 2, kind: input, shape index: {}]   ;;  %s190_s3 = inlined_call_operand.vmem [shape: f32[32,4], index: 3, kind: output, shape index: {}]  }
   0x1   :  { %v136_v0 = vld [vmem:[%s187_s1 + $0x8] sm:$0xff]   ;;  %v137_v1 = vld [vmem:[%s187_s1] sm:$0xff]  }
   0x2   :  { %128 = vmatprep.subr.bf16.mxu0 %v136_v0  ;;  %v138_v2 = vld [vmem:[%s188_s0] sm:$0xff]   ;;  %v139_v3 = vld [vmem:[%s188_s0 + $0x8] sm:$0xff]  }
   0x3   :  { %129 = vmatpush3.bf16.msra.mxu0 %v136_v0  ;;  %132 = vmatprep.mubr.msk.bf16.mxu0 %vm52_vm0, %v138_v2  ;;  %v117_v4 = vld [vmem:[%s189_s2] ss:$0 sm:$0xff] }
   0x4   :  { %130 = vmatprep.subr.bf16.mxu0 %v137_v1 }
   0x7   :  { %131 = vmatpush3.bf16.msra.mxu0 %v137_v1 }
   0xa   :  { %133 = vmatmul.mubr.msk.bf16.vlgmr.msra.gmra.mxu0 %vm52_vm0, %v139_v3 }
  0xca   :  { %v134_v5 = vpop.f32.mrf.mxu0 }
  0xcb   :  { %v102_v6 = vadd.f32 %v134_v5, %v117_v4 }
  0xcc   :  { %v93_v7 = vpop.f32.mrf.mxu0 }
  0xcd   :  { %111 = vst.msk [vmem:[%s190_s3 + $0x10] sm:$0xff] %vm108_vm1, %v102_v6  ;;  %v94_v8 = vadd.f32 %v117_v4, %v93_v7 }
  0xce   :  { %v135_v9 = vpop.f32.mrf.mxu0 }
  0xcf   :  { %109 = vst.msk [vmem:[%s190_s3] sm:$0xff] %vm108_vm1, %v94_v8  ;;  %v105_v10 = vadd.f32 %v135_v9, %v117_v4 }
  0xd0   :  { %v96_v11 = vpop.f32.mrf.mxu0 }
  0xd1   :  { %112 = vst.msk [vmem:[%s190_s3 + $0x18] sm:$0xff] %vm108_vm1, %v105_v10  ;;  %v97_v12 = vadd.f32 %v117_v4, %v96_v11 }
  0xd3   :  { %110 = vst.msk [vmem:[%s190_s3 + $0x8] sm:$0xff] %vm108_vm1, %v97_v12 }

// kernel: _lambda_.45
= control target key start
LH: loop header
LB: loop body
LE: loop exit
PB: predicated region body
PF: predicated region fallthrough
CT: control target
= control target key end

     0   :  { %s3423_s24 = smov 0   ;;  %s3425_s25 = smov 0   ;;  %s4425_s0 = inlined_call_operand.vmem [shape: f32[4,16,16], index: 0, kind: input, shape index: {}]   ;;  %s4426_s1 = inlined_call_operand.vmem [shape: f32[4,16,16], index: 1, kind: input, shape index: {}]   ;;  %s4427_s2 = inlined_call_operand.vmem [shape: f32[16,8], index: 2, kind: input, shape index: {}, may-alias: {2,4}]   ;;  %s4428_s3 = inlined_call_operand.vmem [shape: f32[16,8], index: 3, kind: input, shape index: {}, may-alias: {3,5}]   ;;  %s4429_s4 = inlined_call_operand.vmem [shape: f32[16,8], index: 4, kind: input, shape index: {}, may-alias: {2,4}]   ;;  %s4430_s5 = inlined_call_operand.vmem [shape: f32[16,8], index: 5, kind: input, shape index: {}, may-alias: {3,5}]   ;;  %s4431_s6 = inlined_call_operand.vmem [shape: f32[16,8,8], index: 6, kind: output, shape index: {0}]   ;;  %s4432_s7 = inlined_call_operand.vmem [shape: f32[16,8,8], index: 7, kind: output, shape index: {1}]  }
   0x1   :  { %s3427_s26 = smov 0  }
   0x2 LB: > { %s3130_s27 = sadd.s32 4294967295, %s3378_s26   ;;  %s3440_s28 = sadd.s32 1, %s3378_s26   ;;  %s3378_s26 = sphi %s3427_s26, %s4467_s26   ;;  %s3374_s25 = sphi %s3425_s25, %s4466_s25   ;;  %s3370_s24 = sphi %s3423_s24, %s4465_s24  }
   0x3   : > { %s22_s29 = ssub.s32 %s3378_s26, %s3440_s28  ;;  %s25_s30 = sadd.s32 1, %s3374_s25 }
   0x4   : > { %p23_p0 = scmp.eq.s32.totalorder %s22_s29, 0  ;;  %p32_p1 = scmp.ne.s32.totalorder %s3374_s25, %s3370_s24 }
   0x5   : > { %p33_p2 = scmp.eq.s32.totalorder %s3378_s26, 0  ;;  %p3133_p4 = scmp.ge.s32.totalorder %s3378_s26, 2 }
   0x6   : > { %s3449_s8 = scalar_select %p23_p0, %s3374_s25, %s25_s30  }
   0x7   : > { %p3451_p3 = por %p33_p2, %p32_p1  ;;  %232 = sbr.rel (%p3133_p4) target bundleno = 24 (0x18), region = 32 }
   0xc   : > { %235 = sbr.rel (!%p3451_p3) target bundleno = 18 (0x12), region = 36  ;;  %s237_s10 = sand.u32 (%p3451_p3), 1, %s3374_s25  }
   0xd   : > { %s3135_s11 = sshll.u32 (%p3451_p3), %s3378_s26, 3  ;;  %s3134_s12 = sshll.u32 (%p3451_p3), %s237_s10, 5 }
   0xe   : > { %s241_s15 = scalar_lea.vmem (%p3451_p3), %s4425_s0, %s3135_s11  ;;  %s239_s16 = scalar_lea.vmem (%p3451_p3), [#allocation2], %s3134_s12 }
   0xf   : > { %v276_v0 = vld [vmem:[%s241_s15] sm:$0xff] (%p3451_p3)  ;;  %v278_v1 = vld [vmem:[%s241_s15 + $0x10] sm:$0xff] (%p3451_p3) }
  0x10   : > { %v280_v2 = vld [vmem:[%s241_s15 + $0x20] sm:$0xff] (%p3451_p3)  ;;  %277 = vst [vmem:[%s239_s16] sm:$0xff] (%p3451_p3), %v276_v0  ;;  %279 = vst [vmem:[%s239_s16 + $0x8] sm:$0xff] (%p3451_p3), %v278_v1  ;;  %v282_v3 = vld [vmem:[%s241_s15 + $0x30] sm:$0xff] (%p3451_p3) }
  0x11   : > { %281 = vst [vmem:[%s239_s16 + $0x10] sm:$0xff] %v280_v2  ;;  %283 = vst [vmem:[%s239_s16 + $0x18] sm:$0xff] %v282_v3 }
  0x12 PF: > { %289 = sbr.rel (!%p3451_p3) target bundleno = 24 (0x18), region = 74  ;;  %s291_s17 = sand.u32 (%p3451_p3), 1, %s3374_s25  }
  0x13   : > { %s3137_s18 = sshll.u32 (%p3451_p3), %s3378_s26, 3  ;;  %s3136_s19 = sshll.u32 (%p3451_p3), %s291_s17, 5 }
  0x14   : > { %s295_s22 = scalar_lea.vmem (%p3451_p3), %s4426_s1, %s3137_s18  ;;  %s293_s23 = scalar_lea.vmem (%p3451_p3), [#allocation3], %s3136_s19 }
  0x15   : > { %v330_v4 = vld [vmem:[%s295_s22] sm:$0xff] (%p3451_p3)  ;;  %v332_v5 = vld [vmem:[%s295_s22 + $0x10] sm:$0xff] (%p3451_p3) }
  0x16   : > { %v334_v6 = vld [vmem:[%s295_s22 + $0x20] sm:$0xff] (%p3451_p3)  ;;  %331 = vst [vmem:[%s293_s23] sm:$0xff] (%p3451_p3), %v330_v4  ;;  %333 = vst [vmem:[%s293_s23 + $0x8] sm:$0xff] (%p3451_p3), %v332_v5  ;;  %v336_v7 = vld [vmem:[%s295_s22 + $0x30] sm:$0xff] (%p3451_p3) }
  0x17   : > { %335 = vst [vmem:[%s293_s23 + $0x10] sm:$0xff] %v334_v6  ;;  %337 = vst [vmem:[%s293_s23 + $0x18] sm:$0xff] %v336_v7 }
  0x18 PF: > { %p3138_p5 = scmp.ge.s32.totalorder %s3378_s26, 1  ;;  %p342_p6 = scmp.lt.s32.totalorder %s3378_s26, 3 }
  0x1a   : > { %p343_p7 = pnand %p3138_p5, %p342_p6 }
  0x1c   : > { %346 = sbr.rel (%p343_p7) target bundleno = 478 (0x1de), region = 112 }
  0x21   : > { %v3475_v8 = vld [vmem:[%s4427_s2 + $0x8] sm:$0xff]  ;;  %s349_s9 = sand.u32 1, %s3370_s24   ;;  %v3380_v9 = vmov 0.0   ;;  %v3482_v10 = vld [vmem:[%s4427_s2] sm:$0xff]  ;;  %vm3381_vm0 = vmmov 0   ;;  %vm418_vm1 = vcmask 130048   ;;  %v492_v25 = vlaneseq }
  0x22   : > { %3217 = vmatprep.subr.mxu0 %v3380_v9  ;;  %3221 = vmatprep.mubr.msk.f32.mxu0 %vm3381_vm0, %v3380_v9  ;;  %s3139_s12 = sshll.u32 %s349_s9, 5  ;;  %v3489_v11 = vld [vmem:[%s4428_s3 + $0x8] sm:$0xff]  ;;  %v3496_v12 = vld [vmem:[%s4428_s3] sm:$0xff]  ;;  %v3382_v27 = vmov 1966171168   ;;  %s3141_s9 = sshll.u32 %s3130_s27, 3 }
  0x23   : > { %3218 = vmatpush3.msra.mxu0 %v3475_v8  ;;  %3224 = vmatprep.subr.mxu1 %v3380_v9  ;;  %s3499_s16 = scalar_lea.vmem [#allocation2], %s3139_s12  ;;  %v3508_v14 = vld [vmem:[%s4429_s4 + $0x8] sm:$0xff]  ;;  %v3518_v15 = vld [vmem:[%s4429_s4] sm:$0xff]  ;;  %s3522_s21 = scalar_lea.vmem [#allocation3], %s3139_s12  ;;  %v493_v26 = vshrl.u32 %v492_v25, 7  ;;  %v750_v28 = vunpack.c.l.s4 %v3382_v27  ;;  %vm2999_vm2 = vcmask 64512  }
  0x24   : > { %3219 = vmatprep.subr.mxu0 %v3380_v9  ;;  %v416_v13 = vld [vmem:[%s3499_s16] sm:$0xff]  ;;  %3225 = vmatpush3.msra.mxu1 %v3489_v11  ;;  %v3533_v17 = vld [vmem:[%s4430_s5 + $0x8] sm:$0xff]  ;;  %v3155_v21 = vld [vmem:[%s3499_s16 + $0x10] sm:$0xff]  ;;  %p397_p8 = scmp.lt.s32.totalorder %s3141_s9, 15 }
  0x25   : > { %3220 = vmatpush3.msra.mxu0 %v3482_v10  ;;  %3226 = vmatprep.subr.mxu1 %v3380_v9  ;;  %v417_v16 = vld [vmem:[%s3522_s21] sm:$0xff]  ;;  %v3149_v18 = vld [vmem:[%s3499_s16 + $0x8] sm:$0xff]  ;;  %v3156_v22 = vld [vmem:[%s3522_s21 + $0x10] sm:$0xff]  ;;  %v3637_v29 = vsub.s32 0, %v493_v26  ;;  %v3639_v30 = vsub.s32 2, %v493_v26  ;;  %v751_v31 = vunpack.c.0.s8 %v750_v28  ;;  %v3643_v35 = vsub.s32 3, %v493_v26 }
  0x26   : > { %3222 = vmatmul.mubr.msk.f32.vlgmr.msra.gmra.mxu0 %vm418_vm1, %v416_v13  ;;  %3227 = vmatpush3.msra.mxu1 %v3496_v12  ;;  %v3544_v19 = vld [vmem:[%s4430_s5] sm:$0xff]  ;;  %v3150_v20 = vld [vmem:[%s3522_s21 + $0x8] sm:$0xff]  ;;  %v3161_v23 = vld [vmem:[%s3499_s16 + $0x18] sm:$0xff]  ;;  %v3645_v36 = vsub.s32 1, %v493_v26  ;;  %v3653_v43 = vsub.s32 5, %v493_v26  ;;  %v3655_v44 = vsub.s32 4, %v493_v26 }
  0x27   : > { %3228 = vmatprep.mubr.msk.f32.mxu1 %vm3381_vm0, %v3380_v9  ;;  %3231 = vmatprep.subr.mxu0 %v3380_v9  ;;  %v3162_v24 = vld [vmem:[%s3522_s21 + $0x18] sm:$0xff]  ;;  %v3647_v38 = vsub.s32 %v751_v31, %v493_v26  ;;  %v3664_v54 = vsub.s32 7, %v493_v26  ;;  %v3666_v55 = vsub.s32 6, %v493_v26  ;;  %s4469_s9 = smov (!%p397_p8, %s3141_s9), 15 }
  0x28   : > { %3229 = vmatmul.mubr.msk.f32.vlgmr.msra.gmra.mxu1 %vm418_vm1, %v416_v13  ;;  %3232 = vmatpush3.msra.mxu0 %v3508_v14  ;;  %s3142_s26 = sshll.u32 %s4469_s9, 3 }
  0x29   : > { %3233 = vmatprep.subr.mxu0 %v3380_v9  ;;  %3235 = vmatprep.mubr.msk.f32.mxu0 %vm3381_vm0, %v3380_v9  ;;  %s4364_s11 = scalar_lea.vmem %s4431_s6, %s3142_s26  ;;  %s4369_s14 = scalar_lea.vmem %s4432_s7, %s3142_s26 }
  0x2a   : > { %3234 = vmatpush3.msra.mxu0 %v3518_v15  ;;  %3238 = vmatprep.subr.mxu1 %v3380_v9 }
  0x2b   : > { %3236 = vmatmul.mubr.msk.f32.vlgmr.msra.gmra.mxu0 %vm418_vm1, %v417_v16  ;;  %3245 = vmatprep.subr.mxu0 %v3380_v9 }
  0x2c   : > { %3246 = vmatpush3.msra.mxu0 %v3475_v8  ;;  %3249 = vmatprep.mubr.msk.f32.mxu0 %vm3381_vm0, %v3380_v9 }
  0x2d   : > { %3247 = vmatprep.subr.mxu0 %v3380_v9  ;;  %3239 = vmatpush3.msra.mxu1 %v3533_v17 }
  0x2e   : > { %3248 = vmatpush3.msra.mxu0 %v3482_v10  ;;  %3240 = vmatprep.subr.mxu1 %v3380_v9 }
  0x2f   : > { %3250 = vmatmul.mubr.msk.f32.vlgmr.msra.gmra.mxu0 %vm418_vm1, %v3149_v18  ;;  %3241 = vmatpush3.msra.mxu1 %v3544_v19 }
  0x30   : > { %3242 = vmatprep.mubr.msk.f32.mxu1 %vm3381_vm0, %v3380_v9  ;;  %3252 = vmatprep.subr.mxu1 %v3380_v9 }
  0x31   : > { %3243 = vmatmul.mubr.msk.f32.vlgmr.msra.gmra.mxu1 %vm418_vm1, %v417_v16  ;;  %3259 = vmatprep.subr.mxu0 %v3380_v9 }
  0x32   : > { %3253 = vmatpush3.msra.mxu1 %v3489_v11  ;;  %3256 = vmatprep.mubr.msk.f32.mxu1 %vm3381_vm0, %v3380_v9 }
  0x33   : > { %3254 = vmatprep.subr.mxu1 %v3380_v9  ;;  %3260 = vmatpush3.msra.mxu0 %v3508_v14 }
  0x34   : > { %3255 = vmatpush3.msra.mxu1 %v3496_v12  ;;  %3261 = vmatprep.subr.mxu0 %v3380_v9 }
  0x35   : > { %3257 = vmatmul.mubr.msk.f32.vlgmr.msra.gmra.mxu1 %vm418_vm1, %v3149_v18  ;;  %3262 = vmatpush3.msra.mxu0 %v3518_v15 }
  0x36   : > { %3263 = vmatprep.mubr.msk.f32.mxu0 %vm3381_vm0, %v3380_v9  ;;  %3273 = vmatprep.subr.mxu0 %v3380_v9 }
  0x37   : > { %3264 = vmatmul.mubr.msk.f32.vlgmr.msra.gmra.mxu0 %vm418_vm1, %v3150_v20  ;;  %3266 = vmatprep.subr.mxu1 %v3380_v9 }
  0x38   : > { %3274 = vmatpush3.msra.mxu0 %v3475_v8  ;;  %3277 = vmatprep.mubr.msk.f32.mxu0 %vm3381_vm0, %v3380_v9 }
  0x39   : > { %3275 = vmatprep.subr.mxu0 %v3380_v9  ;;  %3267 = vmatpush3.msra.mxu1 %v3533_v17 }
  0x3a   : > { %3276 = vmatpush3.msra.mxu0 %v3482_v10  ;;  %3268 = vmatprep.subr.mxu1 %v3380_v9 }
  0x3b   : > { %3278 = vmatmul.mubr.msk.f32.vlgmr.msra.gmra.mxu0 %vm418_vm1, %v3155_v21  ;;  %3269 = vmatpush3.msra.mxu1 %v3544_v19 }
  0x3c   : > { %3270 = vmatprep.mubr.msk.f32.mxu1 %vm3381_vm0, %v3380_v9  ;;  %3280 = vmatprep.subr.mxu1 %v3380_v9 }
  0x3d   : > { %3271 = vmatmul.mubr.msk.f32.vlgmr.msra.gmra.mxu1 %vm418_vm1, %v3150_v20  ;;  %3287 = vmatprep.subr.mxu0 %v3380_v9 }
  0x3e   : > { %3281 = vmatpush3.msra.mxu1 %v3489_v11  ;;  %3284 = vmatprep.mubr.msk.f32.mxu1 %vm3381_vm0, %v3380_v9 }
  0x3f   : > { %3282 = vmatprep.subr.mxu1 %v3380_v9  ;;  %3288 = vmatpush3.msra.mxu0 %v3508_v14 }
  0x40   : > { %3283 = vmatpush3.msra.mxu1 %v3496_v12  ;;  %3289 = vmatprep.subr.mxu0 %v3380_v9 }
  0x41   : > { %3285 = vmatmul.mubr.msk.f32.vlgmr.msra.gmra.mxu1 %vm418_vm1, %v3155_v21  ;;  %3290 = vmatpush3.msra.mxu0 %v3518_v15 }
  0x42   : > { %3291 = vmatprep.mubr.msk.f32.mxu0 %vm3381_vm0, %v3380_v9  ;;  %3301 = vmatprep.subr.mxu0 %v3380_v9 }
  0x43   : > { %3292 = vmatmul.mubr.msk.f32.vlgmr.msra.gmra.mxu0 %vm418_vm1, %v3156_v22  ;;  %3294 = vmatprep.subr.mxu1 %v3380_v9 }
  0x44   : > { %3302 = vmatpush3.msra.mxu0 %v3475_v8  ;;  %3305 = vmatprep.mubr.msk.f32.mxu0 %vm3381_vm0, %v3380_v9 }
  0x45   : > { %3303 = vmatprep.subr.mxu0 %v3380_v9  ;;  %3295 = vmatpush3.msra.mxu1 %v3533_v17 }
  0x46   : > { %3304 = vmatpush3.msra.mxu0 %v3482_v10  ;;  %3296 = vmatprep.subr.mxu1 %v3380_v9 }
  0x47   : > { %3306 = vmatmul.mubr.msk.f32.vlgmr.msra.gmra.mxu0 %vm418_vm1, %v3161_v23  ;;  %3297 = vmatpush3.msra.mxu1 %v3544_v19 }
  0x48   : > { %3298 = vmatprep.mubr.msk.f32.mxu1 %vm3381_vm0, %v3380_v9  ;;  %3308 = vmatprep.subr.mxu1 %v3380_v9 }
  0x49   : > { %3299 = vmatmul.mubr.msk.f32.vlgmr.msra.gmra.mxu1 %vm418_vm1, %v3156_v22  ;;  %3315 = vmatprep.subr.mxu0 %v3380_v9 }
  0x4a   : > { %3309 = vmatpush3.msra.mxu1 %v3489_v11  ;;  %3312 = vmatprep.mubr.msk.f32.mxu1 %vm3381_vm0, %v3380_v9 }
  0x4b   : > { %3310 = vmatprep.subr.mxu1 %v3380_v9  ;;  %3316 = vmatpush3.msra.mxu0 %v3508_v14 }
  0x4c   : > { %3311 = vmatpush3.msra.mxu1 %v3496_v12  ;;  %3317 = vmatprep.subr.mxu0 %v3380_v9 }
  0x4d   : > { %3313 = vmatmul.mubr.msk.f32.vlgmr.msra.gmra.mxu1 %vm418_vm1, %v3161_v23  ;;  %3322 = vmatprep.subr.mxu1 %v3380_v9 }
  0x4e   : > { %3323 = vmatpush3.msra.mxu1 %v3533_v17  ;;  %3318 = vmatpush3.msra.mxu0 %v3518_v15 }
  0x4f   : > { %3324 = vmatprep.subr.mxu1 %v3380_v9  ;;  %3319 = vmatprep.mubr.msk.f32.mxu0 %vm3381_vm0, %v3380_v9 }
  0x50   : > { %3325 = vmatpush3.msra.mxu1 %v3544_v19  ;;  %3326 = vmatprep.mubr.msk.f32.mxu1 %vm3381_vm0, %v3380_v9 }
  0x51   : > { %3320 = vmatmul.mubr.msk.f32.vlgmr.msra.gmra.mxu0 %vm418_vm1, %v3162_v24  ;;  %3327 = vmatmul.mubr.msk.f32.vlgmr.msra.gmra.mxu1 %vm418_vm1, %v3162_v24 }
  0xe6   : > { %v488_v32 = vpop.f32.mrf.mxu0 }
  0xe7   : > { %v509_v33 = vrot.slane %v488_v32, %v3639_v30  ;;  %v495_v34 = vrot.slane %v488_v32, %v3637_v29  ;;  %v516_v41 = vrot.slane %v488_v32, %v3643_v35  ;;  %v502_v42 = vrot.slane %v488_v32, %v3645_v36 }
  0xe8   : > { %v3223_v37 = vpop.f32.mrf.mxu0  ;;  %v3649_v39 = vpop.f32.mrf.mxu1  ;;  %v530_v52 = vrot.slane %v488_v32, %v3653_v43  ;;  %v523_v53 = vrot.slane %v488_v32, %v3655_v44  ;;  %v544_v63 = vrot.slane %v488_v32, %v3664_v54  ;;  %v537_v0 = vrot.slane %v488_v32, %v3666_v55 }
  0xe9   : > { %511 = vbcast.lane.b32.xlu1 %v509_v33, 256  ;;  %497 = vbcast.lane.b32.xlu0 %v495_v34, 256  ;;  %v628_v5 = vrot.slane %v3649_v39, %v3645_v36  ;;  %v621_v6 = vrot.slane %v3649_v39, %v3637_v29  ;;  %v642_v18 = vrot.slane %v3649_v39, %v3643_v35 }
  0xea   : > { %v3230_v40 = vpop.f32.mrf.mxu1  ;;  %v635_v19 = vrot.slane %v3649_v39, %v3639_v30  ;;  %v656_v26 = vrot.slane %v3649_v39, %v3653_v43  ;;  %v649_v27 = vrot.slane %v3649_v39, %v3655_v44 }
  0xeb   : > { %v743_v45 = vpop.f32.mrf.mxu0 }
  0xec   : > { %v748_v46 = vcombine.high %v743_v45, %v743_v45  ;;  %v755_v47 = vrot.slane %v743_v45, %v3647_v38  ;;  %v663_v45 = vrot.slane %v3649_v39, %v3666_v55 }
  0xed   : > { %518 = vbcast.lane.b32.xlu1 %v516_v41, 256  ;;  %504 = vbcast.lane.b32.xlu0 %v502_v42, 256  ;;  %v3237_v48 = vpop.f32.mrf.mxu0  ;;  %v670_v42 = vrot.slane %v3649_v39, %v3664_v54 }
  0xee   : > { %v762_v49 = vrot.slane %v748_v46, %v3647_v38  ;;  %v763_v50 = vcombine.high %v755_v47, %v755_v47  ;;  %v3660_v51 = vrot.slane %v755_v47, %v3647_v38 }
  0xef   : > { %v3668_v56 = vpop.f32.mrf.mxu0 }
  0xf0   : > { %v3671_v57 = vrot.slane %v763_v50, %v3647_v38  ;;  %v764_v58 = vcombine.high %v762_v49, %v762_v49  ;;  %v3717_v32 = vrot.slane %v762_v49, %v3647_v38 }
  0xf1   : > { %532 = vbcast.lane.b32.xlu1 %v530_v52, 256  ;;  %525 = vbcast.lane.b32.xlu0 %v523_v53, 256  ;;  %v3251_v59 = vpop.f32.mrf.mxu0  ;;  %v863_v60 = vpop.f32.mrf.mxu1  ;;  %v1148_v53 = vrot.slane %v3668_v56, %v3645_v36 }
  0xf2   : > { %v868_v61 = vcombine.high %v863_v60, %v863_v60  ;;  %v875_v62 = vrot.slane %v863_v60, %v3647_v38  ;;  %v3687_v8 = vrot.slane %v764_v58, %v3647_v38  ;;  %v1141_v58 = vrot.slane %v3668_v56, %v3637_v29 }
  0xf3   : > { %v3244_v1 = vpop.f32.mrf.mxu1 }
  0xf4   : > { %v882_v2 = vrot.slane %v868_v61, %v3647_v38  ;;  %v883_v3 = vcombine.high %v875_v62, %v875_v62  ;;  %v3678_v4 = vrot.slane %v875_v62, %v3647_v38 }
  0xf5   : > { %546 = vbcast.lane.b32.xlu1 %v544_v63, 256  ;;  %539 = vbcast.lane.b32.xlu0 %v537_v0, 256  ;;  %v3684_v7 = vpop.f32.mrf.mxu1 }
  0xf6   : > { %v3690_v9 = vrot.slane %v883_v3, %v3647_v38  ;;  %v884_v10 = vcombine.high %v882_v2, %v882_v2  ;;  %v3714_v31 = vrot.slane %v882_v2, %v3647_v38 }
  0xf7   : > { %v3258_v11 = vpop.f32.mrf.mxu1  ;;  %v1389_v12 = vpop.f32.mrf.mxu0 }
  0xf8   : > { %v1394_v13 = vcombine.high %v1389_v12, %v1389_v12  ;;  %v1401_v14 = vrot.slane %v1389_v12, %v3647_v38  ;;  %v3706_v21 = vrot.slane %v884_v10, %v3647_v38 }
  0xf9   : > { %630 = vbcast.lane.b32.xlu1 %v628_v5, 256  ;;  %623 = vbcast.lane.b32.xlu0 %v621_v6, 256  ;;  %v3265_v15 = vpop.f32.mrf.mxu0 }
  0xfa   : > { %v3694_v16 = vrot.slane %v1394_v13, %v3647_v38  ;;  %v3697_v17 = vrot.slane %v1401_v14, %v3647_v38  ;;  %v1409_v41 = vcombine.high %v1401_v14, %v1401_v14  ;;  %v1162_v14 = vrot.slane %v3668_v56, %v3643_v35 }
  0xfb   : > { %v3703_v20 = vpop.f32.mrf.mxu0  ;;  %v1155_v15 = vrot.slane %v3668_v56, %v3639_v30 }
  0xfc   : > { %v3748_v62 = vrot.slane %v1409_v41, %v3647_v38 }
  0xfd   : > { %644 = vbcast.lane.b32.xlu1 %v642_v18, 256  ;;  %637 = vbcast.lane.b32.xlu0 %v635_v19, 256  ;;  %v3279_v22 = vpop.f32.mrf.mxu0  ;;  %v1509_v23 = vpop.f32.mrf.mxu1 }
  0xfe   : > { %v1514_v24 = vcombine.high %v1509_v23, %v1509_v23  ;;  %v1521_v25 = vrot.slane %v1509_v23, %v3647_v38 }
  0xff   : > { %v3272_v28 = vpop.f32.mrf.mxu1 }
 0x100   : > { %v3720_v33 = vrot.slane %v1514_v24, %v3647_v38  ;;  %v3723_v34 = vrot.slane %v1521_v25, %v3647_v38  ;;  %v1529_v37 = vcombine.high %v1521_v25, %v1521_v25  ;;  %v1176_v24 = vrot.slane %v3668_v56, %v3653_v43 }
 0x101   : > { %658 = vbcast.lane.b32.xlu1 %v656_v26, 256  ;;  %651 = vbcast.lane.b32.xlu0 %v649_v27, 256  ;;  %v3725_v40 = vpop.f32.mrf.mxu1  ;;  %v1169_v25 = vrot.slane %v3668_v56, %v3655_v44  ;;  %v1410_v26 = vcombine.high %v3694_v16, %v3694_v16 }
 0x102   : > { %v1962_v48 = vrot.slane %v3725_v40, %v3664_v54  ;;  %v1955_v52 = vrot.slane %v3725_v40, %v3666_v55  ;;  %v3741_v59 = vrot.slane %v1529_v37, %v3647_v38  ;;  %v1530_v19 = vcombine.high %v3720_v33, %v3720_v33 }
 0x103   : > { %v3286_v46 = vpop.f32.mrf.mxu1  ;;  %v2035_v47 = vpop.f32.mrf.mxu0 }
 0x104   : > { %v2040_v49 = vcombine.high %v2035_v47, %v2035_v47  ;;  %v2047_v50 = vrot.slane %v2035_v47, %v3647_v38 }
 0x105   : > { %672 = vbcast.lane.b32.xlu1 %v670_v42, 256  ;;  %665 = vbcast.lane.b32.xlu0 %v663_v45, 256  ;;  %v3293_v39 = vpop.f32.mrf.mxu0 }
 0x106   : > { %v2054_v60 = vrot.slane %v2040_v49, %v3647_v38  ;;  %v3745_v61 = vrot.slane %v2047_v50, %v3647_v38  ;;  %v2055_v28 = vcombine.high %v2047_v50, %v2047_v50  ;;  %v3801_v39 = vrot.slane %v1410_v26, %v3647_v38 }
 0x107   : > { %v3750_v63 = vpop.f32.mrf.mxu0 }
 0x108   : > { %v2454_v0 = vrot.slane %v3750_v63, %v3643_v35  ;;  %v2447_v2 = vrot.slane %v3750_v63, %v3639_v30  ;;  %v2468_v5 = vrot.slane %v3750_v63, %v3653_v43  ;;  %v2461_v6 = vrot.slane %v3750_v63, %v3655_v44 }
 0x109   : > { %1150 = vbcast.lane.b32.xlu1 %v1148_v53, 256  ;;  %1143 = vbcast.lane.b32.xlu0 %v1141_v58, 256  ;;  %v3307_v1 = vpop.f32.mrf.mxu0  ;;  %v2155_v3 = vpop.f32.mrf.mxu1  ;;  %v2482_v12 = vrot.slane %v3750_v63, %v3664_v54  ;;  %v2475_v13 = vrot.slane %v3750_v63, %v3666_v55  ;;  %v3798_v58 = vrot.slane %v1530_v19, %v3647_v38 }
 0x10a   : > { %v2160_v10 = vcombine.high %v2155_v3, %v2155_v3  ;;  %v2167_v11 = vrot.slane %v2155_v3, %v3647_v38  ;;  %v3805_v1 = vrot.slane %v3720_v33, %v3647_v38  ;;  %v3809_v3 = vrot.slane %v3694_v16, %v3647_v38 }
 0x10b   : > { %v3300_v18 = vpop.f32.mrf.mxu1  ;;  %v2056_v19 = vcombine.high %v2054_v60, %v2054_v60  ;;  %v1274_v16 = vrot.slane %v3684_v7, %v3645_v36  ;;  %v1267_v33 = vrot.slane %v3684_v7, %v3637_v29 }
 0x10c   : > { %v2174_v22 = vrot.slane %v2160_v10, %v3647_v38  ;;  %v3773_v23 = vrot.slane %v2167_v11, %v3647_v38  ;;  %v2175_v37 = vcombine.high %v2167_v11, %v2167_v11  ;;  %v3815_v11 = vrot.slane %v2055_v28, %v3647_v38 }
 0x10d   : > { %1164 = vbcast.lane.b32.xlu1 %v1162_v14, 256  ;;  %1157 = vbcast.lane.b32.xlu0 %v1155_v15, 256  ;;  %v3781_v27 = vpop.f32.mrf.mxu1  ;;  %v1190_v14 = vrot.slane %v3668_v56, %v3664_v54  ;;  %v1183_v15 = vrot.slane %v3668_v56, %v3666_v55  ;;  %v3835_v56 = vrot.slane %v2054_v60, %v3647_v38 }
 0x10e   : > { %v2566_v41 = vrot.slane %v3781_v27, %v3645_v36  ;;  %v2580_v42 = vrot.slane %v3781_v27, %v3643_v35  ;;  %v2573_v46 = vrot.slane %v3781_v27, %v3639_v30  ;;  %v3812_v10 = vrot.slane %v2175_v37, %v3647_v38 }
 0x10f   : > { %v3314_v45 = vpop.f32.mrf.mxu1  ;;  %v2176_v18 = vcombine.high %v2174_v22, %v2174_v22  ;;  %v3832_v26 = vrot.slane %v2174_v22, %v3647_v38  ;;  %4443 = vst [vmem:[#allocation4_spill] sm:$0xff] %v3835_v56  ;;  %v1288_v28 = vrot.slane %v3684_v7, %v3643_v35  ;;  %v1281_v37 = vrot.slane %v3684_v7, %v3639_v30 }
 0x110   : > { %v1302_v45 = vrot.slane %v3684_v7, %v3653_v43  ;;  %v1295_v22 = vrot.slane %v3684_v7, %v3655_v44  ;;  %v1316_v60 = vrot.slane %v3684_v7, %v3664_v54 }
 0x111   : > { %1178 = vbcast.lane.b32.xlu1 %v1176_v24, 256  ;;  %1171 = vbcast.lane.b32.xlu0 %v1169_v25, 256  ;;  %v3826_v24 = vrot.slane %v2176_v18, %v3647_v38  ;;  %v3829_v25 = vrot.slane %v2056_v19, %v3647_v38  ;;  %v1787_v18 = vrot.slane %v3703_v20, %v3637_v29 }
 0x112   : > { %v1808_v19 = vrot.slane %v3703_v20, %v3643_v35 }
 0x115   : > { %1192 = vbcast.lane.b32.xlu1 %v1190_v14, 256  ;;  %1185 = vbcast.lane.b32.xlu0 %v1183_v15, 256  ;;  %v1309_v14 = vrot.slane %v3684_v7, %v3666_v55  ;;  %v1794_v15 = vrot.slane %v3703_v20, %v3645_v36  ;;  %v1822_v7 = vrot.slane %v3703_v20, %v3653_v43 }
 0x119   : > { %1276 = vbcast.lane.b32.xlu1 %v1274_v16, 256  ;;  %1269 = vbcast.lane.b32.xlu0 %v1267_v33, 256  ;;  %v1801_v16 = vrot.slane %v3703_v20, %v3639_v30  ;;  %v1815_v33 = vrot.slane %v3703_v20, %v3655_v44 }
 0x11d   : > { %1290 = vbcast.lane.b32.xlu1 %v1288_v28, 256  ;;  %1283 = vbcast.lane.b32.xlu0 %v1281_v37, 256  ;;  %v2801_v28 = vpop.f32.mrf.mxu1  ;;  %v1836_v37 = vrot.slane %v3703_v20, %v3664_v54 }
 0x121   : > { %1304 = vbcast.lane.b32.xlu1 %v1302_v45, 256  ;;  %1297 = vbcast.lane.b32.xlu0 %v1295_v22, 256  ;;  %v1829_v45 = vrot.slane %v3703_v20, %v3666_v55  ;;  %v2806_v22 = vcombine.high %v2801_v28, %v2801_v28 }
 0x125   : > { %1318 = vbcast.lane.b32.xlu1 %v1316_v60, 256  ;;  %1311 = vbcast.lane.b32.xlu0 %v1309_v14, 256  ;;  %v2813_v60 = vrot.slane %v2801_v28, %v3647_v38  ;;  %v1920_v14 = vrot.slane %v3725_v40, %v3645_v36 }
 0x129   : > { %1796 = vbcast.lane.b32.xlu1 %v1794_v15, 256  ;;  %1789 = vbcast.lane.b32.xlu0 %v1787_v18, 256  ;;  %v1913_v15 = vrot.slane %v3725_v40, %v3637_v29  ;;  %v2681_v18 = vpop.f32.mrf.mxu0 }
 0x12a   : > { %v2686_v20 = vcombine.high %v2681_v18, %v2681_v18  ;;  %v2693_v53 = vrot.slane %v2681_v18, %v3647_v38 }
 0x12b   : > { %v3321_v28 = vpop.f32.mrf.mxu0 }
 0x12c   : > { %v2700_v50 = vrot.slane %v2686_v20, %v3647_v38  ;;  %v2701_v49 = vcombine.high %v2693_v53, %v2693_v53  ;;  %v3877_v47 = vrot.slane %v2693_v53, %v3647_v38  ;;  %v1948_v53 = vrot.slane %v3725_v40, %v3653_v43 }
 0x12d   : > { %1810 = vbcast.lane.b32.xlu1 %v1808_v19, 256  ;;  %1803 = vbcast.lane.b32.xlu0 %v1801_v16, 256  ;;  %v3328_v19 = vpop.f32.mrf.mxu1  ;;  %v2820_v16 = vrot.slane %v2806_v22, %v3647_v38  ;;  %v1934_v22 = vrot.slane %v3725_v40, %v3643_v35  ;;  %v2440_v28 = vrot.slane %v3750_v63, %v3645_v36 }
 0x12e   : > { %4445 = vst [vmem:[#allocation6_spill] sm:$0xff] %v3877_v47  ;;  %v2702_v19 = vcombine.high %v2700_v50, %v2700_v50  ;;  %v3903_v20 = vrot.slane %v2700_v50, %v3647_v38  ;;  %v915_v36 = vcombine.high %v3690_v9, %v3690_v9  ;;  %v940_v35 = vrot.slane %v3687_v8, %v3637_v29 }
 0x12f   : > { %v2822_v18 = vcombine.high %v2820_v16, %v2820_v16 }
 0x130   : > { %4451 = vst [vmem:[#allocation12_spill] sm:$0xff] %v3903_v20 }
 0x131   : > { %1824 = vbcast.lane.b32.xlu1 %v1822_v7, 256  ;;  %1817 = vbcast.lane.b32.xlu0 %v1815_v33, 256  ;;  %v2821_v7 = vcombine.high %v2813_v60, %v2813_v60  ;;  %v3872_v33 = vrot.slane %v2813_v60, %v3647_v38  ;;  %v1927_v60 = vrot.slane %v3725_v40, %v3639_v30 }
 0x133   : > { %4444 = vst [vmem:[#allocation5_spill] sm:$0xff] %v3872_v33 }
 0x135   : > { %1838 = vbcast.lane.b32.xlu1 %v1836_v37, 256  ;;  %1831 = vbcast.lane.b32.xlu0 %v1829_v45, 256  ;;  %v3880_v37 = vrot.slane %v2821_v7, %v3647_v38  ;;  %v3883_v45 = vrot.slane %v2701_v49, %v3647_v38  ;;  %v3894_v49 = vrot.slane %v2822_v18, %v3647_v38 }
 0x136   : > { %v3900_v7 = vrot.slane %v2820_v16, %v3647_v38  ;;  %v924_v18 = vrot.slane %v3671_v57, %v3637_v29 }
 0x137   : > { %4446 = vst [vmem:[#allocation7_spill] sm:$0xff] %v3880_v37  ;;  %4447 = vst [vmem:[#allocation8_spill] sm:$0xff] %v3883_v45 }
 0x138   : > { %4448 = vst [vmem:[#allocation9_spill] sm:$0xff] %v3894_v49  ;;  %4450 = vst [vmem:[#allocation11_spill] sm:$0xff] %v3900_v7 }
 0x139   : > { %1922 = vbcast.lane.b32.xlu1 %v1920_v14, 256  ;;  %1915 = vbcast.lane.b32.xlu0 %v1913_v15, 256  ;;  %v1941_v14 = vrot.slane %v3725_v40, %v3655_v44  ;;  %v3897_v15 = vrot.slane %v2702_v19, %v3647_v38  ;;  %v2559_v38 = vrot.slane %v3781_v27, %v3637_v29 }
 0x13a   : > { %v913_v40 = vcombine.high %v3678_v4, %v3678_v4 }
 0x13b   : > { %4449 = vst [vmem:[#allocation10_spill] sm:$0xff] %v3897_v15 }
 0x13d   : > { %1936 = vbcast.lane.b32.xlu1 %v1934_v22, 256  ;;  %1929 = vbcast.lane.b32.xlu0 %v1927_v60, 256  ;;  %v2433_v22 = vrot.slane %v3750_v63, %v3637_v29  ;;  %v795_v63 = vcombine.high %v3671_v57, %v3671_v57  ;;  %v980_v60 = vrot.slane %v3690_v9, %v3637_v29 }
 0x13e   : > { %v4453_v9 = vrot.slane %v3781_v27, %v3655_v44  ;;  %v996_v57 = vrot.slane %v3706_v21, %v3637_v29  ;;  %v794_v44 = vcombine.high %v3717_v32, %v3717_v32 }
 0x13f   : > { %v932_v16 = vrot.slane %v795_v63, %v3637_v29 }
 0x141   : > { %1950 = vbcast.lane.b32.xlu1 %v1948_v53, 256  ;;  %1943 = vbcast.lane.b32.xlu0 %v1941_v14, 256 }
 0x145   : > { %1964 = vbcast.lane.b32.xlu1 %v1962_v48, 256  ;;  %1957 = vbcast.lane.b32.xlu0 %v1955_v52, 256  ;;  %v793_v48 = vcombine.high %v3660_v51, %v3660_v51  ;;  %v920_v52 = vrot.slane %v3660_v51, %v3637_v29 }
 0x149   : > { %2442 = vbcast.lane.b32.xlu1 %v2440_v28, 256  ;;  %2435 = vbcast.lane.b32.xlu0 %v2433_v22, 256  ;;  %v4452_v28 = vrot.slane %v3781_v27, %v3653_v43  ;;  %v916_v22 = vcombine.high %v3706_v21, %v3706_v21  ;;  %v936_v43 = vrot.slane %v3717_v32, %v3637_v29 }
 0x14d   : > { %2456 = vbcast.lane.b32.xlu1 %v2454_v0, 256  ;;  %2449 = vbcast.lane.b32.xlu0 %v2447_v2, 256  ;;  %v3947_v0 = vrot.slane %v913_v40, %v3637_v29  ;;  %v3950_v2 = vrot.slane %v793_v48, %v3637_v29  ;;  %v992_v40 = vrot.slane %v3714_v31, %v3637_v29 }
 0x14e   : > { %v914_v48 = vcombine.high %v3714_v31, %v3714_v31  ;;  %v1004_v31 = vrot.slane %v916_v22, %v3637_v29 }
 0x151   : > { %2470 = vbcast.lane.b32.xlu1 %v2468_v5, 256  ;;  %2463 = vbcast.lane.b32.xlu0 %v2461_v6, 256  ;;  %v976_v5 = vrot.slane %v3678_v4, %v3637_v29  ;;  %v988_v4 = vrot.slane %v915_v36, %v3637_v29 }
 0x155   : > { %2484 = vbcast.lane.b32.xlu1 %v2482_v12, 256  ;;  %2477 = vbcast.lane.b32.xlu0 %v2475_v13, 256 }
 0x159   : > { %2568 = vbcast.lane.b32.xlu1 %v2566_v41, 256  ;;  %2561 = vbcast.lane.b32.xlu0 %v2559_v38, 256  ;;  %v796_v38 = vcombine.high %v3687_v8, %v3687_v8 }
 0x15b   : > { %v512_v6 = vpop.permute.xlu1 %511  ;;  %v498_v12 = vpop.permute.xlu0 %497  ;;  %v948_v32 = vrot.slane %v796_v38, %v3637_v29 }
 0x15c   : > { %v3957_v13 = vmul.f32 %v3950_v2, %v512_v6  ;;  %v1031_v51 = vmul.f32 %v3947_v0, %v512_v6  ;;  %v3960_v41 = vmul.f32 %v920_v52, %v498_v12  ;;  %v1029_v50 = vmul.f32 %v976_v5, %v498_v12 }
 0x15d   : > { %2582 = vbcast.lane.b32.xlu1 %v2580_v42, 256  ;;  %2575 = vbcast.lane.b32.xlu0 %v2573_v46, 256 }
 0x15f   : > { %v519_v19 = vpop.permute.xlu1 %518  ;;  %v505_v53 = vpop.permute.xlu0 %504 }
 0x160   : > { %v3976_v42 = vmul.f32 %v932_v16, %v519_v19  ;;  %v1032_v14 = vmul.f32 %v988_v4, %v519_v19  ;;  %v3978_v30 = vmul.f32 %v924_v18, %v505_v53  ;;  %v1030_v46 = vmul.f32 %v980_v60, %v505_v53 }
 0x161   : > { %2596 = vbcast.lane.b32.xlu1 %v4452_v28, 256  ;;  %2589 = vbcast.lane.b32.xlu0 %v4453_v9, 256  ;;  %v4454_v19 = vrot.slane %v3781_v27, %v3664_v54  ;;  %v4455_v53 = vrot.slane %v3781_v27, %v3666_v55  ;;  %v1000_v28 = vrot.slane %v914_v48, %v3637_v29 }
 0x162   : > { %v944_v9 = vrot.slane %v794_v44, %v3637_v29 }
 0x163   : > { %v533_v63 = vpop.permute.xlu1 %532  ;;  %v526_v36 = vpop.permute.xlu0 %525 }
 0x164   : > { %v4000_v6 = vmul.f32 %v940_v35, %v533_v63  ;;  %v1034_v21 = vmul.f32 %v996_v57, %v533_v63  ;;  %v4002_v12 = vmul.f32 %v936_v43, %v526_v36  ;;  %v1033_v8 = vmul.f32 %v992_v40, %v526_v36 }
 0x165   : > { %2610 = vbcast.lane.b32.xlu1 %v4454_v19, 256  ;;  %2603 = vbcast.lane.b32.xlu0 %v4455_v53, 256 }
 0x167   : > { %v547_v63 = vpop.permute.xlu1 %546  ;;  %v540_v20 = vpop.permute.xlu0 %539 }
 0x168   : > { %v4014_v7 = vmul.f32 %v948_v32, %v547_v63  ;;  %v1036_v36 = vmul.f32 %v1004_v31, %v547_v63  ;;  %v4016_v15 = vmul.f32 %v944_v9, %v540_v20  ;;  %v1035_v54 = vmul.f32 %v1000_v28, %v540_v20 }
 0x16b   : > { %v631_v19 = vpop.permute.xlu1 %630  ;;  %v624_v49 = vpop.permute.xlu0 %623 }
 0x16c   : > { %v1014_v55 = vmul.f32 %v980_v60, %v631_v19  ;;  %v1046_v27 = vmul.f32 %v924_v18, %v631_v19  ;;  %v1013_v53 = vmul.f32 %v976_v5, %v624_v49  ;;  %v1045_v22 = vmul.f32 %v920_v52, %v624_v49 }
 0x16d   : > { %v1439_v19 = vcombine.high %v3697_v17, %v3697_v17 }
 0x16e   : > { %v1022_v38 = vsub.f32 %v3978_v30, %v1014_v55  ;;  %v1054_v47 = vadd.f32 %v1046_v27, %v1030_v46  ;;  %v1021_v48 = vsub.f32 %v3960_v41, %v1013_v53  ;;  %v1053_v44 = vadd.f32 %v1045_v22, %v1029_v50 }
 0x16f   : > { %v645_v33 = vpop.permute.xlu1 %644  ;;  %v638_v45 = vpop.permute.xlu0 %637 }
 0x170   : > { %v4020_v37 = vmul.f32 %v988_v4, %v645_v33  ;;  %v1048_v63 = vmul.f32 %v932_v16, %v645_v33  ;;  %v4023_v56 = vmul.f32 %v3947_v0, %v638_v45  ;;  %v1047_v20 = vmul.f32 %v3950_v2, %v638_v45 }
 0x171   : > { %v4048_v16 = vrot.slane %v3748_v62, %v3637_v29 }
 0x172   : > { %v1024_v5 = vsub.f32 %v3976_v42, %v4020_v37  ;;  %v1056_v49 = vadd.f32 %v1048_v63, %v1032_v14  ;;  %v1023_v52 = vsub.f32 %v3957_v13, %v4023_v56  ;;  %v1055_v60 = vadd.f32 %v1047_v20, %v1031_v51 }
 0x173   : > { %v659_v41 = vpop.permute.xlu1 %658  ;;  %v652_v50 = vpop.permute.xlu0 %651  ;;  %v4044_v51 = vrot.slane %v3741_v59, %v3637_v29  ;;  %v4056_v42 = vrot.slane %v3697_v17, %v3637_v29 }
 0x174   : > { %v4030_v18 = vmul.f32 %v996_v57, %v659_v41  ;;  %v1050_v4 = vmul.f32 %v940_v35, %v659_v41  ;;  %v4032_v30 = vmul.f32 %v992_v40, %v652_v50  ;;  %v1049_v33 = vmul.f32 %v936_v43, %v652_v50 }
 0x175   : > { %v4052_v35 = vrot.slane %v3723_v34, %v3637_v29  ;;  %v1561_v43 = vcombine.high %v3741_v59, %v3741_v59 }
 0x176   : > { %v1026_v0 = vsub.f32 %v4000_v6, %v4030_v18  ;;  %v4036_v45 = vadd.f32 %v1050_v4, %v1034_v21  ;;  %v1025_v37 = vsub.f32 %v4002_v12, %v4032_v30  ;;  %v4040_v2 = vadd.f32 %v1049_v33, %v1033_v8 }
 0x177   : > { %v673_v56 = vpop.permute.xlu1 %672  ;;  %v666_v13 = vpop.permute.xlu0 %665  ;;  %v1441_v21 = vcombine.high %v3748_v62, %v3748_v62  ;;  %v1559_v8 = vcombine.high %v3723_v34, %v3723_v34  ;;  %v1634_v17 = vrot.slane %v1561_v43, %v3637_v29  ;;  %v1642_v4 = vrot.slane %v3798_v58, %v3637_v29 }
 0x178   : > { %v4058_v14 = vmul.f32 %v1004_v31, %v673_v56  ;;  %v1052_v46 = vmul.f32 %v948_v32, %v673_v56  ;;  %v4060_v57 = vmul.f32 %v1000_v28, %v666_v13  ;;  %v1051_v40 = vmul.f32 %v944_v9, %v666_v13 }
 0x179   : > { %v1578_v22 = vrot.slane %v1441_v21, %v3637_v29  ;;  %v1586_v33 = vrot.slane %v3801_v39, %v3637_v29  ;;  %v1638_v56 = vrot.slane %v3805_v1, %v3637_v29  ;;  %v1562_v13 = vcombine.high %v3798_v58, %v3798_v58 }
 0x17a   : > { %v1028_v31 = vsub.f32 %v4014_v7, %v4058_v14  ;;  %v1060_v55 = vadd.f32 %v1052_v46, %v1036_v36  ;;  %v1027_v32 = vsub.f32 %v4016_v15, %v4060_v57  ;;  %v1059_v28 = vadd.f32 %v1051_v40, %v1035_v54 }
 0x17b   : > { %v1151_v9 = vpop.permute.xlu1 %1150  ;;  %v1144_v27 = vpop.permute.xlu0 %1143  ;;  %v1630_v7 = vrot.slane %v1559_v8, %v3637_v29  ;;  %v1574_v36 = vrot.slane %v1439_v19, %v3637_v29  ;;  %v1442_v46 = vcombine.high %v3801_v39, %v3801_v39  ;;  %v1560_v57 = vcombine.high %v3805_v1, %v3805_v1 }
 0x17c   : > { %v1604_v59 = vmul.f32 %v4048_v16, %v1151_v9  ;;  %v1676_v62 = vmul.f32 %v4044_v51, %v1151_v9  ;;  %v1603_v53 = vmul.f32 %v4056_v42, %v1144_v27  ;;  %v1675_v34 = vmul.f32 %v4052_v35, %v1144_v27 }
 0x17d   : > { %v1440_v40 = vcombine.high %v3809_v3, %v3809_v3  ;;  %v1650_v39 = vrot.slane %v1562_v13, %v3637_v29  ;;  %v1646_v1 = vrot.slane %v1560_v57, %v3637_v29 }
 0x17e   : > { %v4082_v15 = vadd.f32 %v1604_v59, %v1022_v38  ;;  %v1684_v54 = vadd.f32 %v1676_v62, %v1054_v47  ;;  %v4084_v63 = vadd.f32 %v1603_v53, %v1021_v48  ;;  %v1683_v20 = vadd.f32 %v1675_v34, %v1053_v44 }
 0x17f   : > { %v1165_v41 = vpop.permute.xlu1 %1164  ;;  %v1158_v50 = vpop.permute.xlu0 %1157  ;;  %v1582_v44 = vrot.slane %v3809_v3, %v3637_v29  ;;  %v1594_v34 = vrot.slane %v1442_v46, %v3637_v29  ;;  %v1590_v3 = vrot.slane %v1440_v40, %v3637_v29 }
 0x180   : > { %v1606_v38 = vmul.f32 %v1578_v22, %v1165_v41  ;;  %v1678_v14 = vmul.f32 %v1634_v17, %v1165_v41  ;;  %v1605_v47 = vmul.f32 %v1574_v36, %v1158_v50  ;;  %v1677_v48 = vmul.f32 %v1630_v7, %v1158_v50 }
 0x182   : > { %v4102_v43 = vadd.f32 %v1606_v38, %v1024_v5  ;;  %v1686_v21 = vadd.f32 %v1678_v14, %v1056_v49  ;;  %v4104_v58 = vadd.f32 %v1605_v47, %v1023_v52  ;;  %v1685_v8 = vadd.f32 %v1677_v48, %v1055_v60 }
 0x183   : > { %v1179_v19 = vpop.permute.xlu1 %1178  ;;  %v1172_v9 = vpop.permute.xlu0 %1171 }
 0x184   : > { %v1608_v27 = vmul.f32 %v1586_v33, %v1179_v19  ;;  %v1680_v59 = vmul.f32 %v1642_v4, %v1179_v19  ;;  %v1607_v62 = vmul.f32 %v1582_v44, %v1172_v9  ;;  %v1679_v53 = vmul.f32 %v1638_v56, %v1172_v9 }
 0x186   : > { %v4113_v5 = vadd.f32 %v1608_v27, %v1026_v0  ;;  %v1688_v49 = vadd.f32 %v1680_v59, %v4036_v45  ;;  %v4119_v52 = vadd.f32 %v1607_v62, %v1025_v37  ;;  %v1687_v60 = vadd.f32 %v1679_v53, %v4040_v2 }
 0x187   : > { %v1193_v41 = vpop.permute.xlu1 %1192  ;;  %v1186_v50 = vpop.permute.xlu0 %1185 }
 0x188   : > { %v1610_v13 = vmul.f32 %v1594_v34, %v1193_v41  ;;  %v1682_v38 = vmul.f32 %v1650_v39, %v1193_v41  ;;  %v1609_v14 = vmul.f32 %v1590_v3, %v1186_v50  ;;  %v1681_v47 = vmul.f32 %v1646_v1, %v1186_v50 }
 0x189   : > { %v2207_v41 = vcombine.high %v3812_v10, %v3812_v10  ;;  %v2087_v50 = vcombine.high %v3815_v11, %v3815_v11 }
 0x18a   : > { %v4122_v48 = vadd.f32 %v1610_v13, %v1028_v31  ;;  %v1690_v6 = vadd.f32 %v1682_v38, %v1060_v55  ;;  %v4124_v18 = vadd.f32 %v1609_v14, %v1027_v32  ;;  %v1689_v0 = vadd.f32 %v1681_v47, %v1059_v28 }
 0x18b   : > { %v1277_v45 = vpop.permute.xlu1 %1276  ;;  %v1270_v46 = vpop.permute.xlu0 %1269  ;;  %v2205_v13 = vcombine.high %v3773_v23, %v3773_v23  ;;  %v2085_v38 = vcombine.high %v3745_v61, %v3745_v61 }
 0x18c   : > { %v1660_v12 = vmul.f32 %v4044_v51, %v1277_v45  ;;  %v1692_v30 = vmul.f32 %v4048_v16, %v1277_v45  ;;  %v1659_v37 = vmul.f32 %v4052_v35, %v1270_v46  ;;  %v1691_v2 = vmul.f32 %v4056_v42, %v1270_v46 }
 0x18d   : > { %v2224_v46 = vrot.slane %v2087_v50, %v3637_v29 }
 0x18e   : > { %v1668_v57 = vsub.f32 %v4082_v15, %v1660_v12  ;;  %v1700_v40 = vadd.f32 %v1692_v30, %v1684_v54  ;;  %v1667_v31 = vsub.f32 %v4084_v63, %v1659_v37  ;;  %v1699_v19 = vadd.f32 %v1691_v2, %v1683_v20 }
 0x18f   : > { %v1291_v55 = vpop.permute.xlu1 %1290  ;;  %v1284_v32 = vpop.permute.xlu0 %1283 }
 0x190   : > { %v4132_v9 = vmul.f32 %v1634_v17, %v1291_v55  ;;  %v1694_v28 = vmul.f32 %v1578_v22, %v1291_v55  ;;  %v4134_v27 = vmul.f32 %v1630_v7, %v1284_v32  ;;  %v1693_v51 = vmul.f32 %v1574_v36, %v1284_v32 }
 0x191   : > { %v2288_v55 = vrot.slane %v3826_v24, %v3637_v29  ;;  %v2232_v32 = vrot.slane %v3829_v25, %v3637_v29 }
 0x192   : > { %v1670_v16 = vsub.f32 %v4102_v43, %v4132_v9  ;;  %v1702_v35 = vadd.f32 %v1694_v28, %v1686_v21  ;;  %v1669_v42 = vsub.f32 %v4104_v58, %v4134_v27  ;;  %v1701_v15 = vadd.f32 %v1693_v51, %v1685_v8  ;;  %v4456_v28 = vld [vmem:[#allocation4_spill] sm:$0xff] }
 0x193   : > { %v1305_v54 = vpop.permute.xlu1 %1304  ;;  %v1298_v59 = vpop.permute.xlu0 %1297  ;;  %v2284_v9 = vrot.slane %v3832_v26, %v3637_v29  ;;  %v2228_v27 = vrot.slane %v4456_v28, %v3637_v29 }
 0x194   : > { %v4140_v63 = vmul.f32 %v1642_v4, %v1305_v54  ;;  %v1696_v20 = vmul.f32 %v1586_v33, %v1305_v54  ;;  %v4142_v62 = vmul.f32 %v1638_v56, %v1298_v59  ;;  %v1695_v17 = vmul.f32 %v1582_v44, %v1298_v59 }
 0x195   : > { %v4154_v4 = vrot.slane %v3812_v10, %v3637_v29  ;;  %v4158_v33 = vrot.slane %v3815_v11, %v3637_v29  ;;  %v4162_v56 = vrot.slane %v3773_v23, %v3637_v29  ;;  %v4166_v44 = vrot.slane %v3745_v61, %v3637_v29 }
 0x196   : > { %v1672_v22 = vsub.f32 %v4113_v5, %v4140_v63  ;;  %v4146_v7 = vadd.f32 %v1696_v20, %v1688_v49  ;;  %v1671_v36 = vsub.f32 %v4119_v52, %v4142_v62  ;;  %v4150_v43 = vadd.f32 %v1695_v17, %v1687_v60 }
 0x197   : > { %v1319_v21 = vpop.permute.xlu1 %1318  ;;  %v1312_v58 = vpop.permute.xlu0 %1311  ;;  %v2280_v61 = vrot.slane %v2207_v41, %v3637_v29  ;;  %v2088_v54 = vcombine.high %v3829_v25, %v3829_v25  ;;  %v2206_v59 = vcombine.high %v3832_v26, %v3832_v26  ;;  %v2086_v20 = vcombine.high %v4456_v28, %v4456_v28 }
 0x198   : > { %v4168_v8 = vmul.f32 %v1650_v39, %v1319_v21  ;;  %v1698_v53 = vmul.f32 %v1594_v34, %v1319_v21  ;;  %v4170_v49 = vmul.f32 %v1646_v1, %v1312_v58  ;;  %v1697_v60 = vmul.f32 %v1590_v3, %v1312_v58 }
 0x199   : > { %v2292_v26 = vrot.slane %v2206_v59, %v3637_v29 }
 0x19a   : > { %v1674_v39 = vsub.f32 %v4122_v48, %v4168_v8  ;;  %v1706_v14 = vadd.f32 %v1698_v53, %v1690_v6  ;;  %v1673_v34 = vsub.f32 %v4124_v18, %v4170_v49  ;;  %v1705_v1 = vadd.f32 %v1697_v60, %v1689_v0 }
 0x19b   : > { %v1797_v3 = vpop.permute.xlu1 %1796  ;;  %v1790_v47 = vpop.permute.xlu0 %1789  ;;  %v2276_v48 = vrot.slane %v2205_v13, %v3637_v29  ;;  %v2220_v6 = vrot.slane %v2085_v38, %v3637_v29  ;;  %v2240_v13 = vrot.slane %v2088_v54, %v3637_v29  ;;  %v2236_v38 = vrot.slane %v2086_v20, %v3637_v29  ;;  %v4459_v20 = vld [vmem:[#allocation5_spill] sm:$0xff] }
 0x19c   : > { %v2250_v10 = vmul.f32 %v4158_v33, %v1797_v3  ;;  %v2322_v11 = vmul.f32 %v4154_v4, %v1797_v3  ;;  %v2249_v45 = vmul.f32 %v4166_v44, %v1790_v47  ;;  %v2321_v23 = vmul.f32 %v4162_v56, %v1790_v47 }
 0x19e   : > { %v4192_v18 = vadd.f32 %v2250_v10, %v1668_v57  ;;  %v2330_v0 = vadd.f32 %v2322_v11, %v1700_v40  ;;  %v4194_v12 = vadd.f32 %v2249_v45, %v1667_v31  ;;  %v2329_v30 = vadd.f32 %v2321_v23, %v1699_v19 }
 0x19f   : > { %v1811_v37 = vpop.permute.xlu1 %1810  ;;  %v1804_v2 = vpop.permute.xlu0 %1803  ;;  %v2208_v19 = vcombine.high %v3826_v24, %v3826_v24 }
 0x1a0   : > { %v2252_v57 = vmul.f32 %v2224_v46, %v1811_v37  ;;  %v2324_v51 = vmul.f32 %v2280_v61, %v1811_v37  ;;  %v2251_v40 = vmul.f32 %v2220_v6, %v1804_v2  ;;  %v2323_v31 = vmul.f32 %v2276_v48, %v1804_v2 }
 0x1a1   : > { %v2296_v25 = vrot.slane %v2208_v19, %v3637_v29 }
 0x1a2   : > { %v4212_v17 = vadd.f32 %v2252_v57, %v1670_v16  ;;  %v2332_v21 = vadd.f32 %v2324_v51, %v1702_v35  ;;  %v4214_v58 = vadd.f32 %v2251_v40, %v1669_v42  ;;  %v2331_v8 = vadd.f32 %v2323_v31, %v1701_v15 }
 0x1a3   : > { %v1825_v53 = vpop.permute.xlu1 %1824  ;;  %v1818_v49 = vpop.permute.xlu0 %1817 }
 0x1a4   : > { %v2254_v60 = vmul.f32 %v2232_v32, %v1825_v53  ;;  %v2326_v41 = vmul.f32 %v2288_v55, %v1825_v53  ;;  %v2253_v24 = vmul.f32 %v2228_v27, %v1818_v49  ;;  %v2325_v50 = vmul.f32 %v2284_v9, %v1818_v49 }
 0x1a6   : > { %v4223_v16 = vadd.f32 %v2254_v60, %v1672_v22  ;;  %v2334_v35 = vadd.f32 %v2326_v41, %v4146_v7  ;;  %v4229_v42 = vadd.f32 %v2253_v24, %v1671_v36  ;;  %v2333_v15 = vadd.f32 %v2325_v50, %v4150_v43 }
 0x1a7   : > { %v1839_v3 = vpop.permute.xlu1 %1838  ;;  %v1832_v47 = vpop.permute.xlu0 %1831  ;;  %v2851_v41 = vcombine.high %v4459_v20, %v4459_v20 }
 0x1a8   : > { %v2256_v10 = vmul.f32 %v2240_v13, %v1839_v3  ;;  %v2328_v11 = vmul.f32 %v2296_v25, %v1839_v3  ;;  %v2255_v45 = vmul.f32 %v2236_v38, %v1832_v47  ;;  %v2327_v23 = vmul.f32 %v2292_v26, %v1832_v47 }
 0x1aa   : > { %v4232_v37 = vadd.f32 %v2256_v10, %v1674_v39  ;;  %v2336_v5 = vadd.f32 %v2328_v11, %v1706_v14  ;;  %v4234_v63 = vadd.f32 %v2255_v45, %v1673_v34  ;;  %v2335_v22 = vadd.f32 %v2327_v23, %v1705_v1 }
 0x1ab   : > { %v1923_v7 = vpop.permute.xlu1 %1922  ;;  %v1916_v2 = vpop.permute.xlu0 %1915 }
 0x1ac   : > { %v2306_v52 = vmul.f32 %v4154_v4, %v1923_v7  ;;  %v2338_v62 = vmul.f32 %v4158_v33, %v1923_v7  ;;  %v2305_v36 = vmul.f32 %v4162_v56, %v1916_v2  ;;  %v2337_v43 = vmul.f32 %v4166_v44, %v1916_v2  ;;  %v4462_v2 = vld [vmem:[#allocation10_spill] sm:$0xff] }
 0x1ae   : > { %v2314_v28 = vsub.f32 %v4192_v18, %v2306_v52  ;;  %v2346_v57 = vadd.f32 %v2338_v62, %v2330_v0  ;;  %v2313_v39 = vsub.f32 %v4194_v12, %v2305_v36  ;;  %v2345_v51 = vadd.f32 %v2337_v43, %v2329_v30  ;;  %v4463_v62 = vld [vmem:[#allocation11_spill] sm:$0xff]  ;;  %v4464_v43 = vld [vmem:[#allocation12_spill] sm:$0xff] }
 0x1af   : > { %v1937_v14 = vpop.permute.xlu1 %1936  ;;  %v1930_v34 = vpop.permute.xlu0 %1929  ;;  %v4312_v52 = vrot.slane %v4462_v2, %v3637_v29  ;;  %v4316_v36 = vrot.slane %v4463_v62, %v3637_v29 }
 0x1b0   : > { %v4242_v40 = vmul.f32 %v2280_v61, %v1937_v14  ;;  %v2340_v1 = vmul.f32 %v2224_v46, %v1937_v14  ;;  %v4244_v31 = vmul.f32 %v2276_v48, %v1930_v34  ;;  %v2339_v4 = vmul.f32 %v2220_v6, %v1930_v34  ;;  %v4457_v46 = vld [vmem:[#allocation7_spill] sm:$0xff]  ;;  %v4458_v6 = vld [vmem:[#allocation8_spill] sm:$0xff] }
 0x1b1   : > { %v4256_v48 = vrot.slane %v4457_v46, %v3637_v29  ;;  %v4260_v59 = vrot.slane %v4458_v6, %v3637_v29  ;;  %v2853_v49 = vcombine.high %v4457_v46, %v4457_v46  ;;  %v2733_v60 = vcombine.high %v4458_v6, %v4458_v6 }
 0x1b2   : > { %v2316_v33 = vsub.f32 %v4212_v17, %v4242_v40  ;;  %v2348_v56 = vadd.f32 %v2340_v1, %v2332_v21  ;;  %v2315_v44 = vsub.f32 %v4214_v58, %v4244_v31  ;;  %v2347_v18 = vadd.f32 %v2339_v4, %v2331_v8  ;;  %v4460_v21 = vld [vmem:[#allocation6_spill] sm:$0xff] }
 0x1b3   : > { %v1951_v0 = vpop.permute.xlu1 %1950  ;;  %v1944_v19 = vpop.permute.xlu0 %1943  ;;  %v4264_v17 = vrot.slane %v4459_v20, %v3637_v29  ;;  %v2731_v24 = vcombine.high %v4460_v21, %v4460_v21  ;;  %v4291_v23 = vrot.slane %v2853_v49, %v3637_v29  ;;  %v4320_v14 = vrot.slane %v4464_v43, %v3637_v29 }
 0x1b4   : > { %v4250_v12 = vmul.f32 %v2288_v55, %v1951_v0  ;;  %v2342_v30 = vmul.f32 %v2232_v32, %v1951_v0  ;;  %v4252_v54 = vmul.f32 %v2284_v9, %v1944_v19  ;;  %v2341_v61 = vmul.f32 %v2228_v27, %v1944_v19 }
 0x1b5   : > { %v4268_v55 = vrot.slane %v4460_v21, %v3637_v29 }
 0x1b6   : > { %v2318_v32 = vsub.f32 %v4223_v16, %v4250_v12  ;;  %v2350_v9 = vadd.f32 %v2342_v30, %v2334_v35  ;;  %v2317_v27 = vsub.f32 %v4229_v42, %v4252_v54  ;;  %v2349_v58 = vadd.f32 %v2341_v61, %v2333_v15 }
 0x1b7   : > { %v1965_v8 = vpop.permute.xlu1 %1964  ;;  %v1958_v53 = vpop.permute.xlu0 %1957  ;;  %v2734_v12 = vcombine.high %v4462_v2, %v4462_v2  ;;  %v2852_v30 = vcombine.high %v4463_v62, %v4463_v62  ;;  %v2732_v54 = vcombine.high %v4464_v43, %v4464_v43 }
 0x1b8   : > { %v4282_v50 = vmul.f32 %v2296_v25, %v1965_v8  ;;  %v2344_v16 = vmul.f32 %v2240_v13, %v1965_v8  ;;  %v4284_v35 = vmul.f32 %v2292_v26, %v1958_v53  ;;  %v2343_v42 = vmul.f32 %v2236_v38, %v1958_v53 }
 0x1b9   : > { %v4294_v25 = vrot.slane %v2733_v60, %v3637_v29  ;;  %v4297_v13 = vrot.slane %v2851_v41, %v3637_v29  ;;  %v4300_v26 = vrot.slane %v2731_v24, %v3637_v29  ;;  %v4340_v49 = vrot.slane %v2734_v12, %v3637_v29 }
 0x1ba   : > { %v2320_v15 = vsub.f32 %v4232_v37, %v4282_v50  ;;  %v2352_v3 = vadd.f32 %v2344_v16, %v2336_v5  ;;  %v2319_v47 = vsub.f32 %v4234_v63, %v4284_v35  ;;  %v2351_v10 = vadd.f32 %v2343_v42, %v2335_v22  ;;  %v4461_v22 = vld [vmem:[#allocation9_spill] sm:$0xff] }
 0x1bb   : > { %v2443_v11 = vpop.permute.xlu1 %2442  ;;  %v2436_v45 = vpop.permute.xlu0 %2435  ;;  %v4308_v7 = vrot.slane %v4461_v22, %v3637_v29  ;;  %v2854_v19 = vcombine.high %v4461_v22, %v4461_v22  ;;  %v4343_v60 = vrot.slane %v2852_v30, %v3637_v29  ;;  %v4346_v41 = vrot.slane %v2732_v54, %v3637_v29 }
 0x1bc   : > { %v2896_v38 = vmul.f32 %v4260_v59, %v2443_v11  ;;  %v2968_v37 = vmul.f32 %v4256_v48, %v2443_v11  ;;  %v2895_v5 = vmul.f32 %v4268_v55, %v2436_v45  ;;  %v2967_v63 = vmul.f32 %v4264_v17, %v2436_v45 }
 0x1bd   : > { %v4337_v53 = vrot.slane %v2854_v19, %v3637_v29 }
 0x1be   : > { %v2904_v34 = vadd.f32 %v2896_v38, %v2314_v28  ;;  %v2976_v40 = vadd.f32 %v2968_v37, %v2346_v57  ;;  %v2903_v1 = vadd.f32 %v2895_v5, %v2313_v39  ;;  %v2975_v31 = vadd.f32 %v2967_v63, %v2345_v51 }
 0x1bf   : > { %v2457_v4 = vpop.permute.xlu1 %2456  ;;  %v2450_v0 = vpop.permute.xlu0 %2449 }
 0x1c0   : > { %v2898_v28 = vmul.f32 %v4294_v25, %v2457_v4  ;;  %v2970_v57 = vmul.f32 %v4291_v23, %v2457_v4  ;;  %v2897_v39 = vmul.f32 %v4300_v26, %v2450_v0  ;;  %v2969_v51 = vmul.f32 %v4297_v13, %v2450_v0 }
 0x1c2   : > { %v2906_v61 = vadd.f32 %v2898_v28, %v2316_v33  ;;  %v2978_v46 = vadd.f32 %v2970_v57, %v2348_v56  ;;  %v2905_v6 = vadd.f32 %v2897_v39, %v2315_v44  ;;  %v2977_v20 = vadd.f32 %v2969_v51, %v2347_v18 }
 0x1c3   : > { %v2471_v21 = vpop.permute.xlu1 %2470  ;;  %v2464_v8 = vpop.permute.xlu0 %2463 }
 0x1c4   : > { %v2900_v33 = vmul.f32 %v4312_v52, %v2471_v21  ;;  %v2972_v56 = vmul.f32 %v4308_v7, %v2471_v21  ;;  %v2899_v44 = vmul.f32 %v4320_v14, %v2464_v8  ;;  %v2971_v18 = vmul.f32 %v4316_v36, %v2464_v8 }
 0x1c6   : > { %v2908_v24 = vadd.f32 %v2900_v33, %v2318_v32  ;;  %v2980_v50 = vadd.f32 %v2972_v56, %v2350_v9  ;;  %v2907_v16 = vadd.f32 %v2899_v44, %v2317_v27  ;;  %v2979_v35 = vadd.f32 %v2971_v18, %v2349_v58 }
 0x1c7   : > { %v2485_v42 = vpop.permute.xlu1 %2484  ;;  %v2478_v11 = vpop.permute.xlu0 %2477 }
 0x1c8   : > { %v2902_v45 = vmul.f32 %v4340_v49, %v2485_v42  ;;  %v2974_v29 = vmul.f32 %v4337_v53, %v2485_v42  ;;  %v2901_v38 = vmul.f32 %v4346_v41, %v2478_v11  ;;  %v2973_v37 = vmul.f32 %v4343_v60, %v2478_v11 }
 0x1ca   : > { %v2910_v5 = vadd.f32 %v2902_v45, %v2320_v15  ;;  %v2982_v63 = vadd.f32 %v2974_v29, %v2352_v3  ;;  %v2909_v22 = vadd.f32 %v2901_v38, %v2319_v47  ;;  %v2981_v2 = vadd.f32 %v2973_v37, %v2351_v10 }
 0x1cb   : > { %v2569_v32 = vpop.permute.xlu1 %2568  ;;  %v2562_v9 = vpop.permute.xlu0 %2561 }
 0x1cc   : > { %v2952_v27 = vmul.f32 %v4256_v48, %v2569_v32  ;;  %v2984_v58 = vmul.f32 %v4260_v59, %v2569_v32  ;;  %v2951_v62 = vmul.f32 %v4264_v17, %v2562_v9  ;;  %v2983_v43 = vmul.f32 %v4268_v55, %v2562_v9 }
 0x1ce   : > { %v2960_v48 = vsub.f32 %v2904_v34, %v2952_v27  ;;  %v2992_v59 = vadd.f32 %v2984_v58, %v2976_v40  ;;  %v2959_v17 = vsub.f32 %v2903_v1, %v2951_v62  ;;  %v2991_v15 = vadd.f32 %v2983_v43, %v2975_v31 }
 0x1cf   : > { %v2583_v55 = vpop.permute.xlu1 %2582  ;;  %v2576_v3 = vpop.permute.xlu0 %2575 }
 0x1d0   : > { %3001 = vst.msk [vmem:[%s4364_s11 + $0x8] sm:$0xff] %vm2999_vm2, %v2960_v48  ;;  %3009 = vst.msk [vmem:[%s4369_s14 + $0x8] sm:$0xff] %vm2999_vm2, %v2992_v59  ;;  %v2954_v47 = vmul.f32 %v4291_v23, %v2583_v55  ;;  %v2986_v10 = vmul.f32 %v4294_v25, %v2583_v55  ;;  %v2953_v34 = vmul.f32 %v4297_v13, %v2576_v3 }
 0x1d1   : > { %3000 = vst.msk [vmem:[%s4364_s11] sm:$0xff] %vm2999_vm2, %v2959_v17  ;;  %3008 = vst.msk [vmem:[%s4369_s14] sm:$0xff] %vm2999_vm2, %v2991_v15  ;;  %v2985_v40 = vmul.f32 %v4300_v26, %v2576_v3 }
 0x1d2   : > { %v2962_v1 = vsub.f32 %v2906_v61, %v2954_v47  ;;  %v2994_v31 = vadd.f32 %v2986_v10, %v2978_v46  ;;  %v2961_v4 = vsub.f32 %v2905_v6, %v2953_v34 }
 0x1d3   : > { %v2993_v0 = vadd.f32 %v2985_v40, %v2977_v20  ;;  %v2597_v19 = vpop.permute.xlu1 %2596  ;;  %v2590_v12 = vpop.permute.xlu0 %2589 }
 0x1d4   : > { %3003 = vst.msk [vmem:[%s4364_s11 + $0x18] sm:$0xff] %vm2999_vm2, %v2962_v1  ;;  %3011 = vst.msk [vmem:[%s4369_s14 + $0x18] sm:$0xff] %vm2999_vm2, %v2994_v31  ;;  %v2956_v23 = vmul.f32 %v4308_v7, %v2597_v19  ;;  %v2988_v25 = vmul.f32 %v4312_v52, %v2597_v19  ;;  %v2955_v13 = vmul.f32 %v4316_v36, %v2590_v12 }
 0x1d5   : > { %3002 = vst.msk [vmem:[%s4364_s11 + $0x10] sm:$0xff] %vm2999_vm2, %v2961_v4  ;;  %3010 = vst.msk [vmem:[%s4369_s14 + $0x10] sm:$0xff] %vm2999_vm2, %v2993_v0  ;;  %v2987_v26 = vmul.f32 %v4320_v14, %v2590_v12 }
 0x1d6   : > { %v2964_v30 = vsub.f32 %v2908_v24, %v2956_v23  ;;  %v2996_v54 = vadd.f32 %v2988_v25, %v2980_v50  ;;  %v2963_v28 = vsub.f32 %v2907_v16, %v2955_v13 }
 0x1d7   : > { %v2995_v57 = vadd.f32 %v2987_v26, %v2979_v35  ;;  %v2611_v39 = vpop.permute.xlu1 %2610  ;;  %v2604_v51 = vpop.permute.xlu0 %2603 }
 0x1d8   : > { %3005 = vst.msk [vmem:[%s4364_s11 + $0x28] sm:$0xff] %vm2999_vm2, %v2964_v30  ;;  %3013 = vst.msk [vmem:[%s4369_s14 + $0x28] sm:$0xff] %vm2999_vm2, %v2996_v54  ;;  %v2958_v7 = vmul.f32 %v4337_v53, %v2611_v39  ;;  %v2990_v52 = vmul.f32 %v4340_v49, %v2611_v39  ;;  %v2957_v36 = vmul.f32 %v4343_v60, %v2604_v51 }
 0x1d9   : > { %3004 = vst.msk [vmem:[%s4364_s11 + $0x20] sm:$0xff] %vm2999_vm2, %v2963_v28  ;;  %3012 = vst.msk [vmem:[%s4369_s14 + $0x20] sm:$0xff] %vm2999_vm2, %v2995_v57  ;;  %v2989_v14 = vmul.f32 %v4346_v41, %v2604_v51 }
 0x1da   : > { %v2966_v61 = vsub.f32 %v2910_v5, %v2958_v7  ;;  %v2998_v46 = vadd.f32 %v2990_v52, %v2982_v63  ;;  %v2965_v6 = vsub.f32 %v2909_v22, %v2957_v36 }
 0x1db   : > { %v2997_v20 = vadd.f32 %v2989_v14, %v2981_v2 }
 0x1dc   : > { %3007 = vst.msk [vmem:[%s4364_s11 + $0x38] sm:$0xff] %vm2999_vm2, %v2966_v61  ;;  %3015 = vst.msk [vmem:[%s4369_s14 + $0x38] sm:$0xff] %vm2999_vm2, %v2998_v46 }
 0x1dd   : > { %3006 = vst.msk [vmem:[%s4364_s11 + $0x30] sm:$0xff] %vm2999_vm2, %v2965_v6  ;;  %3014 = vst.msk [vmem:[%s4369_s14 + $0x30] sm:$0xff] %vm2999_vm2, %v2997_v20 }
 0x1de PF: > { %p15_p9 = scmp.ge.s32.totalorder %s3440_s28, 4   ;;  %s4465_s24 = smov %s3374_s25 }
 0x1df   : > { %s4466_s25 = smov %s3449_s8  ;;  %s4467_s26 = smov %s3440_s28 }
 0x1e0   :  { %17 = sbr.rel (!%p15_p9) target bundleno = 2 (0x2), region = 181 }

// kernel: _lambda_.50
= control target key start
LH: loop header
LB: loop body
LE: loop exit
PB: predicated region body
PF: predicated region fallthrough
CT: control target
= control target key end

     0   :  { %vm84_vm0 = vcmask 785408   ;;  %vm140_vm1 = vcmask 31744   ;;  %s253_s1 = inlined_call_operand.vmem [shape: bf16[96,4], index: 1, kind: input, shape index: {}]   ;;  %s254_s0 = inlined_call_operand.vmem [shape: bf16[32,96], index: 0, kind: input, shape index: {}]   ;;  %s255_s2 = inlined_call_operand.vmem [shape: f32[1,4], index: 2, kind: input, shape index: {}]   ;;  %s256_s3 = inlined_call_operand.vmem [shape: f32[32,4], index: 3, kind: output, shape index: {}]  }
   0x1   :  { %v184_v0 = vld [vmem:[%s253_s1 + $0x28] sm:$0xff]   ;;  %v185_v1 = vld [vmem:[%s253_s1 + $0x20] sm:$0xff]   ;;  %v186_v2 = vld [vmem:[%s253_s1 + $0x18] sm:$0xff]  }
   0x2   :  { %168 = vmatprep.subr.bf16.mxu0 %v184_v0  ;;  %v190_v3 = vld [vmem:[%s254_s0] sm:$0xff]   ;;  %v187_v4 = vld [vmem:[%s253_s1 + $0x10] sm:$0xff]   ;;  %v188_v5 = vld [vmem:[%s253_s1 + $0x8] sm:$0xff]  }
   0x3   :  { %169 = vmatpush3.bf16.msra.mxu0 %v184_v0  ;;  %180 = vmatprep.mubr.msk.bf16.mxu0 %vm84_vm0, %v190_v3  ;;  %v189_v6 = vld [vmem:[%s253_s1] sm:$0xff]   ;;  %v191_v7 = vld [vmem:[%s254_s0 + $0x8] sm:$0xff]  }
   0x4   :  { %170 = vmatprep.subr.bf16.mxu0 %v185_v1  ;;  %v149_v8 = vld [vmem:[%s255_s2] ss:$0 sm:$0xff] }
   0x7   :  { %171 = vmatpush3.bf16.msra.mxu0 %v185_v1 }
   0x8   :  { %172 = vmatprep.subr.bf16.mxu0 %v186_v2 }
   0xb   :  { %173 = vmatpush3.bf16.msra.mxu0 %v186_v2 }
   0xc   :  { %174 = vmatprep.subr.bf16.mxu0 %v187_v4 }
   0xf   :  { %175 = vmatpush3.bf16.msra.mxu0 %v187_v4 }
  0x10   :  { %176 = vmatprep.subr.bf16.mxu0 %v188_v5 }
  0x13   :  { %177 = vmatpush3.bf16.msra.mxu0 %v188_v5 }
  0x14   :  { %178 = vmatprep.subr.bf16.mxu0 %v189_v6 }
  0x17   :  { %179 = vmatpush3.bf16.msra.mxu0 %v189_v6 }
  0x1a   :  { %181 = vmatmul.mubr.msk.bf16.vlgmr.msra.gmra.mxu0 %vm84_vm0, %v191_v7 }
  0xda   :  { %v182_v9 = vpop.f32.mrf.mxu0 }
  0xdb   :  { %v134_v10 = vadd.f32 %v182_v9, %v149_v8 }
  0xdc   :  { %v125_v11 = vpop.f32.mrf.mxu0 }
  0xdd   :  { %143 = vst.msk [vmem:[%s256_s3 + $0x10] sm:$0xff] %vm140_vm1, %v134_v10  ;;  %v126_v12 = vadd.f32 %v149_v8, %v125_v11 }
  0xde   :  { %v183_v13 = vpop.f32.mrf.mxu0 }
  0xdf   :  { %141 = vst.msk [vmem:[%s256_s3] sm:$0xff] %vm140_vm1, %v126_v12  ;;  %v137_v14 = vadd.f32 %v183_v13, %v149_v8 }
  0xe0   :  { %v128_v15 = vpop.f32.mrf.mxu0 }
  0xe1   :  { %144 = vst.msk [vmem:[%s256_s3 + $0x18] sm:$0xff] %vm140_vm1, %v137_v14  ;;  %v129_v16 = vadd.f32 %v149_v8, %v128_v15 }
  0xe3   :  { %142 = vst.msk [vmem:[%s256_s3 + $0x8] sm:$0xff] %vm140_vm1, %v129_v16 }

// kernel: _lambda_.46
= control target key start
LH: loop header
LB: loop body
LE: loop exit
PB: predicated region body
PF: predicated region fallthrough
CT: control target
= control target key end

     0   :  { %s7175_s30 = smov 0   ;;  %s7177_s10 = smov 0   ;;  %s10473_s0 = inlined_call_operand.vmem [shape: f32[4,16,16], index: 0, kind: input, shape index: {}]   ;;  %s10474_s1 = inlined_call_operand.vmem [shape: f32[16,8,8], index: 1, kind: input, shape index: {}]   ;;  %s10475_s2 = inlined_call_operand.vmem [shape: f32[16,8,8], index: 2, kind: input, shape index: {}]   ;;  %s10476_s3 = inlined_call_operand.vmem [shape: f32[16,8], index: 3, kind: input, shape index: {}]   ;;  %s10477_s4 = inlined_call_operand.vmem [shape: f32[16,8], index: 4, kind: input, shape index: {}]   ;;  %s10478_s5 = inlined_call_operand.vmem [shape: f32[4,4,16,8], index: 5, kind: input, shape index: {}]   ;;  %s10479_s6 = inlined_call_operand.vmem [shape: f32[4,4,16,8], index: 6, kind: input, shape index: {}]   ;;  %s10480_s7 = inlined_call_operand.vmem [shape: f32[8,16], index: 7, kind: input, shape index: {}]   ;;  %s10481_s8 = inlined_call_operand.vmem [shape: f32[8,16], index: 8, kind: input, shape index: {}]   ;;  %s10482_s9 = inlined_call_operand.vmem [shape: f32[4,16,16], index: 9, kind: output, shape index: {}]  }
   0x1   :  { %s7179_s11 = smov 0  }
   0x2 LB: > { %s6851_s12 = sadd.s32 4294967295, %s7119_s11   ;;  %s7192_s13 = sadd.s32 1, %s7119_s11   ;;  %s7119_s11 = sphi %s7179_s11, %s11436_s11   ;;  %s7115_s10 = sphi %s7177_s10, %s11435_s10   ;;  %s7111_s30 = sphi %s7175_s30, %s11434_s30  }
   0x3   : > { %s23_s14 = ssub.s32 %s7119_s11, %s7192_s13  ;;  %s26_s15 = sadd.s32 1, %s7115_s10 }
   0x4   : > { %p24_p0 = scmp.eq.s32.totalorder %s23_s14, 0  ;;  %p33_p1 = scmp.ne.s32.totalorder %s7115_s10, %s7111_s30 }
   0x5   : > { %p34_p2 = scmp.eq.s32.totalorder %s7119_s11, 0  ;;  %p251_p3 = scmp.eq.s32.totalorder %s6851_s12, 1 }
   0x6   : > { %s7203_s16 = scalar_select %p24_p0, %s7115_s10, %s26_s15  }
   0x7   : > { %p7205_p4 = por %p34_p2, %p33_p1  ;;  %p7209_p5 = por %p251_p3, %p33_p1 }
   0x8   : > { %p6854_p6 = scmp.ge.s32.totalorder %s7119_s11, 2 }
   0xa   : > { %285 = sbr.rel (%p6854_p6) target bundleno = 45 (0x2d), region = 32 }
   0xf   : > { %288 = sbr.rel (!%p7205_p4) target bundleno = 21 (0x15), region = 36  ;;  %s290_s19 = sand.u32 (%p7205_p4), 1, %s7115_s10  }
  0x10   : > { %s6856_s20 = sshll.u32 (%p7205_p4), %s7119_s11, 3  ;;  %s6855_s21 = sshll.u32 (%p7205_p4), %s290_s19, 5 }
  0x11   : > { %s294_s24 = scalar_lea.vmem (%p7205_p4), %s10473_s0, %s6856_s20  ;;  %s292_s25 = scalar_lea.vmem (%p7205_p4), [#allocation2], %s6855_s21 }
  0x12   : > { %v329_v0 = vld [vmem:[%s294_s24] sm:$0xff] (%p7205_p4)  ;;  %v331_v1 = vld [vmem:[%s294_s24 + $0x10] sm:$0xff] (%p7205_p4) }
  0x13   : > { %v333_v2 = vld [vmem:[%s294_s24 + $0x20] sm:$0xff] (%p7205_p4)  ;;  %330 = vst [vmem:[%s292_s25] sm:$0xff] (%p7205_p4), %v329_v0  ;;  %332 = vst [vmem:[%s292_s25 + $0x8] sm:$0xff] (%p7205_p4), %v331_v1  ;;  %v335_v3 = vld [vmem:[%s294_s24 + $0x30] sm:$0xff] (%p7205_p4) }
  0x14   : > { %334 = vst [vmem:[%s292_s25 + $0x10] sm:$0xff] %v333_v2  ;;  %336 = vst [vmem:[%s292_s25 + $0x18] sm:$0xff] %v335_v3 }
  0x15 PF: > { %360 = sbr.rel (!%p7205_p4) target bundleno = 33 (0x21), region = 82  ;;  %s362_s26 = sand.u32 (%p7205_p4), 1, %s7115_s10  }
  0x16   : > { %s6858_s27 = sshll.u32 (%p7205_p4), %s7119_s11, 3  ;;  %s6857_s28 = sshll.u32 (%p7205_p4), %s362_s26, 7 }
  0x17   : > { %s7228_s15 = scalar_lea.vmem (%p7205_p4), %s10478_s5, %s6858_s27  ;;  %s364_s19 = scalar_lea.vmem (%p7205_p4), [#allocation3], %s6857_s28 }
  0x18   : > { %v425_v4 = vld [vmem:[%s7228_s15] sm:$0xff] (%p7205_p4)  ;;  %v427_v5 = vld [vmem:[%s7228_s15 + $0x10] sm:$0xff] (%p7205_p4) }
  0x19   : > { %v429_v6 = vld [vmem:[%s7228_s15 + $0x20] sm:$0xff] (%p7205_p4)  ;;  %426 = vst [vmem:[%s364_s19] sm:$0xff] (%p7205_p4), %v425_v4  ;;  %428 = vst [vmem:[%s364_s19 + $0x8] sm:$0xff] (%p7205_p4), %v427_v5  ;;  %v431_v7 = vld [vmem:[%s7228_s15 + $0x30] sm:$0xff] (%p7205_p4) }
  0x1a   : > { %430 = vst [vmem:[%s364_s19 + $0x10] sm:$0xff] %v429_v6  ;;  %v433_v8 = vld [vmem:[%s7228_s15 + $0x40] sm:$0xff]  ;;  %v435_v9 = vld [vmem:[%s7228_s15 + $0x50] sm:$0xff]  ;;  %432 = vst [vmem:[%s364_s19 + $0x18] sm:$0xff] %v431_v7 }
  0x1b   : > { %434 = vst [vmem:[%s364_s19 + $0x20] sm:$0xff] %v433_v8  ;;  %436 = vst [vmem:[%s364_s19 + $0x28] sm:$0xff] %v435_v9  ;;  %v437_v10 = vld [vmem:[%s7228_s15 + $0x60] sm:$0xff]  ;;  %v439_v11 = vld [vmem:[%s7228_s15 + $0x70] sm:$0xff] }
  0x1c   : > { %v441_v12 = vld [vmem:[%s7228_s15 + $0x80] sm:$0xff]  ;;  %438 = vst [vmem:[%s364_s19 + $0x30] sm:$0xff] %v437_v10  ;;  %440 = vst [vmem:[%s364_s19 + $0x38] sm:$0xff] %v439_v11  ;;  %v443_v13 = vld [vmem:[%s7228_s15 + $0x90] sm:$0xff] }
  0x1d   : > { %442 = vst [vmem:[%s364_s19 + $0x40] sm:$0xff] %v441_v12  ;;  %v445_v14 = vld [vmem:[%s7228_s15 + $0xa0] sm:$0xff]  ;;  %v447_v15 = vld [vmem:[%s7228_s15 + $0xb0] sm:$0xff]  ;;  %444 = vst [vmem:[%s364_s19 + $0x48] sm:$0xff] %v443_v13 }
  0x1e   : > { %446 = vst [vmem:[%s364_s19 + $0x50] sm:$0xff] %v445_v14  ;;  %448 = vst [vmem:[%s364_s19 + $0x58] sm:$0xff] %v447_v15  ;;  %v449_v16 = vld [vmem:[%s7228_s15 + $0xc0] sm:$0xff]  ;;  %v451_v17 = vld [vmem:[%s7228_s15 + $0xd0] sm:$0xff] }
  0x1f   : > { %v453_v18 = vld [vmem:[%s7228_s15 + $0xe0] sm:$0xff]  ;;  %450 = vst [vmem:[%s364_s19 + $0x60] sm:$0xff] %v449_v16  ;;  %452 = vst [vmem:[%s364_s19 + $0x68] sm:$0xff] %v451_v17  ;;  %v455_v19 = vld [vmem:[%s7228_s15 + $0xf0] sm:$0xff] }
  0x20   : > { %454 = vst [vmem:[%s364_s19 + $0x70] sm:$0xff] %v453_v18  ;;  %456 = vst [vmem:[%s364_s19 + $0x78] sm:$0xff] %v455_v19 }
  0x21 PF: > { %462 = sbr.rel (!%p7205_p4) target bundleno = 45 (0x2d), region = 120  ;;  %s464_s20 = sand.u32 (%p7205_p4), 1, %s7115_s10  }
  0x22   : > { %s6860_s21 = sshll.u32 (%p7205_p4), %s7119_s11, 3  ;;  %s6859_s22 = sshll.u32 (%p7205_p4), %s464_s20, 7 }
  0x23   : > { %s7253_s25 = scalar_lea.vmem (%p7205_p4), %s10479_s6, %s6860_s21  ;;  %s466_s17 = scalar_lea.vmem (%p7205_p4), [#allocation4], %s6859_s22 }
  0x24   : > { %v527_v20 = vld [vmem:[%s7253_s25] sm:$0xff] (%p7205_p4)  ;;  %v529_v21 = vld [vmem:[%s7253_s25 + $0x10] sm:$0xff] (%p7205_p4) }
  0x25   : > { %v531_v22 = vld [vmem:[%s7253_s25 + $0x20] sm:$0xff] (%p7205_p4)  ;;  %528 = vst [vmem:[%s466_s17] sm:$0xff] (%p7205_p4), %v527_v20  ;;  %530 = vst [vmem:[%s466_s17 + $0x8] sm:$0xff] (%p7205_p4), %v529_v21  ;;  %v533_v23 = vld [vmem:[%s7253_s25 + $0x30] sm:$0xff] (%p7205_p4) }
  0x26   : > { %532 = vst [vmem:[%s466_s17 + $0x10] sm:$0xff] %v531_v22  ;;  %v535_v24 = vld [vmem:[%s7253_s25 + $0x40] sm:$0xff]  ;;  %v537_v25 = vld [vmem:[%s7253_s25 + $0x50] sm:$0xff]  ;;  %534 = vst [vmem:[%s466_s17 + $0x18] sm:$0xff] %v533_v23 }
  0x27   : > { %536 = vst [vmem:[%s466_s17 + $0x20] sm:$0xff] %v535_v24  ;;  %538 = vst [vmem:[%s466_s17 + $0x28] sm:$0xff] %v537_v25  ;;  %v539_v26 = vld [vmem:[%s7253_s25 + $0x60] sm:$0xff]  ;;  %v541_v27 = vld [vmem:[%s7253_s25 + $0x70] sm:$0xff] }
  0x28   : > { %v543_v28 = vld [vmem:[%s7253_s25 + $0x80] sm:$0xff]  ;;  %540 = vst [vmem:[%s466_s17 + $0x30] sm:$0xff] %v539_v26  ;;  %542 = vst [vmem:[%s466_s17 + $0x38] sm:$0xff] %v541_v27  ;;  %v545_v29 = vld [vmem:[%s7253_s25 + $0x90] sm:$0xff] }
  0x29   : > { %544 = vst [vmem:[%s466_s17 + $0x40] sm:$0xff] %v543_v28  ;;  %v547_v30 = vld [vmem:[%s7253_s25 + $0xa0] sm:$0xff]  ;;  %v549_v31 = vld [vmem:[%s7253_s25 + $0xb0] sm:$0xff]  ;;  %546 = vst [vmem:[%s466_s17 + $0x48] sm:$0xff] %v545_v29 }
  0x2a   : > { %548 = vst [vmem:[%s466_s17 + $0x50] sm:$0xff] %v547_v30  ;;  %550 = vst [vmem:[%s466_s17 + $0x58] sm:$0xff] %v549_v31  ;;  %v551_v32 = vld [vmem:[%s7253_s25 + $0xc0] sm:$0xff]  ;;  %v553_v33 = vld [vmem:[%s7253_s25 + $0xd0] sm:$0xff] }
  0x2b   : > { %v555_v34 = vld [vmem:[%s7253_s25 + $0xe0] sm:$0xff]  ;;  %552 = vst [vmem:[%s466_s17 + $0x60] sm:$0xff] %v551_v32  ;;  %554 = vst [vmem:[%s466_s17 + $0x68] sm:$0xff] %v553_v33  ;;  %v557_v35 = vld [vmem:[%s7253_s25 + $0xf0] sm:$0xff] }
  0x2c   : > { %556 = vst [vmem:[%s466_s17 + $0x70] sm:$0xff] %v555_v34  ;;  %558 = vst [vmem:[%s466_s17 + $0x78] sm:$0xff] %v557_v35 }
  0x2d PF: > { %p6861_p7 = scmp.ge.s32.totalorder %s7119_s11, 1  ;;  %p563_p8 = scmp.lt.s32.totalorder %s7119_s11, 3 }
  0x2f   : > { %p564_p9 = pnand %p6861_p7, %p563_p8 }
  0x31   : > { %567 = sbr.rel (%p564_p9) target bundleno = 1518 (0x5ee), region = 158 }
  0x36   : > { %v7276_v36 = vld [vmem:[%s10476_s3 + $0x8] sm:$0xff]  ;;  %s570_s14 = sand.u32 1, %s7111_s30   ;;  %v750_v38 = vlaneseq  ;;  %v10483_v39 = vmov 0.0   ;;  %v648_v40 = vld [vmem:[%s10476_s3] sm:$0xff]  ;;  %vm671_vm0 = vcmask 130048   ;;  %vm7122_vm1 = vmmov 0  }
  0x37   : > { %v7281_v37 = vld [vmem:[%s10477_s4 + $0x8] sm:$0xff]  ;;  %6966 = vmatprep.subr.mxu0 %v10483_v39  ;;  %6973 = vmatprep.subr.mxu1 %v10483_v39  ;;  %s7289_s20 = sshll.u32 %s570_s14, 5  ;;  %v7296_v41 = vld [vmem:[%s10477_s4] sm:$0xff]  ;;  %s7314_s23 = sshll.u32 %s570_s14, 7  ;;  %vm1019_vm2 = vcmask 64512   ;;  %vm3211_vm3 = vcmask 1041409  }
  0x38   : > { %6967 = vmatpush3.msra.mxu0 %v7276_v36  ;;  %6974 = vmatpush3.msra.mxu1 %v7281_v37  ;;  %v7298_v42 = vshrl.u32 %v750_v38, 7  ;;  %v3178_v43 = vand.u32 127, %v750_v38  ;;  %s7303_s30 = scalar_lea.vmem [#allocation2], %s7289_s20  ;;  %s7336_s24 = scalar_lea.vmem [#allocation3], %s7314_s23  ;;  %vm3213_vm4 = vcmask 1042434   ;;  %vm3215_vm5 = vcmask 1043459  }
  0x39   : > { %6968 = vmatprep.subr.mxu0 %v10483_v39  ;;  %6975 = vmatprep.subr.mxu1 %v10483_v39  ;;  %v670_v44 = vld [vmem:[%s7303_s30] sm:$0xff]  ;;  %v6872_v46 = vld [vmem:[%s7303_s30 + $0x8] sm:$0xff]  ;;  %v6875_v49 = vld [vmem:[%s7303_s30 + $0x10] sm:$0xff]  ;;  %s7403_s25 = scalar_lea.vmem [#allocation4], %s7314_s23  ;;  %s7446_s17 = sshll.u32 %s6851_s12, 3  ;;  %vm3217_vm6 = vcmask 1044484  }
  0x3a   : > { %6969 = vmatpush3.msra.mxu0 %v648_v40  ;;  %6970 = vmatprep.mubr.msk.f32.mxu0 %vm7122_vm1, %v10483_v39  ;;  %v7309_v45 = vsub.s32 %v3178_v43, %v7298_v42  ;;  %v7331_v47 = vsub.s32 1, %v7298_v42  ;;  %v2355_v48 = vld [vmem:[%s7336_s24] sm:$0xff]  ;;  %v7348_v51 = vsub.s32 2, %v7298_v42  ;;  %v7358_v52 = vsub.s32 0, %v7298_v42  ;;  %v6878_v55 = vld [vmem:[%s7303_s30 + $0x18] sm:$0xff]  ;;  %p637_p10 = scmp.lt.s32.totalorder %s7446_s17, 15 }
  0x3b   : > { %6976 = vmatpush3.msra.mxu1 %v7296_v41  ;;  %6977 = vmatprep.mubr.msk.f32.mxu1 %vm7122_vm1, %v10483_v39  ;;  %v7363_v54 = vsub.s32 3, %v7298_v42  ;;  %v7373_v57 = vsub.s32 4, %v7298_v42  ;;  %v7379_v59 = vsub.s32 5, %v7298_v42  ;;  %v7388_v61 = vsub.s32 6, %v7298_v42  ;;  %v2356_v2 = vld [vmem:[%s7403_s25] sm:$0xff] }
  0x3c   : > { %10846 = vst [vmem:[#allocation6_spill] sm:$0xff] %v7309_v45  ;;  %6971 = vmatmul.mubr.msk.f32.vlgmr.msra.gmra.mxu0 %vm671_vm0, %v670_v44  ;;  %6978 = vmatmul.mubr.msk.f32.vlgmr.msra.gmra.mxu1 %vm671_vm0, %v670_v44  ;;  %10847 = vst [vmem:[#allocation7_spill] sm:$0xff] %v7331_v47  ;;  %v2368_v50 = vrot.slane %v2355_v48, %v7331_v47  ;;  %v2375_v53 = vrot.slane %v2355_v48, %v7348_v51  ;;  %v7393_v63 = vsub.s32 7, %v7298_v42  ;;  %v6881_v11 = vld [vmem:[%s7336_s24 + $0x20] sm:$0xff]  ;;  %v7123_v43 = vmov 1966171168  }
  0x3d   : > { %6980 = vmatprep.subr.mxu0 %v10483_v39  ;;  %6987 = vmatprep.subr.mxu1 %v10483_v39  ;;  %10848 = vst [vmem:[#allocation8_spill] sm:$0xff] %v7348_v51  ;;  %10849 = vst [vmem:[#allocation9_spill] sm:$0xff] %v7358_v52  ;;  %v2361_v56 = vrot.slane %v2355_v48, %v7358_v52  ;;  %v2382_v58 = vrot.slane %v2355_v48, %v7363_v54  ;;  %v6882_v20 = vld [vmem:[%s7403_s25 + $0x20] sm:$0xff]  ;;  %v748_v44 = vunpack.c.l.s4 %v7123_v43  ;;  %s638_s26 = scalar_select %p637_p10, %s7446_s17, 15  ;;  %vm3219_vm7 = vcmask 1045509  }
  0x3e   : > { %6981 = vmatpush3.msra.mxu0 %v7276_v36  ;;  %6988 = vmatpush3.msra.mxu1 %v7281_v37  ;;  %10850 = vst [vmem:[#allocation10_spill] sm:$0xff] %v7363_v54  ;;  %10851 = vst [vmem:[#allocation11_spill] sm:$0xff] %v7373_v57  ;;  %v2389_v60 = vrot.slane %v2355_v48, %v7373_v57  ;;  %v2396_v62 = vrot.slane %v2355_v48, %v7379_v59  ;;  %v6883_v29 = vld [vmem:[%s7336_s24 + $0x40] sm:$0xff]  ;;  %vm3221_vm8 = vcmask 1046534   ;;  %vm3223_vm9 = vcmask 1047559  }
  0x3f   : > { %6982 = vmatprep.subr.mxu0 %v10483_v39  ;;  %6989 = vmatprep.subr.mxu1 %v10483_v39  ;;  %10852 = vst [vmem:[#allocation12_spill] sm:$0xff] %v7379_v59  ;;  %10853 = vst [vmem:[#allocation13_spill] sm:$0xff] %v7388_v61  ;;  %v2403_v0 = vrot.slane %v2355_v48, %v7388_v61  ;;  %v2410_v1 = vrot.slane %v2355_v48, %v7393_v63  ;;  %v6884_v38 = vld [vmem:[%s7403_s25 + $0x40] sm:$0xff]  ;;  %s6867_s27 = sshll.u32 %s638_s26, 3 }
  0x40   : > { %6983 = vmatpush3.msra.mxu0 %v648_v40  ;;  %6984 = vmatprep.mubr.msk.f32.mxu0 %vm7122_vm1, %v10483_v39  ;;  %10854 = vst [vmem:[#allocation14_spill] sm:$0xff] %v7393_v63  ;;  %v2442_v3 = vrot.slane %v2356_v2, %v7358_v52  ;;  %v2449_v4 = vrot.slane %v2356_v2, %v7331_v47  ;;  %s7461_s28 = scalar_lea.vmem %s10474_s1, %s6867_s27  ;;  %s7466_s15 = scalar_lea.vmem %s10475_s2, %s6867_s27 }
  0x41   : > { %6990 = vmatpush3.msra.mxu1 %v7296_v41  ;;  %6991 = vmatprep.mubr.msk.f32.mxu1 %vm7122_vm1, %v10483_v39  ;;  %v2456_v5 = vrot.slane %v2356_v2, %v7348_v51  ;;  %v2463_v6 = vrot.slane %v2356_v2, %v7363_v54  ;;  %v2470_v7 = vrot.slane %v2356_v2, %v7373_v57  ;;  %s9435_s27 = scalar_lea.vmem [#allocation5], %s7289_s20 }
  0x42   : > { %6985 = vmatmul.mubr.msk.f32.vlgmr.msra.gmra.mxu0 %vm671_vm0, %v6872_v46  ;;  %6992 = vmatmul.mubr.msk.f32.vlgmr.msra.gmra.mxu1 %vm671_vm0, %v6872_v46  ;;  %v2477_v8 = vrot.slane %v2356_v2, %v7379_v59  ;;  %v2484_v9 = vrot.slane %v2356_v2, %v7388_v61  ;;  %v2491_v10 = vrot.slane %v2356_v2, %v7393_v63  ;;  %v749_v46 = vunpack.c.0.s8 %v748_v44 }
  0x43   : > { %6994 = vmatprep.subr.mxu0 %v10483_v39  ;;  %7001 = vmatprep.subr.mxu1 %v10483_v39  ;;  %v2559_v12 = vrot.slane %v6881_v11, %v7358_v52  ;;  %v2566_v13 = vrot.slane %v6881_v11, %v7331_v47  ;;  %v2573_v14 = vrot.slane %v6881_v11, %v7348_v51 }
  0x44   : > { %6995 = vmatpush3.msra.mxu0 %v7276_v36  ;;  %7002 = vmatpush3.msra.mxu1 %v7281_v37  ;;  %v2580_v15 = vrot.slane %v6881_v11, %v7363_v54  ;;  %v2587_v16 = vrot.slane %v6881_v11, %v7373_v57  ;;  %v2594_v17 = vrot.slane %v6881_v11, %v7379_v59 }
  0x45   : > { %6996 = vmatprep.subr.mxu0 %v10483_v39  ;;  %7003 = vmatprep.subr.mxu1 %v10483_v39  ;;  %v2601_v18 = vrot.slane %v6881_v11, %v7388_v61  ;;  %v2608_v19 = vrot.slane %v6881_v11, %v7393_v63  ;;  %v2640_v21 = vrot.slane %v6882_v20, %v7358_v52  ;;  %v7473_v11 = vld [vmem:[%s7461_s28] sm:$0xff] }
  0x46   : > { %6997 = vmatpush3.msra.mxu0 %v648_v40  ;;  %6998 = vmatprep.mubr.msk.f32.mxu0 %vm7122_vm1, %v10483_v39  ;;  %v2647_v22 = vrot.slane %v6882_v20, %v7331_v47  ;;  %v2654_v23 = vrot.slane %v6882_v20, %v7348_v51  ;;  %v2661_v24 = vrot.slane %v6882_v20, %v7363_v54 }
  0x47   : > { %7004 = vmatpush3.msra.mxu1 %v7296_v41  ;;  %7005 = vmatprep.mubr.msk.f32.mxu1 %vm7122_vm1, %v10483_v39  ;;  %v2668_v25 = vrot.slane %v6882_v20, %v7373_v57  ;;  %v2675_v26 = vrot.slane %v6882_v20, %v7379_v59  ;;  %v2682_v27 = vrot.slane %v6882_v20, %v7388_v61 }
  0x48   : > { %6999 = vmatmul.mubr.msk.f32.vlgmr.msra.gmra.mxu0 %vm671_vm0, %v6875_v49  ;;  %7006 = vmatmul.mubr.msk.f32.vlgmr.msra.gmra.mxu1 %vm671_vm0, %v6875_v49  ;;  %v2689_v28 = vrot.slane %v6882_v20, %v7393_v63  ;;  %v2757_v30 = vrot.slane %v6883_v29, %v7358_v52  ;;  %v2764_v31 = vrot.slane %v6883_v29, %v7331_v47 }
  0x49   : > { %2370 = vbcast.lane.b32.xlu1 %v2368_v50, 256  ;;  %7008 = vmatprep.subr.mxu0 %v10483_v39  ;;  %v2771_v32 = vrot.slane %v6883_v29, %v7348_v51  ;;  %v2778_v33 = vrot.slane %v6883_v29, %v7363_v54  ;;  %v2785_v34 = vrot.slane %v6883_v29, %v7373_v57 }
  0x4a   : > { %7015 = vmatprep.subr.mxu1 %v10483_v39  ;;  %7009 = vmatpush3.msra.mxu0 %v7276_v36  ;;  %v2792_v35 = vrot.slane %v6883_v29, %v7379_v59  ;;  %v2799_v36 = vrot.slane %v6883_v29, %v7388_v61  ;;  %v7451_v48 = vsub.s32 %v749_v46, %v7298_v42 }
  0x4b   : > { %7016 = vmatpush3.msra.mxu1 %v7281_v37  ;;  %7010 = vmatprep.subr.mxu0 %v10483_v39  ;;  %v2806_v37 = vrot.slane %v6883_v29, %v7393_v63 }
  0x4c   : > { %7017 = vmatprep.subr.mxu1 %v10483_v39  ;;  %7011 = vmatpush3.msra.mxu0 %v648_v40  ;;  %v2838_v40 = vrot.slane %v6884_v38, %v7358_v52 }
  0x4d   : > { %2377 = vbcast.lane.b32.xlu1 %v2375_v53, 256  ;;  %7012 = vmatprep.mubr.msk.f32.mxu0 %vm7122_vm1, %v10483_v39 }
  0x4e   : > { %7018 = vmatpush3.msra.mxu1 %v7296_v41  ;;  %7019 = vmatprep.mubr.msk.f32.mxu1 %vm7122_vm1, %v10483_v39  ;;  %v2845_v41 = vrot.slane %v6884_v38, %v7331_v47 }
  0x4f   : > { %7013 = vmatmul.mubr.msk.f32.vlgmr.msra.gmra.mxu0 %vm671_vm0, %v6878_v55  ;;  %7020 = vmatmul.mubr.msk.f32.vlgmr.msra.gmra.mxu1 %vm671_vm0, %v6878_v55 }
  0x50   : > { %2363 = vbcast.lane.b32.xlu0 %v2361_v56, 256  ;;  %7022 = vmatprep.subr.mxu0 %v10483_v39 }
  0x51   : > { %2384 = vbcast.lane.b32.xlu1 %v2382_v58, 256  ;;  %7024 = vmatprep.mubr.msk.f32.mxu0 %vm7122_vm1, %v10483_v39 }
  0x52   : > { %7027 = vmatprep.subr.mxu1 %v10483_v39  ;;  %7029 = vmatprep.mubr.msk.f32.mxu1 %vm7122_vm1, %v10483_v39 }
  0x54   : > { %2391 = vbcast.lane.b32.xlu0 %v2389_v60, 256 }
  0x55   : > { %2398 = vbcast.lane.b32.xlu1 %v2396_v62, 256 }
  0x58   : > { %2405 = vbcast.lane.b32.xlu0 %v2403_v0, 256 }
  0x59   : > { %2412 = vbcast.lane.b32.xlu1 %v2410_v1, 256 }
  0x5c   : > { %2444 = vbcast.lane.b32.xlu0 %v2442_v3, 256 }
  0x5d   : > { %2451 = vbcast.lane.b32.xlu1 %v2449_v4, 256 }
  0x60   : > { %2458 = vbcast.lane.b32.xlu0 %v2456_v5, 256 }
  0x61   : > { %2465 = vbcast.lane.b32.xlu1 %v2463_v6, 256 }
  0x64   : > { %2472 = vbcast.lane.b32.xlu0 %v2470_v7, 256 }
  0x65   : > { %2479 = vbcast.lane.b32.xlu1 %v2477_v8, 256 }
  0x68   : > { %2486 = vbcast.lane.b32.xlu0 %v2484_v9, 256 }
  0x69   : > { %2493 = vbcast.lane.b32.xlu1 %v2491_v10, 256 }
  0x6c   : > { %2561 = vbcast.lane.b32.xlu0 %v2559_v12, 256  ;;  %v7476_v12 = vld [vmem:[%s7466_s15] sm:$0xff] }
  0x6d   : > { %2568 = vbcast.lane.b32.xlu1 %v2566_v13, 256 }
  0x70   : > { %2575 = vbcast.lane.b32.xlu0 %v2573_v14, 256 }
  0x71   : > { %2582 = vbcast.lane.b32.xlu1 %v2580_v15, 256 }
  0x74   : > { %2589 = vbcast.lane.b32.xlu0 %v2587_v16, 256 }
  0x75   : > { %2596 = vbcast.lane.b32.xlu1 %v2594_v17, 256 }
  0x78   : > { %2603 = vbcast.lane.b32.xlu0 %v2601_v18, 256 }
  0x79   : > { %2610 = vbcast.lane.b32.xlu1 %v2608_v19, 256 }
  0x7c   : > { %2642 = vbcast.lane.b32.xlu0 %v2640_v21, 256 }
  0x7d   : > { %2649 = vbcast.lane.b32.xlu1 %v2647_v22, 256 }
  0x80   : > { %2656 = vbcast.lane.b32.xlu0 %v2654_v23, 256  ;;  %v7496_v23 = vld [vmem:[%s7461_s28 + $0x10] sm:$0xff] }
  0x81   : > { %2663 = vbcast.lane.b32.xlu1 %v2661_v24, 256  ;;  %v7499_v24 = vld [vmem:[%s7466_s15 + $0x10] sm:$0xff] }
  0x84   : > { %2670 = vbcast.lane.b32.xlu0 %v2668_v25, 256 }
  0x85   : > { %2677 = vbcast.lane.b32.xlu1 %v2675_v26, 256 }
  0x88   : > { %2684 = vbcast.lane.b32.xlu0 %v2682_v27, 256 }
  0x89   : > { %2691 = vbcast.lane.b32.xlu1 %v2689_v28, 256 }
  0x8c   : > { %2759 = vbcast.lane.b32.xlu0 %v2757_v30, 256 }
  0x8d   : > { %2766 = vbcast.lane.b32.xlu1 %v2764_v31, 256  ;;  %v7506_v31 = vld [vmem:[%s7461_s28 + $0x8] sm:$0xff] }
  0x90   : > { %2773 = vbcast.lane.b32.xlu0 %v2771_v32, 256  ;;  %v7509_v32 = vld [vmem:[%s7466_s15 + $0x8] sm:$0xff] }
  0x91   : > { %2780 = vbcast.lane.b32.xlu1 %v2778_v33, 256 }
  0x94   : > { %2787 = vbcast.lane.b32.xlu0 %v2785_v34, 256 }
  0x95   : > { %2794 = vbcast.lane.b32.xlu1 %v2792_v35, 256 }
  0x98   : > { %2801 = vbcast.lane.b32.xlu0 %v2799_v36, 256 }
  0x99   : > { %2808 = vbcast.lane.b32.xlu1 %v2806_v37, 256 }
  0x9c   : > { %2840 = vbcast.lane.b32.xlu0 %v2838_v40, 256  ;;  %v7518_v40 = vld [vmem:[%s7461_s28 + $0x18] sm:$0xff] }
  0x9d   : > { %2847 = vbcast.lane.b32.xlu1 %v2845_v41, 256 }
  0xc2   : > { %v7659_v39 = vpop.permute.xlu0 %2363 }
  0xc3   : > { %10857 = vst [vmem:[#allocation17_spill] sm:$0xff] %v7659_v39 }
  0xfc   : > { %v741_v49 = vpop.f32.mrf.mxu0  ;;  %v861_v50 = vpop.f32.mrf.mxu1 }
  0xfd   : > { %v746_v53 = vcombine.high %v741_v49, %v741_v49  ;;  %v753_v55 = vrot.slane %v741_v49, %v7451_v48  ;;  %v866_v56 = vcombine.high %v861_v50, %v861_v50  ;;  %v873_v58 = vrot.slane %v861_v50, %v7451_v48 }
  0xfe   : > { %v6972_v60 = vpop.f32.mrf.mxu0  ;;  %v6979_v62 = vpop.f32.mrf.mxu1 }
  0xff   : > { %v760_v0 = vrot.slane %v746_v53, %v7451_v48  ;;  %v761_v1 = vcombine.high %v753_v55, %v753_v55  ;;  %v769_v2 = vrot.slane %v753_v55, %v7451_v48  ;;  %v880_v3 = vrot.slane %v866_v56, %v7451_v48  ;;  %v7525_v53 = vld [vmem:[%s7466_s15 + $0x18] sm:$0xff] }
 0x100   : > { %v881_v42 = vcombine.high %v873_v58, %v873_v58  ;;  %v889_v4 = vrot.slane %v873_v58, %v7451_v48 }
 0x101   : > { %v762_v5 = vcombine.high %v760_v0, %v760_v0  ;;  %v783_v6 = vrot.slane %v761_v1, %v7451_v48  ;;  %v791_v7 = vcombine.high %v769_v2, %v769_v2  ;;  %v918_v8 = vrot.slane %v769_v2, %v7358_v52 }
 0x102   : > { %v882_v9 = vcombine.high %v880_v3, %v880_v3  ;;  %v903_v10 = vrot.slane %v881_v42, %v7451_v48  ;;  %v7478_v13 = vpop.f32.mrf.mxu1  ;;  %v7480_v14 = vpop.f32.mrf.mxu0  ;;  %v7483_v15 = vrot.slane %v760_v0, %v7451_v48  ;;  %v7486_v17 = vrot.slane %v880_v3, %v7451_v48  ;;  %v7536_v3 = vld [vmem:[%s7461_s28 + $0x20] sm:$0xff] }
 0x103   : > { %v793_v16 = vcombine.high %v783_v6, %v783_v6  ;;  %v911_v18 = vcombine.high %v889_v4, %v889_v4  ;;  %v7489_v19 = vrot.slane %v762_v5, %v7451_v48  ;;  %v966_v22 = vrot.slane %v889_v4, %v7358_v52  ;;  %v7539_v42 = vld [vmem:[%s7466_s15 + $0x20] sm:$0xff] }
 0x104   : > { %v7492_v20 = vrot.slane %v882_v9, %v7451_v48  ;;  %v913_v21 = vcombine.high %v903_v10, %v903_v10  ;;  %v6993_v25 = vpop.f32.mrf.mxu1  ;;  %v6986_v26 = vpop.f32.mrf.mxu0  ;;  %v955_v27 = vmul.f32 %v918_v8, %v7473_v11  ;;  %v926_v28 = vrot.slane %v791_v7, %v7358_v52 }
 0x105   : > { %v974_v29 = vrot.slane %v911_v18, %v7358_v52  ;;  %v1044_v30 = vmul.f32 %v918_v8, %v7476_v12  ;;  %v1003_v33 = vmul.f32 %v966_v22, %v7476_v12  ;;  %v1052_v34 = vmul.f32 %v966_v22, %v7473_v11 }
 0x106   : > { %v922_v35 = vrot.slane %v783_v6, %v7358_v52  ;;  %v970_v36 = vrot.slane %v903_v10, %v7358_v52  ;;  %v957_v37 = vmul.f32 %v926_v28, %v7496_v23  ;;  %v930_v41 = vrot.slane %v793_v16, %v7358_v52  ;;  %v7548_v10 = vld [vmem:[%s7461_s28 + $0x28] sm:$0xff] }
 0x107   : > { %v1005_v38 = vmul.f32 %v974_v29, %v7499_v24  ;;  %v978_v43 = vrot.slane %v913_v21, %v7358_v52  ;;  %v1011_v44 = vsub.f32 %v955_v27, %v1003_v33  ;;  %v1060_v46 = vadd.f32 %v1052_v34, %v1044_v30  ;;  %v7551_v16 = vld [vmem:[%s7466_s15 + $0x28] sm:$0xff] }
 0x108   : > { %v1045_v49 = vmul.f32 %v922_v35, %v7509_v32  ;;  %v1053_v50 = vmul.f32 %v970_v36, %v7506_v31  ;;  %v7527_v55 = vpop.f32.mrf.mxu1  ;;  %v7529_v56 = vpop.f32.mrf.mxu0  ;;  %v956_v60 = vmul.f32 %v922_v35, %v7506_v31  ;;  %v1004_v62 = vmul.f32 %v970_v36, %v7509_v32 }
 0x109   : > { %v1013_v58 = vsub.f32 %v957_v37, %v1005_v38  ;;  %v1020_v0 = vsel %vm1019_vm2, %v1011_v44, 0.0  ;;  %v958_v2 = vmul.f32 %v930_v41, %v7518_v40  ;;  %v1006_v7 = vmul.f32 %v978_v43, %v7525_v53 }
 0x10a   : > { %v1061_v1 = vadd.f32 %v1053_v50, %v1045_v49  ;;  %v7007_v4 = vpop.f32.mrf.mxu1  ;;  %v7000_v5 = vpop.f32.mrf.mxu0  ;;  %1021 = vadd.xlane.f32.xlu0 %v1020_v0  ;;  %v934_v8 = vrot.slane %v7483_v15, %v7358_v52  ;;  %v982_v9 = vrot.slane %v7486_v17, %v7358_v52  ;;  %v1068_v18 = vsel %vm1019_vm2, %v1060_v46, 0.0 }
 0x10b   : > { %v1026_v6 = vsel %vm1019_vm2, %v1013_v58, 0.0  ;;  %v938_v21 = vrot.slane %v7489_v19, %v7358_v52  ;;  %v986_v22 = vrot.slane %v7492_v20, %v7358_v52  ;;  %v1012_v25 = vsub.f32 %v956_v60, %v1004_v62 }
 0x10c   : > { %1027 = vadd.xlane.f32.xlu1 %v1026_v6  ;;  %v959_v26 = vmul.f32 %v934_v8, %v7536_v3  ;;  %v1007_v27 = vmul.f32 %v982_v9, %v7539_v42  ;;  %v1046_v30 = vmul.f32 %v926_v28, %v7499_v24  ;;  %v1071_v33 = vsel %vm1019_vm2, %v1061_v1, 0.0 }
 0x10d   : > { %v960_v34 = vmul.f32 %v938_v21, %v7548_v10  ;;  %v1008_v35 = vmul.f32 %v986_v22, %v7551_v16  ;;  %v1054_v36 = vmul.f32 %v974_v29, %v7496_v23  ;;  %v1014_v37 = vsub.f32 %v958_v2, %v1006_v7 }
 0x10e   : > { %1069 = vadd.xlane.f32.xlu0 %v1068_v18  ;;  %v1288_v38 = vcombine.high %v7478_v13, %v7478_v13  ;;  %v1295_v44 = vrot.slane %v7478_v13, %v7451_v48  ;;  %v1047_v46 = vmul.f32 %v930_v41, %v7525_v53  ;;  %v1015_v28 = vsub.f32 %v959_v26, %v1007_v27  ;;  %v7588_v18 = vpop.permute.xlu1 %2370 }
 0x10f   : > { %v7570_v49 = vpop.f32.mrf.mxu1  ;;  %v1016_v50 = vsub.f32 %v960_v34, %v1008_v35  ;;  %v1055_v58 = vmul.f32 %v978_v43, %v7518_v40  ;;  %v1168_v29 = vcombine.high %v7480_v14, %v7480_v14  ;;  %v7575_v60 = vpop.f32.mrf.mxu0  ;;  %v1062_v62 = vadd.f32 %v1054_v36, %v1046_v30  ;;  %10855 = vst [vmem:[#allocation15_spill] sm:$0xff] %v7588_v18 }
 0x110   : > { %1072 = vadd.xlane.f32.xlu1 %v1071_v33  ;;  %v1302_v0 = vrot.slane %v1288_v38, %v7451_v48  ;;  %v1303_v1 = vcombine.high %v1295_v44, %v1295_v44  ;;  %v1023_v13 = vsel %vm1019_vm2, %v1012_v25, 0.0  ;;  %v7580_v41 = vrot.slane %v1295_v44, %v7451_v48 }
 0x111   : > { %v7021_v2 = vpop.f32.mrf.mxu1  ;;  %v1063_v4 = vadd.f32 %v1055_v58, %v1047_v46  ;;  %v1175_v5 = vrot.slane %v7480_v14, %v7451_v48  ;;  %v7014_v43 = vpop.f32.mrf.mxu0  ;;  %v792_v6 = vcombine.high %v7483_v15, %v7483_v15  ;;  %v912_v7 = vcombine.high %v7486_v17, %v7486_v17 }
 0x112   : > { %1024 = vadd.xlane.f32.xlu0 %v1023_v13  ;;  %v1029_v26 = vsel %vm1019_vm2, %v1014_v37, 0.0  ;;  %v1304_v25 = vcombine.high %v1302_v0, %v1302_v0  ;;  %v1032_v27 = vsel %vm1019_vm2, %v1015_v28, 0.0  ;;  %v1035_v30 = vsel %vm1019_vm2, %v1016_v50, 0.0  ;;  %v7627_v2 = vld [vmem:[%s7466_s15 + $0x30] sm:$0xff]  ;;  %v7629_v13 = vpop.permute.xlu1 %2377 }
 0x113   : > { %v7594_v14 = vrot.slane %v1303_v1, %v7451_v48  ;;  %v1182_v33 = vrot.slane %v1168_v29, %v7451_v48  ;;  %v1074_v15 = vsel %vm1019_vm2, %v1062_v62, 0.0  ;;  %v7599_v17 = vrot.slane %v1302_v0, %v7451_v48  ;;  %v7624_v1 = vld [vmem:[%s7461_s28 + $0x30] sm:$0xff]  ;;  %10856 = vst [vmem:[#allocation16_spill] sm:$0xff] %v7629_v13 }
 0x114   : > { %1030 = vadd.xlane.f32.xlu1 %v1029_v26  ;;  %v1183_v34 = vcombine.high %v1175_v5, %v1175_v5  ;;  %v7602_v35 = vrot.slane %v1175_v5, %v7451_v48  ;;  %v1388_v37 = vrot.slane %v7580_v41, %v7358_v52  ;;  %v1077_v38 = vsel %vm1019_vm2, %v1063_v4, 0.0 }
 0x115   : > { %v1048_v44 = vmul.f32 %v934_v8, %v7539_v42  ;;  %v7611_v46 = vrot.slane %v1304_v25, %v7451_v48  ;;  %v1056_v50 = vmul.f32 %v982_v9, %v7536_v3  ;;  %v1049_v58 = vmul.f32 %v938_v21, %v7551_v16  ;;  %v7637_v25 = vld [vmem:[%s7461_s28 + $0x38] sm:$0xff] }
 0x116   : > { %1033 = vadd.xlane.f32.xlu0 %v1032_v27  ;;  %v1340_v28 = vrot.slane %v7602_v35, %v7358_v52  ;;  %v1184_v62 = vcombine.high %v1182_v33, %v1182_v33  ;;  %v7620_v8 = vrot.slane %v1182_v33, %v7451_v48  ;;  %v1057_v0 = vmul.f32 %v986_v22, %v7548_v10  ;;  %v7640_v22 = vld [vmem:[%s7466_s15 + $0x38] sm:$0xff]  ;;  %v7665_v29 = vpop.permute.xlu1 %2384  ;;  %s6689_s15 = scalar_lea.vmem (%p7209_p5), %s10482_s9, %s7446_s17 }
 0x117   : > { %v1205_v9 = vrot.slane %v1183_v34, %v7451_v48  ;;  %v942_v21 = vrot.slane %v792_v6, %v7358_v52  ;;  %v990_v4 = vrot.slane %v912_v7, %v7358_v52  ;;  %v794_v5 = vcombine.high %v7489_v19, %v7489_v19  ;;  %10858 = vst [vmem:[#allocation18_spill] sm:$0xff] %v7665_v29 }
 0x118   : > { %1036 = vadd.xlane.f32.xlu1 %v1035_v30  ;;  %v1064_v43 = vadd.f32 %v1056_v50, %v1048_v44  ;;  %v1065_v26 = vadd.f32 %v1057_v0, %v1049_v58  ;;  %v914_v27 = vcombine.high %v7492_v20, %v7492_v20  ;;  %v1377_v30 = vmul.f32 %v1340_v28, %v7473_v11 }
 0x119   : > { %v961_v33 = vmul.f32 %v942_v21, %v7624_v1  ;;  %v1009_v6 = vmul.f32 %v990_v4, %v7627_v2  ;;  %v946_v7 = vrot.slane %v794_v5, %v7358_v52  ;;  %v1425_v19 = vmul.f32 %v1388_v37, %v7476_v12 }
 0x11a   : > { %1075 = vadd.xlane.f32.xlu0 %v1074_v15  ;;  %v1213_v34 = vcombine.high %v7602_v35, %v7602_v35  ;;  %v994_v44 = vrot.slane %v914_v27, %v7358_v52  ;;  %v1050_v50 = vmul.f32 %v942_v21, %v7627_v2  ;;  %v1058_v20 = vmul.f32 %v990_v4, %v7624_v1 }
 0x11b   : > { %v7655_v15 = vrot.slane %v1184_v62, %v7451_v48  ;;  %v1017_v58 = vsub.f32 %v961_v33, %v1009_v6  ;;  %v962_v0 = vmul.f32 %v946_v7, %v7637_v25  ;;  %v1051_v5 = vmul.f32 %v946_v7, %v7640_v22 }
 0x11c   : > { %1078 = vadd.xlane.f32.xlu1 %v1077_v38  ;;  %v1080_v38 = vsel %vm1019_vm2, %v1064_v43, 0.0  ;;  %v1010_v35 = vmul.f32 %v994_v44, %v7640_v22  ;;  %v1059_v27 = vmul.f32 %v994_v44, %v7637_v25  ;;  %v1344_v21 = vrot.slane %v1205_v9, %v7358_v52 }
 0x11d   : > { %v1215_v4 = vcombine.high %v1205_v9, %v1205_v9  ;;  %v1083_v62 = vsel %vm1019_vm2, %v1065_v26, 0.0  ;;  %v1433_v33 = vsub.f32 %v1377_v30, %v1425_v19  ;;  %v1392_v6 = vrot.slane %v7594_v14, %v7358_v52 }
 0x11e   : > { %1081 = vadd.xlane.f32.xlu0 %v1080_v38  ;;  %v1038_v7 = vsel %vm1019_vm2, %v1017_v58, 0.0  ;;  %v1018_v43 = vsub.f32 %v962_v0, %v1010_v35  ;;  %v1066_v36 = vadd.f32 %v1058_v20, %v1050_v50  ;;  %v1378_v45 = vmul.f32 %v1344_v21, %v7506_v31 }
 0x11f   : > { %v1067_v44 = vadd.f32 %v1059_v27, %v1051_v5  ;;  %v1426_v18 = vmul.f32 %v1392_v6, %v7509_v32  ;;  %v1465_v29 = vmul.f32 %v1340_v28, %v7476_v12  ;;  %v1473_v9 = vmul.f32 %v1388_v37, %v7473_v11  ;;  %v7685_v37 = vpop.permute.xlu0 %2391 }
 0x120   : > { %1084 = vadd.xlane.f32.xlu1 %v1083_v62  ;;  %v1466_v26 = vmul.f32 %v1344_v21, %v7509_v32  ;;  %v1474_v30 = vmul.f32 %v1392_v6, %v7506_v31  ;;  %v1348_v19 = vrot.slane %v1213_v34, %v7358_v52  ;;  %v10859_v58 = vcombine.high %v7580_v41, %v7580_v41  ;;  %v7695_v21 = vpop.permute.xlu1 %2398 }
 0x121   : > { %v1041_v20 = vsel %vm1019_vm2, %v1018_v43, 0.0  ;;  %v1441_v0 = vsel %vm1019_vm2, %v1433_v33, 0.0  ;;  %v1434_v5 = vsub.f32 %v1378_v45, %v1426_v18  ;;  %v1352_v28 = vrot.slane %v1215_v4, %v7358_v52  ;;  %10860 = vst [vmem:[#allocation19_spill] sm:$0xff] %v7685_v37  ;;  %10862 = vst [vmem:[#allocation20_spill] sm:$0xff] %v7695_v21 }
 0x122   : > { %v1396_v50 = vrot.slane %v10859_v58, %v7358_v52  ;;  %1039 = vadd.xlane.f32.xlu0 %v1038_v7  ;;  %v1379_v38 = vmul.f32 %v1348_v19, %v7496_v23  ;;  %v10861_v41 = vcombine.high %v7594_v14, %v7594_v14  ;;  %v1356_v27 = vrot.slane %v7620_v8, %v7358_v52 }
 0x123   : > { %v1086_v45 = vsel %vm1019_vm2, %v1066_v36, 0.0  ;;  %v1089_v18 = vsel %vm1019_vm2, %v1067_v44, 0.0  ;;  %v1481_v4 = vadd.f32 %v1473_v9, %v1465_v29  ;;  %v1380_v62 = vmul.f32 %v1352_v28, %v7518_v40 }
 0x124   : > { %1042 = vadd.xlane.f32.xlu1 %v1041_v20  ;;  %v1427_v34 = vmul.f32 %v1396_v50, %v7499_v24  ;;  %v1400_v35 = vrot.slane %v10861_v41, %v7358_v52  ;;  %v1444_v33 = vsel %vm1019_vm2, %v1434_v5, 0.0  ;;  %v1482_v6 = vadd.f32 %v1474_v30, %v1466_v26 }
 0x125   : > { %v1404_v14 = vrot.slane %v7599_v17, %v7358_v52  ;;  %v1360_v43 = vrot.slane %v7655_v15, %v7358_v52  ;;  %v1408_v36 = vrot.slane %v7611_v46, %v7358_v52  ;;  %v1467_v44 = vmul.f32 %v1348_v19, %v7499_v24  ;;  %v7718_v19 = vpop.permute.xlu0 %2405 }
 0x126   : > { %v1428_v7 = vmul.f32 %v1400_v35, %v7525_v53  ;;  %1087 = vadd.xlane.f32.xlu0 %v1086_v45  ;;  %v1475_v29 = vmul.f32 %v1396_v50, %v7496_v23  ;;  %v1435_v9 = vsub.f32 %v1379_v38, %v1427_v34  ;;  %v1381_v26 = vmul.f32 %v1356_v27, %v7536_v3  ;;  %v7721_v34 = vpop.permute.xlu1 %2412 }
 0x127   : > { %v1709_v30 = vcombine.high %v7527_v55, %v7527_v55  ;;  %v1429_v20 = vmul.f32 %v1404_v14, %v7539_v42  ;;  %v1382_v5 = vmul.f32 %v1360_v43, %v7548_v10  ;;  %v1430_v41 = vmul.f32 %v1408_v36, %v7551_v16  ;;  %10863 = vst [vmem:[#allocation21_spill] sm:$0xff] %v7718_v19 }
 0x128   : > { %1090 = vadd.xlane.f32.xlu1 %v1089_v18  ;;  %v1436_v58 = vsub.f32 %v1380_v62, %v1428_v7  ;;  %v1716_v45 = vrot.slane %v7527_v55, %v7451_v48  ;;  %v1483_v50 = vadd.f32 %v1475_v29, %v1467_v44  ;;  %10864 = vst [vmem:[#allocation22_spill] sm:$0xff] %v7721_v34  ;;  %v1489_v7 = vsel %vm1019_vm2, %v1481_v4, 0.0 }
 0x129   : > { %v1723_v38 = vrot.slane %v1709_v30, %v7451_v48  ;;  %v1334_v18 = vcombine.high %v7599_v17, %v7599_v17  ;;  %v1214_v62 = vcombine.high %v7620_v8, %v7620_v8  ;;  %v1492_v21 = vsel %vm1019_vm2, %v1482_v6, 0.0 }
 0x12a   : > { %1442 = vadd.xlane.f32.xlu0 %v1441_v0  ;;  %v1447_v55 = vsel %vm1019_vm2, %v1435_v9, 0.0  ;;  %v1450_v44 = vsel %vm1019_vm2, %v1436_v58, 0.0  ;;  %v1724_v29 = vcombine.high %v1716_v45, %v1716_v45  ;;  %v1437_v30 = vsub.f32 %v1381_v26, %v1429_v20  ;;  %v7746_v9 = vpop.permute.xlu0 %2444 }
 0x12b   : > { %v1438_v19 = vsub.f32 %v1382_v5, %v1430_v41  ;;  %v1468_v34 = vmul.f32 %v1352_v28, %v7525_v53  ;;  %v1476_v17 = vmul.f32 %v1400_v35, %v7518_v40  ;;  %v1495_v37 = vsel %vm1019_vm2, %v1483_v50, 0.0  ;;  %10865 = vst [vmem:[#allocation23_spill] sm:$0xff] %v7746_v9  ;;  %v7754_v41 = vpop.permute.xlu1 %2451 }
 0x12c   : > { %1445 = vadd.xlane.f32.xlu1 %v1444_v33  ;;  %v1725_v8 = vcombine.high %v1723_v38, %v1723_v38  ;;  %v7735_v0 = vrot.slane %v1716_v45, %v7451_v48  ;;  %v1589_v4 = vcombine.high %v7529_v56, %v7529_v56  ;;  %v7740_v33 = vrot.slane %v1723_v38, %v7451_v48 }
 0x12d   : > { %v1596_v6 = vrot.slane %v7529_v56, %v7451_v48  ;;  %v1469_v28 = vmul.f32 %v1356_v27, %v7539_v42  ;;  %v1477_v35 = vmul.f32 %v1404_v14, %v7536_v3  ;;  %v7749_v58 = vrot.slane %v1724_v29, %v7451_v48  ;;  %10866 = vst [vmem:[#allocation24_spill] sm:$0xff] %v7754_v41 }
 0x12e   : > { %1490 = vadd.xlane.f32.xlu0 %v1489_v7  ;;  %v1603_v26 = vrot.slane %v1589_v4, %v7451_v48  ;;  %v1470_v20 = vmul.f32 %v1360_v43, %v7551_v16  ;;  %v1478_v5 = vmul.f32 %v1408_v36, %v7548_v10  ;;  %v1453_v56 = vsel %vm1019_vm2, %v1437_v30, 0.0 }
 0x12f   : > { %v1456_v27 = vsel %vm1019_vm2, %v1438_v19, 0.0  ;;  %v1484_v45 = vadd.f32 %v1476_v17, %v1468_v34  ;;  %v1604_v14 = vcombine.high %v1596_v6, %v1596_v6  ;;  %v1612_v50 = vrot.slane %v1596_v6, %v7451_v48 }
 0x130   : > { %1493 = vadd.xlane.f32.xlu1 %v1492_v21  ;;  %v1754_v21 = vcombine.high %v7735_v0, %v7735_v0  ;;  %v1364_v38 = vrot.slane %v1214_v62, %v7358_v52  ;;  %v1412_v7 = vrot.slane %v1334_v18, %v7358_v52  ;;  %v7764_v43 = vrot.slane %v1725_v8, %v7451_v48 }
 0x131   : > { %v1809_v36 = vrot.slane %v7735_v0, %v7358_v52  ;;  %v1626_v19 = vrot.slane %v1604_v14, %v7451_v48  ;;  %v1485_v34 = vadd.f32 %v1477_v35, %v1469_v28  ;;  %v1756_v30 = vcombine.high %v7749_v58, %v7749_v58 }
 0x132   : > { %1448 = vadd.xlane.f32.xlu0 %v1447_v55  ;;  %v1605_v62 = vcombine.high %v1603_v26, %v1603_v26  ;;  %v1486_v17 = vadd.f32 %v1478_v5, %v1470_v20  ;;  %v1498_v18 = vsel %vm1019_vm2, %v1484_v45, 0.0  ;;  %v7775_v55 = vrot.slane %v1603_v26, %v7451_v48  ;;  %v7786_v20 = vpop.permute.xlu1 %2465 }
 0x133   : > { %v1216_v8 = vcombine.high %v7655_v15, %v7655_v15  ;;  %v1336_v0 = vcombine.high %v7611_v46, %v7611_v46  ;;  %v1634_v4 = vcombine.high %v1612_v50, %v1612_v50  ;;  %v1761_v6 = vrot.slane %v1612_v50, %v7358_v52  ;;  %10868 = vst [vmem:[#allocation26_spill] sm:$0xff] %v7786_v20 }
 0x134   : > { %1451 = vadd.xlane.f32.xlu1 %v1450_v44  ;;  %v7781_v44 = vpop.permute.xlu0 %2458  ;;  %v1383_v28 = vmul.f32 %v1364_v38, %v7624_v1  ;;  %v1431_v35 = vmul.f32 %v1412_v7, %v7627_v2  ;;  %v1501_v26 = vsel %vm1019_vm2, %v1485_v34, 0.0  ;;  %v1765_v46 = vrot.slane %v1626_v19, %v7358_v52 }
 0x135   : > { %10867 = vst [vmem:[#allocation25_spill] sm:$0xff] %v7781_v44  ;;  %v1368_v5 = vrot.slane %v1216_v8, %v7358_v52  ;;  %v1416_v15 = vrot.slane %v1336_v0, %v7358_v52  ;;  %v7793_v45 = vrot.slane %v1605_v62, %v7451_v48  ;;  %v1636_v14 = vcombine.high %v1626_v19, %v1626_v19 }
 0x136   : > { %1454 = vadd.xlane.f32.xlu0 %v1453_v56  ;;  %v1504_v50 = vsel %vm1019_vm2, %v1486_v17, 0.0  ;;  %v1813_v29 = vrot.slane %v7749_v58, %v7358_v52  ;;  %v1471_v8 = vmul.f32 %v1364_v38, %v7627_v2  ;;  %v1479_v0 = vmul.f32 %v1412_v7, %v7624_v1 }
 0x137   : > { %v1384_v56 = vmul.f32 %v1368_v5, %v7637_v25  ;;  %v1432_v34 = vmul.f32 %v1416_v15, %v7640_v22  ;;  %v1439_v20 = vsub.f32 %v1383_v28, %v1431_v35  ;;  %v1798_v62 = vmul.f32 %v1761_v6, %v7473_v11 }
 0x138   : > { %1457 = vadd.xlane.f32.xlu1 %v1456_v27  ;;  %v1472_v27 = vmul.f32 %v1368_v5, %v7640_v22  ;;  %v1846_v19 = vmul.f32 %v1809_v36, %v7476_v12  ;;  %v1480_v41 = vmul.f32 %v1416_v15, %v7637_v25  ;;  %v1799_v58 = vmul.f32 %v1765_v46, %v7506_v31  ;;  %v7808_v13 = vpop.permute.xlu0 %2472  ;;  %v7814_v5 = vpop.permute.xlu1 %2479 }
 0x139   : > { %v1440_v17 = vsub.f32 %v1384_v56, %v1432_v34  ;;  %v1847_v44 = vmul.f32 %v1813_v29, %v7509_v32  ;;  %10869 = vst [vmem:[#allocation27_spill] sm:$0xff] %v7808_v13  ;;  %v1886_v38 = vmul.f32 %v1761_v6, %v7476_v12  ;;  %v1894_v7 = vmul.f32 %v1809_v36, %v7473_v11 }
 0x13a   : > { %1496 = vadd.xlane.f32.xlu0 %v1495_v37  ;;  %v1769_v28 = vrot.slane %v1634_v4, %v7358_v52  ;;  %v1817_v35 = vrot.slane %v1754_v21, %v7358_v52  ;;  %10870 = vst [vmem:[#allocation28_spill] sm:$0xff] %v7814_v5  ;;  %v1487_v37 = vadd.f32 %v1479_v0, %v1471_v8  ;;  %v1459_v13 = vsel %vm1019_vm2, %v1439_v20, 0.0 }
 0x13b   : > { %v1887_v15 = vmul.f32 %v1765_v46, %v7509_v32  ;;  %v1895_v56 = vmul.f32 %v1813_v29, %v7506_v31  ;;  %v1773_v34 = vrot.slane %v1636_v14, %v7358_v52  ;;  %v1462_v4 = vsel %vm1019_vm2, %v1440_v17, 0.0 }
 0x13c   : > { %1499 = vadd.xlane.f32.xlu1 %v1498_v18  ;;  %v1854_v18 = vsub.f32 %v1798_v62, %v1846_v19  ;;  %v1800_v6 = vmul.f32 %v1769_v28, %v7496_v23  ;;  %v1848_v36 = vmul.f32 %v1817_v35, %v7499_v24  ;;  %v1488_v21 = vadd.f32 %v1480_v41, %v1472_v27  ;;  %v7839_v17 = vpop.permute.xlu1 %2493 }
 0x13d   : > { %v1855_v39 = vsub.f32 %v1799_v58, %v1847_v44  ;;  %v1821_v8 = vrot.slane %v1756_v30, %v7358_v52  ;;  %v1902_v46 = vadd.f32 %v1894_v7, %v1886_v38  ;;  %v1801_v29 = vmul.f32 %v1773_v34, %v7518_v40  ;;  %v7834_v30 = vpop.permute.xlu0 %2486  ;;  %10872 = vst [vmem:[#allocation30_spill] sm:$0xff] %v7839_v17 }
 0x13e   : > { %1502 = vadd.xlane.f32.xlu0 %v1501_v26  ;;  %v1777_v14 = vrot.slane %v7775_v55, %v7358_v52  ;;  %v1825_v20 = vrot.slane %v7740_v33, %v7358_v52  ;;  %v1903_v0 = vadd.f32 %v1895_v56, %v1887_v15  ;;  %v1781_v26 = vrot.slane %v7793_v45, %v7358_v52 }
 0x13f   : > { %v1849_v62 = vmul.f32 %v1821_v8, %v7525_v53  ;;  %v1829_v41 = vrot.slane %v7764_v43, %v7358_v52  ;;  %10871 = vst [vmem:[#allocation29_spill] sm:$0xff] %v7834_v30  ;;  %v1856_v44 = vsub.f32 %v1800_v6, %v1848_v36  ;;  %v1888_v19 = vmul.f32 %v1769_v28, %v7499_v24 }
 0x140   : > { %1505 = vadd.xlane.f32.xlu1 %v1504_v50  ;;  %v1802_v50 = vmul.f32 %v1777_v14, %v7536_v3  ;;  %v1850_v27 = vmul.f32 %v1825_v20, %v7539_v42  ;;  %v1803_v58 = vmul.f32 %v1781_v26, %v7548_v10  ;;  %v1896_v7 = vmul.f32 %v1817_v35, %v7496_v23 }
 0x141   : > { %v1851_v38 = vmul.f32 %v1829_v41, %v7551_v16  ;;  %v2130_v15 = vcombine.high %v7570_v49, %v7570_v49  ;;  %v1635_v56 = vcombine.high %v7775_v55, %v7775_v55  ;;  %v1857_v6 = vsub.f32 %v1801_v29, %v1849_v62 }
 0x142   : > { %1460 = vadd.xlane.f32.xlu0 %v1459_v13  ;;  %v1858_v36 = vsub.f32 %v1802_v50, %v1850_v27  ;;  %v2137_v28 = vrot.slane %v7570_v49, %v7451_v48  ;;  %v1507_v13 = vsel %vm1019_vm2, %v1487_v37, 0.0  ;;  %v1862_v17 = vsel %vm1019_vm2, %v1854_v18, 0.0  ;;  %v7861_v18 = vpop.permute.xlu0 %2561 }
 0x143   : > { %v1859_v30 = vsub.f32 %v1803_v58, %v1851_v38  ;;  %v2144_v5 = vrot.slane %v2130_v15, %v7451_v48  ;;  %v1510_v35 = vsel %vm1019_vm2, %v1488_v21, 0.0  ;;  %v1865_v9 = vsel %vm1019_vm2, %v1855_v39, 0.0 }
 0x144   : > { %1463 = vadd.xlane.f32.xlu1 %v1462_v4  ;;  %v1910_v47 = vsel %vm1019_vm2, %v1902_v46, 0.0  ;;  %v2145_v55 = vcombine.high %v2137_v28, %v2137_v28  ;;  %v1913_v4 = vsel %vm1019_vm2, %v1903_v0, 0.0  ;;  %v1868_v29 = vsel %vm1019_vm2, %v1856_v44, 0.0  ;;  %v7870_v0 = vpop.permute.xlu1 %2568 }
 0x145   : > { %v7858_v49 = vadd.f32 %v1896_v7, %v1888_v19  ;;  %v1889_v37 = vmul.f32 %v1773_v34, %v7525_v53  ;;  %v1871_v62 = vsel %vm1019_vm2, %v1857_v6, 0.0  ;;  %v7865_v21 = vrot.slane %v2137_v28, %v7451_v48 }
 0x146   : > { %1508 = vadd.xlane.f32.xlu0 %v1507_v13  ;;  %v1897_v39 = vmul.f32 %v1821_v8, %v7518_v40  ;;  %v2010_v46 = vcombine.high %v7575_v60, %v7575_v60  ;;  %v7873_v44 = vsel %vm1019_vm2, %v1858_v36, 0.0  ;;  %v7876_v34 = vsel %vm1019_vm2, %v1859_v30, 0.0 }
 0x147   : > { %v2146_v50 = vcombine.high %v2144_v5, %v2144_v5  ;;  %v2017_v27 = vrot.slane %v7575_v60, %v7451_v48  ;;  %v7881_v19 = vrot.slane %v2145_v55, %v7451_v48  ;;  %v1890_v58 = vmul.f32 %v1777_v14, %v7539_v42 }
 0x148   : > { %1511 = vadd.xlane.f32.xlu1 %v1510_v35  ;;  %v2024_v8 = vrot.slane %v2010_v46, %v7451_v48  ;;  %v1898_v38 = vmul.f32 %v1825_v20, %v7536_v3  ;;  %v1891_v30 = vmul.f32 %v1781_v26, %v7551_v16  ;;  %v1899_v6 = vmul.f32 %v1829_v41, %v7548_v10  ;;  %v7901_v26 = vpop.permute.xlu0 %2575 }
 0x149   : > { %v2025_v7 = vcombine.high %v2017_v27, %v2017_v27  ;;  %v2033_v15 = vrot.slane %v2017_v27, %v7451_v48  ;;  %v7890_v60 = vrot.slane %v2144_v5, %v7451_v48  ;;  %v2230_v36 = vrot.slane %v7865_v21, %v7358_v52 }
 0x14a   : > { %1863 = vadd.xlane.f32.xlu0 %v1862_v17  ;;  %v7894_v28 = vadd.f32 %v1898_v38, %v1890_v58  ;;  %v1785_v14 = vrot.slane %v1635_v56, %v7358_v52  ;;  %v1905_v20 = vadd.f32 %v1897_v39, %v1889_v37  ;;  %v7899_v35 = vadd.f32 %v1899_v6, %v1891_v30  ;;  %v7910_v56 = vpop.permute.xlu1 %2582 }
 0x14b   : > { %v2047_v17 = vrot.slane %v2025_v7, %v7451_v48  ;;  %v2182_v13 = vrot.slane %v2033_v15, %v7358_v52  ;;  %v2175_v5 = vcombine.high %v7865_v21, %v7865_v21  ;;  %v2177_v41 = vcombine.high %v7881_v19, %v7881_v19  ;;  %10873 = vst [vmem:[#allocation31_spill] sm:$0xff] %v7910_v56 }
 0x14c   : > { %1866 = vadd.xlane.f32.xlu1 %v1865_v9  ;;  %v7904_v9 = vrot.slane %v2146_v50, %v7451_v48  ;;  %v2026_v55 = vcombine.high %v2024_v8, %v2024_v8  ;;  %v2055_v37 = vcombine.high %v2033_v15, %v2033_v15  ;;  %v7913_v39 = vmul.f32 %v1785_v14, %v7624_v1 }
 0x14d   : > { %v10874_v46 = vcombine.high %v7740_v33, %v7740_v33  ;;  %v1637_v27 = vcombine.high %v7793_v45, %v7793_v45  ;;  %v1757_v21 = vcombine.high %v7764_v43, %v7764_v43  ;;  %v1892_v58 = vmul.f32 %v1785_v14, %v7627_v2 }
 0x14e   : > { %1911 = vadd.xlane.f32.xlu0 %v1910_v47  ;;  %v7925_v47 = vmul.f32 %v2182_v13, %v7473_v11  ;;  %v7928_v38 = vmul.f32 %v2230_v36, %v7476_v12  ;;  %v2186_v45 = vrot.slane %v2047_v17, %v7358_v52  ;;  %v2234_v30 = vrot.slane %v7881_v19, %v7358_v52  ;;  %v7959_v19 = vpop.permute.xlu1 %2596 }
 0x14f   : > { %v1833_v50 = vrot.slane %v10874_v46, %v7358_v52  ;;  %v1789_v33 = vrot.slane %v1637_v27, %v7358_v52  ;;  %v2307_v6 = vmul.f32 %v2182_v13, %v7476_v12  ;;  %v2057_v43 = vcombine.high %v2047_v17, %v2047_v17 }
 0x150   : > { %1914 = vadd.xlane.f32.xlu1 %v1913_v4  ;;  %v1837_v4 = vrot.slane %v1757_v21, %v7358_v52  ;;  %v7950_v21 = vpop.permute.xlu0 %2589  ;;  %v2040_v13 = vrot.slane %v2024_v8, %v7451_v48  ;;  %v2316_v14 = vmul.f32 %v2234_v30, %v7506_v31 }
 0x151   : > { %v7931_v7 = vmul.f32 %v1833_v50, %v7627_v2  ;;  %v1900_v15 = vmul.f32 %v1833_v50, %v7624_v1  ;;  %v7945_v46 = vmul.f32 %v1789_v33, %v7637_v25  ;;  %v1893_v27 = vmul.f32 %v1789_v33, %v7640_v22 }
 0x152   : > { %1869 = vadd.xlane.f32.xlu0 %v1868_v29  ;;  %v7953_v56 = vmul.f32 %v1837_v4, %v7640_v22  ;;  %v1901_v12 = vmul.f32 %v1837_v4, %v7637_v25  ;;  %v7957_v29 = vmul.f32 %v2186_v45, %v7506_v31  ;;  %v7966_v33 = vmul.f32 %v2234_v30, %v7509_v32 }
 0x153   : > { %v7947_v50 = vadd.f32 %v1900_v15, %v1892_v58  ;;  %v7963_v58 = vrot.slane %v2026_v55, %v7451_v48  ;;  %v2308_v4 = vmul.f32 %v2186_v45, %v7509_v32  ;;  %v2190_v55 = vrot.slane %v2055_v37, %v7358_v52 }
 0x154   : > { %1872 = vadd.xlane.f32.xlu1 %v1871_v62  ;;  %v2315_v62 = vmul.f32 %v2230_v36, %v7473_v11  ;;  %v1861_v17 = vsub.f32 %v7945_v46, %v7953_v56  ;;  %v7971_v15 = vadd.f32 %v1901_v12, %v1893_v27  ;;  %v2238_v11 = vrot.slane %v2175_v5, %v7358_v52 }
 0x155   : > { %v1916_v36 = vsel %vm1019_vm2, %v7858_v49, 0.0  ;;  %v2176_v32 = vcombine.high %v7890_v60, %v7890_v60  ;;  %v7987_v31 = vadd.f32 %v2316_v14, %v2308_v4  ;;  %v1919_v56 = vsel %vm1019_vm2, %v1905_v20, 0.0  ;;  %v8006_v20 = vpop.permute.xlu1 %2610 }
 0x156   : > { %1875 = vadd.xlane.f32.xlu0 %v7873_v44  ;;  %v7978_v8 = vadd.f32 %v2315_v62, %v2307_v6  ;;  %v2194_v44 = vrot.slane %v2057_v43, %v7358_v52  ;;  %v2056_v45 = vcombine.high %v2040_v13, %v2040_v13  ;;  %v7992_v30 = vmul.f32 %v2190_v55, %v7496_v23 }
 0x157   : > { %v7995_v5 = vmul.f32 %v2238_v11, %v7499_v24  ;;  %v1922_v49 = vsel %vm1019_vm2, %v7894_v28, 0.0  ;;  %v2242_v6 = vrot.slane %v2177_v41, %v7358_v52  ;;  %v2198_v43 = vrot.slane %v2040_v13, %v7358_v52  ;;  %10876 = vst [vmem:[#allocation33_spill] sm:$0xff] %v8006_v20 }
 0x158   : > { %1878 = vadd.xlane.f32.xlu1 %v7876_v34  ;;  %v7997_v34 = vpop.permute.xlu0 %2603  ;;  %v8002_v37 = vmul.f32 %v2194_v44, %v7518_v40  ;;  %v2246_v46 = vrot.slane %v7890_v60, %v7358_v52  ;;  %v2202_v27 = vrot.slane %v7963_v58, %v7358_v52  ;;  %v2250_v28 = vrot.slane %v7904_v9, %v7358_v52 }
 0x159   : > { %10875 = vst [vmem:[#allocation32_spill] sm:$0xff] %v7997_v34  ;;  %v8017_v41 = vmul.f32 %v2242_v6, %v7525_v53  ;;  %v8020_v12 = vmul.f32 %v2198_v43, %v7536_v3  ;;  %v2309_v13 = vmul.f32 %v2190_v55, %v7499_v24  ;;  %v2317_v62 = vmul.f32 %v2238_v11, %v7496_v23 }
 0x15a   : > { %1917 = vadd.xlane.f32.xlu0 %v1916_v36  ;;  %v1925_v60 = vsel %vm1019_vm2, %v7899_v35, 0.0  ;;  %v8027_v4 = vmul.f32 %v2246_v46, %v7539_v42  ;;  %v8030_v36 = vmul.f32 %v2202_v27, %v7548_v10  ;;  %v2310_v24 = vmul.f32 %v2194_v44, %v7525_v53  ;;  %v8050_v53 = vpop.permute.xlu1 %2649 }
 0x15b   : > { %v2278_v14 = vsub.f32 %v8002_v37, %v8017_v41  ;;  %v8037_v48 = vadd.f32 %v2317_v62, %v2309_v13  ;;  %v2318_v23 = vmul.f32 %v2242_v6, %v7518_v40  ;;  %v2311_v11 = vmul.f32 %v2198_v43, %v7539_v42 }
 0x15c   : > { %1920 = vadd.xlane.f32.xlu1 %v1919_v56  ;;  %v8033_v56 = vmul.f32 %v2250_v28, %v7551_v16  ;;  %v2279_v35 = vsub.f32 %v8020_v12, %v8027_v4  ;;  %v2319_v20 = vmul.f32 %v2246_v46, %v7536_v3  ;;  %v8047_v34 = vpop.permute.xlu0 %2642  ;;  %v2312_v41 = vmul.f32 %v2202_v27, %v7551_v16 }
 0x15d   : > { %v2326_v37 = vadd.f32 %v2318_v23, %v2310_v24  ;;  %v2320_v44 = vmul.f32 %v2250_v28, %v7548_v10  ;;  %v2206_v42 = vrot.slane %v2056_v45, %v7358_v52  ;;  %v2254_v3 = vrot.slane %v2176_v32, %v7358_v52 }
 0x15e   : > { %1923 = vadd.xlane.f32.xlu0 %v1922_v49  ;;  %v2280_v55 = vsub.f32 %v8030_v36, %v8033_v56  ;;  %v2327_v40 = vadd.f32 %v2319_v20, %v2311_v11  ;;  %v10877_v49 = vsub.f32 %v7913_v39, %v7931_v7  ;;  %v2058_v43 = vcombine.high %v7963_v58, %v7963_v58  ;;  %v8076_v13 = vpop.permute.xlu1 %2663 }
 0x15f   : > { %v1883_v16 = vsel %vm1019_vm2, %v1861_v17, 0.0  ;;  %v2328_v46 = vadd.f32 %v2320_v44, %v2312_v41  ;;  %v2178_v20 = vcombine.high %v7904_v9, %v7904_v9  ;;  %v2225_v10 = vmul.f32 %v2206_v42, %v7624_v1 }
 0x160   : > { %1926 = vadd.xlane.f32.xlu1 %v1925_v60  ;;  %v1880_v6 = vsel %vm1019_vm2, %v10877_v49, 0.0  ;;  %v2273_v39 = vmul.f32 %v2254_v3, %v7627_v2  ;;  %v2210_v7 = vrot.slane %v2058_v43, %v7358_v52  ;;  %v2313_v45 = vmul.f32 %v2206_v42, %v7627_v2  ;;  %v8070_v27 = vpop.permute.xlu0 %2656 }
 0x161   : > { %v2258_v32 = vrot.slane %v2178_v20, %v7358_v52  ;;  %v2321_v58 = vmul.f32 %v2254_v3, %v7624_v1  ;;  %v1928_v17 = vsel %vm1019_vm2, %v7947_v50, 0.0  ;;  %v1931_v2 = vsel %vm1019_vm2, %v7971_v15, 0.0 }
 0x162   : > { %1881 = vadd.xlane.f32.xlu0 %v1880_v6  ;;  %v2281_v28 = vsub.f32 %v2225_v10, %v2273_v39  ;;  %v2226_v9 = vmul.f32 %v2210_v7, %v7637_v25  ;;  %v2314_v12 = vmul.f32 %v2210_v7, %v7640_v22  ;;  %v10878_v50 = vsub.f32 %v7925_v47, %v7928_v38 }
 0x163   : > { %v2274_v62 = vmul.f32 %v2258_v32, %v7640_v22  ;;  %v2329_v60 = vadd.f32 %v2321_v58, %v2313_v45  ;;  %v2322_v1 = vmul.f32 %v2258_v32, %v7637_v25  ;;  %v10879_v36 = vsub.f32 %v7957_v29, %v7966_v33  ;;  %v8092_v22 = vpop.permute.xlu1 %2677  ;;  %v7092_v45 = vld [vmem:[%s7403_s25 + $0x40] sm:$0xff] }
 0x164   : > { %1884 = vadd.xlane.f32.xlu1 %v1883_v16  ;;  %v2283_v4 = vsel %vm1019_vm2, %v10878_v50, 0.0  ;;  %v8090_v15 = vpop.permute.xlu0 %2670  ;;  %v2331_v25 = vsel %vm1019_vm2, %v7978_v8, 0.0  ;;  %v2334_v47 = vsel %vm1019_vm2, %v7987_v31, 0.0  ;;  %v10880_v29 = vsub.f32 %v7992_v30, %v7995_v5  ;;  %v6885_v50 = vld [vmem:[%s7336_s24 + $0x60] sm:$0xff] }
 0x165   : > { %v2286_v56 = vsel %vm1019_vm2, %v10879_v36, 0.0  ;;  %v2282_v24 = vsub.f32 %v2226_v9, %v2274_v62  ;;  %v2330_v23 = vadd.f32 %v2322_v1, %v2314_v12  ;;  %v2292_v41 = vsel %vm1019_vm2, %v2278_v14, 0.0 }
 0x166   : > { %1929 = vadd.xlane.f32.xlu0 %v1928_v17  ;;  %v2289_v33 = vsel %vm1019_vm2, %v10880_v29, 0.0  ;;  %v2295_v8 = vsel %vm1019_vm2, %v2279_v35, 0.0  ;;  %v2298_v44 = vsel %vm1019_vm2, %v2280_v55, 0.0  ;;  %v2337_v30 = vsel %vm1019_vm2, %v8037_v48, 0.0 }
 0x167   : > { %v8104_v11 = vpop.permute.xlu1 %2691  ;;  %v2340_v5 = vsel %vm1019_vm2, %v2326_v37, 0.0  ;;  %v2343_v14 = vsel %vm1019_vm2, %v2327_v40, 0.0  ;;  %v2346_v55 = vsel %vm1019_vm2, %v2328_v46, 0.0  ;;  %v2301_v42 = vsel %vm1019_vm2, %v2281_v28, 0.0 }
 0x168   : > { %1932 = vadd.xlane.f32.xlu1 %v1931_v2  ;;  %v8098_v38 = vpop.permute.xlu0 %2684  ;;  %v2304_v48 = vsel %vm1019_vm2, %v2282_v24, 0.0  ;;  %v2349_v43 = vsel %vm1019_vm2, %v2329_v60, 0.0  ;;  %v2352_v40 = vsel %vm1019_vm2, %v2330_v23, 0.0  ;;  %v2859_v32 = vrot.slane %v7092_v45, %v7363_v54 }
 0x169   : > { %v2852_v28 = vrot.slane %v7092_v45, %v7348_v51  ;;  %v2873_v9 = vrot.slane %v7092_v45, %v7379_v59  ;;  %v2866_v62 = vrot.slane %v7092_v45, %v7373_v57  ;;  %v2887_v60 = vrot.slane %v7092_v45, %v7393_v63 }
 0x16a   : > { %2284 = vadd.xlane.f32.xlu0 %v2283_v4  ;;  %v2880_v36 = vrot.slane %v7092_v45, %v7388_v61  ;;  %v2976_v29 = vrot.slane %v6885_v50, %v7363_v54 }
 0x16b   : > { %v8111_v49 = vpop.permute.xlu1 %2766 }
 0x16c   : > { %2287 = vadd.xlane.f32.xlu1 %v2286_v56  ;;  %v8109_v31 = vpop.permute.xlu0 %2759  ;;  %10882 = vst [vmem:[#allocation35_spill] sm:$0xff] %v8111_v49  ;;  %v10899_v56 = vld [vmem:[#allocation7_spill] sm:$0xff] }
 0x16d   : > { %10881 = vst [vmem:[#allocation34_spill] sm:$0xff] %v8109_v31  ;;  %v2962_v24 = vrot.slane %v6885_v50, %v10899_v56 }
 0x16e   : > { %2332 = vadd.xlane.f32.xlu0 %v2331_v25 }
 0x16f   : > { %v8119_v35 = vpop.permute.xlu1 %2780 }
 0x170   : > { %2335 = vadd.xlane.f32.xlu1 %v2334_v47  ;;  %v8116_v6 = vpop.permute.xlu0 %2773  ;;  %10884 = vst [vmem:[#allocation37_spill] sm:$0xff] %v8119_v35  ;;  %v2955_v47 = vrot.slane %v6885_v50, %v7358_v52 }
 0x171   : > { %10883 = vst [vmem:[#allocation36_spill] sm:$0xff] %v8116_v6  ;;  %v6890_v6 = vld [vmem:[%s7403_s25 + $0x8] sm:$0xff] }
 0x172   : > { %2290 = vadd.xlane.f32.xlu0 %v2289_v33 }
 0x173   : > { %v8126_v37 = vpop.permute.xlu1 %2794 }
 0x174   : > { %2293 = vadd.xlane.f32.xlu1 %v2292_v41  ;;  %v8124_v3 = vpop.permute.xlu0 %2787  ;;  %10886 = vst [vmem:[#allocation39_spill] sm:$0xff] %v8126_v37 }
 0x175   : > { %10885 = vst [vmem:[#allocation38_spill] sm:$0xff] %v8124_v3 }
 0x176   : > { %2296 = vadd.xlane.f32.xlu0 %v2295_v8  ;;  %v2969_v8 = vrot.slane %v6885_v50, %v7348_v51 }
 0x177   : > { %v8132_v46 = vpop.permute.xlu1 %2808 }
 0x178   : > { %2299 = vadd.xlane.f32.xlu1 %v2298_v44  ;;  %v8130_v16 = vpop.permute.xlu0 %2801  ;;  %10888 = vst [vmem:[#allocation41_spill] sm:$0xff] %v8132_v46  ;;  %v2990_v44 = vrot.slane %v6885_v50, %v7379_v59 }
 0x179   : > { %10887 = vst [vmem:[#allocation40_spill] sm:$0xff] %v8130_v16 }
 0x17a   : > { %2338 = vadd.xlane.f32.xlu0 %v2337_v30 }
 0x17b   : > { %v8136_v10 = vpop.permute.xlu1 %2847 }
 0x17c   : > { %2341 = vadd.xlane.f32.xlu1 %v2340_v5  ;;  %v8134_v20 = vpop.permute.xlu0 %2840  ;;  %10890 = vst [vmem:[#allocation43_spill] sm:$0xff] %v8136_v10 }
 0x17d   : > { %10889 = vst [vmem:[#allocation42_spill] sm:$0xff] %v8134_v20 }
 0x17e   : > { %2344 = vadd.xlane.f32.xlu0 %v2343_v14  ;;  %v2983_v14 = vrot.slane %v6885_v50, %v7373_v57 }
 0x180   : > { %2347 = vadd.xlane.f32.xlu1 %v2346_v55  ;;  %v3004_v55 = vrot.slane %v6885_v50, %v7393_v63 }
 0x182   : > { %2302 = vadd.xlane.f32.xlu0 %v2301_v42 }
 0x184   : > { %2305 = vadd.xlane.f32.xlu1 %v2304_v48  ;;  %v6886_v48 = vld [vmem:[%s7403_s25 + $0x60] sm:$0xff] }
 0x185   : > { %v3043_v45 = vrot.slane %v6886_v48, %v10899_v56 }
 0x186   : > { %2350 = vadd.xlane.f32.xlu0 %v2349_v43 }
 0x188   : > { %2353 = vadd.xlane.f32.xlu1 %v2352_v40  ;;  %v2997_v40 = vrot.slane %v6885_v50, %v7388_v61 }
 0x193   : > { %v8138_v39 = vpop.xlane.xlu0 %1021 }
 0x194   : > { %10891 = vst [vmem:[#allocation44_spill] sm:$0xff] %v8138_v39 }
 0x195   : > { %v8140_v7 = vpop.xlane.xlu1 %1027 }
 0x196   : > { %10892 = vst [vmem:[#allocation45_spill] sm:$0xff] %v8140_v7 }
 0x197   : > { %v8144_v58 = vpop.xlane.xlu0 %1069 }
 0x198   : > { %10893 = vst [vmem:[#allocation46_spill] sm:$0xff] %v8144_v58 }
 0x199   : > { %v8146_v17 = vpop.xlane.xlu1 %1072  ;;  %2861 = vbcast.lane.b32.xlu1 %v2859_v32, 256 }
 0x19a   : > { %10894 = vst [vmem:[#allocation47_spill] sm:$0xff] %v8146_v17 }
 0x19b   : > { %v8150_v12 = vpop.xlane.xlu0 %1024 }
 0x19c   : > { %10895 = vst [vmem:[#allocation48_spill] sm:$0xff] %v8150_v12  ;;  %2854 = vbcast.lane.b32.xlu0 %v2852_v28, 256 }
 0x19d   : > { %v8152_v2 = vpop.xlane.xlu1 %1030  ;;  %2875 = vbcast.lane.b32.xlu1 %v2873_v9, 256  ;;  %v3036_v9 = vrot.slane %v6886_v48, %v7358_v52 }
 0x19e   : > { %10896 = vst [vmem:[#allocation49_spill] sm:$0xff] %v8152_v2 }
 0x19f   : > { %v8156_v1 = vpop.xlane.xlu0 %1033 }
 0x1a0   : > { %10897 = vst [vmem:[#allocation50_spill] sm:$0xff] %v8156_v1  ;;  %2868 = vbcast.lane.b32.xlu0 %v2866_v62, 256  ;;  %v3057_v62 = vrot.slane %v6886_v48, %v7363_v54 }
 0x1a1   : > { %v8159_v4 = vpop.xlane.xlu1 %1036  ;;  %2889 = vbcast.lane.b32.xlu1 %v2887_v60, 256  ;;  %v7124_v60 = vmov 0  }
 0x1a2   : > { %10898 = vst [vmem:[#allocation51_spill] sm:$0xff] %v8159_v4  ;;  %7091 = vset.pattern.permute.xlu1 %v7124_v60  ;;  %7090 = vset.pattern.permute.xlu0 %v7124_v60 }
 0x1a3   : > { %v8163_v23 = vpop.xlane.xlu0 %1075 }
 0x1a4   : > { %10900 = vst [vmem:[#allocation52_spill] sm:$0xff] %v8163_v23  ;;  %2882 = vbcast.lane.b32.xlu0 %v2880_v36, 256 }
 0x1a5   : > { %v8165_v25 = vpop.xlane.xlu1 %1078  ;;  %2964 = vbcast.lane.b32.xlu1 %v2962_v24, 256  ;;  %v3050_v24 = vrot.slane %v6886_v48, %v7348_v51 }
 0x1a6   : > { %10901 = vst [vmem:[#allocation53_spill] sm:$0xff] %v8165_v25 }
 0x1a7   : > { %v8169_v33 = vpop.xlane.xlu0 %1081 }
 0x1a8   : > { %10902 = vst [vmem:[#allocation54_spill] sm:$0xff] %v8169_v33  ;;  %2957 = vbcast.lane.b32.xlu0 %v2955_v47, 256  ;;  %v3071_v47 = vrot.slane %v6886_v48, %v7379_v59 }
 0x1a9   : > { %v8171_v41 = vpop.xlane.xlu1 %1084  ;;  %2978 = vbcast.lane.b32.xlu1 %v2976_v29, 256 }
 0x1aa   : > { %10903 = vst [vmem:[#allocation55_spill] sm:$0xff] %v8171_v41 }
 0x1ab   : > { %v8175_v30 = vpop.xlane.xlu0 %1039 }
 0x1ac   : > { %10904 = vst [vmem:[#allocation56_spill] sm:$0xff] %v8175_v30  ;;  %2971 = vbcast.lane.b32.xlu0 %v2969_v8, 256 }
 0x1ad   : > { %v8177_v5 = vpop.xlane.xlu1 %1042  ;;  %2992 = vbcast.lane.b32.xlu1 %v2990_v44, 256  ;;  %v3064_v44 = vrot.slane %v6886_v48, %v7373_v57 }
 0x1ae   : > { %10905 = vst [vmem:[#allocation57_spill] sm:$0xff] %v8177_v5 }
 0x1af   : > { %v8181_v42 = vpop.xlane.xlu0 %1087 }
 0x1b0   : > { %10906 = vst [vmem:[#allocation58_spill] sm:$0xff] %v8181_v42  ;;  %2985 = vbcast.lane.b32.xlu0 %v2983_v14, 256  ;;  %v3085_v14 = vrot.slane %v6886_v48, %v7393_v63 }
 0x1b1   : > { %v8184_v43 = vpop.xlane.xlu1 %1090  ;;  %3006 = vbcast.lane.b32.xlu1 %v3004_v55, 256 }
 0x1b2   : > { %10907 = vst [vmem:[#allocation59_spill] sm:$0xff] %v8184_v43 }
 0x1b3   : > { %v8188_v32 = vpop.xlane.xlu0 %1442 }
 0x1b4   : > { %10908 = vst [vmem:[#allocation60_spill] sm:$0xff] %v8188_v32  ;;  %2999 = vbcast.lane.b32.xlu0 %v2997_v40, 256  ;;  %v6889_v40 = vld [vmem:[%s7336_s24 + $0x8] sm:$0xff] }
 0x1b5   : > { %v8190_v28 = vpop.xlane.xlu1 %1445  ;;  %3045 = vbcast.lane.b32.xlu1 %v3043_v45, 256 }
 0x1b6   : > { %10909 = vst [vmem:[#allocation61_spill] sm:$0xff] %v8190_v28 }
 0x1b7   : > { %v8194_v36 = vpop.xlane.xlu0 %1490 }
 0x1b8   : > { %10910 = vst [vmem:[#allocation62_spill] sm:$0xff] %v8194_v36  ;;  %3038 = vbcast.lane.b32.xlu0 %v3036_v9, 256  ;;  %v3078_v9 = vrot.slane %v6886_v48, %v7388_v61  ;;  %v3470_v48 = vrot.slane %v6889_v40, %v7363_v54 }
 0x1b9   : > { %v8196_v50 = vpop.xlane.xlu1 %1493  ;;  %3059 = vbcast.lane.b32.xlu1 %v3057_v62, 256  ;;  %v3449_v62 = vrot.slane %v6889_v40, %v7358_v52 }
 0x1ba   : > { %10911 = vst [vmem:[#allocation63_spill] sm:$0xff] %v8196_v50 }
 0x1bb   : > { %v8200_v29 = vpop.xlane.xlu0 %1448 }
 0x1bc   : > { %10912 = vst [vmem:[#allocation64_spill] sm:$0xff] %v8200_v29  ;;  %3052 = vbcast.lane.b32.xlu0 %v3050_v24, 256  ;;  %v3456_v24 = vrot.slane %v6889_v40, %v10899_v56 }
 0x1bd   : > { %v8202_v8 = vpop.xlane.xlu1 %1451  ;;  %3073 = vbcast.lane.b32.xlu1 %v3071_v47, 256  ;;  %v3463_v47 = vrot.slane %v6889_v40, %v7348_v51 }
 0x1be   : > { %10913 = vst [vmem:[#allocation65_spill] sm:$0xff] %v8202_v8 }
 0x1bf   : > { %v8206_v55 = vpop.xlane.xlu0 %1454 }
 0x1c0   : > { %10914 = vst [vmem:[#allocation66_spill] sm:$0xff] %v8206_v55  ;;  %3066 = vbcast.lane.b32.xlu0 %v3064_v44, 256  ;;  %v3477_v44 = vrot.slane %v6889_v40, %v7373_v57 }
 0x1c1   : > { %v8209_v45 = vpop.xlane.xlu1 %1457  ;;  %3087 = vbcast.lane.b32.xlu1 %v3085_v14, 256 }
 0x1c2   : > { %10915 = vst [vmem:[#allocation67_spill] sm:$0xff] %v8209_v45 }
 0x1c3   : > { %v8213_v60 = vpop.xlane.xlu0 %1496 }
 0x1c4   : > { %10916 = vst [vmem:[#allocation68_spill] sm:$0xff] %v8213_v60  ;;  %3080 = vbcast.lane.b32.xlu0 %v3078_v9, 256  ;;  %v3484_v9 = vrot.slane %v6889_v40, %v7379_v59 }
 0x1c5   : > { %v8215_v46 = vpop.xlane.xlu1 %1499  ;;  %3451 = vbcast.lane.b32.xlu1 %v3449_v62, 256  ;;  %v3491_v62 = vrot.slane %v6889_v40, %v7388_v61 }
 0x1c6   : > { %10917 = vst [vmem:[#allocation69_spill] sm:$0xff] %v8215_v46 }
 0x1c7   : > { %v8219_v16 = vpop.xlane.xlu0 %1502 }
 0x1c8   : > { %10918 = vst [vmem:[#allocation70_spill] sm:$0xff] %v8219_v16  ;;  %3458 = vbcast.lane.b32.xlu0 %v3456_v24, 256  ;;  %v3498_v24 = vrot.slane %v6889_v40, %v7393_v63  ;;  %v3551_v40 = vrot.slane %v6890_v6, %v7363_v54 }
 0x1c9   : > { %v8221_v37 = vpop.xlane.xlu1 %1505  ;;  %3465 = vbcast.lane.b32.xlu1 %v3463_v47, 256  ;;  %v3530_v47 = vrot.slane %v6890_v6, %v7358_v52 }
 0x1ca   : > { %10919 = vst [vmem:[#allocation71_spill] sm:$0xff] %v8221_v37 }
 0x1cb   : > { %v8225_v14 = vpop.xlane.xlu0 %1460 }
 0x1cc   : > { %10920 = vst [vmem:[#allocation72_spill] sm:$0xff] %v8225_v14  ;;  %3472 = vbcast.lane.b32.xlu0 %v3470_v48, 256  ;;  %v3537_v48 = vrot.slane %v6890_v6, %v10899_v56 }
 0x1cd   : > { %v8227_v3 = vpop.xlane.xlu1 %1463  ;;  %3479 = vbcast.lane.b32.xlu1 %v3477_v44, 256  ;;  %v3544_v44 = vrot.slane %v6890_v6, %v7348_v51 }
 0x1ce   : > { %10921 = vst [vmem:[#allocation73_spill] sm:$0xff] %v8227_v3 }
 0x1cf   : > { %v8231_v35 = vpop.xlane.xlu0 %1508 }
 0x1d0   : > { %10922 = vst [vmem:[#allocation74_spill] sm:$0xff] %v8231_v35  ;;  %3486 = vbcast.lane.b32.xlu0 %v3484_v9, 256  ;;  %v3558_v9 = vrot.slane %v6890_v6, %v7373_v57 }
 0x1d1   : > { %v8234_v10 = vpop.xlane.xlu1 %1511  ;;  %3493 = vbcast.lane.b32.xlu1 %v3491_v62, 256 }
 0x1d2   : > { %10923 = vst [vmem:[#allocation75_spill] sm:$0xff] %v8234_v10 }
 0x1d3   : > { %v8238_v20 = vpop.xlane.xlu0 %1863 }
 0x1d4   : > { %10924 = vst [vmem:[#allocation76_spill] sm:$0xff] %v8238_v20  ;;  %3500 = vbcast.lane.b32.xlu0 %v3498_v24, 256  ;;  %v3565_v24 = vrot.slane %v6890_v6, %v7379_v59 }
 0x1d5   : > { %v8240_v49 = vpop.xlane.xlu1 %1866  ;;  %3532 = vbcast.lane.b32.xlu1 %v3530_v47, 256  ;;  %v3572_v47 = vrot.slane %v6890_v6, %v7388_v61 }
 0x1d6   : > { %10925 = vst [vmem:[#allocation77_spill] sm:$0xff] %v8240_v49 }
 0x1d7   : > { %v8244_v35 = vpop.xlane.xlu0 %1911 }
 0x1d8   : > { %10926 = vst [vmem:[#allocation78_spill] sm:$0xff] %v8244_v35  ;;  %3539 = vbcast.lane.b32.xlu0 %v3537_v48, 256  ;;  %v6891_v35 = vld [vmem:[%s7336_s24 + $0x28] sm:$0xff]  ;;  %v3579_v48 = vrot.slane %v6890_v6, %v7393_v63 }
 0x1d9   : > { %v8246_v10 = vpop.xlane.xlu1 %1914  ;;  %3546 = vbcast.lane.b32.xlu1 %v3544_v44, 256  ;;  %v3647_v44 = vrot.slane %v6891_v35, %v7358_v52  ;;  %v3668_v6 = vrot.slane %v6891_v35, %v7363_v54 }
 0x1da   : > { %10927 = vst [vmem:[#allocation79_spill] sm:$0xff] %v8246_v10 }
 0x1db   : > { %v8250_v62 = vpop.xlane.xlu0 %1869 }
 0x1dc   : > { %10928 = vst [vmem:[#allocation80_spill] sm:$0xff] %v8250_v62  ;;  %3553 = vbcast.lane.b32.xlu0 %v3551_v40, 256  ;;  %v3654_v40 = vrot.slane %v6891_v35, %v10899_v56 }
 0x1dd   : > { %v8252_v49 = vpop.xlane.xlu1 %1872  ;;  %3560 = vbcast.lane.b32.xlu1 %v3558_v9, 256  ;;  %v3661_v9 = vrot.slane %v6891_v35, %v7348_v51 }
 0x1de   : > { %10929 = vst [vmem:[#allocation81_spill] sm:$0xff] %v8252_v49 }
 0x1df   : > { %v8256_v31 = vpop.xlane.xlu0 %1875 }
 0x1e0   : > { %10930 = vst [vmem:[#allocation82_spill] sm:$0xff] %v8256_v31  ;;  %3567 = vbcast.lane.b32.xlu0 %v3565_v24, 256  ;;  %v3675_v24 = vrot.slane %v6891_v35, %v7373_v57 }
 0x1e1   : > { %v8259_v10 = vpop.xlane.xlu1 %1878  ;;  %3574 = vbcast.lane.b32.xlu1 %v3572_v47, 256 }
 0x1e2   : > { %10931 = vst [vmem:[#allocation83_spill] sm:$0xff] %v8259_v10 }
 0x1e3   : > { %v8263_v62 = vpop.xlane.xlu0 %1917 }
 0x1e4   : > { %10932 = vst [vmem:[#allocation84_spill] sm:$0xff] %v8263_v62  ;;  %3581 = vbcast.lane.b32.xlu0 %v3579_v48, 256  ;;  %v3682_v48 = vrot.slane %v6891_v35, %v7379_v59 }
 0x1e5   : > { %v8265_v49 = vpop.xlane.xlu1 %1920  ;;  %3649 = vbcast.lane.b32.xlu1 %v3647_v44, 256  ;;  %v3689_v44 = vrot.slane %v6891_v35, %v7388_v61 }
 0x1e6   : > { %10933 = vst [vmem:[#allocation85_spill] sm:$0xff] %v8265_v49 }
 0x1e7   : > { %v8269_v31 = vpop.xlane.xlu0 %1923 }
 0x1e8   : > { %10934 = vst [vmem:[#allocation86_spill] sm:$0xff] %v8269_v31  ;;  %3656 = vbcast.lane.b32.xlu0 %v3654_v40, 256  ;;  %v6892_v31 = vld [vmem:[%s7403_s25 + $0x28] sm:$0xff]  ;;  %v3696_v40 = vrot.slane %v6891_v35, %v7393_v63 }
 0x1e9   : > { %v8271_v10 = vpop.xlane.xlu1 %1926  ;;  %3663 = vbcast.lane.b32.xlu1 %v3661_v9, 256  ;;  %v3728_v9 = vrot.slane %v6892_v31, %v7358_v52  ;;  %v3749_v35 = vrot.slane %v6892_v31, %v7363_v54 }
 0x1ea   : > { %10935 = vst [vmem:[#allocation87_spill] sm:$0xff] %v8271_v10 }
 0x1eb   : > { %v8275_v47 = vpop.xlane.xlu0 %1881 }
 0x1ec   : > { %10936 = vst [vmem:[#allocation88_spill] sm:$0xff] %v8275_v47  ;;  %3670 = vbcast.lane.b32.xlu0 %v3668_v6, 256  ;;  %v3735_v6 = vrot.slane %v6892_v31, %v10899_v56 }
 0x1ed   : > { %v8277_v49 = vpop.xlane.xlu1 %1884  ;;  %3677 = vbcast.lane.b32.xlu1 %v3675_v24, 256  ;;  %v3742_v24 = vrot.slane %v6892_v31, %v7348_v51 }
 0x1ee   : > { %10937 = vst [vmem:[#allocation89_spill] sm:$0xff] %v8277_v49 }
 0x1ef   : > { %v8281_v62 = vpop.xlane.xlu0 %1929 }
 0x1f0   : > { %10938 = vst [vmem:[#allocation90_spill] sm:$0xff] %v8281_v62  ;;  %3684 = vbcast.lane.b32.xlu0 %v3682_v48, 256  ;;  %v3756_v48 = vrot.slane %v6892_v31, %v7373_v57 }
 0x1f1   : > { %v8284_v10 = vpop.xlane.xlu1 %1932  ;;  %3691 = vbcast.lane.b32.xlu1 %v3689_v44, 256 }
 0x1f2   : > { %10939 = vst [vmem:[#allocation91_spill] sm:$0xff] %v8284_v10 }
 0x1f3   : > { %v8288_v47 = vpop.xlane.xlu0 %2284 }
 0x1f4   : > { %10940 = vst [vmem:[#allocation92_spill] sm:$0xff] %v8288_v47  ;;  %3698 = vbcast.lane.b32.xlu0 %v3696_v40, 256  ;;  %v3763_v40 = vrot.slane %v6892_v31, %v7379_v59 }
 0x1f5   : > { %v8290_v49 = vpop.xlane.xlu1 %2287  ;;  %3730 = vbcast.lane.b32.xlu1 %v3728_v9, 256  ;;  %v3770_v9 = vrot.slane %v6892_v31, %v7388_v61 }
 0x1f6   : > { %10941 = vst [vmem:[#allocation93_spill] sm:$0xff] %v8290_v49 }
 0x1f7   : > { %v8294_v62 = vpop.xlane.xlu0 %2332 }
 0x1f8   : > { %10942 = vst [vmem:[#allocation94_spill] sm:$0xff] %v8294_v62  ;;  %3737 = vbcast.lane.b32.xlu0 %v3735_v6, 256  ;;  %v8309_v62 = vld [vmem:[%s7336_s24 + $0x48] sm:$0xff] }
 0x1f9   : > { %v8296_v10 = vpop.xlane.xlu1 %2335  ;;  %3744 = vbcast.lane.b32.xlu1 %v3742_v24, 256  ;;  %10947 = vst [vmem:[#allocation99_spill] sm:$0xff] %v8309_v62  ;;  %v3777_v24 = vrot.slane %v6892_v31, %v7393_v63  ;;  %v3845_v57 = vrot.slane %v8309_v62, %v7358_v52  ;;  %v10956_v63 = vld [vmem:[#allocation17_spill] sm:$0xff] }
 0x1fa   : > { %10943 = vst [vmem:[#allocation95_spill] sm:$0xff] %v8296_v10 }
 0x1fb   : > { %v8300_v44 = vpop.xlane.xlu0 %2290 }
 0x1fc   : > { %10944 = vst [vmem:[#allocation96_spill] sm:$0xff] %v8300_v44  ;;  %3751 = vbcast.lane.b32.xlu0 %v3749_v35, 256 }
 0x1fd   : > { %v8302_v49 = vpop.xlane.xlu1 %2293  ;;  %3758 = vbcast.lane.b32.xlu1 %v3756_v48, 256  ;;  %v3852_v48 = vrot.slane %v8309_v62, %v10899_v56  ;;  %v10959_v62 = vld [vmem:[#allocation16_spill] sm:$0xff] }
 0x1fe   : > { %10945 = vst [vmem:[#allocation97_spill] sm:$0xff] %v8302_v49 }
 0x1ff   : > { %v8306_v51 = vpop.xlane.xlu0 %2296 }
 0x200   : > { %10946 = vst [vmem:[#allocation98_spill] sm:$0xff] %v8306_v51  ;;  %3765 = vbcast.lane.b32.xlu0 %v3763_v40, 256 }
 0x201   : > { %v8311_v6 = vpop.xlane.xlu1 %2299  ;;  %3772 = vbcast.lane.b32.xlu1 %v3770_v9, 256  ;;  %v10955_v9 = vld [vmem:[#allocation23_spill] sm:$0xff] }
 0x202   : > { %10948 = vst [vmem:[#allocation100_spill] sm:$0xff] %v8311_v6  ;;  %v8332_v52 = vmul.f32 %v10955_v9, %v8144_v58 }
 0x203   : > { %v8316_v54 = vpop.xlane.xlu0 %2338 }
 0x204   : > { %10949 = vst [vmem:[#allocation101_spill] sm:$0xff] %v8316_v54  ;;  %3779 = vbcast.lane.b32.xlu0 %v3777_v24, 256  ;;  %v2535_v24 = vmul.f32 %v10956_v63, %v8144_v58 }
 0x205   : > { %v8318_v35 = vpop.xlane.xlu1 %2341  ;;  %3847 = vbcast.lane.b32.xlu1 %v3845_v57, 256  ;;  %v2422_v57 = vmul.f32 %v10956_v63, %v8138_v39 }
 0x206   : > { %10950 = vst [vmem:[#allocation102_spill] sm:$0xff] %v8318_v35 }
 0x207   : > { %v8322_v61 = vpop.xlane.xlu0 %2344 }
 0x208   : > { %10951 = vst [vmem:[#allocation103_spill] sm:$0xff] %v8322_v61  ;;  %3854 = vbcast.lane.b32.xlu0 %v3852_v48, 256  ;;  %v2519_v48 = vmul.f32 %v10955_v9, %v8138_v39  ;;  %v10961_v61 = vld [vmem:[#allocation15_spill] sm:$0xff] }
 0x209   : > { %v8324_v59 = vpop.xlane.xlu1 %2347  ;;  %v2423_v58 = vmul.f32 %v10961_v61, %v8150_v12  ;;  %v2536_v9 = vmul.f32 %v10961_v61, %v8146_v17  ;;  %v10967_v61 = vld [vmem:[#allocation27_spill] sm:$0xff] }
 0x20a   : > { %10952 = vst [vmem:[#allocation104_spill] sm:$0xff] %v8324_v59  ;;  %v2543_v51 = vadd.f32 %v2535_v24, %v2519_v48 }
 0x20b   : > { %v8326_v40 = vpop.xlane.xlu0 %2302 }
 0x20c   : > { %10953 = vst [vmem:[#allocation105_spill] sm:$0xff] %v8326_v40  ;;  %v10960_v40 = vld [vmem:[#allocation25_spill] sm:$0xff] }
 0x20d   : > { %v8328_v31 = vpop.xlane.xlu1 %2305  ;;  %v2521_v59 = vmul.f32 %v10960_v40, %v8140_v7  ;;  %v8361_v39 = vmul.f32 %v10960_v40, %v8163_v23  ;;  %v10968_v40 = vld [vmem:[#allocation19_spill] sm:$0xff] }
 0x20e   : > { %10954 = vst [vmem:[#allocation106_spill] sm:$0xff] %v8328_v31  ;;  %v8346_v31 = vmul.f32 %v10959_v62, %v8140_v7  ;;  %v2537_v7 = vmul.f32 %v10959_v62, %v8163_v23  ;;  %v2539_v48 = vmul.f32 %v10968_v40, %v8169_v33  ;;  %v10969_v62 = vld [vmem:[#allocation28_spill] sm:$0xff] }
 0x20f   : > { %v8336_v35 = vpop.xlane.xlu0 %2350  ;;  %v8383_v23 = vmul.f32 %v10969_v62, %v8171_v41 }
 0x210   : > { %10957 = vst [vmem:[#allocation23_spill] sm:$0xff] %v8336_v35  ;;  %v10962_v35 = vld [vmem:[#allocation24_spill] sm:$0xff] }
 0x211   : > { %v8338_v56 = vpop.xlane.xlu1 %2353  ;;  %v2520_v6 = vmul.f32 %v10962_v35, %v8150_v12  ;;  %v2504_v63 = vmul.f32 %v10962_v35, %v8146_v17  ;;  %v10964_v12 = vld [vmem:[#allocation26_spill] sm:$0xff]  ;;  %v10970_v17 = vld [vmem:[#allocation20_spill] sm:$0xff] }
 0x212   : > { %10958 = vst [vmem:[#allocation17_spill] sm:$0xff] %v8338_v56  ;;  %v2511_v56 = vsub.f32 %v2422_v57, %v8332_v52  ;;  %v8369_v49 = vmul.f32 %v10964_v12, %v8165_v25  ;;  %v10965_v52 = vld [vmem:[#allocation18_spill] sm:$0xff]  ;;  %v8377_v57 = vmul.f32 %v10967_v61, %v8169_v33  ;;  %v2540_v44 = vmul.f32 %v10970_v17, %v8171_v41 }
 0x213   : > { %v8365_v54 = vpop.permute.xlu0 %2854  ;;  %v2538_v35 = vmul.f32 %v10965_v52, %v8165_v25  ;;  %v8389_v10 = vmul.f32 %v10965_v52, %v8152_v2  ;;  %v2522_v25 = vmul.f32 %v10964_v12, %v8152_v2  ;;  %v2544_v47 = vadd.f32 %v2536_v9, %v2520_v6 }
 0x214   : > { %10963 = vst [vmem:[#allocation16_spill] sm:$0xff] %v8365_v54  ;;  %v8395_v54 = vmul.f32 %v10968_v40, %v8156_v1  ;;  %v2523_v33 = vmul.f32 %v10967_v61, %v8156_v1  ;;  %v8401_v20 = vmul.f32 %v10970_v17, %v8159_v4  ;;  %v2524_v52 = vmul.f32 %v10969_v62, %v8159_v4  ;;  %v10971_v62 = vld [vmem:[#allocation29_spill] sm:$0xff] }
 0x215   : > { %v8373_v24 = vpop.permute.xlu1 %2861  ;;  %v2513_v41 = vsub.f32 %v8346_v31, %v8361_v39  ;;  %v2545_v12 = vadd.f32 %v2537_v7, %v2521_v59  ;;  %v2546_v6 = vadd.f32 %v2538_v35, %v2522_v25  ;;  %v8419_v39 = vmul.f32 %v10971_v62, %v8181_v42  ;;  %v10972_v59 = vld [vmem:[#allocation21_spill] sm:$0xff]  ;;  %v10975_v35 = vld [vmem:[#allocation30_spill] sm:$0xff] }
 0x216   : > { %10966 = vst [vmem:[#allocation25_spill] sm:$0xff] %v8373_v24  ;;  %v2512_v24 = vsub.f32 %v2423_v58, %v2504_v63  ;;  %v2514_v58 = vsub.f32 %v8389_v10, %v8369_v49  ;;  %v2515_v9 = vsub.f32 %v8395_v54, %v8377_v57  ;;  %v2547_v61 = vadd.f32 %v2539_v48, %v2523_v33 }
 0x217   : > { %v8409_v63 = vpop.permute.xlu0 %2868  ;;  %v2516_v17 = vsub.f32 %v8401_v20, %v8383_v23  ;;  %v2548_v40 = vadd.f32 %v2540_v44, %v2524_v52  ;;  %v2541_v49 = vmul.f32 %v10972_v59, %v8181_v42  ;;  %v2620_v10 = vmul.f32 %v7861_v18, %v8188_v32  ;;  %v10973_v44 = vld [vmem:[#allocation22_spill] sm:$0xff] }
 0x218   : > { %v2717_v54 = vmul.f32 %v8047_v34, %v8188_v32  ;;  %v8429_v7 = vmul.f32 %v10972_v59, %v8175_v30  ;;  %v2525_v20 = vmul.f32 %v10971_v62, %v8175_v30  ;;  %v2621_v23 = vmul.f32 %v7870_v0, %v8190_v28 }
 0x219   : > { %v8415_v1 = vpop.permute.xlu1 %2875  ;;  %v2718_v25 = vmul.f32 %v8050_v53, %v8190_v28  ;;  %v8441_v31 = vmul.f32 %v10973_v44, %v8177_v5  ;;  %v8445_v57 = vmul.f32 %v10975_v35, %v8184_v43  ;;  %v2542_v48 = vmul.f32 %v10973_v44, %v8184_v43 }
 0x21a   : > { %v8451_v52 = vmul.f32 %v8047_v34, %v8194_v36  ;;  %v2526_v62 = vmul.f32 %v10975_v35, %v8177_v5  ;;  %v8459_v32 = vmul.f32 %v8050_v53, %v8196_v50  ;;  %v2733_v28 = vmul.f32 %v7861_v18, %v8194_v36  ;;  %v10977_v18 = vld [vmem:[#allocation31_spill] sm:$0xff] }
 0x21b   : > { %v8437_v33 = vpop.permute.xlu0 %2882  ;;  %10974 = vst [vmem:[#allocation15_spill] sm:$0xff] %v8441_v31  ;;  %10976 = vst [vmem:[#allocation24_spill] sm:$0xff] %v8445_v57  ;;  %v2734_v42 = vmul.f32 %v7870_v0, %v8196_v50  ;;  %v2517_v44 = vsub.f32 %v8429_v7, %v8419_v39  ;;  %v2549_v34 = vadd.f32 %v2541_v49, %v2525_v20  ;;  %v10984_v0 = vld [vmem:[#allocation35_spill] sm:$0xff]  ;;  %v11011_v57 = vld [vmem:[#allocation96_spill] sm:$0xff] }
 0x21c   : > { %v8467_v30 = vadd.f32 %v2620_v10, %v2511_v56  ;;  %v2725_v43 = vadd.f32 %v2717_v54, %v2543_v51  ;;  %v2622_v35 = vmul.f32 %v7901_v26, %v8200_v29  ;;  %v2719_v53 = vmul.f32 %v8070_v27, %v8200_v29 }
 0x21d   : > { %v8455_v59 = vpop.permute.xlu1 %2889  ;;  %v8473_v5 = vadd.f32 %v2621_v23, %v2512_v24  ;;  %v2726_v4 = vadd.f32 %v2718_v25, %v2544_v47  ;;  %v2623_v36 = vmul.f32 %v10977_v18, %v8202_v8  ;;  %v2550_v39 = vadd.f32 %v2542_v48, %v2526_v62 }
 0x21e   : > { %v2709_v56 = vsub.f32 %v8467_v30, %v8451_v52  ;;  %v2720_v49 = vmul.f32 %v8076_v13, %v8202_v8  ;;  %v2741_v47 = vadd.f32 %v2733_v28, %v2725_v43  ;;  %v2624_v7 = vmul.f32 %v7950_v21, %v8206_v55 }
 0x21f   : > { %v8481_v51 = vpop.permute.xlu0 %2957  ;;  %v2710_v24 = vsub.f32 %v8473_v5, %v8459_v32  ;;  %v2742_v54 = vadd.f32 %v2734_v42, %v2726_v4  ;;  %v2721_v20 = vmul.f32 %v8090_v15, %v8206_v55  ;;  %v2625_v30 = vmul.f32 %v7959_v19, %v8209_v45 }
 0x220   : > { %v2722_v23 = vmul.f32 %v8092_v22, %v8209_v45  ;;  %v8497_v25 = vadd.f32 %v2622_v35, %v2513_v41  ;;  %v8501_v5 = vmul.f32 %v8070_v27, %v8213_v60  ;;  %v2727_v43 = vadd.f32 %v2719_v53, %v2545_v12 }
 0x221   : > { %v8487_v10 = vpop.permute.xlu1 %2964  ;;  %v2735_v4 = vmul.f32 %v7901_v26, %v8213_v60  ;;  %v8505_v42 = vadd.f32 %v2623_v36, %v2514_v58  ;;  %v8509_v32 = vmul.f32 %v8076_v13, %v8215_v46  ;;  %v2736_v28 = vmul.f32 %v10977_v18, %v8215_v46  ;;  %v10990_v60 = vld [vmem:[#allocation79_spill] sm:$0xff]  ;;  %v10998_v46 = vld [vmem:[#allocation25_spill] sm:$0xff] }
 0x222   : > { %v8515_v41 = vmul.f32 %v8090_v15, %v8219_v16  ;;  %v2728_v27 = vadd.f32 %v2720_v49, %v2546_v6  ;;  %v2737_v12 = vmul.f32 %v7950_v21, %v8219_v16  ;;  %v8523_v26 = vmul.f32 %v8092_v22, %v8221_v37  ;;  %v10978_v21 = vld [vmem:[#allocation32_spill] sm:$0xff] }
 0x223   : > { %v8517_v48 = vpop.permute.xlu0 %2971  ;;  %v2738_v13 = vmul.f32 %v7959_v19, %v8221_v37  ;;  %v8529_v58 = vadd.f32 %v2624_v7, %v2515_v9  ;;  %v2729_v52 = vadd.f32 %v2721_v20, %v2547_v61  ;;  %v8531_v15 = vadd.f32 %v2625_v30, %v2516_v17  ;;  %v10979_v20 = vld [vmem:[#allocation76_spill] sm:$0xff]  ;;  %v10980_v30 = vld [vmem:[#allocation34_spill] sm:$0xff] }
 0x224   : > { %v2730_v62 = vadd.f32 %v2722_v23, %v2548_v40  ;;  %v2743_v35 = vadd.f32 %v2735_v4, %v2727_v43  ;;  %v2626_v53 = vmul.f32 %v10978_v21, %v8225_v14  ;;  %v2723_v22 = vmul.f32 %v8098_v38, %v8225_v14  ;;  %v10981_v4 = vld [vmem:[#allocation33_spill] sm:$0xff]  ;;  %v10985_v19 = vld [vmem:[#allocation42_spill] sm:$0xff] }
 0x225   : > { %v8527_v36 = vpop.permute.xlu1 %2978  ;;  %v2744_v18 = vadd.f32 %v2736_v28, %v2728_v27  ;;  %v2724_v61 = vmul.f32 %v8104_v11, %v8227_v3  ;;  %v2745_v40 = vadd.f32 %v2737_v12, %v2729_v52  ;;  %v2818_v23 = vmul.f32 %v10980_v30, %v10979_v20  ;;  %v10983_v27 = vld [vmem:[#allocation77_spill] sm:$0xff]  ;;  %v10986_v12 = vld [vmem:[#allocation43_spill] sm:$0xff]  ;;  %v10989_v37 = vld [vmem:[#allocation78_spill] sm:$0xff] }
 0x226   : > { %v2746_v7 = vadd.f32 %v2738_v13, %v2730_v62  ;;  %v8555_v28 = vmul.f32 %v10981_v4, %v8227_v3  ;;  %v2819_v9 = vmul.f32 %v10984_v0, %v10983_v27  ;;  %v2915_v6 = vmul.f32 %v10985_v19, %v10979_v20  ;;  %v10988_v62 = vld [vmem:[#allocation74_spill] sm:$0xff] }
 0x227   : > { %v8545_v17 = vpop.permute.xlu0 %2985  ;;  %v2916_v52 = vmul.f32 %v10986_v12, %v10983_v27  ;;  %v8563_v49 = vadd.f32 %v2626_v53, %v2517_v44  ;;  %v2731_v13 = vadd.f32 %v2723_v22, %v2549_v34  ;;  %v2739_v16 = vmul.f32 %v10978_v21, %v10988_v62  ;;  %v10992_v53 = vld [vmem:[#allocation80_spill] sm:$0xff]  ;;  %v10997_v27 = vld [vmem:[#allocation81_spill] sm:$0xff] }
 0x228   : > { %10982 = vst [vmem:[#allocation26_spill] sm:$0xff] %v8555_v28  ;;  %v2899_v14 = vmul.f32 %v10985_v19, %v10989_v37  ;;  %v2732_v3 = vadd.f32 %v2724_v61, %v2550_v39  ;;  %v2900_v55 = vmul.f32 %v10986_v12, %v10990_v60  ;;  %v2931_v20 = vmul.f32 %v10980_v30, %v10989_v37  ;;  %v10993_v34 = vld [vmem:[#allocation16_spill] sm:$0xff] }
 0x229   : > { %v8551_v43 = vpop.permute.xlu1 %2992  ;;  %10987 = vst [vmem:[#allocation18_spill] sm:$0xff] %v8563_v49  ;;  %v2932_v44 = vmul.f32 %v10984_v0, %v10990_v60  ;;  %v2917_v22 = vmul.f32 %v10993_v34, %v10992_v53  ;;  %v8581_v21 = vmul.f32 %v8098_v38, %v10988_v62  ;;  %v2826_v19 = vadd.f32 %v2818_v23, %v2709_v56  ;;  %v10995_v39 = vld [vmem:[#allocation92_spill] sm:$0xff]  ;;  %v11000_v60 = vld [vmem:[#allocation75_spill] sm:$0xff]  ;;  %v11002_v23 = vld [vmem:[#allocation82_spill] sm:$0xff] }
 0x22a   : > { %v3016_v61 = vmul.f32 %v8481_v51, %v10995_v39  ;;  %v2918_v50 = vmul.f32 %v10998_v46, %v10997_v27  ;;  %v2827_v30 = vadd.f32 %v2819_v9, %v2710_v24  ;;  %v2923_v37 = vadd.f32 %v2915_v6, %v2741_v47 }
 0x22b   : > { %v8571_v45 = vpop.permute.xlu0 %2999  ;;  %10994 = vst [vmem:[#allocation19_spill] sm:$0xff] %v8581_v21  ;;  %v2924_v29 = vadd.f32 %v2916_v52, %v2742_v54  ;;  %v8589_v0 = vadd.f32 %v2739_v16, %v2731_v13  ;;  %v8593_v8 = vmul.f32 %v8104_v11, %v11000_v60  ;;  %v2740_v38 = vmul.f32 %v10981_v4, %v11000_v60  ;;  %v11003_v54 = vld [vmem:[#allocation94_spill] sm:$0xff]  ;;  %v11004_v52 = vld [vmem:[#allocation83_spill] sm:$0xff]  ;;  %v11005_v4 = vld [vmem:[#allocation93_spill] sm:$0xff] }
 0x22c   : > { %10991 = vst [vmem:[#allocation27_spill] sm:$0xff] %v8571_v45  ;;  %v2907_v56 = vsub.f32 %v2826_v19, %v2899_v14  ;;  %v2919_v62 = vmul.f32 %v8409_v63, %v11002_v23  ;;  %v2908_v2 = vsub.f32 %v2827_v30, %v2900_v55  ;;  %v2925_v24 = vadd.f32 %v2917_v22, %v2743_v35  ;;  %v11006_v19 = vld [vmem:[#allocation84_spill] sm:$0xff]  ;;  %v11009_v22 = vld [vmem:[#allocation85_spill] sm:$0xff] }
 0x22d   : > { %v8585_v12 = vpop.permute.xlu1 %3006  ;;  %10999 = vst [vmem:[#allocation20_spill] sm:$0xff] %v8589_v0  ;;  %11001 = vst [vmem:[#allocation29_spill] sm:$0xff] %v8593_v8  ;;  %v2940_v28 = vadd.f32 %v2932_v44, %v2924_v29  ;;  %v2926_v11 = vadd.f32 %v2918_v50, %v2744_v18  ;;  %v2920_v13 = vmul.f32 %v8415_v1, %v11004_v52  ;;  %v11007_v60 = vld [vmem:[#allocation36_spill] sm:$0xff] }
 0x22e   : > { %10996 = vst [vmem:[#allocation28_spill] sm:$0xff] %v8585_v12  ;;  %v2939_v12 = vadd.f32 %v2931_v20, %v2923_v37  ;;  %v3024_v47 = vadd.f32 %v3016_v61, %v2907_v56  ;;  %v2933_v8 = vmul.f32 %v11007_v60, %v11006_v19  ;;  %v3129_v37 = vmul.f32 %v8481_v51, %v11003_v54  ;;  %v11010_v61 = vld [vmem:[#allocation37_spill] sm:$0xff] }
 0x22f   : > { %v3039_v45 = vpop.permute.xlu0 %3038  ;;  %v3017_v29 = vmul.f32 %v8487_v10, %v11005_v4  ;;  %v2927_v20 = vadd.f32 %v2919_v62, %v2745_v40  ;;  %v2934_v30 = vmul.f32 %v11010_v61, %v11009_v22  ;;  %v11012_v40 = vld [vmem:[#allocation97_spill] sm:$0xff] }
 0x230   : > { %v3097_v16 = vmul.f32 %v3039_v45, %v11003_v54  ;;  %v3113_v6 = vmul.f32 %v3039_v45, %v10995_v39  ;;  %v11008_v45 = vld [vmem:[#allocation95_spill] sm:$0xff]  ;;  %v2941_v39 = vadd.f32 %v2933_v8, %v2925_v24  ;;  %v2821_v8 = vmul.f32 %v11010_v61, %v10997_v27 }
 0x231   : > { %v3046_v9 = vpop.permute.xlu1 %3045  ;;  %v3130_v50 = vmul.f32 %v8487_v10, %v11008_v45  ;;  %v11014_v10 = vld [vmem:[#allocation38_spill] sm:$0xff]  ;;  %v2942_v49 = vadd.f32 %v2934_v30, %v2926_v11  ;;  %v2748_v24 = vadd.f32 %v2740_v38, %v2732_v3  ;;  %v2901_v3 = vmul.f32 %v10993_v34, %v11006_v19  ;;  %v11023_v30 = vld [vmem:[#allocation88_spill] sm:$0xff]  ;;  %v11083_v19 = vld [vmem:[#allocation59_spill] sm:$0xff] }
 0x232   : > { %v3114_v14 = vmul.f32 %v3046_v9, %v11005_v4  ;;  %v3105_v55 = vsub.f32 %v3024_v47, %v3097_v16  ;;  %v3121_v35 = vadd.f32 %v3113_v6, %v2939_v12  ;;  %v3098_v56 = vmul.f32 %v3046_v9, %v11008_v45  ;;  %v11013_v47 = vld [vmem:[#allocation86_spill] sm:$0xff]  ;;  %v11017_v45 = vld [vmem:[#allocation101_spill] sm:$0xff] }
 0x233   : > { %v3053_v44 = vpop.permute.xlu0 %3052  ;;  %v2820_v12 = vmul.f32 %v11007_v60, %v10992_v53  ;;  %v2928_v6 = vadd.f32 %v2920_v13, %v2746_v7  ;;  %v3131_v53 = vmul.f32 %v8517_v48, %v11017_v45  ;;  %v2822_v38 = vmul.f32 %v11014_v10, %v11002_v23  ;;  %v11021_v13 = vld [vmem:[#allocation102_spill] sm:$0xff] }
 0x234   : > { %v3122_v18 = vadd.f32 %v3114_v14, %v2940_v28  ;;  %v3115_v31 = vmul.f32 %v3053_v44, %v11011_v57  ;;  %3306 = vperm.xlu1 %7091, %v3105_v55   ;;  %v3137_v54 = vadd.f32 %v3129_v37, %v3121_v35  ;;  %v2935_v28 = vmul.f32 %v11014_v10, %v11013_v47  ;;  %v11015_v55 = vld [vmem:[#allocation87_spill] sm:$0xff]  ;;  %v11026_v10 = vld [vmem:[#allocation89_spill] sm:$0xff] }
 0x235   : > { %v3060_v51 = vpop.permute.xlu1 %3059  ;;  %v3025_v14 = vadd.f32 %v3017_v29, %v2908_v2  ;;  %v11016_v35 = vld [vmem:[#allocation39_spill] sm:$0xff]  ;;  %v3132_v29 = vmul.f32 %v8527_v36, %v11021_v13  ;;  %v11022_v61 = vsub.f32 %v8505_v42, %v8509_v32  ;;  %v11025_v42 = vsub.f32 %v8529_v58, %v8515_v41 }
 0x236   : > { %v3116_v62 = vmul.f32 %v3060_v51, %v11012_v40  ;;  %v3138_v16 = vadd.f32 %v3130_v50, %v3122_v18  ;;  %v3123_v4 = vadd.f32 %v3115_v31, %v2941_v39  ;;  %3154 = vperm.xlu0 %7090, %v3137_v54   ;;  %v2943_v9 = vadd.f32 %v2935_v28, %v2927_v20  ;;  %v11018_v50 = vld [vmem:[#allocation98_spill] sm:$0xff]  ;;  %v11020_v54 = vld [vmem:[#allocation100_spill] sm:$0xff] }
 0x237   : > { %v3067_v37 = vpop.permute.xlu0 %3066  ;;  %v2936_v60 = vmul.f32 %v11016_v35, %v11015_v55  ;;  %v3106_v21 = vsub.f32 %v3025_v14, %v3098_v56  ;;  %v11019_v31 = vsub.f32 %v8497_v25, %v8501_v5  ;;  %v2829_v25 = vadd.f32 %v2821_v8, %v11022_v61  ;;  %v11032_v61 = vld [vmem:[#allocation105_spill] sm:$0xff] }
 0x238   : > { %v3124_v0 = vadd.f32 %v3116_v62, %v2942_v49  ;;  %v3117_v7 = vmul.f32 %v3067_v37, %v11018_v50  ;;  %3157 = vperm.xlu1 %7091, %v3138_v16   ;;  %v3139_v18 = vadd.f32 %v3131_v53, %v3123_v4  ;;  %v2902_v5 = vmul.f32 %v10998_v46, %v11009_v22  ;;  %v11024_v62 = vld [vmem:[#allocation103_spill] sm:$0xff]  ;;  %v11081_v22 = vld [vmem:[#allocation54_spill] sm:$0xff] }
 0x239   : > { %v3074_v2 = vpop.permute.xlu1 %3073  ;;  %v2828_v39 = vadd.f32 %v2820_v12, %v11019_v31  ;;  %v2944_v20 = vadd.f32 %v2936_v60, %v2928_v6  ;;  %v2823_v34 = vmul.f32 %v11016_v35, %v11004_v52  ;;  %v2921_v56 = vmul.f32 %v8437_v33, %v11023_v30  ;;  %v11027_v6 = vld [vmem:[#allocation104_spill] sm:$0xff] }
 0x23a   : > { %v3118_v11 = vmul.f32 %v3074_v2, %v11020_v54  ;;  %v3125_v49 = vadd.f32 %v3117_v7, %v2943_v9  ;;  %3309 = vperm.xlu0 %7090, %v3106_v21   ;;  %v3018_v12 = vmul.f32 %v8517_v48, %v11011_v57  ;;  %v3133_v21 = vmul.f32 %v8545_v17, %v11024_v62  ;;  %v11029_v35 = vld [vmem:[#allocation20_spill] sm:$0xff] }
 0x23b   : > { %v3140_v4 = vadd.f32 %v3132_v29, %v3124_v0  ;;  %v2830_v32 = vadd.f32 %v2822_v38, %v11025_v42  ;;  %v2903_v46 = vmul.f32 %v8409_v63, %v11013_v47  ;;  %v2922_v28 = vmul.f32 %v8455_v59, %v11026_v10  ;;  %v3081_v7 = vpop.permute.xlu0 %3080  ;;  %v11030_v29 = vld [vmem:[#allocation90_spill] sm:$0xff]  ;;  %v11036_v42 = vld [vmem:[#allocation19_spill] sm:$0xff] }
 0x23c   : > { %v3126_v53 = vadd.f32 %v3118_v11, %v2944_v20  ;;  %3160 = vperm.xlu1 %7091, %v3139_v18   ;;  %v3019_v16 = vmul.f32 %v8527_v36, %v11012_v40  ;;  %v2909_v48 = vsub.f32 %v2828_v39, %v2901_v3  ;;  %v3134_v14 = vmul.f32 %v8551_v43, %v11027_v6 }
 0x23d   : > { %v3099_v8 = vmul.f32 %v3053_v44, %v11017_v45  ;;  %v3141_v0 = vadd.f32 %v3133_v21, %v3125_v49  ;;  %v2910_v9 = vsub.f32 %v2829_v25, %v2902_v5  ;;  %v11028_v41 = vsub.f32 %v8531_v15, %v8523_v26  ;;  %v11031_v26 = vld [vmem:[#allocation40_spill] sm:$0xff]  ;;  %v3088_v49 = vpop.permute.xlu1 %3087 }
 0x23e   : > { %3163 = vperm.xlu0 %7090, %v3140_v4   ;;  %v2904_v63 = vmul.f32 %v8415_v1, %v11015_v55  ;;  %v2929_v60 = vadd.f32 %v2921_v56, %v11029_v35  ;;  %v3026_v36 = vadd.f32 %v3018_v12, %v2909_v48  ;;  %v3020_v31 = vmul.f32 %v8545_v17, %v11018_v50  ;;  %v11035_v4 = vld [vmem:[#allocation106_spill] sm:$0xff]  ;;  %v11042_v35 = vld [vmem:[#allocation29_spill] sm:$0xff] }
 0x23f   : > { %v2831_v58 = vadd.f32 %v2823_v34, %v11028_v41  ;;  %v3100_v39 = vmul.f32 %v3060_v51, %v11021_v13  ;;  %v3142_v44 = vadd.f32 %v3134_v14, %v3126_v53  ;;  %v2911_v3 = vsub.f32 %v2830_v32, %v2903_v46  ;;  %v11034_v34 = vld [vmem:[#allocation41_spill] sm:$0xff]  ;;  %v11041_v14 = vld [vmem:[#allocation26_spill] sm:$0xff] }
 0x240   : > { %3166 = vperm.xlu1 %7091, %v3141_v0   ;;  %v2930_v38 = vadd.f32 %v2922_v28, %v2748_v24  ;;  %v3027_v11 = vadd.f32 %v3019_v16, %v2910_v9  ;;  %v2937_v15 = vmul.f32 %v11031_v26, %v11030_v29  ;;  %v3021_v1 = vmul.f32 %v8551_v43, %v11020_v54  ;;  %v11033_v24 = vld [vmem:[#allocation91_spill] sm:$0xff]  ;;  %v11039_v16 = vld [vmem:[#allocation24_spill] sm:$0xff] }
 0x241   : > { %v3107_v20 = vsub.f32 %v3026_v36, %v3099_v8  ;;  %v3101_v18 = vmul.f32 %v3067_v37, %v11024_v62  ;;  %v3119_v25 = vmul.f32 %v3081_v7, %v11032_v61  ;;  %v2912_v17 = vsub.f32 %v2831_v58, %v2904_v63  ;;  %v11037_v37 = vld [vmem:[#allocation18_spill] sm:$0xff]  ;;  %v11038_v28 = vld [vmem:[#allocation15_spill] sm:$0xff] }
 0x242   : > { %3169 = vperm.xlu0 %7090, %v3142_v44   ;;  %v2824_v51 = vmul.f32 %v11031_v26, %v11023_v30  ;;  %v2945_v5 = vadd.f32 %v2937_v15, %v2929_v60  ;;  %v2938_v56 = vmul.f32 %v11034_v34, %v11033_v24  ;;  %v3028_v12 = vadd.f32 %v3020_v31, %v2911_v3 }
 0x243   : > { %v3108_v21 = vsub.f32 %v3027_v11, %v3100_v39  ;;  %v3102_v53 = vmul.f32 %v3074_v2, %v11027_v6  ;;  %v3120_v43 = vmul.f32 %v3088_v49, %v11035_v4  ;;  %v2715_v32 = vsub.f32 %v11037_v37, %v11036_v42  ;;  %v11044_v39 = vld [vmem:[#allocation23_spill] sm:$0xff]  ;;  %v11047_v42 = vld [vmem:[#allocation8_spill] sm:$0xff] }
 0x244   : > { %3312 = vperm.xlu1 %7091, %v3107_v20   ;;  %v2905_v46 = vmul.f32 %v8437_v33, %v11030_v29  ;;  %v11040_v48 = vsub.f32 %v11038_v28, %v11039_v16  ;;  %v2825_v0 = vmul.f32 %v11034_v34, %v11026_v10  ;;  %v3029_v9 = vadd.f32 %v3021_v1, %v2912_v17  ;;  %v11043_v33 = vld [vmem:[#allocation27_spill] sm:$0xff]  ;;  %v11046_v20 = vld [vmem:[#allocation17_spill] sm:$0xff]  ;;  %v8706_v17 = vpop.permute.xlu1 %3451  ;;  %v11050_v28 = vld [vmem:[#allocation10_spill] sm:$0xff] }
 0x245   : > { %v3109_v41 = vsub.f32 %v3028_v12, %v3101_v18  ;;  %v3127_v2 = vadd.f32 %v3119_v25, %v2945_v5  ;;  %v2946_v58 = vadd.f32 %v2938_v56, %v2930_v38  ;;  %v2832_v63 = vadd.f32 %v2824_v51, %v2715_v32  ;;  %v11045_v38 = vld [vmem:[#allocation28_spill] sm:$0xff]  ;;  %v8709_v12 = vpop.permute.xlu0 %3458  ;;  %v11048_v37 = vld [vmem:[#allocation99_spill] sm:$0xff] }
 0x246   : > { %v2635_v8 = vadd.f32 %v11041_v14, %v11040_v48  ;;  %3315 = vperm.xlu0 %7090, %v3108_v21   ;;  %v2906_v36 = vmul.f32 %v8455_v59, %v11033_v24  ;;  %v3022_v31 = vmul.f32 %v11043_v33, %v11032_v61  ;;  %v3135_v44 = vmul.f32 %v11043_v33, %v11044_v39  ;;  %v8727_v48 = vld [vmem:[%s10480_s7] sm:$0xff] }
 0x247   : > { %v3110_v3 = vsub.f32 %v3029_v9, %v3102_v53  ;;  %v3128_v11 = vadd.f32 %v3120_v43, %v2946_v58  ;;  %v2913_v26 = vsub.f32 %v2832_v63, %v2905_v46  ;;  %v3023_v1 = vmul.f32 %v11045_v38, %v11035_v4  ;;  %v8714_v43 = vld [vmem:[%s10481_s8] sm:$0xff]  ;;  %7028 = vmatpush3.msra.mxu1 %v8727_v48  ;;  %v11052_v9 = vld [vmem:[#allocation12_spill] sm:$0xff]  ;;  %v11053_v58 = vld [vmem:[#allocation13_spill] sm:$0xff] }
 0x248   : > { %v2716_v60 = vsub.f32 %v2635_v8, %v11042_v35  ;;  %3318 = vperm.xlu1 %7091, %v3109_v41   ;;  %v3136_v18 = vmul.f32 %v11045_v38, %v11046_v20  ;;  %v3103_v25 = vmul.f32 %v3081_v7, %v11044_v39  ;;  %v3143_v59 = vadd.f32 %v3135_v44, %v3127_v2  ;;  %v8720_v46 = vpop.permute.xlu1 %3465  ;;  %v11051_v8 = vld [vmem:[#allocation11_spill] sm:$0xff]  ;;  %v11060_v39 = vld [vmem:[#allocation6_spill] sm:$0xff] }
 0x249   : > { %v3030_v5 = vadd.f32 %v3022_v31, %v2913_v26  ;;  %v3104_v34 = vmul.f32 %v3088_v49, %v11046_v20  ;;  %7023 = vmatpush3.msra.mxu0 %v8714_v43  ;;  %v3859_v32 = vrot.slane %v11048_v37, %v11047_v42  ;;  %v11049_v49 = vmov 0.0   ;;  %v8729_v14 = vpop.permute.xlu0 %3472  ;;  %v11055_v31 = vld [vmem:[#allocation9_spill] sm:$0xff] }
 0x24a   : > { %v2833_v15 = vadd.f32 %v2825_v0, %v2716_v60  ;;  %3321 = vperm.xlu0 %7090, %v3110_v3   ;;  %v3144_v56 = vadd.f32 %v3136_v18, %v3128_v11  ;;  %7032 = vmatprep.subr.mxu0 %v11049_v49  ;;  %v3866_v16 = vrot.slane %v11048_v37, %v11050_v28  ;;  %v6894_v60 = vld [vmem:[%s7403_s25 + $0x48] sm:$0xff] }
 0x24b   : > { %v3111_v53 = vsub.f32 %v3030_v5, %v3103_v25  ;;  %v3873_v0 = vrot.slane %v11048_v37, %v11051_v8  ;;  %7037 = vmatprep.subr.mxu1 %v11049_v49  ;;  %v3880_v41 = vrot.slane %v11048_v37, %v11052_v9  ;;  %v3887_v63 = vrot.slane %v11048_v37, %v11053_v58  ;;  %v11056_v11 = vld [vmem:[#allocation7_spill] sm:$0xff] }
 0x24c   : > { %v2914_v51 = vsub.f32 %v2833_v15, %v2906_v36  ;;  %3172 = vperm.xlu1 %7091, %v3143_v59   ;;  %v8737_v2 = vpop.permute.xlu1 %3479  ;;  %v11054_v36 = vld [vmem:[#allocation14_spill] sm:$0xff]  ;;  %v3926_v44 = vrot.slane %v6894_v60, %v11055_v31  ;;  %v3933_v26 = vrot.slane %v6894_v60, %v11056_v11  ;;  %v3940_v38 = vrot.slane %v6894_v60, %v11047_v42 }
 0x24d   : > { %v8741_v35 = vpop.permute.xlu0 %3486  ;;  %v3894_v33 = vrot.slane %v11048_v37, %v11054_v36  ;;  %v3954_v25 = vrot.slane %v6894_v60, %v11051_v8  ;;  %v3968_v5 = vrot.slane %v6894_v60, %v11053_v58  ;;  %v3627_v52 = vmul.f32 %v8737_v2, %v11081_v22 }
 0x24e   : > { %v3031_v21 = vadd.f32 %v3023_v1, %v2914_v51  ;;  %3175 = vperm.xlu0 %7090, %v3144_v56   ;;  %v3947_v1 = vrot.slane %v6894_v60, %v11050_v28  ;;  %v3961_v51 = vrot.slane %v6894_v60, %v11052_v9  ;;  %v6895_v56 = vld [vmem:[%s7336_s24 + $0x68] sm:$0xff] }
 0x24f   : > { %v4050_v37 = vrot.slane %v6895_v56, %v11056_v11 }
 0x250   : > { %v3112_v7 = vsub.f32 %v3031_v21, %v3104_v34  ;;  %3324 = vperm.xlu1 %7091, %v3111_v53   ;;  %v8747_v3 = vpop.permute.xlu1 %3493  ;;  %v3975_v21 = vrot.slane %v6894_v60, %v11054_v36 }
 0x251   : > { %v8750_v15 = vpop.permute.xlu0 %3500 }
 0x252   : > { %3327 = vperm.xlu0 %7090, %v3112_v7   ;;  %v4043_v7 = vrot.slane %v6895_v56, %v11055_v31  ;;  %v3630_v23 = vmul.f32 %v8750_v15, %v11083_v19 }
 0x254   : > { %3861 = vbcast.lane.b32.xlu1 %v3859_v32, 256  ;;  %v8754_v18 = vpop.permute.xlu1 %3532 }
 0x255   : > { %v8757_v59 = vpop.permute.xlu0 %3539 }
 0x256   : > { %3868 = vbcast.lane.b32.xlu0 %v3866_v16, 256  ;;  %v4057_v16 = vrot.slane %v6895_v56, %v11047_v42 }
 0x258   : > { %3875 = vbcast.lane.b32.xlu1 %v3873_v0, 256  ;;  %v8761_v34 = vpop.permute.xlu1 %3546 }
 0x259   : > { %v8765_v53 = vpop.permute.xlu0 %3553 }
 0x25a   : > { %3882 = vbcast.lane.b32.xlu0 %v3880_v41, 256  ;;  %v4064_v41 = vrot.slane %v6895_v56, %v11050_v28 }
 0x25c   : > { %3889 = vbcast.lane.b32.xlu1 %v3887_v63, 256  ;;  %v8769_v32 = vpop.permute.xlu1 %3560  ;;  %v4071_v63 = vrot.slane %v6895_v56, %v11051_v8 }
 0x25d   : > { %v8772_v0 = vpop.permute.xlu0 %3567 }
 0x25e   : > { %3896 = vbcast.lane.b32.xlu0 %v3894_v33, 256  ;;  %v4078_v33 = vrot.slane %v6895_v56, %v11052_v9 }
 0x260   : > { %3928 = vbcast.lane.b32.xlu1 %v3926_v44, 256  ;;  %v8776_v60 = vpop.permute.xlu1 %3574 }
 0x261   : > { %v8779_v44 = vpop.permute.xlu0 %3581 }
 0x262   : > { %3935 = vbcast.lane.b32.xlu0 %v3933_v26, 256  ;;  %v4085_v26 = vrot.slane %v6895_v56, %v11053_v58 }
 0x264   : > { %3942 = vbcast.lane.b32.xlu1 %v3940_v38, 256  ;;  %v6896_v38 = vld [vmem:[%s7403_s25 + $0x68] sm:$0xff] }
 0x266   : > { %3949 = vbcast.lane.b32.xlu0 %v3947_v1, 256  ;;  %v4092_v1 = vrot.slane %v6895_v56, %v11054_v36  ;;  %v4152_v56 = vrot.slane %v6896_v38, %v11051_v8 }
 0x268   : > { %3956 = vbcast.lane.b32.xlu1 %v3954_v25, 256  ;;  %v8784_v25 = vpop.permute.xlu1 %3649 }
 0x26a   : > { %3963 = vbcast.lane.b32.xlu0 %v3961_v51, 256  ;;  %v4124_v51 = vrot.slane %v6896_v38, %v11055_v31 }
 0x26c   : > { %3970 = vbcast.lane.b32.xlu1 %v3968_v5, 256  ;;  %v8787_v5 = vpop.permute.xlu0 %3656 }
 0x26e   : > { %3977 = vbcast.lane.b32.xlu0 %v3975_v21, 256  ;;  %v4131_v21 = vrot.slane %v6896_v38, %v11056_v11 }
 0x270   : > { %4045 = vbcast.lane.b32.xlu1 %v4043_v7, 256  ;;  %v4138_v7 = vrot.slane %v6896_v38, %v11047_v42 }
 0x272   : > { %4052 = vbcast.lane.b32.xlu0 %v4050_v37, 256  ;;  %v8791_v37 = vpop.permute.xlu1 %3663 }
 0x274   : > { %4059 = vbcast.lane.b32.xlu1 %v4057_v16, 256  ;;  %v4145_v16 = vrot.slane %v6896_v38, %v11050_v28 }
 0x276   : > { %4066 = vbcast.lane.b32.xlu0 %v4064_v41, 256  ;;  %v8794_v41 = vpop.permute.xlu0 %3670 }
 0x278   : > { %4073 = vbcast.lane.b32.xlu1 %v4071_v63, 256  ;;  %v4159_v63 = vrot.slane %v6896_v38, %v11052_v9 }
 0x27a   : > { %4080 = vbcast.lane.b32.xlu0 %v4078_v33, 256  ;;  %v8798_v33 = vpop.permute.xlu1 %3677 }
 0x27c   : > { %4087 = vbcast.lane.b32.xlu1 %v4085_v26, 256  ;;  %v4166_v26 = vrot.slane %v6896_v38, %v11053_v58 }
 0x27e   : > { %4094 = vbcast.lane.b32.xlu0 %v4092_v1, 256  ;;  %v8801_v1 = vpop.permute.xlu0 %3684 }
 0x280   : > { %4126 = vbcast.lane.b32.xlu1 %v4124_v51, 256  ;;  %v4173_v51 = vrot.slane %v6896_v38, %v11054_v36 }
 0x282   : > { %4133 = vbcast.lane.b32.xlu0 %v4131_v21, 256  ;;  %v8804_v21 = vpop.permute.xlu1 %3691 }
 0x284   : > { %4140 = vbcast.lane.b32.xlu1 %v4138_v7, 256  ;;  %v8806_v7 = vpop.permute.xlu0 %3698 }
 0x286   : > { %4147 = vbcast.lane.b32.xlu0 %v4145_v16, 256  ;;  %v8808_v8 = vpop.permute.xlu1 %3730 }
 0x288   : > { %4154 = vbcast.lane.b32.xlu1 %v4152_v56, 256  ;;  %v8810_v16 = vpop.permute.xlu0 %3737 }
 0x28a   : > { %4161 = vbcast.lane.b32.xlu0 %v4159_v63, 256  ;;  %v8812_v9 = vpop.permute.xlu1 %3744 }
 0x28c   : > { %4168 = vbcast.lane.b32.xlu1 %v4166_v26, 256  ;;  %v8814_v56 = vpop.permute.xlu0 %3751 }
 0x28e   : > { %4175 = vbcast.lane.b32.xlu0 %v4173_v51, 256  ;;  %v8816_v58 = vpop.permute.xlu1 %3758 }
 0x290   : > { %v8818_v28 = vpop.permute.xlu0 %3765 }
 0x292   : > { %v8820_v63 = vpop.permute.xlu1 %3772 }
 0x293   : > { %11057 = vst [vmem:[#allocation21_spill] sm:$0xff] %v8820_v63 }
 0x294   : > { %v8822_v38 = vpop.permute.xlu0 %3779 }
 0x296   : > { %v8824_v26 = vpop.permute.xlu1 %3847 }
 0x297   : > { %11058 = vst [vmem:[#allocation22_spill] sm:$0xff] %v8824_v26 }
 0x298   : > { %v8826_v51 = vpop.permute.xlu0 %3854 }
 0x299   : > { %11059 = vst [vmem:[#allocation30_spill] sm:$0xff] %v8826_v51 }
 0x2af   : > { %v3307_v36 = vpop.permute.xlu1 %3306 }
 0x2b0   : > { %v3332_v40 = vrot.slane %v3307_v36, %v11060_v39 }
 0x2b1   : > { %v3155_v42 = vpop.permute.xlu0 %3154 }
 0x2b2   : > { %v3182_v62 = vrot.slane %v3155_v42, %v11060_v39 }
 0x2b3   : > { %v3158_v11 = vpop.permute.xlu1 %3157 }
 0x2b4   : > { %v3186_v6 = vrot.slane %v3158_v11, %v11060_v39 }
 0x2b5   : > { %v3310_v31 = vpop.permute.xlu0 %3309 }
 0x2b6   : > { %v3212_v13 = vsel %vm3211_vm3, %v3186_v6, %v3182_v62  ;;  %v3336_v29 = vrot.slane %v3310_v31, %v11060_v39 }
 0x2b7   : > { %v3161_v20 = vpop.permute.xlu1 %3160 }
 0x2b8   : > { %v3190_v24 = vrot.slane %v3161_v20, %v11060_v39  ;;  %v3361_v42 = vsel %vm3211_vm3, %v3336_v29, %v3332_v40 }
 0x2b9   : > { %v3164_v4 = vpop.permute.xlu0 %3163 }
 0x2ba   : > { %v3194_v50 = vrot.slane %v3164_v4, %v11060_v39  ;;  %v3214_v55 = vsel %vm3213_vm4, %v3190_v24, %v3212_v13 }
 0x2bb   : > { %v3167_v61 = vpop.permute.xlu1 %3166 }
 0x2bc   : > { %v3198_v20 = vrot.slane %v3167_v61, %v11060_v39  ;;  %v3216_v47 = vsel %vm3215_vm5, %v3194_v50, %v3214_v55 }
 0x2bd   : > { %v3170_v54 = vpop.permute.xlu0 %3169 }
 0x2be   : > { %v3202_v13 = vrot.slane %v3170_v54, %v11060_v39 }
 0x2bf   : > { %v3313_v45 = vpop.permute.xlu1 %3312 }
 0x2c0   : > { %v3340_v11 = vrot.slane %v3313_v45, %v11060_v39  ;;  %v3218_v45 = vsel %vm3217_vm6, %v3198_v20, %v3216_v47 }
 0x2c1   : > { %v3316_v10 = vpop.permute.xlu0 %3315  ;;  %v3220_v50 = vsel %vm3219_vm7, %v3202_v13, %v3218_v45 }
 0x2c2   : > { %v3344_v62 = vrot.slane %v3316_v10, %v11060_v39  ;;  %v3362_v4 = vsel %vm3213_vm4, %v3340_v11, %v3361_v42 }
 0x2c3   : > { %v3319_v6 = vpop.permute.xlu1 %3318 }
 0x2c4   : > { %v3348_v36 = vrot.slane %v3319_v6, %v11060_v39  ;;  %v3363_v61 = vsel %vm3215_vm5, %v3344_v62, %v3362_v4 }
 0x2c5   : > { %v3322_v24 = vpop.permute.xlu0 %3321 }
 0x2c6   : > { %v3352_v10 = vrot.slane %v3322_v24, %v11060_v39  ;;  %v3364_v54 = vsel %vm3217_vm6, %v3348_v36, %v3363_v61 }
 0x2c7   : > { %v3173_v40 = vpop.permute.xlu1 %3172 }
 0x2c8   : > { %v3206_v55 = vrot.slane %v3173_v40, %v11060_v39  ;;  %v3365_v62 = vsel %vm3219_vm7, %v3352_v10, %v3364_v54  ;;  %v11069_v54 = vld [vmem:[#allocation47_spill] sm:$0xff] }
 0x2c9   : > { %v3176_v29 = vpop.permute.xlu0 %3175 }
 0x2ca   : > { %v3222_v31 = vsel %vm3221_vm8, %v3206_v55, %v3220_v50  ;;  %v3210_v47 = vrot.slane %v3176_v29, %v11060_v39  ;;  %v11068_v29 = vld [vmem:[#allocation48_spill] sm:$0xff] }
 0x2cb   : > { %v3325_v11 = vpop.permute.xlu1 %3324 }
 0x2cc   : > { %v3356_v20 = vrot.slane %v3325_v11, %v11060_v39  ;;  %v3224_v42 = vsel %vm3223_vm9, %v3210_v47, %v3222_v31  ;;  %v3624_v31 = vmul.f32 %v8709_v12, %v11069_v54  ;;  %v11070_v47 = vld [vmem:[#allocation44_spill] sm:$0xff] }
 0x2cd   : > { %v3328_v6 = vpop.permute.xlu0 %3327  ;;  %7025 = vmatmul.mubr.msk.f32.vlgmr.msra.gmra.mxu0 %vm1019_vm2, %v3224_v42  ;;  %v3510_v11 = vmul.f32 %v8706_v17, %v11070_v47  ;;  %v11072_v42 = vld [vmem:[#allocation46_spill] sm:$0xff]  ;;  %v3607_v51 = vmul.f32 %v8754_v18, %v11070_v47 }
 0x2ce   : > { %v3366_v4 = vsel %vm3221_vm8, %v3356_v20, %v3365_v62  ;;  %v3360_v13 = vrot.slane %v3328_v6, %v11060_v39  ;;  %7033 = vmatpush3.msra.mxu0 %v8714_v43  ;;  %7034 = vmatprep.mubr.msk.f32.mxu0 %vm7122_vm1, %v11049_v49  ;;  %v3623_v62 = vmul.f32 %v8706_v17, %v11072_v42  ;;  %v11073_v6 = vld [vmem:[#allocation49_spill] sm:$0xff] }
 0x2cf   : > { %v8861_v24 = vpop.permute.xlu1 %3861  ;;  %7042 = vmatprep.subr.mxu0 %v11049_v49  ;;  %v11075_v39 = vld [vmem:[#allocation45_spill] sm:$0xff] }
 0x2d0   : > { %11061 = vst [vmem:[#allocation31_spill] sm:$0xff] %v8861_v24  ;;  %v3367_v45 = vsel %vm3223_vm9, %v3360_v13, %v3366_v4  ;;  %v8896_v4 = vmul.f32 %v8729_v14, %v11073_v6  ;;  %v11074_v13 = vld [vmem:[#allocation53_spill] sm:$0xff] }
 0x2d1   : > { %v8865_v36 = vpop.permute.xlu0 %3868  ;;  %7030 = vmatmul.mubr.msk.f32.vlgmr.msra.gmra.mxu1 %vm1019_vm2, %v3367_v45  ;;  %v3626_v45 = vmul.f32 %v8729_v14, %v11074_v13  ;;  %v11079_v14 = vld [vmem:[#allocation55_spill] sm:$0xff] }
 0x2d2   : > { %11062 = vst [vmem:[#allocation32_spill] sm:$0xff] %v8865_v36  ;;  %7038 = vmatpush3.msra.mxu1 %v8727_v48  ;;  %7039 = vmatprep.mubr.msk.f32.mxu1 %vm7122_vm1, %v11049_v49  ;;  %v3511_v48 = vmul.f32 %v8709_v12, %v11068_v29  ;;  %v8904_v12 = vmul.f32 %v8720_v46, %v11075_v39 }
 0x2d3   : > { %v8871_v61 = vpop.permute.xlu1 %3875  ;;  %7047 = vmatprep.subr.mxu1 %v11049_v49  ;;  %v3592_v49 = vmul.f32 %v8757_v59, %v11069_v54  ;;  %v3628_v30 = vmul.f32 %v8741_v35, %v11079_v14  ;;  %v11080_v54 = vld [vmem:[#allocation50_spill] sm:$0xff] }
 0x2d4   : > { %11063 = vst [vmem:[#allocation34_spill] sm:$0xff] %v8871_v61  ;;  %v3608_v61 = vmul.f32 %v8757_v59, %v11068_v29  ;;  %v8920_v36 = vmul.f32 %v8737_v2, %v11080_v54  ;;  %v11084_v59 = vld [vmem:[#allocation56_spill] sm:$0xff]  ;;  %v11086_v2 = vld [vmem:[#allocation58_spill] sm:$0xff] }
 0x2d5   : > { %v8874_v43 = vpop.permute.xlu0 %3882  ;;  %v8932_v29 = vmul.f32 %v8747_v3, %v11084_v59  ;;  %v3600_v27 = vsub.f32 %v3511_v48, %v3592_v49 }
 0x2d6   : > { %11064 = vst [vmem:[#allocation33_spill] sm:$0xff] %v8874_v43  ;;  %v11077_v43 = vld [vmem:[#allocation51_spill] sm:$0xff]  ;;  %v3632_v63 = vadd.f32 %v3624_v31, %v3608_v61  ;;  %v3598_v61 = vmul.f32 %v8779_v44, %v11083_v19  ;;  %v3631_v31 = vadd.f32 %v3623_v62, %v3607_v51 }
 0x2d7   : > { %v8876_v40 = vpop.permute.xlu1 %3889  ;;  %v8910_v17 = vmul.f32 %v8741_v35, %v11077_v43  ;;  %v3591_v35 = vmul.f32 %v8754_v18, %v11072_v42  ;;  %v3609_v42 = vmul.f32 %v8761_v34, %v11075_v39  ;;  %v3596_v18 = vmul.f32 %v8772_v0, %v11079_v14 }
 0x2d8   : > { %11065 = vst [vmem:[#allocation35_spill] sm:$0xff] %v8876_v40  ;;  %v3612_v49 = vmul.f32 %v8772_v0, %v11077_v43  ;;  %v11105_v43 = vld [vmem:[#allocation71_spill] sm:$0xff] }
 0x2d9   : > { %v8878_v55 = vpop.permute.xlu0 %3896  ;;  %v3599_v48 = vsub.f32 %v3510_v11, %v3591_v35  ;;  %v3604_v62 = vsub.f32 %v8910_v17, %v3596_v18  ;;  %v3826_v14 = vmul.f32 %v8801_v1, %v11105_v43 }
 0x2da   : > { %11066 = vst [vmem:[#allocation42_spill] sm:$0xff] %v8878_v55  ;;  %v11076_v55 = vld [vmem:[#allocation52_spill] sm:$0xff] }
 0x2db   : > { %v8880_v50 = vpop.permute.xlu1 %3928  ;;  %v3625_v40 = vmul.f32 %v8720_v46, %v11076_v55  ;;  %v11082_v46 = vld [vmem:[#allocation57_spill] sm:$0xff] }
 0x2dc   : > { %v8926_v24 = vmul.f32 %v8750_v15, %v11082_v46  ;;  %v3610_v15 = vmul.f32 %v8765_v53, %v11073_v6  ;;  %v3597_v6 = vmul.f32 %v8776_v60, %v11086_v2 }
 0x2dd   : > { %v8882_v10 = vpop.permute.xlu0 %3935  ;;  %v3633_v51 = vadd.f32 %v3625_v40, %v3609_v42  ;;  %v11093_v42 = vld [vmem:[#allocation64_spill] sm:$0xff] }
 0x2de   : > { %11067 = vst [vmem:[#allocation43_spill] sm:$0xff] %v8882_v10  ;;  %v3593_v10 = vmul.f32 %v8761_v34, %v11076_v55  ;;  %v3614_v34 = vmul.f32 %v8779_v44, %v11082_v46  ;;  %v3634_v39 = vadd.f32 %v3626_v45, %v3610_v15  ;;  %v3613_v55 = vmul.f32 %v8776_v60, %v11084_v59  ;;  %v11090_v44 = vld [vmem:[#allocation60_spill] sm:$0xff] }
 0x2df   : > { %v8890_v20 = vpop.permute.xlu1 %3942  ;;  %v3708_v35 = vmul.f32 %v8784_v25, %v11090_v44  ;;  %v3636_v46 = vadd.f32 %v3628_v30, %v3612_v49  ;;  %v3606_v60 = vsub.f32 %v8926_v24, %v3598_v61  ;;  %v3605_v15 = vsub.f32 %v8932_v29, %v3597_v6  ;;  %v11095_v24 = vld [vmem:[#allocation62_spill] sm:$0xff]  ;;  %v11096_v29 = vld [vmem:[#allocation69_spill] sm:$0xff] }
 0x2e0   : > { %11071 = vst [vmem:[#allocation16_spill] sm:$0xff] %v8890_v20  ;;  %v3594_v20 = vmul.f32 %v8765_v53, %v11074_v13  ;;  %v3611_v53 = vmul.f32 %v8769_v32, %v11080_v54  ;;  %v3601_v11 = vsub.f32 %v8904_v12, %v3593_v10  ;;  %v8983_v45 = vadd.f32 %v3630_v23, %v3614_v34  ;;  %v11092_v10 = vld [vmem:[#allocation65_spill] sm:$0xff]  ;;  %v11098_v61 = vld [vmem:[#allocation66_spill] sm:$0xff] }
 0x2e1   : > { %v8914_v57 = vpop.permute.xlu0 %3949  ;;  %v3711_v40 = vmul.f32 %v8794_v41, %v11092_v10  ;;  %v3710_v12 = vmul.f32 %v8791_v37, %v11093_v42  ;;  %v3821_v23 = vmul.f32 %v8784_v25, %v11095_v24  ;;  %v9000_v49 = vadd.f32 %v3708_v35, %v3599_v48 }
 0x2e2   : > { %11078 = vst [vmem:[#allocation25_spill] sm:$0xff] %v8914_v57  ;;  %v3629_v57 = vmul.f32 %v8747_v3, %v11086_v2  ;;  %v3595_v3 = vmul.f32 %v8769_v32, %v11081_v22  ;;  %v3602_v0 = vsub.f32 %v8896_v4, %v3594_v20  ;;  %v11089_v32 = vld [vmem:[#allocation61_spill] sm:$0xff]  ;;  %v8980_v4 = vadd.f32 %v3627_v52, %v3611_v53  ;;  %v11094_v52 = vld [vmem:[#allocation63_spill] sm:$0xff]  ;;  %v11103_v2 = vld [vmem:[#allocation72_spill] sm:$0xff] }
 0x2e3   : > { %v8938_v26 = vpop.permute.xlu1 %3956  ;;  %v3709_v54 = vmul.f32 %v8787_v5, %v11089_v32  ;;  %v3824_v6 = vmul.f32 %v8794_v41, %v11096_v29  ;;  %v3806_v25 = vmul.f32 %v8810_v16, %v11089_v32  ;;  %v3805_v41 = vmul.f32 %v8808_v8, %v11090_v44  ;;  %v11106_v32 = vld [vmem:[#allocation70_spill] sm:$0xff] }
 0x2e4   : > { %11085 = vst [vmem:[#allocation36_spill] sm:$0xff] %v8938_v26  ;;  %v3603_v20 = vsub.f32 %v8920_v36, %v3595_v3  ;;  %v8992_v18 = vadd.f32 %v3629_v57, %v3613_v55  ;;  %v3822_v36 = vmul.f32 %v8787_v5, %v11094_v52  ;;  %v11097_v3 = vld [vmem:[#allocation67_spill] sm:$0xff]  ;;  %v3712_v57 = vmul.f32 %v8798_v33, %v11098_v61  ;;  %v11101_v5 = vld [vmem:[#allocation73_spill] sm:$0xff] }
 0x2e5   : > { %v8952_v47 = vpop.permute.xlu0 %3963  ;;  %v8994_v30 = vadd.f32 %v3709_v54, %v3600_v27  ;;  %v3713_v53 = vmul.f32 %v8801_v1, %v11097_v3  ;;  %v11100_v27 = vld [vmem:[#allocation68_spill] sm:$0xff]  ;;  %v3715_v34 = vmul.f32 %v8806_v7, %v11101_v5  ;;  %v9018_v48 = vadd.f32 %v3711_v40, %v3602_v0 }
 0x2e6   : > { %11087 = vst [vmem:[#allocation37_spill] sm:$0xff] %v8952_v47  ;;  %v3823_v54 = vmul.f32 %v8791_v37, %v11100_v27  ;;  %v9020_v35 = vadd.f32 %v3710_v12, %v3601_v11  ;;  %v3714_v59 = vmul.f32 %v8804_v21, %v11103_v2  ;;  %v9026_v22 = vmul.f32 %v8810_v16, %v11094_v52  ;;  %v11109_v16 = vld [vmem:[#allocation75_spill] sm:$0xff] }
 0x2e7   : > { %v8966_v13 = vpop.permute.xlu1 %3970  ;;  %11102 = vst [vmem:[#allocation40_spill] sm:$0xff] %v9018_v48  ;;  %v3808_v0 = vmul.f32 %v8814_v56, %v11092_v10  ;;  %v3807_v11 = vmul.f32 %v8812_v9, %v11093_v42  ;;  %v9038_v40 = vadd.f32 %v3713_v53, %v3604_v62  ;;  %v9040_v12 = vadd.f32 %v3712_v57, %v3603_v20  ;;  %v11139_v48 = vld [vmem:[#allocation94_spill] sm:$0xff] }
 0x2e8   : > { %11088 = vst [vmem:[#allocation38_spill] sm:$0xff] %v8966_v13  ;;  %v3828_v52 = vmul.f32 %v8806_v7, %v11109_v16  ;;  %v9046_v44 = vmul.f32 %v8808_v8, %v11095_v24  ;;  %v3813_v42 = vadd.f32 %v3805_v41, %v3631_v31  ;;  %v9054_v62 = vadd.f32 %v3714_v59, %v3605_v15  ;;  %v11114_v59 = vld [vmem:[#allocation76_spill] sm:$0xff]  ;;  %v11117_v41 = vld [vmem:[#allocation77_spill] sm:$0xff] }
 0x2e9   : > { %v8977_v19 = vpop.permute.xlu0 %3977  ;;  %11107 = vst [vmem:[#allocation19_spill] sm:$0xff] %v9038_v40  ;;  %11108 = vst [vmem:[#allocation18_spill] sm:$0xff] %v9040_v12  ;;  %v9060_v7 = vmul.f32 %v8814_v56, %v11096_v29  ;;  %v3810_v8 = vmul.f32 %v8818_v28, %v11097_v3  ;;  %v4003_v31 = vmul.f32 %v8880_v50, %v11114_v59  ;;  %v11119_v15 = vld [vmem:[#allocation21_spill] sm:$0xff]  ;;  %v11129_v3 = vld [vmem:[#allocation30_spill] sm:$0xff] }
 0x2ea   : > { %11091 = vst [vmem:[#allocation39_spill] sm:$0xff] %v8977_v19  ;;  %v3825_v19 = vmul.f32 %v8798_v33, %v11106_v32  ;;  %v9050_v33 = vadd.f32 %v3715_v34, %v3606_v60  ;;  %v3816_v60 = vadd.f32 %v3808_v0, %v3634_v39  ;;  %v9076_v56 = vmul.f32 %v8818_v28, %v11105_v43  ;;  %v11118_v0 = vld [vmem:[#allocation43_spill] sm:$0xff] }
 0x2eb   : > { %v8990_v17 = vpop.permute.xlu1 %4045  ;;  %11112 = vst [vmem:[#allocation24_spill] sm:$0xff] %v9060_v7  ;;  %v3809_v57 = vmul.f32 %v8816_v58, %v11098_v61  ;;  %v3812_v39 = vmul.f32 %v8822_v38, %v11101_v5  ;;  %v3818_v20 = vadd.f32 %v3810_v8, %v3636_v46  ;;  %v3811_v29 = vmul.f32 %v11119_v15, %v11103_v2  ;;  %v11121_v5 = vld [vmem:[#allocation16_spill] sm:$0xff]  ;;  %v11122_v8 = vld [vmem:[#allocation81_spill] sm:$0xff] }
 0x2ec   : > { %11110 = vst [vmem:[#allocation15_spill] sm:$0xff] %v9050_v33  ;;  %11115 = vst [vmem:[#allocation29_spill] sm:$0xff] %v9076_v56  ;;  %v11123_v2 = vld [vmem:[#allocation25_spill] sm:$0xff]  ;;  %v11130_v33 = vld [vmem:[#allocation82_spill] sm:$0xff] }
 0x2ed   : > { %v9008_v55 = vpop.permute.xlu0 %4052  ;;  %v3817_v28 = vadd.f32 %v3809_v57, %v8980_v4  ;;  %v3820_v46 = vadd.f32 %v3812_v39, %v8983_v45  ;;  %v3819_v45 = vadd.f32 %v3811_v29, %v8992_v18  ;;  %v3834_v39 = vadd.f32 %v3826_v14, %v3818_v20  ;;  %v11133_v56 = vld [vmem:[#allocation31_spill] sm:$0xff] }
 0x2ee   : > { %11099 = vst [vmem:[#allocation20_spill] sm:$0xff] %v9008_v55  ;;  %v3814_v55 = vadd.f32 %v3806_v25, %v3632_v63  ;;  %v3815_v63 = vadd.f32 %v3807_v11, %v3633_v51  ;;  %v3829_v51 = vadd.f32 %v3821_v23, %v3813_v42  ;;  %v4004_v11 = vmul.f32 %v11118_v0, %v11117_v41  ;;  %v11135_v14 = vld [vmem:[#allocation83_spill] sm:$0xff] }
 0x2ef   : > { %v9028_v37 = vpop.permute.xlu1 %4059  ;;  %v3832_v23 = vadd.f32 %v3824_v6, %v3816_v60  ;;  %v11125_v6 = vld [vmem:[#allocation78_spill] sm:$0xff]  ;;  %v3833_v40 = vadd.f32 %v3825_v19, %v3817_v28  ;;  %v3836_v18 = vadd.f32 %v3828_v52, %v3820_v46  ;;  %v11141_v28 = vld [vmem:[#allocation88_spill] sm:$0xff] }
 0x2f0   : > { %11104 = vst [vmem:[#allocation41_spill] sm:$0xff] %v9028_v37  ;;  %v11111_v37 = vld [vmem:[#allocation74_spill] sm:$0xff]  ;;  %v3830_v25 = vadd.f32 %v3822_v36, %v3814_v55  ;;  %v4011_v42 = vadd.f32 %v4003_v31, %v3829_v51  ;;  %v3831_v36 = vadd.f32 %v3823_v54, %v3815_v63  ;;  %v9112_v31 = vmul.f32 %v8822_v38, %v11109_v16  ;;  %v11128_v55 = vld [vmem:[#allocation79_spill] sm:$0xff] }
 0x2f1   : > { %v9048_v1 = vpop.permute.xlu0 %4066  ;;  %v3827_v10 = vmul.f32 %v8804_v21, %v11111_v37  ;;  %v9068_v21 = vmul.f32 %v8812_v9, %v11100_v27  ;;  %v9086_v9 = vmul.f32 %v8816_v58, %v11106_v32  ;;  %v11120_v27 = vld [vmem:[#allocation80_spill] sm:$0xff]  ;;  %v4006_v32 = vmul.f32 %v11123_v2, %v11122_v8  ;;  %v11126_v54 = vld [vmem:[#allocation22_spill] sm:$0xff] }
 0x2f2   : > { %v4005_v61 = vmul.f32 %v11121_v5, %v11120_v27  ;;  %11124 = vst [vmem:[#allocation28_spill] sm:$0xff] %v9112_v31  ;;  %v4019_v60 = vmul.f32 %v11126_v54, %v11125_v6  ;;  %v4012_v63 = vadd.f32 %v4004_v11, %v3830_v25  ;;  %v9118_v4 = vmul.f32 %v11119_v15, %v11111_v37  ;;  %v11131_v31 = vld [vmem:[#allocation92_spill] sm:$0xff] }
 0x2f3   : > { %v9064_v53 = vpop.permute.xlu1 %4073  ;;  %11113 = vst [vmem:[#allocation26_spill] sm:$0xff] %v9068_v21  ;;  %11116 = vst [vmem:[#allocation27_spill] sm:$0xff] %v9086_v9  ;;  %v4020_v58 = vmul.f32 %v11129_v3, %v11128_v55  ;;  %v4007_v38 = vmul.f32 %v8938_v26, %v11130_v33  ;;  %v11132_v11 = vld [vmem:[#allocation84_spill] sm:$0xff]  ;;  %v4014_v37 = vadd.f32 %v4006_v32, %v3832_v23  ;;  %v11136_v9 = vld [vmem:[#allocation93_spill] sm:$0xff] }
 0x2f4   : > { %11127 = vst [vmem:[#allocation99_spill] sm:$0xff] %v9118_v4  ;;  %v4013_v57 = vadd.f32 %v4005_v61, %v3831_v36  ;;  %v4027_v16 = vadd.f32 %v4019_v60, %v4011_v42  ;;  %v4021_v15 = vmul.f32 %v11133_v56, %v11132_v11  ;;  %v4008_v61 = vmul.f32 %v8952_v47, %v11135_v14  ;;  %v11137_v42 = vld [vmem:[#allocation85_spill] sm:$0xff]  ;;  %v11138_v60 = vld [vmem:[#allocation32_spill] sm:$0xff]  ;;  %v11145_v14 = vld [vmem:[#allocation95_spill] sm:$0xff] }
 0x2f5   : > { %v9082_v34 = vpop.permute.xlu0 %4080  ;;  %v4028_v36 = vadd.f32 %v4020_v58, %v4012_v63  ;;  %v4022_v26 = vmul.f32 %v11138_v60, %v11137_v42  ;;  %v3835_v7 = vadd.f32 %v3827_v10, %v3819_v45  ;;  %v4217_v2 = vmul.f32 %v8990_v17, %v11139_v48  ;;  %v11143_v63 = vld [vmem:[#allocation86_spill] sm:$0xff]  ;;  %v11148_v33 = vld [vmem:[#allocation89_spill] sm:$0xff] }
 0x2f6   : > { %v4029_v32 = vadd.f32 %v4021_v15, %v4013_v57  ;;  %v4015_v52 = vadd.f32 %v4007_v38, %v3833_v40  ;;  %v4009_v23 = vmul.f32 %v8966_v13, %v11141_v28  ;;  %v4016_v15 = vadd.f32 %v4008_v61, %v3834_v39  ;;  %v11149_v40 = vld [vmem:[#allocation39_spill] sm:$0xff]  ;;  %v11150_v13 = vld [vmem:[#allocation97_spill] sm:$0xff] }
 0x2f7   : > { %v9096_v43 = vpop.permute.xlu1 %4087  ;;  %v4030_v45 = vadd.f32 %v4022_v26, %v4014_v37  ;;  %v4010_v38 = vmul.f32 %v11149_v40, %v11148_v33  ;;  %v11151_v28 = vld [vmem:[#allocation87_spill] sm:$0xff] }
 0x2f8   : > { %v4017_v39 = vadd.f32 %v4009_v23, %v3835_v7  ;;  %v11161_v40 = vld [vmem:[#allocation103_spill] sm:$0xff] }
 0x2f9   : > { %v9106_v24 = vpop.permute.xlu0 %4094  ;;  %v4221_v4 = vmul.f32 %v9064_v53, %v11161_v40 }
 0x2fb   : > { %v9121_v51 = vpop.permute.xlu1 %4126 }
 0x2fc   : > { %v4201_v25 = vmul.f32 %v9121_v51, %v11131_v31 }
 0x2fd   : > { %v9131_v29 = vpop.permute.xlu0 %4133 }
 0x2fe   : > { %11134 = vst [vmem:[#allocation77_spill] sm:$0xff] %v9131_v29  ;;  %v4209_v20 = vadd.f32 %v4201_v25, %v4027_v16  ;;  %v4202_v12 = vmul.f32 %v9131_v29, %v11136_v9  ;;  %v11142_v16 = vld [vmem:[#allocation96_spill] sm:$0xff]  ;;  %v11144_v25 = vld [vmem:[#allocation34_spill] sm:$0xff] }
 0x2ff   : > { %v9141_v19 = vpop.permute.xlu1 %4140  ;;  %v4023_v47 = vmul.f32 %v11144_v25, %v11143_v63  ;;  %v11146_v29 = vld [vmem:[#allocation20_spill] sm:$0xff] }
 0x300   : > { %11140 = vst [vmem:[#allocation43_spill] sm:$0xff] %v9141_v19  ;;  %v4210_v46 = vadd.f32 %v4202_v12, %v4028_v36  ;;  %v4203_v58 = vmul.f32 %v9141_v19, %v11142_v16  ;;  %v4218_v10 = vmul.f32 %v11146_v29, %v11145_v14  ;;  %v4225_v57 = vadd.f32 %v4217_v2, %v4209_v20  ;;  %v11152_v19 = vld [vmem:[#allocation33_spill] sm:$0xff] }
 0x301   : > { %v9151_v42 = vpop.permute.xlu0 %4147  ;;  %v3906_v36 = vmul.f32 %v11126_v54, %v11114_v59  ;;  %v4024_v63 = vmul.f32 %v11152_v19, %v11151_v28  ;;  %v11153_v16 = vld [vmem:[#allocation101_spill] sm:$0xff]  ;;  %v4031_v20 = vadd.f32 %v4023_v47, %v4015_v52  ;;  %v11156_v54 = vld [vmem:[#allocation90_spill] sm:$0xff]  ;;  %v11157_v59 = vld [vmem:[#allocation35_spill] sm:$0xff] }
 0x302   : > { %11147 = vst [vmem:[#allocation21_spill] sm:$0xff] %v9151_v42  ;;  %v4211_v21 = vadd.f32 %v4203_v58, %v4029_v32  ;;  %v4204_v12 = vmul.f32 %v9151_v42, %v11150_v13  ;;  %v11154_v14 = vld [vmem:[#allocation41_spill] sm:$0xff]  ;;  %4242 = vperm.xlu1 %7091, %v4225_v57   ;;  %v4226_v2 = vadd.f32 %v4218_v10, %v4210_v46  ;;  %v11155_v32 = vld [vmem:[#allocation98_spill] sm:$0xff]  ;;  %v11159_v47 = vld [vmem:[#allocation100_spill] sm:$0xff] }
 0x303   : > { %v4219_v26 = vmul.f32 %v11154_v14, %v11153_v16  ;;  %v9163_v37 = vpop.permute.xlu1 %4154  ;;  %v4025_v33 = vmul.f32 %v11157_v59, %v11156_v54  ;;  %v11158_v42 = vld [vmem:[#allocation102_spill] sm:$0xff]  ;;  %v4018_v46 = vadd.f32 %v4010_v38, %v3836_v18  ;;  %v4032_v23 = vadd.f32 %v4024_v63, %v4016_v15  ;;  %v11162_v18 = vld [vmem:[#allocation91_spill] sm:$0xff] }
 0x304   : > { %v4212_v61 = vadd.f32 %v4204_v12, %v4030_v45  ;;  %v4205_v58 = vmul.f32 %v9163_v37, %v11155_v32  ;;  %v4220_v28 = vmul.f32 %v9048_v1, %v11158_v42  ;;  %4245 = vperm.xlu0 %7090, %v4226_v2   ;;  %v3907_v10 = vmul.f32 %v11129_v3, %v11117_v41  ;;  %v11163_v38 = vld [vmem:[#allocation42_spill] sm:$0xff] }
 0x305   : > { %v9173_v57 = vpop.permute.xlu0 %4161  ;;  %v4227_v16 = vadd.f32 %v4219_v26, %v4211_v21  ;;  %v11160_v45 = vsub.f32 %v9000_v49, %v9046_v44  ;;  %v4026_v63 = vmul.f32 %v11163_v38, %v11162_v18  ;;  %v4033_v26 = vadd.f32 %v4025_v33, %v4017_v39  ;;  %v11165_v49 = vld [vmem:[#allocation104_spill] sm:$0xff] }
 0x306   : > { %v4213_v7 = vadd.f32 %v4205_v58, %v4031_v20  ;;  %v4206_v52 = vmul.f32 %v9173_v57, %v11159_v47  ;;  %v4228_v21 = vadd.f32 %v4220_v28, %v4212_v61  ;;  %v11164_v20 = vld [vmem:[#allocation105_spill] sm:$0xff]  ;;  %v3908_v3 = vmul.f32 %v11133_v56, %v11120_v27  ;;  %v11166_v61 = vld [vmem:[#allocation23_spill] sm:$0xff] }
 0x307   : > { %v3914_v12 = vadd.f32 %v3906_v36, %v11160_v45  ;;  %4248 = vperm.xlu1 %7091, %v4227_v16   ;;  %v9184_v2 = vpop.permute.xlu1 %4168  ;;  %v3987_v44 = vmul.f32 %v8880_v50, %v11125_v6  ;;  %v4222_v16 = vmul.f32 %v9082_v34, %v11165_v49  ;;  %v4034_v39 = vadd.f32 %v4026_v63, %v4018_v46 }
 0x308   : > { %v4214_v15 = vadd.f32 %v4206_v52, %v4032_v23  ;;  %v4207_v58 = vmul.f32 %v9184_v2, %v11164_v20  ;;  %4251 = vperm.xlu0 %7090, %v4228_v21   ;;  %v4229_v28 = vadd.f32 %v4221_v4, %v4213_v7  ;;  %v4223_v23 = vmul.f32 %v9096_v43, %v11166_v61  ;;  %v11167_v52 = vld [vmem:[#allocation106_spill] sm:$0xff]  ;;  %v11168_v7 = vld [vmem:[#allocation17_spill] sm:$0xff] }
 0x309   : > { %v9196_v36 = vpop.permute.xlu0 %4175  ;;  %v3909_v56 = vmul.f32 %v11138_v60, %v11122_v8  ;;  %v3988_v50 = vmul.f32 %v11118_v0, %v11128_v55  ;;  %v4104_v21 = vmul.f32 %v8990_v17, %v11131_v31  ;;  %v3989_v4 = vmul.f32 %v11121_v5, %v11132_v11  ;;  %v11179_v11 = vld [vmem:[#allocation24_spill] sm:$0xff] }
 0x30a   : > { %v4215_v33 = vadd.f32 %v4207_v58, %v4033_v26  ;;  %v4208_v45 = vmul.f32 %v9196_v36, %v11167_v52  ;;  %v4230_v27 = vadd.f32 %v4222_v16, %v4214_v15  ;;  %v4224_v46 = vmul.f32 %v9106_v24, %v11168_v7  ;;  %v11170_v15 = vld [vmem:[#allocation26_spill] sm:$0xff] }
 0x30b   : > { %4254 = vperm.xlu1 %7091, %v4229_v28   ;;  %v11169_v58 = vsub.f32 %v8994_v30, %v9026_v22  ;;  %v3995_v8 = vsub.f32 %v3914_v12, %v3987_v44  ;;  %v4105_v0 = vmul.f32 %v11146_v29, %v11136_v9  ;;  %v4185_v17 = vmul.f32 %v9121_v51, %v11139_v48  ;;  %v11172_v28 = vld [vmem:[#allocation82_spill] sm:$0xff]  ;;  %v11175_v12 = vld [vmem:[#allocation96_spill] sm:$0xff]  ;;  %v11176_v44 = vld [vmem:[#allocation95_spill] sm:$0xff] }
 0x30c   : > { %v4216_v63 = vadd.f32 %v4208_v45, %v4034_v39  ;;  %v4231_v26 = vadd.f32 %v4223_v23, %v4215_v33  ;;  %4257 = vperm.xlu0 %7090, %v4230_v27   ;;  %v11171_v5 = vsub.f32 %v9020_v35, %v11170_v15  ;;  %v3910_v39 = vmul.f32 %v11144_v25, %v11172_v28  ;;  %v11173_v23 = vld [vmem:[#allocation85_spill] sm:$0xff]  ;;  %v11178_v27 = vld [vmem:[#allocation40_spill] sm:$0xff]  ;;  %v11181_v15 = vld [vmem:[#allocation83_spill] sm:$0xff] }
 0x30d   : > { %v3915_v60 = vadd.f32 %v3907_v10, %v11169_v58  ;;  %v11174_v33 = vld [vmem:[#allocation25_spill] sm:$0xff]  ;;  %v4112_v10 = vadd.f32 %v4104_v21, %v3995_v8  ;;  %v4106_v29 = vmul.f32 %v11154_v14, %v11175_v12  ;;  %v11180_v35 = vsub.f32 %v11178_v27, %v11179_v11  ;;  %v11182_v28 = vld [vmem:[#allocation86_spill] sm:$0xff]  ;;  %v11189_v27 = vld [vmem:[#allocation88_spill] sm:$0xff] }
 0x30e   : > { %v3916_v16 = vadd.f32 %v3908_v3, %v11171_v5  ;;  %v3990_v45 = vmul.f32 %v11174_v33, %v11173_v23  ;;  %v4232_v22 = vadd.f32 %v4224_v46, %v4216_v63  ;;  %v11177_v58 = vld [vmem:[#allocation77_spill] sm:$0xff]  ;;  %v3911_v25 = vmul.f32 %v11152_v19, %v11181_v15  ;;  %v11183_v33 = vld [vmem:[#allocation36_spill] sm:$0xff]  ;;  %v11185_v63 = vld [vmem:[#allocation43_spill] sm:$0xff] }
 0x30f   : > { %v3996_v30 = vsub.f32 %v3915_v60, %v3988_v50  ;;  %v4186_v51 = vmul.f32 %v11177_v58, %v11176_v44  ;;  %4260 = vperm.xlu1 %7091, %v4231_v26   ;;  %v3917_v3 = vadd.f32 %v3909_v56, %v11180_v35  ;;  %v3991_v46 = vmul.f32 %v11183_v33, %v11182_v28  ;;  %v11184_v21 = vld [vmem:[#allocation101_spill] sm:$0xff]  ;;  %v11186_v26 = vld [vmem:[#allocation18_spill] sm:$0xff]  ;;  %v11187_v58 = vld [vmem:[#allocation27_spill] sm:$0xff] }
 0x310   : > { %v3997_v5 = vsub.f32 %v3916_v16, %v3989_v4  ;;  %v4107_v8 = vmul.f32 %v9048_v1, %v11150_v13  ;;  %v4193_v14 = vsub.f32 %v4112_v10, %v4185_v17  ;;  %v4187_v60 = vmul.f32 %v11185_v63, %v11184_v21  ;;  %4263 = vperm.xlu0 %7090, %v4232_v22   ;;  %v11190_v16 = vld [vmem:[#allocation87_spill] sm:$0xff]  ;;  %v11191_v35 = vld [vmem:[#allocation37_spill] sm:$0xff] }
 0x311   : > { %v4113_v50 = vadd.f32 %v4105_v0, %v3996_v30  ;;  %v11188_v11 = vsub.f32 %v11186_v26, %v11187_v58  ;;  %v3912_v19 = vmul.f32 %v11157_v59, %v11189_v27  ;;  %v3998_v4 = vsub.f32 %v3917_v3, %v3990_v45  ;;  %v11192_v30 = vld [vmem:[#allocation21_spill] sm:$0xff]  ;;  %v11193_v22 = vld [vmem:[#allocation19_spill] sm:$0xff]  ;;  %v11197_v3 = vld [vmem:[#allocation38_spill] sm:$0xff] }
 0x312   : > { %v3992_v33 = vmul.f32 %v11191_v35, %v11190_v16  ;;  %v4114_v0 = vadd.f32 %v4106_v29, %v3997_v5  ;;  %v4108_v1 = vmul.f32 %v9064_v53, %v11155_v32  ;;  %v4188_v10 = vmul.f32 %v11192_v30, %v11158_v42  ;;  %v11194_v63 = vld [vmem:[#allocation29_spill] sm:$0xff] }
 0x313   : > { %v3918_v56 = vadd.f32 %v3910_v39, %v11188_v11  ;;  %v4194_v17 = vsub.f32 %v4113_v50, %v4186_v51  ;;  %4385 = vperm.xlu1 %7091, %v4193_v14   ;;  %v11195_v26 = vsub.f32 %v11193_v22, %v11194_v63  ;;  %v11196_v58 = vld [vmem:[#allocation89_spill] sm:$0xff]  ;;  %v3993_v11 = vmul.f32 %v11197_v3, %v11156_v54  ;;  %v11198_v50 = vld [vmem:[#allocation28_spill] sm:$0xff]  ;;  %v11199_v14 = vld [vmem:[#allocation15_spill] sm:$0xff] }
 0x314   : > { %v3913_v59 = vmul.f32 %v11163_v38, %v11196_v58  ;;  %v4115_v29 = vadd.f32 %v4107_v8, %v3998_v4  ;;  %v4109_v53 = vmul.f32 %v9082_v34, %v11159_v47  ;;  %v4195_v51 = vsub.f32 %v4114_v0, %v4187_v60  ;;  %v11204_v3 = vld [vmem:[#allocation7_spill] sm:$0xff]  ;;  %v11267_v21 = vld [vmem:[#allocation61_spill] sm:$0xff] }
 0x315   : > { %v3919_v39 = vadd.f32 %v3911_v25, %v11195_v26  ;;  %v3999_v45 = vsub.f32 %v3918_v56, %v3991_v46  ;;  %v4189_v5 = vmul.f32 %v9163_v37, %v11161_v40  ;;  %4388 = vperm.xlu0 %7090, %v4194_v17   ;;  %v3804_v35 = vsub.f32 %v11199_v14, %v11198_v50  ;;  %v11200_v25 = vld [vmem:[#allocation99_spill] sm:$0xff]  ;;  %v11208_v50 = vld [vmem:[#allocation12_spill] sm:$0xff] }
 0x316   : > { %v11201_v30 = vsub.f32 %v9054_v62, %v11200_v25  ;;  %v11202_v56 = vld [vmem:[#allocation39_spill] sm:$0xff]  ;;  %v4110_v34 = vmul.f32 %v9096_v43, %v11164_v20  ;;  %v4196_v60 = vsub.f32 %v4115_v29, %v4188_v10  ;;  %v4190_v37 = vmul.f32 %v9173_v57, %v11165_v49  ;;  %v6900_v57 = vld [vmem:[%s7336_s24 + $0x10] sm:$0xff] }
 0x317   : > { %v4000_v46 = vsub.f32 %v3919_v39, %v3992_v33  ;;  %v3994_v22 = vmul.f32 %v11202_v56, %v11162_v18  ;;  %v4116_v8 = vadd.f32 %v4108_v1, %v3999_v45  ;;  %4391 = vperm.xlu1 %7091, %v4195_v51   ;;  %v3921_v4 = vadd.f32 %v3913_v59, %v3804_v35  ;;  %v11209_v35 = vld [vmem:[#allocation13_spill] sm:$0xff] }
 0x318   : > { %v3920_v38 = vadd.f32 %v3912_v19, %v11201_v30  ;;  %v4111_v62 = vmul.f32 %v9106_v24, %v11167_v52  ;;  %v4191_v33 = vmul.f32 %v9184_v2, %v11166_v61  ;;  %v4192_v10 = vmul.f32 %v9196_v36, %v11168_v7  ;;  %v11203_v24 = vld [vmem:[#allocation9_spill] sm:$0xff]  ;;  %v11207_v36 = vld [vmem:[#allocation11_spill] sm:$0xff]  ;;  %v6901_v30 = vld [vmem:[%s7403_s25 + $0x10] sm:$0xff] }
 0x319   : > { %v4117_v17 = vadd.f32 %v4109_v53, %v4000_v46  ;;  %v4197_v19 = vsub.f32 %v4116_v8, %v4189_v5  ;;  %4394 = vperm.xlu0 %7090, %v4196_v60   ;;  %v4002_v1 = vsub.f32 %v3921_v4, %v3994_v22  ;;  %v4529_v45 = vrot.slane %v6900_v57, %v11203_v24  ;;  %v11206_v53 = vld [vmem:[#allocation10_spill] sm:$0xff] }
 0x31a   : > { %v4001_v0 = vsub.f32 %v3920_v38, %v3993_v11  ;;  %v4536_v2 = vrot.slane %v6900_v57, %v11204_v3  ;;  %v11205_v11 = vld [vmem:[#allocation8_spill] sm:$0xff]  ;;  %v4550_v51 = vrot.slane %v6900_v57, %v11206_v53  ;;  %v4557_v5 = vrot.slane %v6900_v57, %v11207_v36  ;;  %v11210_v38 = vld [vmem:[#allocation14_spill] sm:$0xff] }
 0x31b   : > { %v4198_v43 = vsub.f32 %v4117_v17, %v4190_v37  ;;  %4397 = vperm.xlu1 %7091, %v4197_v19   ;;  %v4119_v26 = vadd.f32 %v4111_v62, %v4002_v1  ;;  %v4543_v29 = vrot.slane %v6900_v57, %v11205_v11  ;;  %v4564_v14 = vrot.slane %v6900_v57, %v11208_v50 }
 0x31c   : > { %v4118_v63 = vadd.f32 %v4110_v34, %v4001_v0  ;;  %v4571_v25 = vrot.slane %v6900_v57, %v11209_v35  ;;  %v4578_v46 = vrot.slane %v6900_v57, %v11210_v38  ;;  %v4610_v56 = vrot.slane %v6901_v30, %v11203_v24  ;;  %v9298_v0 = vld [vmem:[%s7336_s24 + $0x30] sm:$0xff] }
 0x31d   : > { %4400 = vperm.xlu0 %7090, %v4198_v43   ;;  %v4200_v59 = vsub.f32 %v4119_v26, %v4192_v10  ;;  %v4617_v22 = vrot.slane %v6901_v30, %v11204_v3  ;;  %v4624_v8 = vrot.slane %v6901_v30, %v11205_v11  ;;  %v4631_v34 = vrot.slane %v6901_v30, %v11206_v53 }
 0x31e   : > { %v4199_v39 = vsub.f32 %v4118_v63, %v4191_v33  ;;  %v4638_v60 = vrot.slane %v6901_v30, %v11207_v36  ;;  %v4645_v37 = vrot.slane %v6901_v30, %v11208_v50  ;;  %v4652_v4 = vrot.slane %v6901_v30, %v11209_v35  ;;  %v9310_v63 = vld [vmem:[%s7403_s25 + $0x30] sm:$0xff] }
 0x31f   : > { %v4659_v17 = vrot.slane %v6901_v30, %v11210_v38  ;;  %v4727_v62 = vrot.slane %v9298_v0, %v11203_v24  ;;  %v4734_v19 = vrot.slane %v9298_v0, %v11204_v3  ;;  %v4741_v33 = vrot.slane %v9298_v0, %v11205_v11 }
 0x320   : > { %4403 = vperm.xlu1 %7091, %v4199_v39   ;;  %v4748_v1 = vrot.slane %v9298_v0, %v11206_v53  ;;  %v4755_v43 = vrot.slane %v9298_v0, %v11207_v36  ;;  %v4808_v10 = vrot.slane %v9310_v63, %v11203_v24  ;;  %v4815_v57 = vrot.slane %v9310_v63, %v11204_v3  ;;  %v9321_v39 = vld [vmem:[%s7336_s24 + $0x18] sm:$0xff] }
 0x321   : > { %4406 = vperm.xlu0 %7090, %v4200_v59   ;;  %v4822_v26 = vrot.slane %v9310_v63, %v11205_v11  ;;  %v4829_v59 = vrot.slane %v9310_v63, %v11206_v53 }
 0x324   : > { %4531 = vbcast.lane.b32.xlu1 %v4529_v45, 256  ;;  %v5609_v45 = vrot.slane %v9321_v39, %v11203_v24 }
 0x325   : > { %4538 = vbcast.lane.b32.xlu0 %v4536_v2, 256  ;;  %v9328_v2 = vld [vmem:[%s7403_s25 + $0x18] sm:$0xff] }
 0x326   : > { %v5704_v30 = vrot.slane %v9328_v2, %v11205_v11 }
 0x328   : > { %4545 = vbcast.lane.b32.xlu1 %v4543_v29, 256  ;;  %v5616_v29 = vrot.slane %v9321_v39, %v11204_v3 }
 0x329   : > { %4552 = vbcast.lane.b32.xlu0 %v4550_v51, 256  ;;  %v5690_v51 = vrot.slane %v9328_v2, %v11203_v24 }
 0x32c   : > { %4559 = vbcast.lane.b32.xlu1 %v4557_v5, 256  ;;  %v5697_v5 = vrot.slane %v9328_v2, %v11204_v3 }
 0x32d   : > { %4566 = vbcast.lane.b32.xlu0 %v4564_v14, 256  ;;  %v4836_v14 = vrot.slane %v9310_v63, %v11207_v36 }
 0x330   : > { %4573 = vbcast.lane.b32.xlu1 %v4571_v25, 256  ;;  %v5623_v25 = vrot.slane %v9321_v39, %v11205_v11 }
 0x331   : > { %4580 = vbcast.lane.b32.xlu0 %v4578_v46, 256  ;;  %v4762_v46 = vrot.slane %v9298_v0, %v11208_v50 }
 0x334   : > { %4612 = vbcast.lane.b32.xlu1 %v4610_v56, 256  ;;  %v9345_v56 = vld [vmem:[%s7336_s24 + $0x50] sm:$0xff] }
 0x335   : > { %4619 = vbcast.lane.b32.xlu0 %v4617_v22, 256  ;;  %v4843_v22 = vrot.slane %v9310_v63, %v11208_v50 }
 0x338   : > { %4626 = vbcast.lane.b32.xlu1 %v4624_v8, 256  ;;  %v4925_v8 = vrot.slane %v9345_v56, %v11203_v24 }
 0x339   : > { %4633 = vbcast.lane.b32.xlu0 %v4631_v34, 256  ;;  %v9352_v34 = vld [vmem:[%s7403_s25 + $0x50] sm:$0xff] }
 0x33c   : > { %4640 = vbcast.lane.b32.xlu1 %v4638_v60, 256  ;;  %v4932_v60 = vrot.slane %v9345_v56, %v11204_v3 }
 0x33d   : > { %4647 = vbcast.lane.b32.xlu0 %v4645_v37, 256  ;;  %v5006_v37 = vrot.slane %v9352_v34, %v11203_v24 }
 0x340   : > { %4654 = vbcast.lane.b32.xlu1 %v4652_v4, 256  ;;  %v5013_v4 = vrot.slane %v9352_v34, %v11204_v3 }
 0x341   : > { %4661 = vbcast.lane.b32.xlu0 %v4659_v17, 256  ;;  %v5630_v17 = vrot.slane %v9321_v39, %v11206_v53 }
 0x344   : > { %4729 = vbcast.lane.b32.xlu1 %v4727_v62, 256  ;;  %v9363_v62 = vld [vmem:[%s7336_s24 + $0x38] sm:$0xff] }
 0x345   : > { %4736 = vbcast.lane.b32.xlu0 %v4734_v19, 256  ;;  %v5711_v19 = vrot.slane %v9328_v2, %v11206_v53 }
 0x348   : > { %4743 = vbcast.lane.b32.xlu1 %v4741_v33, 256  ;;  %v5807_v33 = vrot.slane %v9363_v62, %v11203_v24 }
 0x349   : > { %4750 = vbcast.lane.b32.xlu0 %v4748_v1, 256  ;;  %v9370_v1 = vld [vmem:[%s7403_s25 + $0x38] sm:$0xff] }
 0x34c   : > { %4757 = vbcast.lane.b32.xlu1 %v4755_v43, 256  ;;  %v5814_v43 = vrot.slane %v9363_v62, %v11204_v3 }
 0x34d   : > { %4810 = vbcast.lane.b32.xlu0 %v4808_v10, 256  ;;  %v5888_v10 = vrot.slane %v9370_v1, %v11203_v24 }
 0x350   : > { %4817 = vbcast.lane.b32.xlu1 %v4815_v57, 256  ;;  %v5895_v57 = vrot.slane %v9370_v1, %v11204_v3 }
 0x351   : > { %4824 = vbcast.lane.b32.xlu0 %v4822_v26, 256  ;;  %v4769_v26 = vrot.slane %v9298_v0, %v11209_v35 }
 0x354   : > { %4831 = vbcast.lane.b32.xlu1 %v4829_v59, 256  ;;  %v4850_v59 = vrot.slane %v9310_v63, %v11209_v35 }
 0x355   : > { %5611 = vbcast.lane.b32.xlu0 %v5609_v45, 256  ;;  %v4939_v45 = vrot.slane %v9345_v56, %v11205_v11 }
 0x358   : > { %5618 = vbcast.lane.b32.xlu1 %v5616_v29, 256  ;;  %v5020_v29 = vrot.slane %v9352_v34, %v11205_v11 }
 0x359   : > { %5692 = vbcast.lane.b32.xlu0 %v5690_v51, 256 }
 0x35c   : > { %5699 = vbcast.lane.b32.xlu1 %v5697_v5, 256  ;;  %v5637_v5 = vrot.slane %v9321_v39, %v11207_v36 }
 0x35d   : > { %4838 = vbcast.lane.b32.xlu0 %v4836_v14, 256 }
 0x360   : > { %5625 = vbcast.lane.b32.xlu1 %v5623_v25, 256  ;;  %v11211_v25 = vld [vmem:[#allocation6_spill] sm:$0xff] }
 0x361   : > { %5706 = vbcast.lane.b32.xlu0 %v5704_v30, 256 }
 0x364   : > { %4764 = vbcast.lane.b32.xlu1 %v4762_v46, 256 }
 0x365   : > { %4845 = vbcast.lane.b32.xlu0 %v4843_v22, 256  ;;  %v5718_v22 = vrot.slane %v9328_v2, %v11207_v36 }
 0x368   : > { %4927 = vbcast.lane.b32.xlu1 %v4925_v8, 256 }
 0x369   : > { %4934 = vbcast.lane.b32.xlu0 %v4932_v60, 256 }
 0x36c   : > { %5008 = vbcast.lane.b32.xlu1 %v5006_v37, 256 }
 0x36d   : > { %5015 = vbcast.lane.b32.xlu0 %v5013_v4, 256  ;;  %v5821_v4 = vrot.slane %v9363_v62, %v11205_v11 }
 0x370   : > { %5632 = vbcast.lane.b32.xlu1 %v5630_v17, 256 }
 0x371   : > { %5713 = vbcast.lane.b32.xlu0 %v5711_v19, 256 }
 0x374   : > { %5809 = vbcast.lane.b32.xlu1 %v5807_v33, 256 }
 0x375   : > { %5816 = vbcast.lane.b32.xlu0 %v5814_v43, 256  ;;  %v5902_v43 = vrot.slane %v9370_v1, %v11205_v11 }
 0x378   : > { %5890 = vbcast.lane.b32.xlu1 %v5888_v10, 256 }
 0x379   : > { %5897 = vbcast.lane.b32.xlu0 %v5895_v57, 256 }
 0x37c   : > { %4771 = vbcast.lane.b32.xlu1 %v4769_v26, 256 }
 0x37d   : > { %4852 = vbcast.lane.b32.xlu0 %v4850_v59, 256  ;;  %v4243_v51 = vpop.permute.xlu1 %4242  ;;  %v4776_v59 = vrot.slane %v9298_v0, %v11210_v38 }
 0x37e   : > { %v4268_v30 = vrot.slane %v4243_v51, %v11211_v25 }
 0x37f   : > { %v4246_v14 = vpop.permute.xlu0 %4245 }
 0x380   : > { %4941 = vbcast.lane.b32.xlu1 %v4939_v45, 256  ;;  %v4272_v46 = vrot.slane %v4246_v14, %v11211_v25 }
 0x381   : > { %5022 = vbcast.lane.b32.xlu0 %v5020_v29, 256 }
 0x382   : > { %v4249_v8 = vpop.permute.xlu1 %4248  ;;  %v4297_v60 = vsel %vm3211_vm3, %v4272_v46, %v4268_v30 }
 0x383   : > { %v4276_v37 = vrot.slane %v4249_v8, %v11211_v25  ;;  %v4252_v17 = vpop.permute.xlu0 %4251 }
 0x384   : > { %5639 = vbcast.lane.b32.xlu1 %v5637_v5, 256  ;;  %v4280_v33 = vrot.slane %v4252_v17, %v11211_v25  ;;  %v4857_v5 = vrot.slane %v9310_v63, %v11210_v38 }
 0x385   : > { %v4298_v19 = vsel %vm3213_vm4, %v4276_v37, %v4297_v60  ;;  %5720 = vbcast.lane.b32.xlu0 %v5718_v22, 256  ;;  %v4946_v22 = vrot.slane %v9345_v56, %v11206_v53 }
 0x386   : > { %v4255_v10 = vpop.permute.xlu1 %4254  ;;  %v4299_v57 = vsel %vm3215_vm5, %v4280_v33, %v4298_v19  ;;  %v5644_v33 = vrot.slane %v9321_v39, %v11208_v50 }
 0x387   : > { %v4284_v26 = vrot.slane %v4255_v10, %v11211_v25  ;;  %v4258_v45 = vpop.permute.xlu0 %4257 }
 0x388   : > { %5823 = vbcast.lane.b32.xlu1 %v5821_v4, 256  ;;  %v4288_v51 = vrot.slane %v4258_v45, %v11211_v25  ;;  %v5027_v4 = vrot.slane %v9352_v34, %v11206_v53  ;;  %v7093_v45 = vld [vmem:[%s10481_s8] sm:$0xff] }
 0x389   : > { %v4300_v29 = vsel %vm3217_vm6, %v4284_v26, %v4299_v57  ;;  %5904 = vbcast.lane.b32.xlu0 %v5902_v43, 256 }
 0x38a   : > { %v4261_v14 = vpop.permute.xlu1 %4260  ;;  %v4301_v30 = vsel %vm3219_vm7, %v4288_v51, %v4300_v29 }
 0x38b   : > { %v4292_v46 = vrot.slane %v4261_v14, %v11211_v25  ;;  %v4264_v8 = vpop.permute.xlu0 %4263 }
 0x38c   : > { %4778 = vbcast.lane.b32.xlu1 %v4776_v59, 256  ;;  %v4296_v60 = vrot.slane %v4264_v8, %v11211_v25  ;;  %v5725_v59 = vrot.slane %v9328_v2, %v11208_v50 }
 0x38d   : > { %v4302_v0 = vsel %vm3221_vm8, %v4292_v46, %v4301_v30  ;;  %v3293_v37 = vpop.f32.mrf.mxu0  ;;  %4859 = vbcast.lane.b32.xlu0 %v4857_v5, 256  ;;  %v11212_v5 = vmov 0.0  }
 0x38e   : > { %v4386_v63 = vpop.permute.xlu1 %4385  ;;  %v4303_v19 = vsel %vm3223_vm9, %v4296_v60, %v4302_v0 }
 0x38f   : > { %v7026_v17 = vpop.f32.mrf.mxu0  ;;  %7035 = vmatmul.mubr.msk.f32.vlgmr.msra.gmra.mxu0 %vm1019_vm2, %v4303_v19  ;;  %v4411_v10 = vrot.slane %v4386_v63, %v11211_v25  ;;  %v4953_v19 = vrot.slane %v9345_v56, %v11207_v36 }
 0x390   : > { %4948 = vbcast.lane.b32.xlu1 %v4946_v22, 256  ;;  %v4389_v43 = vpop.permute.xlu0 %4388  ;;  %7043 = vmatpush3.msra.mxu0 %v7093_v45  ;;  %v5828_v22 = vrot.slane %v9363_v62, %v11206_v53 }
 0x391   : > { %v4415_v57 = vrot.slane %v4389_v43, %v11211_v25  ;;  %v3436_v26 = vpop.f32.mrf.mxu1  ;;  %5029 = vbcast.lane.b32.xlu0 %v5027_v4, 256  ;;  %7044 = vmatprep.mubr.msk.f32.mxu0 %vm7122_vm1, %v11212_v5 }
 0x392   : > { %v3437_v29 = vadd.f32 %v3436_v26, %v3293_v37  ;;  %v4392_v51 = vpop.permute.xlu1 %4391  ;;  %7052 = vmatprep.subr.mxu0 %v11212_v5  ;;  %v5909_v37 = vrot.slane %v9370_v1, %v11206_v53 }
 0x393   : > { %v4440_v14 = vsel %vm3211_vm3, %v4415_v57, %v4411_v10  ;;  %v4419_v30 = vrot.slane %v4392_v51, %v11211_v25  ;;  %v7031_v46 = vpop.f32.mrf.mxu1  ;;  %v5034_v57 = vrot.slane %v9352_v34, %v11207_v36 }
 0x394   : > { %5646 = vbcast.lane.b32.xlu1 %v5644_v33, 256  ;;  %3440 = vst.msk [vmem:[%s9435_s27] sm:$0xff] %vm671_vm0, %v3437_v29  ;;  %v4395_v8 = vpop.permute.xlu0 %4394  ;;  %v5651_v29 = vrot.slane %v9321_v39, %v11209_v35  ;;  %v5732_v46 = vrot.slane %v9328_v2, %v11209_v35 }
 0x395   : > { %v4441_v0 = vsel %vm3213_vm4, %v4419_v30, %v4440_v14  ;;  %v4423_v60 = vrot.slane %v4395_v8, %v11211_v25  ;;  %5727 = vbcast.lane.b32.xlu0 %v5725_v59, 256 }
 0x396   : > { %v4398_v4 = vpop.permute.xlu1 %4397 }
 0x397   : > { %v4442_v63 = vsel %vm3215_vm5, %v4423_v60, %v4441_v0  ;;  %v4427_v17 = vrot.slane %v4398_v4, %v11211_v25  ;;  %v5835_v0 = vrot.slane %v9363_v62, %v11207_v36  ;;  %v7094_v4 = vld [vmem:[%s10480_s7] sm:$0xff] }
 0x398   : > { %5830 = vbcast.lane.b32.xlu1 %v5828_v22, 256  ;;  %v4401_v33 = vpop.permute.xlu0 %4400 }
 0x399   : > { %v4443_v43 = vsel %vm3217_vm6, %v4427_v17, %v4442_v63  ;;  %v4431_v10 = vrot.slane %v4401_v33, %v11211_v25  ;;  %5911 = vbcast.lane.b32.xlu0 %v5909_v37, 256  ;;  %v5916_v37 = vrot.slane %v9370_v1, %v11207_v36  ;;  %v4960_v17 = vrot.slane %v9345_v56, %v11208_v50  ;;  %v9482_v33 = vld [vmem:[%s7336_s24 + $0x70] sm:$0xff] }
 0x39b   : > { %v4404_v26 = vpop.permute.xlu1 %4403  ;;  %v4444_v59 = vsel %vm3219_vm7, %v4431_v10, %v4443_v43  ;;  %v5041_v43 = vrot.slane %v9352_v34, %v11208_v50 }
 0x39c   : > { %v4435_v45 = vrot.slane %v4404_v26, %v11211_v25  ;;  %4955 = vbcast.lane.b32.xlu1 %v4953_v19, 256  ;;  %v4407_v51 = vpop.permute.xlu0 %4406 }
 0x39d   : > { %v4439_v30 = vrot.slane %v4407_v51, %v11211_v25  ;;  %5036 = vbcast.lane.b32.xlu0 %v5034_v57, 256  ;;  %v5123_v57 = vrot.slane %v9482_v33, %v11203_v24 }
 0x39e   : > { %v4445_v14 = vsel %vm3221_vm8, %v4435_v45, %v4444_v59  ;;  %v9493_v59 = vld [vmem:[%s7403_s25 + $0x70] sm:$0xff]  ;;  %v5130_v45 = vrot.slane %v9482_v33, %v11204_v3 }
 0x39f   : > { %v9459_v22 = vpop.permute.xlu1 %4531  ;;  %v4446_v8 = vsel %vm3223_vm9, %v4439_v30, %v4445_v14  ;;  %v5204_v51 = vrot.slane %v9493_v59, %v11203_v24  ;;  %v5211_v30 = vrot.slane %v9493_v59, %v11204_v3 }
 0x3a0   : > { %5653 = vbcast.lane.b32.xlu1 %v5651_v29, 256  ;;  %v9464_v60 = vpop.permute.xlu0 %4538  ;;  %7040 = vmatmul.mubr.msk.f32.vlgmr.msra.gmra.mxu1 %vm1019_vm2, %v4446_v8  ;;  %v5658_v8 = vrot.slane %v9321_v39, %v11210_v38  ;;  %v5923_v39 = vrot.slane %v9370_v1, %v11208_v50 }
 0x3a1   : > { %5734 = vbcast.lane.b32.xlu0 %v5732_v46, 256  ;;  %7048 = vmatpush3.msra.mxu1 %v7094_v4 }
 0x3a2   : > { %7049 = vmatprep.mubr.msk.f32.mxu1 %vm7122_vm1, %v11212_v5  ;;  %7057 = vmatprep.subr.mxu1 %v11212_v5 }
 0x3a3   : > { %v9472_v63 = vpop.permute.xlu1 %4545 }
 0x3a4   : > { %11213 = vst [vmem:[#allocation16_spill] sm:$0xff] %v9472_v63  ;;  %5837 = vbcast.lane.b32.xlu1 %v5835_v0, 256  ;;  %v9479_v19 = vpop.permute.xlu0 %4552 }
 0x3a5   : > { %11214 = vst [vmem:[#allocation78_spill] sm:$0xff] %v9479_v19  ;;  %5918 = vbcast.lane.b32.xlu0 %v5916_v37, 256  ;;  %v5739_v37 = vrot.slane %v9328_v2, %v11210_v38  ;;  %v11261_v19 = vld [vmem:[#allocation60_spill] sm:$0xff] }
 0x3a7   : > { %v9486_v10 = vpop.permute.xlu1 %4559 }
 0x3a8   : > { %11215 = vst [vmem:[#allocation22_spill] sm:$0xff] %v9486_v10  ;;  %4962 = vbcast.lane.b32.xlu1 %v4960_v17, 256  ;;  %v9490_v26 = vpop.permute.xlu0 %4566  ;;  %v5842_v17 = vrot.slane %v9363_v62, %v11208_v50 }
 0x3a9   : > { %5043 = vbcast.lane.b32.xlu0 %v5041_v43, 256 }
 0x3ab   : > { %v9497_v29 = vpop.permute.xlu1 %4573 }
 0x3ac   : > { %11216 = vst [vmem:[#allocation79_spill] sm:$0xff] %v9497_v29  ;;  %5125 = vbcast.lane.b32.xlu1 %v5123_v57, 256  ;;  %v9501_v14 = vpop.permute.xlu0 %4580  ;;  %v9520_v57 = vld [vmem:[%s7336_s24 + $0x58] sm:$0xff]  ;;  %v11256_v29 = vld [vmem:[#allocation55_spill] sm:$0xff] }
 0x3ad   : > { %11217 = vst [vmem:[#allocation30_spill] sm:$0xff] %v9501_v14  ;;  %5132 = vbcast.lane.b32.xlu0 %v5130_v45, 256  ;;  %v6005_v2 = vrot.slane %v9520_v57, %v11203_v24 }
 0x3af   : > { %v9505_v46 = vpop.permute.xlu1 %4612 }
 0x3b0   : > { %5206 = vbcast.lane.b32.xlu1 %v5204_v51, 256  ;;  %v9509_v0 = vpop.permute.xlu0 %4619 }
 0x3b1   : > { %5213 = vbcast.lane.b32.xlu0 %v5211_v30, 256  ;;  %v9531_v30 = vld [vmem:[%s7403_s25 + $0x58] sm:$0xff] }
 0x3b3   : > { %v9513_v4 = vpop.permute.xlu1 %4626 }
 0x3b4   : > { %5660 = vbcast.lane.b32.xlu1 %v5658_v8, 256  ;;  %v9517_v43 = vpop.permute.xlu0 %4633  ;;  %v6012_v8 = vrot.slane %v9520_v57, %v11204_v3 }
 0x3b5   : > { %11218 = vst [vmem:[#allocation92_spill] sm:$0xff] %v9517_v43  ;;  %5741 = vbcast.lane.b32.xlu0 %v5739_v37, 256  ;;  %v6086_v37 = vrot.slane %v9531_v30, %v11203_v24 }
 0x3b7   : > { %v9524_v45 = vpop.permute.xlu1 %4640 }
 0x3b8   : > { %11219 = vst [vmem:[#allocation31_spill] sm:$0xff] %v9524_v45  ;;  %5844 = vbcast.lane.b32.xlu1 %v5842_v17, 256  ;;  %v9528_v51 = vpop.permute.xlu0 %4647  ;;  %v6093_v17 = vrot.slane %v9531_v30, %v11204_v3 }
 0x3b9   : > { %5925 = vbcast.lane.b32.xlu0 %v5923_v39, 256  ;;  %v4967_v39 = vrot.slane %v9345_v56, %v11209_v35  ;;  %v4676_v10 = vmul.f32 %v9528_v51, %v11256_v29 }
 0x3bb   : > { %v9535_v5 = vpop.permute.xlu1 %4654 }
 0x3bc   : > { %11220 = vst [vmem:[#allocation32_spill] sm:$0xff] %v9535_v5  ;;  %6007 = vbcast.lane.b32.xlu1 %v6005_v2, 256  ;;  %v9539_v25 = vpop.permute.xlu0 %4661  ;;  %v5048_v2 = vrot.slane %v9352_v34, %v11209_v35 }
 0x3bd   : > { %11221 = vst [vmem:[#allocation94_spill] sm:$0xff] %v9539_v25  ;;  %6014 = vbcast.lane.b32.xlu0 %v6012_v8, 256  ;;  %v5137_v8 = vrot.slane %v9482_v33, %v11205_v11  ;;  %v9638_v25 = vld [vmem:[%s7336_s24 + $0x78] sm:$0xff] }
 0x3be   : > { %v6245_v45 = vrot.slane %v9638_v25, %v11209_v35 }
 0x3bf   : > { %v9543_v7 = vpop.permute.xlu1 %4729 }
 0x3c0   : > { %6088 = vbcast.lane.b32.xlu1 %v6086_v37, 256  ;;  %v9547_v52 = vpop.permute.xlu0 %4736  ;;  %v5218_v37 = vrot.slane %v9493_v59, %v11205_v11 }
 0x3c1   : > { %6095 = vbcast.lane.b32.xlu0 %v6093_v17, 256  ;;  %v5849_v17 = vrot.slane %v9363_v62, %v11209_v35 }
 0x3c3   : > { %v9551_v18 = vpop.permute.xlu1 %4743 }
 0x3c4   : > { %11222 = vst [vmem:[#allocation34_spill] sm:$0xff] %v9551_v18  ;;  %4969 = vbcast.lane.b32.xlu1 %v4967_v39, 256  ;;  %v9555_v61 = vpop.permute.xlu0 %4750  ;;  %v5930_v39 = vrot.slane %v9370_v1, %v11209_v35  ;;  %v11269_v18 = vld [vmem:[#allocation66_spill] sm:$0xff] }
 0x3c5   : > { %11223 = vst [vmem:[#allocation20_spill] sm:$0xff] %v9555_v61  ;;  %5050 = vbcast.lane.b32.xlu0 %v5048_v2, 256  ;;  %v6019_v2 = vrot.slane %v9520_v57, %v11205_v11 }
 0x3c7   : > { %v9559_v58 = vpop.permute.xlu1 %4757 }
 0x3c8   : > { %11224 = vst [vmem:[#allocation33_spill] sm:$0xff] %v9559_v58  ;;  %5139 = vbcast.lane.b32.xlu1 %v5137_v8, 256  ;;  %v9563_v20 = vpop.permute.xlu0 %4810  ;;  %v6100_v8 = vrot.slane %v9531_v30, %v11205_v11 }
 0x3c9   : > { %5220 = vbcast.lane.b32.xlu0 %v5218_v37, 256  ;;  %v4974_v37 = vrot.slane %v9345_v56, %v11210_v38  ;;  %v5856_v56 = vrot.slane %v9363_v62, %v11210_v38  ;;  %v5151_v62 = vrot.slane %v9482_v33, %v11207_v36 }
 0x3cb   : > { %v9567_v54 = vpop.permute.xlu1 %4817 }
 0x3cc   : > { %5851 = vbcast.lane.b32.xlu1 %v5849_v17, 256  ;;  %v9571_v27 = vpop.permute.xlu0 %4824  ;;  %v5055_v17 = vrot.slane %v9352_v34, %v11210_v38  ;;  %v5937_v34 = vrot.slane %v9370_v1, %v11210_v38  ;;  %v5232_v1 = vrot.slane %v9493_v59, %v11207_v36  ;;  %v4886_v43 = vmul.f32 %v9567_v54, %v11267_v21 }
 0x3cd   : > { %11225 = vst [vmem:[#allocation41_spill] sm:$0xff] %v9571_v27  ;;  %5932 = vbcast.lane.b32.xlu0 %v5930_v39, 256  ;;  %v5144_v39 = vrot.slane %v9482_v33, %v11206_v53 }
 0x3cf   : > { %v9575_v49 = vpop.permute.xlu1 %4831 }
 0x3d0   : > { %11226 = vst [vmem:[#allocation35_spill] sm:$0xff] %v9575_v49  ;;  %6021 = vbcast.lane.b32.xlu1 %v6019_v2, 256  ;;  %v9579_v47 = vpop.permute.xlu0 %5611  ;;  %v5225_v2 = vrot.slane %v9493_v59, %v11206_v53 }
 0x3d1   : > { %11227 = vst [vmem:[#allocation42_spill] sm:$0xff] %v9579_v47  ;;  %6102 = vbcast.lane.b32.xlu0 %v6100_v8, 256 }
 0x3d3   : > { %v9583_v40 = vpop.permute.xlu1 %5618 }
 0x3d4   : > { %11228 = vst [vmem:[#allocation26_spill] sm:$0xff] %v9583_v40  ;;  %4976 = vbcast.lane.b32.xlu1 %v4974_v37, 256  ;;  %v9587_v32 = vpop.permute.xlu0 %5692 }
 0x3d5   : > { %11229 = vst [vmem:[#allocation25_spill] sm:$0xff] %v9587_v32  ;;  %5057 = vbcast.lane.b32.xlu0 %v5055_v17, 256  ;;  %v6026_v17 = vrot.slane %v9520_v57, %v11206_v53 }
 0x3d7   : > { %v9591_v28 = vpop.permute.xlu1 %5699 }
 0x3d8   : > { %11230 = vst [vmem:[#allocation77_spill] sm:$0xff] %v9591_v28  ;;  %5146 = vbcast.lane.b32.xlu1 %v5144_v39, 256  ;;  %v9595_v8 = vpop.permute.xlu0 %4838  ;;  %v6107_v39 = vrot.slane %v9531_v30, %v11206_v53 }
 0x3d9   : > { %11231 = vst [vmem:[#allocation40_spill] sm:$0xff] %v9595_v8  ;;  %5227 = vbcast.lane.b32.xlu0 %v5225_v2, 256 }
 0x3db   : > { %v9599_v37 = vpop.permute.xlu1 %5625 }
 0x3dc   : > { %11232 = vst [vmem:[#allocation24_spill] sm:$0xff] %v9599_v37  ;;  %5858 = vbcast.lane.b32.xlu1 %v5856_v56, 256  ;;  %v9603_v40 = vpop.permute.xlu0 %5706 }
 0x3dd   : > { %11233 = vst [vmem:[#allocation36_spill] sm:$0xff] %v9603_v40  ;;  %5939 = vbcast.lane.b32.xlu0 %v5937_v34, 256  ;;  %v6033_v34 = vrot.slane %v9520_v57, %v11207_v36 }
 0x3df   : > { %v9607_v47 = vpop.permute.xlu1 %4764 }
 0x3e0   : > { %6028 = vbcast.lane.b32.xlu1 %v6026_v17, 256  ;;  %v9611_v2 = vpop.permute.xlu0 %4845  ;;  %v6114_v17 = vrot.slane %v9531_v30, %v11207_v36 }
 0x3e1   : > { %6109 = vbcast.lane.b32.xlu0 %v6107_v39, 256  ;;  %v5158_v39 = vrot.slane %v9482_v33, %v11208_v50 }
 0x3e3   : > { %v9615_v56 = vpop.permute.xlu1 %4927 }
 0x3e4   : > { %5153 = vbcast.lane.b32.xlu1 %v5151_v62, 256  ;;  %v9619_v37 = vpop.permute.xlu0 %4934  ;;  %v5239_v62 = vrot.slane %v9493_v59, %v11208_v50 }
 0x3e5   : > { %5234 = vbcast.lane.b32.xlu0 %v5232_v1, 256  ;;  %v6040_v1 = vrot.slane %v9520_v57, %v11208_v50 }
 0x3e7   : > { %v9623_v40 = vpop.permute.xlu1 %5008 }
 0x3e8   : > { %6035 = vbcast.lane.b32.xlu1 %v6033_v34, 256  ;;  %v9627_v28 = vpop.permute.xlu0 %5015  ;;  %v6121_v34 = vrot.slane %v9531_v30, %v11208_v50 }
 0x3e9   : > { %6116 = vbcast.lane.b32.xlu0 %v6114_v17, 256  ;;  %v6203_v17 = vrot.slane %v9638_v25, %v11203_v24 }
 0x3eb   : > { %v9631_v32 = vpop.permute.xlu1 %5632 }
 0x3ec   : > { %11234 = vst [vmem:[#allocation43_spill] sm:$0xff] %v9631_v32  ;;  %5160 = vbcast.lane.b32.xlu1 %v5158_v39, 256  ;;  %v9635_v42 = vpop.permute.xlu0 %5713  ;;  %v9649_v39 = vld [vmem:[%s7403_s25 + $0x78] sm:$0xff]  ;;  %v6210_v32 = vrot.slane %v9638_v25, %v11204_v3 }
 0x3ed   : > { %11235 = vst [vmem:[#allocation18_spill] sm:$0xff] %v9635_v42  ;;  %5241 = vbcast.lane.b32.xlu0 %v5239_v62, 256  ;;  %v6284_v62 = vrot.slane %v9649_v39, %v11203_v24 }
 0x3ef   : > { %v9642_v13 = vpop.permute.xlu1 %5809 }
 0x3f0   : > { %11236 = vst [vmem:[#allocation27_spill] sm:$0xff] %v9642_v13  ;;  %6042 = vbcast.lane.b32.xlu1 %v6040_v1, 256  ;;  %v9646_v8 = vpop.permute.xlu0 %5816  ;;  %v6291_v1 = vrot.slane %v9649_v39, %v11204_v3  ;;  %v6128_v3 = vrot.slane %v9531_v30, %v11209_v35 }
 0x3f1   : > { %11237 = vst [vmem:[#allocation37_spill] sm:$0xff] %v9646_v8  ;;  %6123 = vbcast.lane.b32.xlu0 %v6121_v34, 256  ;;  %v5165_v34 = vrot.slane %v9482_v33, %v11209_v35 }
 0x3f3   : > { %v9653_v42 = vpop.permute.xlu1 %5890 }
 0x3f4   : > { %11238 = vst [vmem:[#allocation21_spill] sm:$0xff] %v9653_v42  ;;  %6205 = vbcast.lane.b32.xlu1 %v6203_v17, 256  ;;  %v9657_v58 = vpop.permute.xlu0 %5897  ;;  %v5246_v17 = vrot.slane %v9493_v59, %v11209_v35 }
 0x3f5   : > { %11239 = vst [vmem:[#allocation19_spill] sm:$0xff] %v9657_v58  ;;  %6212 = vbcast.lane.b32.xlu0 %v6210_v32, 256  ;;  %v6047_v32 = vrot.slane %v9520_v57, %v11209_v35 }
 0x3f7   : > { %v9661_v13 = vpop.permute.xlu1 %4771 }
 0x3f8   : > { %11240 = vst [vmem:[#allocation29_spill] sm:$0xff] %v9661_v13  ;;  %6286 = vbcast.lane.b32.xlu1 %v6284_v62, 256  ;;  %v9665_v8 = vpop.permute.xlu0 %4852 }
 0x3f9   : > { %11241 = vst [vmem:[#allocation38_spill] sm:$0xff] %v9665_v8  ;;  %6293 = vbcast.lane.b32.xlu0 %v6291_v1, 256  ;;  %v6217_v1 = vrot.slane %v9638_v25, %v11205_v11 }
 0x3fb   : > { %v9669_v42 = vpop.permute.xlu1 %4941 }
 0x3fc   : > { %11242 = vst [vmem:[#allocation28_spill] sm:$0xff] %v9669_v42  ;;  %5167 = vbcast.lane.b32.xlu1 %v5165_v34, 256  ;;  %v9673_v24 = vpop.permute.xlu0 %5022  ;;  %v6298_v34 = vrot.slane %v9649_v39, %v11205_v11  ;;  %v6135_v11 = vrot.slane %v9531_v30, %v11210_v38  ;;  %v6312_v30 = vrot.slane %v9649_v39, %v11207_v36 }
 0x3fd   : > { %11243 = vst [vmem:[#allocation15_spill] sm:$0xff] %v9673_v24  ;;  %5248 = vbcast.lane.b32.xlu0 %v5246_v17, 256  ;;  %v5172_v17 = vrot.slane %v9482_v33, %v11210_v38  ;;  %v6224_v33 = vrot.slane %v9638_v25, %v11206_v53  ;;  %v11268_v24 = vld [vmem:[#allocation71_spill] sm:$0xff] }
 0x3fe   : > { %v4874_v42 = vmul.f32 %v9611_v2, %v11268_v24 }
 0x3ff   : > { %v9677_v62 = vpop.permute.xlu1 %5639 }
 0x400   : > { %6049 = vbcast.lane.b32.xlu1 %v6047_v32, 256  ;;  %v9681_v8 = vpop.permute.xlu0 %5720  ;;  %v5253_v32 = vrot.slane %v9493_v59, %v11210_v38  ;;  %v6305_v59 = vrot.slane %v9649_v39, %v11206_v53  ;;  %v11252_v53 = vld [vmem:[#allocation46_spill] sm:$0xff] }
 0x401   : > { %6130 = vbcast.lane.b32.xlu0 %v6128_v3, 256  ;;  %v6054_v3 = vrot.slane %v9520_v57, %v11210_v38  ;;  %v6231_v57 = vrot.slane %v9638_v25, %v11207_v36 }
 0x403   : > { %v9685_v13 = vpop.permute.xlu1 %5823 }
 0x404   : > { %11244 = vst [vmem:[#allocation99_spill] sm:$0xff] %v9685_v13  ;;  %6219 = vbcast.lane.b32.xlu1 %v6217_v1, 256  ;;  %v9689_v58 = vpop.permute.xlu0 %5904 }
 0x405   : > { %11245 = vst [vmem:[#allocation39_spill] sm:$0xff] %v9689_v58  ;;  %6300 = vbcast.lane.b32.xlu0 %v6298_v34, 256 }
 0x407   : > { %v9693_v5 = vpop.permute.xlu1 %4778 }
 0x408   : > { %11246 = vst [vmem:[#allocation9_spill] sm:$0xff] %v9693_v5  ;;  %5174 = vbcast.lane.b32.xlu1 %v5172_v17, 256  ;;  %v9697_v14 = vpop.permute.xlu0 %4859  ;;  %v11253_v5 = vld [vmem:[#allocation44_spill] sm:$0xff] }
 0x409   : > { %11247 = vst [vmem:[#allocation7_spill] sm:$0xff] %v9697_v14  ;;  %5255 = vbcast.lane.b32.xlu0 %v5253_v32, 256  ;;  %v4687_v58 = vmul.f32 %v9505_v46, %v11253_v5  ;;  %v9733_v36 = vmul.f32 %v9459_v22, %v11253_v5 }
 0x40b   : > { %v9701_v1 = vpop.permute.xlu1 %4948 }
 0x40c   : > { %11248 = vst [vmem:[#allocation8_spill] sm:$0xff] %v9701_v1  ;;  %6056 = vbcast.lane.b32.xlu1 %v6054_v3, 256  ;;  %v9705_v34 = vpop.permute.xlu0 %5029 }
 0x40d   : > { %11249 = vst [vmem:[#allocation10_spill] sm:$0xff] %v9705_v34  ;;  %6137 = vbcast.lane.b32.xlu0 %v6135_v11, 256  ;;  %v6238_v11 = vrot.slane %v9638_v25, %v11208_v50  ;;  %v6252_v34 = vrot.slane %v9638_v25, %v11210_v38  ;;  %v11263_v25 = vld [vmem:[#allocation54_spill] sm:$0xff] }
 0x40f   : > { %v9709_v17 = vpop.permute.xlu1 %5646 }
 0x410   : > { %6226 = vbcast.lane.b32.xlu1 %v6224_v33, 256  ;;  %v9713_v32 = vpop.permute.xlu0 %5727  ;;  %v9725_v33 = vmul.f32 %v9505_v46, %v11252_v53  ;;  %v4703_v46 = vmul.f32 %v9459_v22, %v11252_v53  ;;  %v4708_v22 = vmul.f32 %v9490_v26, %v11256_v29 }
 0x411   : > { %6307 = vbcast.lane.b32.xlu0 %v6305_v59, 256  ;;  %v6319_v59 = vrot.slane %v9649_v39, %v11208_v50 }
 0x413   : > { %v9717_v3 = vpop.permute.xlu1 %5830 }
 0x414   : > { %11250 = vst [vmem:[#allocation11_spill] sm:$0xff] %v9717_v3  ;;  %6233 = vbcast.lane.b32.xlu1 %v6231_v57, 256  ;;  %v9721_v14 = vpop.permute.xlu0 %5911  ;;  %v11254_v57 = vld [vmem:[#allocation47_spill] sm:$0xff] }
 0x415   : > { %11251 = vst [vmem:[#allocation12_spill] sm:$0xff] %v9721_v14  ;;  %6314 = vbcast.lane.b32.xlu0 %v6312_v30, 256  ;;  %v9737_v3 = vmul.f32 %v9509_v0, %v11254_v57  ;;  %v11255_v14 = vld [vmem:[#allocation48_spill] sm:$0xff]  ;;  %v11258_v30 = vld [vmem:[#allocation51_spill] sm:$0xff] }
 0x416   : > { %v4688_v13 = vmul.f32 %v9509_v0, %v11255_v14  ;;  %v9749_v50 = vmul.f32 %v9464_v60, %v11255_v14  ;;  %v4692_v5 = vmul.f32 %v9528_v51, %v11258_v30  ;;  %v4704_v0 = vmul.f32 %v9464_v60, %v11254_v57 }
 0x417   : > { %v9743_v23 = vpop.permute.xlu1 %4955  ;;  %v6326_v14 = vrot.slane %v9649_v39, %v11209_v35  ;;  %v6333_v60 = vrot.slane %v9649_v39, %v11210_v38  ;;  %v5755_v51 = vmul.f32 %v9681_v8, %v11263_v25  ;;  %v4885_v38 = vmul.f32 %v9563_v20, %v11261_v19 }
 0x418   : > { %11257 = vst [vmem:[#allocation13_spill] sm:$0xff] %v9743_v23  ;;  %6240 = vbcast.lane.b32.xlu1 %v6238_v11, 256  ;;  %v4595_v23 = vmul.f32 %v9490_v26, %v11258_v30  ;;  %v9761_v53 = vpop.permute.xlu0 %5036  ;;  %v4711_v11 = vadd.f32 %v4703_v46, %v4687_v58  ;;  %v4712_v26 = vadd.f32 %v4704_v0, %v4688_v13  ;;  %v11265_v0 = vld [vmem:[#allocation56_spill] sm:$0xff] }
 0x419   : > { %11259 = vst [vmem:[#allocation14_spill] sm:$0xff] %v9761_v53  ;;  %6321 = vbcast.lane.b32.xlu0 %v6319_v59, 256  ;;  %v11260_v53 = vld [vmem:[#allocation67_spill] sm:$0xff]  ;;  %v4716_v61 = vadd.f32 %v4708_v22, %v4692_v5  ;;  %v4788_v58 = vmul.f32 %v9543_v7, %v11261_v19  ;;  %v11262_v59 = vld [vmem:[#allocation62_spill] sm:$0xff] }
 0x41a   : > { %v4684_v1 = vsub.f32 %v4595_v23, %v4676_v10  ;;  %v4793_v49 = vmul.f32 %v9607_v47, %v11260_v53  ;;  %v4901_v46 = vmul.f32 %v9543_v7, %v11262_v59  ;;  %v4890_v13 = vmul.f32 %v9611_v2, %v11260_v53  ;;  %v11264_v23 = vld [vmem:[#allocation50_spill] sm:$0xff] }
 0x41b   : > { %v5654_v35 = vpop.permute.xlu1 %5653  ;;  %v5674_v10 = vmul.f32 %v9677_v62, %v11264_v23  ;;  %v5771_v5 = vmul.f32 %v9681_v8, %v11264_v23  ;;  %v11266_v7 = vld [vmem:[#allocation58_spill] sm:$0xff]  ;;  %v5787_v8 = vmul.f32 %v9677_v62, %v11263_v25  ;;  %v4893_v2 = vadd.f32 %v4885_v38, %v4711_v11 }
 0x41c   : > { %6247 = vbcast.lane.b32.xlu1 %v6245_v45, 256  ;;  %v5735_v39 = vpop.permute.xlu0 %5734  ;;  %v9790_v22 = vmul.f32 %v5654_v35, %v11265_v0  ;;  %v5789_v57 = vmul.f32 %v5654_v35, %v11266_v7  ;;  %v4801_v12 = vadd.f32 %v4793_v49, %v4684_v1  ;;  %v11270_v49 = vld [vmem:[#allocation63_spill] sm:$0xff] }
 0x41d   : > { %v9794_v45 = vmul.f32 %v5735_v39, %v11266_v7  ;;  %v5773_v19 = vmul.f32 %v5735_v39, %v11265_v0  ;;  %6328 = vbcast.lane.b32.xlu0 %v6326_v14, 256  ;;  %v5763_v27 = vsub.f32 %v5674_v10, %v5755_v51  ;;  %v4789_v14 = vmul.f32 %v9547_v52, %v11267_v21  ;;  %v11272_v51 = vld [vmem:[#allocation70_spill] sm:$0xff]  ;;  %v11274_v21 = vld [vmem:[#allocation76_spill] sm:$0xff] }
 0x41e   : > { %v4902_v1 = vmul.f32 %v9547_v52, %v11270_v49  ;;  %v4898_v0 = vadd.f32 %v4890_v13, %v4716_v61  ;;  %v5795_v62 = vadd.f32 %v5787_v8, %v5771_v5  ;;  %v4882_v35 = vsub.f32 %v4801_v12, %v4874_v42 }
 0x41f   : > { %v5838_v23 = vpop.permute.xlu1 %5837  ;;  %v9805_v7 = vadd.f32 %v5789_v57, %v5773_v19  ;;  %v4894_v57 = vadd.f32 %v4886_v43, %v4712_v26  ;;  %v5083_v52 = vmul.f32 %v9623_v40, %v11274_v21  ;;  %v4909_v43 = vadd.f32 %v4901_v46, %v4893_v2 }
 0x420   : > { %v5872_v39 = vmul.f32 %v5838_v23, %v11269_v18  ;;  %6254 = vbcast.lane.b32.xlu1 %v6252_v34, 256  ;;  %v5919_v63 = vpop.permute.xlu0 %5918  ;;  %v4906_v34 = vmul.f32 %v9607_v47, %v11268_v24  ;;  %v5985_v61 = vmul.f32 %v5838_v23, %v11272_v51  ;;  %v5084_v47 = vmul.f32 %v9627_v28, %v11117_v41 }
 0x421   : > { %v9815_v10 = vmul.f32 %v5919_v63, %v11272_v51  ;;  %v5969_v19 = vmul.f32 %v5919_v63, %v11269_v18  ;;  %6335 = vbcast.lane.b32.xlu0 %v6333_v60, 256  ;;  %v4869_v63 = vmul.f32 %v9563_v20, %v11262_v59  ;;  %v11276_v8 = vsub.f32 %v9733_v36, %v9725_v33 }
 0x422   : > { %v9812_v25 = vadd.f32 %v5872_v39, %v5763_v27  ;;  %v4914_v12 = vadd.f32 %v4906_v34, %v4898_v0  ;;  %v4870_v20 = vmul.f32 %v9567_v54, %v11270_v49  ;;  %v4986_v46 = vmul.f32 %v9615_v56, %v11274_v21  ;;  %v11299_v27 = vld [vmem:[#allocation49_spill] sm:$0xff] }
 0x423   : > { %11273 = vst [vmem:[#allocation51_spill] sm:$0xff] %v9815_v10  ;;  %v4963_v11 = vpop.permute.xlu1 %4962  ;;  %v5977_v38 = vadd.f32 %v5969_v19, %v5795_v62  ;;  %v4796_v39 = vadd.f32 %v4788_v58, %v11276_v8  ;;  %v4910_v0 = vadd.f32 %v4902_v1, %v4894_v57  ;;  %v5091_v2 = vadd.f32 %v5083_v52, %v4909_v43 }
 0x424   : > { %11271 = vst [vmem:[#allocation55_spill] sm:$0xff] %v9812_v25  ;;  %v4991_v13 = vmul.f32 %v4963_v11, %v11181_v15  ;;  %v5044_v42 = vpop.permute.xlu0 %5043  ;;  %v5104_v62 = vmul.f32 %v4963_v11, %v11190_v16  ;;  %v4987_v54 = vmul.f32 %v9619_v37, %v11117_v41  ;;  %v5067_v58 = vmul.f32 %v9623_v40, %v11125_v6 }
 0x425   : > { %v9833_v26 = vmul.f32 %v5044_v42, %v11190_v16  ;;  %v5088_v23 = vmul.f32 %v5044_v42, %v11181_v15  ;;  %v9836_v5 = vadd.f32 %v5985_v61, %v5977_v38  ;;  %v11277_v61 = vsub.f32 %v9749_v50, %v9737_v3 }
 0x426   : > { %v9830_v60 = vadd.f32 %v4991_v13, %v4882_v35  ;;  %v4877_v36 = vsub.f32 %v4796_v39, %v4869_v63  ;;  %v5099_v57 = vmul.f32 %v9615_v56, %v11125_v6  ;;  %v5092_v52 = vadd.f32 %v5084_v47, %v4910_v0 }
 0x427   : > { %11275 = vst [vmem:[#allocation67_spill] sm:$0xff] %v9836_v5  ;;  %v5126_v35 = vpop.permute.xlu1 %5125  ;;  %v5096_v34 = vadd.f32 %v5088_v23, %v4914_v12  ;;  %v4797_v33 = vadd.f32 %v4789_v14, %v11277_v61  ;;  %v5068_v3 = vmul.f32 %v9627_v28, %v11128_v55  ;;  %v5100_v14 = vmul.f32 %v9619_v37, %v11128_v55 }
 0x428   : > { %v5133_v1 = vpop.permute.xlu0 %5132  ;;  %v4994_v13 = vadd.f32 %v4986_v46, %v4877_v36  ;;  %v5107_v63 = vadd.f32 %v5099_v57, %v5091_v2  ;;  %v5184_v12 = vmul.f32 %v5126_v35, %v11131_v31  ;;  %v5297_v47 = vmul.f32 %v5126_v35, %v11139_v48 }
 0x429   : > { %v9857_v11 = vadd.f32 %v5104_v62, %v5096_v34  ;;  %v4878_v38 = vsub.f32 %v4797_v33, %v4870_v20  ;;  %v5108_v8 = vadd.f32 %v5100_v14, %v5092_v52  ;;  %v5675_v28 = vmul.f32 %v9709_v17, %v11258_v30 }
 0x42a   : > { %v5075_v42 = vsub.f32 %v4994_v13, %v5067_v58  ;;  %v5756_v37 = vmul.f32 %v9713_v32, %v11256_v29  ;;  %v5185_v46 = vmul.f32 %v5133_v1, %v11136_v9  ;;  %v5298_v2 = vmul.f32 %v5133_v1, %v11176_v44 }
 0x42b   : > { %v5207_v50 = vpop.permute.xlu1 %5206  ;;  %v4995_v40 = vadd.f32 %v4987_v54, %v4878_v38  ;;  %v5772_v61 = vmul.f32 %v9713_v32, %v11258_v30  ;;  %v11278_v54 = vld [vmem:[#allocation57_spill] sm:$0xff]  ;;  %v11280_v38 = vld [vmem:[#allocation59_spill] sm:$0xff]  ;;  %v11307_v25 = vsub.f32 %v9790_v22, %v9794_v45 }
 0x42c   : > { %v5281_v43 = vmul.f32 %v5207_v50, %v11131_v31  ;;  %v5214_v56 = vpop.permute.xlu0 %5213  ;;  %v5265_v62 = vmul.f32 %v5207_v50, %v11139_v48  ;;  %v5192_v33 = vadd.f32 %v5184_v12, %v5075_v42  ;;  %v5788_v50 = vmul.f32 %v9709_v17, %v11256_v29  ;;  %v11282_v12 = vld [vmem:[#allocation52_spill] sm:$0xff] }
 0x42d   : > { %v5282_v39 = vmul.f32 %v5214_v56, %v11136_v9  ;;  %v5076_v20 = vsub.f32 %v4995_v40, %v5068_v3  ;;  %v5266_v36 = vmul.f32 %v5214_v56, %v11176_v44  ;;  %v5764_v32 = vsub.f32 %v5675_v28, %v5756_v37  ;;  %v11286_v37 = vld [vmem:[#allocation16_spill] sm:$0xff]  ;;  %v11332_v44 = vld [vmem:[#allocation94_spill] sm:$0xff] }
 0x42e   : > { %v5289_v23 = vadd.f32 %v5281_v43, %v5107_v63  ;;  %v5273_v63 = vsub.f32 %v5192_v33, %v5265_v62  ;;  %v4673_v56 = vmul.f32 %v9513_v4, %v11282_v12  ;;  %v11288_v62 = vld [vmem:[#allocation34_spill] sm:$0xff] }
 0x42f   : > { %v5661_v0 = vpop.permute.xlu1 %5660  ;;  %v5290_v35 = vadd.f32 %v5282_v39, %v5108_v8  ;;  %v5193_v30 = vadd.f32 %v5185_v46, %v5076_v20  ;;  %v5796_v8 = vadd.f32 %v5788_v50, %v5772_v61 }
 0x430   : > { %v5305_v34 = vadd.f32 %v5297_v47, %v5289_v23  ;;  %v9878_v58 = vmul.f32 %v5661_v0, %v11278_v54  ;;  %v5742_v57 = vpop.permute.xlu0 %5741  ;;  %v5790_v13 = vmul.f32 %v5661_v0, %v11280_v38  ;;  %v11283_v47 = vld [vmem:[#allocation45_spill] sm:$0xff]  ;;  %v4705_v0 = vmul.f32 %v11286_v37, %v11282_v12 }
 0x431   : > { %v5306_v52 = vadd.f32 %v5298_v2, %v5290_v35  ;;  %v9882_v3 = vmul.f32 %v5742_v57, %v11280_v38  ;;  %v5774_v1 = vmul.f32 %v5742_v57, %v11278_v54  ;;  %v4689_v23 = vmul.f32 %v9513_v4, %v11283_v47  ;;  %v11287_v2 = vld [vmem:[#allocation64_spill] sm:$0xff]  ;;  %v11289_v35 = vld [vmem:[#allocation41_spill] sm:$0xff] }
 0x432   : > { %11279 = vst [vmem:[#allocation62_spill] sm:$0xff] %v9878_v58  ;;  %5322 = vperm.xlu1 %7091, %v5305_v34   ;;  %v5274_v17 = vsub.f32 %v5193_v30, %v5266_v36  ;;  %v4592_v46 = vmul.f32 %v11286_v37, %v11283_v47  ;;  %v4790_v4 = vmul.f32 %v11288_v62, %v11287_v2  ;;  %v11306_v58 = vld [vmem:[#allocation69_spill] sm:$0xff] }
 0x433   : > { %11281 = vst [vmem:[#allocation71_spill] sm:$0xff] %v9882_v3  ;;  %v5845_v14 = vpop.permute.xlu1 %5844  ;;  %v9889_v40 = vadd.f32 %v5790_v13, %v5774_v1  ;;  %5325 = vperm.xlu0 %7090, %v5306_v52   ;;  %v4887_v61 = vmul.f32 %v11289_v35, %v11287_v2  ;;  %v4713_v13 = vadd.f32 %v4705_v0, %v4689_v23  ;;  %v11290_v1 = vld [vmem:[#allocation68_spill] sm:$0xff] }
 0x434   : > { %v5873_v42 = vmul.f32 %v5845_v14, %v11260_v53  ;;  %v5926_v29 = vpop.permute.xlu0 %5925  ;;  %v5986_v33 = vmul.f32 %v5845_v14, %v11268_v24  ;;  %v4681_v52 = vsub.f32 %v4592_v46, %v4673_v56  ;;  %v4871_v50 = vmul.f32 %v11289_v35, %v11290_v1  ;;  %v11294_v56 = vld [vmem:[#allocation15_spill] sm:$0xff]  ;;  %v11295_v35 = vld [vmem:[#allocation84_spill] sm:$0xff] }
 0x435   : > { %v9899_v20 = vmul.f32 %v5926_v29, %v11268_v24  ;;  %v5970_v28 = vmul.f32 %v5926_v29, %v11260_v53  ;;  %v11292_v29 = vld [vmem:[#allocation80_spill] sm:$0xff] }
 0x436   : > { %v9896_v39 = vadd.f32 %v5873_v42, %v5764_v32  ;;  %5465 = vperm.xlu1 %7091, %v5273_v63   ;;  %v4798_v63 = vadd.f32 %v4790_v4, %v4681_v52  ;;  %v4895_v42 = vadd.f32 %v4887_v61, %v4713_v13  ;;  %v11293_v24 = vld [vmem:[#allocation28_spill] sm:$0xff]  ;;  %v5085_v23 = vmul.f32 %v11294_v56, %v11292_v29 }
 0x437   : > { %11285 = vst [vmem:[#allocation63_spill] sm:$0xff] %v9899_v20  ;;  %v9908_v34 = vpop.permute.xlu1 %6007  ;;  %v5978_v36 = vadd.f32 %v5970_v28, %v5796_v8  ;;  %5468 = vperm.xlu0 %7090, %v5274_v17   ;;  %v4988_v14 = vmul.f32 %v11293_v24, %v11292_v29  ;;  %v4903_v8 = vmul.f32 %v11288_v62, %v11290_v1  ;;  %v11296_v62 = vld [vmem:[#allocation96_spill] sm:$0xff]  ;;  %v11304_v20 = vld [vmem:[#allocation35_spill] sm:$0xff] }
 0x438   : > { %11284 = vst [vmem:[#allocation66_spill] sm:$0xff] %v9896_v39  ;;  %v9915_v57 = vpop.permute.xlu0 %6014  ;;  %v4879_v17 = vsub.f32 %v4798_v63, %v4871_v50  ;;  %v5069_v4 = vmul.f32 %v11294_v56, %v11295_v35  ;;  %v5101_v52 = vmul.f32 %v11293_v24, %v11295_v35  ;;  %v11297_v63 = vld [vmem:[#allocation53_spill] sm:$0xff]  ;;  %v11298_v53 = vld [vmem:[#allocation92_spill] sm:$0xff]  ;;  %v4872_v15 = vmul.f32 %v11304_v20, %v11306_v58  ;;  %v11309_v35 = vld [vmem:[#allocation74_spill] sm:$0xff] }
 0x439   : > { %v9919_v32 = vadd.f32 %v5986_v33, %v5978_v36  ;;  %v4911_v0 = vadd.f32 %v4903_v8, %v4895_v42  ;;  %v4674_v43 = vmul.f32 %v11298_v53, %v11297_v63  ;;  %v11300_v56 = vld [vmem:[#allocation101_spill] sm:$0xff] }
 0x43a   : > { %v4996_v46 = vadd.f32 %v4988_v14, %v4879_v17  ;;  %v4690_v14 = vmul.f32 %v11298_v53, %v11299_v27 }
 0x43b   : > { %11291 = vst [vmem:[#allocation70_spill] sm:$0xff] %v9919_v32  ;;  %v9921_v30 = vpop.permute.xlu1 %6088  ;;  %v5093_v33 = vadd.f32 %v5085_v23, %v4911_v0  ;;  %v11301_v0 = vld [vmem:[#allocation78_spill] sm:$0xff] }
 0x43c   : > { %v9925_v37 = vpop.permute.xlu0 %6095  ;;  %v5077_v13 = vsub.f32 %v4996_v46, %v5069_v4  ;;  %v4593_v32 = vmul.f32 %v11301_v0, %v11299_v27  ;;  %v4706_v24 = vmul.f32 %v11301_v0, %v11297_v63  ;;  %v11302_v46 = vld [vmem:[#allocation65_spill] sm:$0xff]  ;;  %v11303_v4 = vld [vmem:[#allocation20_spill] sm:$0xff] }
 0x43d   : > { %v5109_v17 = vadd.f32 %v5101_v52, %v5093_v33  ;;  %v4791_v16 = vmul.f32 %v11303_v4, %v11302_v46  ;;  %v4888_v39 = vmul.f32 %v11304_v20, %v11302_v46 }
 0x43e   : > { %v4714_v3 = vadd.f32 %v4706_v24, %v4690_v14  ;;  %v11313_v14 = vld [vmem:[#allocation8_spill] sm:$0xff]  ;;  %v11318_v24 = vld [vmem:[#allocation54_spill] sm:$0xff] }
 0x43f   : > { %v9931_v28 = vpop.permute.xlu1 %4969 }
 0x440   : > { %v9935_v61 = vpop.permute.xlu0 %5050 }
 0x443   : > { %v5140_v36 = vpop.permute.xlu1 %5139 }
 0x444   : > { %v5186_v50 = vmul.f32 %v5140_v36, %v11296_v62  ;;  %v5221_v42 = vpop.permute.xlu0 %5220 }
 0x445   : > { %v5267_v19 = vmul.f32 %v5221_v42, %v11300_v56  ;;  %v5283_v23 = vmul.f32 %v5221_v42, %v11296_v62  ;;  %v4682_v42 = vsub.f32 %v4593_v32, %v4674_v43  ;;  %v11312_v32 = vld [vmem:[#allocation81_spill] sm:$0xff] }
 0x446   : > { %v5194_v8 = vadd.f32 %v5186_v50, %v5077_v13  ;;  %v5299_v13 = vmul.f32 %v5140_v36, %v11300_v56  ;;  %v11305_v50 = vld [vmem:[#allocation72_spill] sm:$0xff]  ;;  %v4989_v20 = vmul.f32 %v11313_v14, %v11312_v32 }
 0x447   : > { %v5852_v53 = vpop.permute.xlu1 %5851  ;;  %v5291_v52 = vadd.f32 %v5283_v23, %v5109_v17  ;;  %v4799_v36 = vadd.f32 %v4791_v16, %v4682_v42 }
 0x448   : > { %v5275_v33 = vsub.f32 %v5194_v8, %v5267_v19  ;;  %v5874_v5 = vmul.f32 %v5852_v53, %v11305_v50  ;;  %v5933_v10 = vpop.permute.xlu0 %5932  ;;  %v4896_v8 = vadd.f32 %v4888_v39, %v4714_v3  ;;  %v5987_v17 = vmul.f32 %v5852_v53, %v11309_v35  ;;  %v11319_v53 = vld [vmem:[#allocation31_spill] sm:$0xff] }
 0x449   : > { %v5307_v0 = vadd.f32 %v5299_v13, %v5291_v52  ;;  %v9964_v46 = vmul.f32 %v5933_v10, %v11309_v35  ;;  %v5971_v19 = vmul.f32 %v5933_v10, %v11305_v50  ;;  %v4904_v10 = vmul.f32 %v11303_v4, %v11306_v58 }
 0x44a   : > { %v9961_v62 = vadd.f32 %v5874_v5, %v11307_v25  ;;  %5471 = vperm.xlu0 %7090, %v5275_v33   ;;  %v4880_v16 = vsub.f32 %v4799_v36, %v4872_v15  ;;  %v11315_v5 = vld [vmem:[#allocation10_spill] sm:$0xff]  ;;  %v4675_v13 = vmul.f32 %v11319_v53, %v11318_v24 }
 0x44b   : > { %11310 = vst [vmem:[#allocation57_spill] sm:$0xff] %v9964_v46  ;;  %v9967_v43 = vpop.permute.xlu1 %6021  ;;  %v5979_v25 = vadd.f32 %v5971_v19, %v9805_v7  ;;  %5328 = vperm.xlu1 %7091, %v5307_v0   ;;  %v5086_v3 = vmul.f32 %v11315_v5, %v11312_v32  ;;  %v4912_v52 = vadd.f32 %v4904_v10, %v4896_v8  ;;  %v11320_v7 = vld [vmem:[#allocation85_spill] sm:$0xff]  ;;  %v11321_v0 = vld [vmem:[#allocation50_spill] sm:$0xff] }
 0x44c   : > { %11308 = vst [vmem:[#allocation76_spill] sm:$0xff] %v9961_v62  ;;  %11311 = vst [vmem:[#allocation59_spill] sm:$0xff] %v9967_v43  ;;  %v9975_v45 = vpop.permute.xlu0 %6102  ;;  %v4997_v33 = vadd.f32 %v4989_v20, %v4880_v16  ;;  %v5070_v42 = vmul.f32 %v11315_v5, %v11320_v7  ;;  %v11322_v19 = vld [vmem:[#allocation22_spill] sm:$0xff]  ;;  %v4691_v15 = vmul.f32 %v11319_v53, %v11321_v0  ;;  %v11328_v53 = vld [vmem:[#allocation32_spill] sm:$0xff] }
 0x44d   : > { %11314 = vst [vmem:[#allocation52_spill] sm:$0xff] %v9975_v45  ;;  %v9981_v39 = vadd.f32 %v5987_v17, %v5979_v25  ;;  %v4594_v22 = vmul.f32 %v11322_v19, %v11321_v0  ;;  %v4707_v17 = vmul.f32 %v11322_v19, %v11318_v24  ;;  %v11324_v25 = vld [vmem:[#allocation56_spill] sm:$0xff]  ;;  %v11326_v8 = vld [vmem:[#allocation58_spill] sm:$0xff]  ;;  %v5094_v16 = vadd.f32 %v5086_v3, %v4912_v52  ;;  %v11329_v62 = vld [vmem:[#allocation33_spill] sm:$0xff] }
 0x44e   : > { %v11327_v5 = vld [vmem:[#allocation30_spill] sm:$0xff]  ;;  %v10011_v0 = vmul.f32 %v11328_v53, %v11326_v8  ;;  %v4792_v32 = vmul.f32 %v11329_v62, %v11269_v18  ;;  %v11330_v24 = vld [vmem:[#allocation40_spill] sm:$0xff]  ;;  %v5102_v3 = vmul.f32 %v11313_v14, %v11320_v7  ;;  %v11331_v52 = vld [vmem:[#allocation97_spill] sm:$0xff]  ;;  %v10024_v43 = vmul.f32 %v11332_v44, %v11280_v38 }
 0x44f   : > { %11316 = vst [vmem:[#allocation45_spill] sm:$0xff] %v9981_v39  ;;  %v9983_v23 = vpop.permute.xlu1 %4976  ;;  %v9995_v36 = vpop.f32.mrf.mxu0  ;;  %v11325_v39 = vld [vmem:[#allocation79_spill] sm:$0xff]  ;;  %v10007_v46 = vmul.f32 %v11327_v5, %v11278_v54  ;;  %v4889_v19 = vmul.f32 %v11330_v24, %v11269_v18  ;;  %v4715_v45 = vadd.f32 %v4707_v17, %v4691_v15  ;;  %v4873_v18 = vmul.f32 %v11330_v24, %v11272_v51  ;;  %v11336_v7 = vld [vmem:[#allocation13_spill] sm:$0xff] }
 0x450   : > { %11317 = vst [vmem:[#allocation16_spill] sm:$0xff] %v9983_v23  ;;  %v9993_v4 = vpop.permute.xlu0 %5057  ;;  %v10001_v20 = vmul.f32 %v11325_v39, %v11324_v25  ;;  %v4709_v10 = vmul.f32 %v11325_v39, %v11326_v8  ;;  %v5078_v39 = vsub.f32 %v4997_v33, %v5070_v42  ;;  %v4693_v8 = vmul.f32 %v11328_v53, %v11324_v25  ;;  %v11335_v53 = vld [vmem:[#allocation82_spill] sm:$0xff] }
 0x451   : > { %11323 = vst [vmem:[#allocation64_spill] sm:$0xff] %v9993_v4  ;;  %v7036_v58 = vpop.f32.mrf.mxu0  ;;  %v4683_v4 = vsub.f32 %v4594_v22, %v4675_v13  ;;  %v5110_v22 = vadd.f32 %v5102_v3, %v5094_v16  ;;  %v11333_v13 = vld [vmem:[#allocation102_spill] sm:$0xff]  ;;  %v4710_v33 = vmul.f32 %v11327_v5, %v11280_v38  ;;  %v4897_v17 = vadd.f32 %v4889_v19, %v4715_v45 }
 0x452   : > { %v4990_v24 = vmul.f32 %v11336_v7, %v11335_v53  ;;  %v4905_v38 = vmul.f32 %v11329_v62, %v11272_v51  ;;  %v11343_v62 = vld [vmem:[#allocation47_spill] sm:$0xff]  ;;  %v11346_v5 = vld [vmem:[#allocation86_spill] sm:$0xff] }
 0x453   : > { %v5147_v56 = vpop.permute.xlu1 %5146  ;;  %v4800_v15 = vadd.f32 %v4792_v32, %v4683_v4  ;;  %v11337_v32 = vld [vmem:[#allocation14_spill] sm:$0xff] }
 0x454   : > { %v5187_v23 = vmul.f32 %v5147_v56, %v11331_v52  ;;  %v5228_v29 = vpop.permute.xlu0 %5227  ;;  %v5087_v45 = vmul.f32 %v11337_v32, %v11335_v53  ;;  %v4913_v42 = vadd.f32 %v4905_v38, %v4897_v17  ;;  %v11349_v53 = vld [vmem:[#allocation48_spill] sm:$0xff] }
 0x455   : > { %v5268_v9 = vmul.f32 %v5228_v29, %v11333_v13  ;;  %v5284_v14 = vmul.f32 %v5228_v29, %v11331_v52  ;;  %v4694_v29 = vmul.f32 %v11332_v44, %v11278_v54  ;;  %v4881_v19 = vsub.f32 %v4800_v15, %v4873_v18  ;;  %v11342_v54 = vld [vmem:[#allocation44_spill] sm:$0xff]  ;;  %v11347_v15 = vld [vmem:[#allocation75_spill] sm:$0xff] }
 0x456   : > { %v5195_v58 = vadd.f32 %v5187_v23, %v5078_v39  ;;  %v5300_v23 = vmul.f32 %v5147_v56, %v11333_v13  ;;  %v10039_v39 = vadd.f32 %v4709_v10, %v4693_v8  ;;  %v11340_v8 = vld [vmem:[#allocation46_spill] sm:$0xff]  ;;  %v5071_v18 = vmul.f32 %v11337_v32, %v11346_v5 }
 0x457   : > { %v10034_v25 = vpop.permute.xlu1 %5858  ;;  %v5292_v3 = vadd.f32 %v5284_v14, %v5110_v22  ;;  %v11344_v22 = vld [vmem:[#allocation77_spill] sm:$0xff]  ;;  %v4998_v52 = vadd.f32 %v4990_v24, %v4881_v19  ;;  %v5095_v38 = vadd.f32 %v5087_v45, %v4913_v42  ;;  %v11351_v32 = vld [vmem:[#allocation26_spill] sm:$0xff]  ;;  %v5103_v45 = vmul.f32 %v11336_v7, %v11346_v5 }
 0x458   : > { %11334 = vst [vmem:[#allocation34_spill] sm:$0xff] %v10034_v25  ;;  %v5276_v16 = vsub.f32 %v5195_v58, %v5268_v9  ;;  %v10047_v4 = vpop.permute.xlu0 %5939  ;;  %v11339_v9 = vld [vmem:[#allocation73_spill] sm:$0xff]  ;;  %v5752_v14 = vmul.f32 %v11344_v22, %v11343_v62  ;;  %v5768_v17 = vmul.f32 %v11344_v22, %v11349_v53  ;;  %v5671_v19 = vmul.f32 %v11351_v32, %v11349_v53  ;;  %v11368_v5 = vld [vmem:[#allocation38_spill] sm:$0xff] }
 0x459   : > { %11338 = vst [vmem:[#allocation41_spill] sm:$0xff] %v10047_v4  ;;  %v5308_v56 = vadd.f32 %v5300_v23, %v5292_v3  ;;  %v5972_v10 = vmul.f32 %v10047_v4, %v11339_v9  ;;  %v11341_v58 = vld [vmem:[#allocation25_spill] sm:$0xff]  ;;  %v5988_v23 = vmul.f32 %v10034_v25, %v11347_v15  ;;  %v10066_v3 = vadd.f32 %v4710_v33, %v4694_v29 }
 0x45a   : > { %5474 = vperm.xlu0 %7090, %v5276_v16   ;;  %v5751_v44 = vmul.f32 %v11341_v58, %v11340_v8  ;;  %v5767_v51 = vmul.f32 %v11341_v58, %v11342_v54  ;;  %v11348_v58 = vld [vmem:[#allocation42_spill] sm:$0xff]  ;;  %v5760_v22 = vsub.f32 %v5671_v19, %v5752_v14  ;;  %v5079_v53 = vsub.f32 %v4998_v52, %v5071_v18  ;;  %v11359_v19 = vld [vmem:[#allocation61_spill] sm:$0xff] }
 0x45b   : > { %v10059_v13 = vpop.permute.xlu1 %6028  ;;  %v5980_v16 = vadd.f32 %v5972_v10, %v9889_v40  ;;  %5331 = vperm.xlu1 %7091, %v5308_v56   ;;  %v5670_v4 = vmul.f32 %v11348_v58, %v11342_v54  ;;  %v5783_v24 = vmul.f32 %v11348_v58, %v11340_v8  ;;  %v5784_v40 = vmul.f32 %v11351_v32, %v11343_v62  ;;  %v11353_v56 = vld [vmem:[#allocation36_spill] sm:$0xff]  ;;  %v11354_v58 = vld [vmem:[#allocation98_spill] sm:$0xff] }
 0x45c   : > { %11345 = vst [vmem:[#allocation68_spill] sm:$0xff] %v10059_v13  ;;  %v10072_v13 = vpop.permute.xlu0 %6109  ;;  %v10084_v10 = vmul.f32 %v11353_v56, %v11282_v12  ;;  %v5769_v42 = vmul.f32 %v11353_v56, %v11283_v47  ;;  %v5111_v32 = vadd.f32 %v5103_v45, %v5095_v38 }
 0x45d   : > { %11350 = vst [vmem:[#allocation28_spill] sm:$0xff] %v10072_v13  ;;  %v10080_v33 = vadd.f32 %v5988_v23, %v5980_v16  ;;  %v5759_v29 = vsub.f32 %v5670_v4, %v5751_v44  ;;  %v5791_v54 = vadd.f32 %v5783_v24, %v5767_v51  ;;  %v5792_v62 = vadd.f32 %v5784_v40, %v5768_v17  ;;  %v11355_v23 = vld [vmem:[#allocation24_spill] sm:$0xff]  ;;  %v11356_v13 = vld [vmem:[#allocation103_spill] sm:$0xff]  ;;  %v11360_v40 = vld [vmem:[#allocation37_spill] sm:$0xff] }
 0x45e   : > { %v5672_v4 = vmul.f32 %v11355_v23, %v11283_v47  ;;  %v5785_v44 = vmul.f32 %v11355_v23, %v11282_v12  ;;  %v11357_v17 = vld [vmem:[#allocation60_spill] sm:$0xff]  ;;  %v11358_v24 = vld [vmem:[#allocation27_spill] sm:$0xff]  ;;  %v5869_v12 = vmul.f32 %v11360_v40, %v11359_v19 }
 0x45f   : > { %11352 = vst [vmem:[#allocation15_spill] sm:$0xff] %v10080_v33  ;;  %v5154_v8 = vpop.permute.xlu1 %5153  ;;  %v5868_v47 = vmul.f32 %v11358_v24, %v11357_v17 }
 0x460   : > { %v5188_v25 = vmul.f32 %v5154_v8, %v11354_v58  ;;  %v5235_v16 = vpop.permute.xlu0 %5234  ;;  %v4515_v56 = vpop.f32.mrf.mxu1  ;;  %v5761_v14 = vsub.f32 %v5672_v4, %v10084_v10  ;;  %v5793_v18 = vadd.f32 %v5785_v44, %v5769_v42  ;;  %v11363_v10 = vld [vmem:[#allocation43_spill] sm:$0xff]  ;;  %v11364_v4 = vld [vmem:[#allocation21_spill] sm:$0xff] }
 0x461   : > { %v5269_v7 = vmul.f32 %v5235_v16, %v11356_v13  ;;  %v5285_v51 = vmul.f32 %v5235_v16, %v11354_v58  ;;  %v4516_v52 = vadd.f32 %v4515_v56, %v9995_v36  ;;  %v10114_v42 = vmul.f32 %v11363_v10, %v11299_v27 }
 0x462   : > { %v5196_v33 = vadd.f32 %v5188_v25, %v5079_v53  ;;  %v7041_v23 = vpop.f32.mrf.mxu1  ;;  %v11362_v25 = vld [vmem:[#allocation18_spill] sm:$0xff]  ;;  %v5301_v53 = vmul.f32 %v5154_v8, %v11356_v13  ;;  %v10118_v44 = vmul.f32 %v11364_v4, %v11262_v59  ;;  %v5965_v56 = vmul.f32 %v11364_v4, %v11357_v17  ;;  %v11367_v4 = vld [vmem:[#allocation29_spill] sm:$0xff] }
 0x463   : > { %v10103_v38 = vpop.permute.xlu1 %6035  ;;  %v10107_v45 = vmul.f32 %v11362_v25, %v11297_v63  ;;  %v5293_v36 = vadd.f32 %v5285_v51, %v5111_v32  ;;  %6899 = vst.msk [vmem:[%s9435_s27 + $0x8] sm:$0xff] %vm671_vm0, %v4516_v52  ;;  %v11365_v23 = vld [vmem:[#allocation19_spill] sm:$0xff]  ;;  %v10134_v32 = vmul.f32 %v11362_v25, %v11299_v27  ;;  %v5876_v52 = vadd.f32 %v5868_v47, %v5759_v29  ;;  %v11369_v25 = vld [vmem:[#allocation100_spill] sm:$0xff] }
 0x464   : > { %11361 = vst [vmem:[#allocation53_spill] sm:$0xff] %v10103_v38  ;;  %v5277_v16 = vsub.f32 %v5196_v33, %v5269_v7  ;;  %v10124_v58 = vmul.f32 %v11365_v23, %v11270_v49  ;;  %v10126_v8 = vpop.permute.xlu0 %6116  ;;  %v10130_v33 = vmul.f32 %v11363_v10, %v11297_v63  ;;  %v5966_v7 = vmul.f32 %v11365_v23, %v11359_v19 }
 0x465   : > { %11366 = vst [vmem:[#allocation92_spill] sm:$0xff] %v10126_v8  ;;  %v5309_v51 = vadd.f32 %v5301_v53, %v5293_v36  ;;  %v5877_v17 = vadd.f32 %v5869_v12, %v5760_v22  ;;  %v4794_v13 = vmul.f32 %v11367_v4, %v11305_v50  ;;  %v4891_v8 = vmul.f32 %v11368_v5, %v11305_v50  ;;  %v11370_v50 = vld [vmem:[#allocation99_spill] sm:$0xff] }
 0x466   : > { %5477 = vperm.xlu0 %7090, %v5277_v16   ;;  %v5762_v63 = vsub.f32 %v10114_v42, %v10107_v45  ;;  %v5981_v27 = vmul.f32 %v11358_v24, %v11262_v59  ;;  %v5982_v19 = vmul.f32 %v11360_v40, %v11270_v49  ;;  %v5957_v29 = vsub.f32 %v5876_v52, %v10118_v44  ;;  %v11372_v24 = vld [vmem:[#allocation104_spill] sm:$0xff] }
 0x467   : > { %v5161_v38 = vpop.permute.xlu1 %5160  ;;  %5334 = vperm.xlu1 %7091, %v5309_v51   ;;  %v5973_v22 = vadd.f32 %v5965_v56, %v5791_v54  ;;  %v5958_v47 = vsub.f32 %v5877_v17, %v10124_v58  ;;  %v5870_v12 = vmul.f32 %v11370_v50, %v11287_v2  ;;  %v5974_v36 = vadd.f32 %v5966_v7, %v5792_v62  ;;  %v11374_v56 = vld [vmem:[#allocation39_spill] sm:$0xff] }
 0x468   : > { %v5189_v53 = vmul.f32 %v5161_v38, %v11369_v25  ;;  %v5242_v16 = vpop.permute.xlu0 %5241  ;;  %v11371_v10 = vsub.f32 %v9830_v60, %v9833_v26  ;;  %v11373_v40 = vsub.f32 %v10001_v20, %v10011_v0  ;;  %v4875_v54 = vmul.f32 %v11368_v5, %v11309_v35 }
 0x469   : > { %v5270_v23 = vmul.f32 %v5242_v16, %v11372_v24  ;;  %v5286_v49 = vmul.f32 %v5242_v16, %v11369_v25  ;;  %v4899_v58 = vadd.f32 %v4891_v8, %v10039_v39  ;;  %v5967_v62 = vmul.f32 %v11374_v56, %v11287_v2  ;;  %v11375_v2 = vld [vmem:[#allocation9_spill] sm:$0xff] }
 0x46a   : > { %v5197_v59 = vadd.f32 %v5189_v53, %v11371_v10  ;;  %v4802_v44 = vadd.f32 %v4794_v13, %v11373_v40  ;;  %v6163_v60 = vmul.f32 %v9921_v30, %v11274_v21  ;;  %v5302_v26 = vmul.f32 %v5161_v38, %v11372_v24 }
 0x46b   : > { %v10166_v7 = vpop.permute.xlu1 %6042  ;;  %v5294_v52 = vadd.f32 %v5286_v49, %v9857_v11  ;;  %v4907_v20 = vmul.f32 %v11367_v4, %v11309_v35  ;;  %v10174_v0 = vadd.f32 %v5870_v12, %v5761_v14  ;;  %v10178_v13 = vmul.f32 %v11374_v56, %v11290_v1 }
 0x46c   : > { %v5278_v51 = vsub.f32 %v5197_v59, %v5270_v23  ;;  %v4795_v39 = vmul.f32 %v11375_v2, %v11339_v9  ;;  %v10182_v5 = vpop.permute.xlu0 %6123  ;;  %v6066_v38 = vmul.f32 %v9908_v34, %v11274_v21  ;;  %v5989_v8 = vadd.f32 %v5981_v27, %v5973_v22 }
 0x46d   : > { %v6164_v11 = vmul.f32 %v9925_v37, %v11117_v41  ;;  %v5310_v17 = vadd.f32 %v5302_v26, %v5294_v52  ;;  %v4883_v35 = vsub.f32 %v4802_v44, %v4875_v54  ;;  %v5975_v14 = vadd.f32 %v5967_v62, %v5793_v18 }
 0x46e   : > { %5480 = vperm.xlu0 %7090, %v5278_v51   ;;  %v5990_v4 = vadd.f32 %v5982_v19, %v5974_v36  ;;  %v4915_v53 = vadd.f32 %v4907_v20, %v4899_v58  ;;  %v5983_v16 = vmul.f32 %v11370_v50, %v11290_v1  ;;  %v6067_v10 = vmul.f32 %v9915_v57, %v11117_v41  ;;  %v11377_v1 = vld [vmem:[#allocation88_spill] sm:$0xff] }
 0x46f   : > { %v6206_v12 = vpop.permute.xlu1 %6205  ;;  %v6147_v21 = vmul.f32 %v9921_v30, %v11125_v6  ;;  %v6171_v27 = vadd.f32 %v6163_v60, %v5989_v8  ;;  %5337 = vperm.xlu1 %7091, %v5310_v17   ;;  %v5959_v22 = vsub.f32 %v10174_v0, %v10178_v13  ;;  %v11376_v18 = vsub.f32 %v10007_v46, %v10024_v43  ;;  %v11378_v30 = vld [vmem:[#allocation7_spill] sm:$0xff]  ;;  %v11381_v8 = vld [vmem:[#allocation80_spill] sm:$0xff] }
 0x470   : > { %v10203_v36 = vmul.f32 %v11375_v2, %v11347_v15  ;;  %v5089_v41 = vmul.f32 %v9935_v61, %v11377_v1  ;;  %v6213_v50 = vpop.permute.xlu0 %6212  ;;  %v10209_v59 = vmul.f32 %v11378_v30, %v11347_v15  ;;  %v6074_v23 = vadd.f32 %v6066_v38, %v5957_v29  ;;  %v11380_v2 = vld [vmem:[#allocation93_spill] sm:$0xff]  ;;  %v11383_v17 = vld [vmem:[#allocation95_spill] sm:$0xff] }
 0x471   : > { %v10199_v19 = vadd.f32 %v4795_v39, %v11376_v18  ;;  %v6179_v49 = vmul.f32 %v9908_v34, %v11125_v6  ;;  %v6172_v40 = vadd.f32 %v6164_v11, %v5990_v4  ;;  %v4892_v46 = vmul.f32 %v11378_v30, %v11339_v9  ;;  %v11379_v34 = vld [vmem:[#allocation90_spill] sm:$0xff]  ;;  %v11382_v11 = vld [vmem:[#allocation59_spill] sm:$0xff] }
 0x472   : > { %v6180_v43 = vmul.f32 %v9915_v57, %v11128_v55  ;;  %v4992_v44 = vmul.f32 %v9931_v28, %v11377_v1  ;;  %v5991_v54 = vadd.f32 %v5983_v16, %v5975_v14  ;;  %v6075_v56 = vadd.f32 %v6067_v10, %v5958_v47  ;;  %v11384_v16 = vld [vmem:[#allocation52_spill] sm:$0xff] }
 0x473   : > { %v6287_v58 = vpop.permute.xlu1 %6286  ;;  %v6155_v62 = vsub.f32 %v6074_v23, %v6147_v21  ;;  %v6187_v60 = vadd.f32 %v6179_v49, %v6171_v27  ;;  %v6148_v6 = vmul.f32 %v9925_v37, %v11128_v55  ;;  %v5105_v26 = vmul.f32 %v9931_v28, %v11379_v34  ;;  %v11387_v49 = vld [vmem:[#allocation11_spill] sm:$0xff] }
 0x474   : > { %v6361_v29 = vmul.f32 %v6287_v58, %v11131_v31  ;;  %v5097_v51 = vadd.f32 %v5089_v41, %v4915_v53  ;;  %v6264_v52 = vmul.f32 %v6206_v12, %v11131_v31  ;;  %v6294_v57 = vpop.permute.xlu0 %6293  ;;  %v6377_v20 = vmul.f32 %v6206_v12, %v11139_v48  ;;  %v11385_v41 = vld [vmem:[#allocation105_spill] sm:$0xff] }
 0x475   : > { %v6188_v13 = vadd.f32 %v6180_v43, %v6172_v40  ;;  %v6362_v47 = vmul.f32 %v6294_v57, %v11380_v2  ;;  %v5000_v39 = vadd.f32 %v4992_v44, %v4883_v35  ;;  %v5073_v38 = vmul.f32 %v9935_v61, %v11379_v34  ;;  %v11388_v43 = vld [vmem:[#allocation12_spill] sm:$0xff] }
 0x476   : > { %v6369_v0 = vadd.f32 %v6361_v29, %v6187_v60  ;;  %v6068_v55 = vmul.f32 %v11382_v11, %v11381_v8  ;;  %v6265_v37 = vmul.f32 %v6213_v50, %v11380_v2  ;;  %v6378_v14 = vmul.f32 %v6213_v50, %v11383_v17 }
 0x477   : > { %v5168_v28 = vpop.permute.xlu1 %5167  ;;  %v6345_v31 = vmul.f32 %v6287_v58, %v11139_v48  ;;  %v6370_v53 = vadd.f32 %v6362_v47, %v6188_v13  ;;  %v6156_v12 = vsub.f32 %v6075_v56, %v6148_v6  ;;  %v6165_v10 = vmul.f32 %v11384_v16, %v11381_v8  ;;  %v11386_v48 = vld [vmem:[#allocation65_spill] sm:$0xff] }
 0x478   : > { %v6385_v4 = vadd.f32 %v6377_v20, %v6369_v0  ;;  %v6272_v35 = vadd.f32 %v6264_v52, %v6155_v62  ;;  %v5249_v21 = vpop.permute.xlu0 %5248  ;;  %v5113_v27 = vadd.f32 %v5105_v26, %v5097_v51  ;;  %v6346_v61 = vmul.f32 %v6294_v57, %v11383_v17  ;;  %v11389_v26 = vld [vmem:[#allocation84_spill] sm:$0xff]  ;;  %v11390_v57 = vld [vmem:[#allocation89_spill] sm:$0xff] }
 0x479   : > { %v6386_v18 = vadd.f32 %v6378_v14, %v6370_v53  ;;  %v5190_v30 = vmul.f32 %v5168_v28, %v11385_v41  ;;  %v5287_v23 = vmul.f32 %v5249_v21, %v11385_v41  ;;  %v4900_v50 = vadd.f32 %v4892_v46, %v10066_v3  ;;  %v11391_v3 = vld [vmem:[#allocation16_spill] sm:$0xff]  ;;  %v11394_v14 = vld [vmem:[#allocation69_spill] sm:$0xff] }
 0x47a   : > { %6402 = vperm.xlu1 %7091, %v6385_v4   ;;  %v5871_v40 = vmul.f32 %v11387_v49, %v11386_v48  ;;  %v5968_v44 = vmul.f32 %v11388_v43, %v11386_v48  ;;  %v5081_v58 = vsub.f32 %v5000_v39, %v5073_v38  ;;  %v6076_v62 = vadd.f32 %v6068_v55, %v5959_v22  ;;  %v11392_v20 = vld [vmem:[#allocation64_spill] sm:$0xff]  ;;  %v11393_v39 = vld [vmem:[#allocation23_spill] sm:$0xff] }
 0x47b   : > { %v10244_v56 = vpop.permute.xlu1 %6049  ;;  %v6273_v60 = vadd.f32 %v6265_v37, %v6156_v12  ;;  %v6353_v29 = vsub.f32 %v6272_v35, %v6345_v31  ;;  %v5295_v6 = vadd.f32 %v5287_v23, %v5113_v27  ;;  %6405 = vperm.xlu0 %7090, %v6386_v18   ;;  %v6149_v51 = vmul.f32 %v11384_v16, %v11389_v26  ;;  %v11395_v53 = vld [vmem:[#allocation96_spill] sm:$0xff]  ;;  %v11397_v27 = vld [vmem:[#allocation101_spill] sm:$0xff] }
 0x47c   : > { %v6173_v52 = vadd.f32 %v6165_v10, %v5991_v54  ;;  %v4993_v46 = vmul.f32 %v11391_v3, %v11390_v57  ;;  %v5090_v0 = vmul.f32 %v11392_v20, %v11390_v57  ;;  %v10252_v13 = vpop.permute.xlu0 %6130  ;;  %v5198_v47 = vadd.f32 %v5190_v30, %v5081_v58  ;;  %v11398_v30 = vld [vmem:[#allocation81_spill] sm:$0xff]  ;;  %v11399_v23 = vld [vmem:[#allocation68_spill] sm:$0xff] }
 0x47d   : > { %v6354_v2 = vsub.f32 %v6273_v60, %v6346_v61  ;;  %v5303_v22 = vmul.f32 %v5168_v28, %v11393_v39  ;;  %v5271_v38 = vmul.f32 %v5249_v21, %v11393_v39  ;;  %v5794_v8 = vadd.f32 %v10130_v33, %v10134_v32 }
 0x47e   : > { %6545 = vperm.xlu1 %7091, %v6353_v29   ;;  %v4884_v54 = vsub.f32 %v10199_v19, %v10209_v59  ;;  %v5879_v55 = vadd.f32 %v5871_v40, %v5762_v63  ;;  %v4916_v37 = vadd.f32 %v10203_v36, %v4900_v50  ;;  %v5952_v31 = vmul.f32 %v11388_v43, %v11394_v14  ;;  %v11396_v59 = vld [vmem:[#allocation91_spill] sm:$0xff]  ;;  %v11400_v43 = vld [vmem:[#allocation106_spill] sm:$0xff] }
 0x47f   : > { %v6220_v17 = vpop.permute.xlu1 %6219  ;;  %v6181_v28 = vmul.f32 %v11382_v11, %v11389_v26  ;;  %v5311_v4 = vadd.f32 %v5303_v22, %v5295_v6  ;;  %6548 = vperm.xlu0 %7090, %v6354_v2   ;;  %v5976_v33 = vadd.f32 %v5968_v44, %v5794_v8  ;;  %v6157_v32 = vsub.f32 %v6076_v62, %v6149_v51  ;;  %v11402_v26 = vld [vmem:[#allocation34_spill] sm:$0xff] }
 0x480   : > { %v6266_v12 = vmul.f32 %v6220_v17, %v11395_v53  ;;  %v5001_v19 = vadd.f32 %v4993_v46, %v4884_v54  ;;  %v5074_v45 = vmul.f32 %v11392_v20, %v11396_v59  ;;  %v6301_v42 = vpop.permute.xlu0 %6300  ;;  %v5098_v63 = vadd.f32 %v5090_v0, %v4916_v37  ;;  %v11403_v20 = vld [vmem:[#allocation82_spill] sm:$0xff]  ;;  %v11404_v0 = vld [vmem:[#allocation53_spill] sm:$0xff] }
 0x481   : > { %v5279_v36 = vsub.f32 %v5198_v47, %v5271_v38  ;;  %v6189_v16 = vadd.f32 %v6181_v28, %v6173_v52  ;;  %v6363_v10 = vmul.f32 %v6301_v42, %v11395_v53  ;;  %v5984_v11 = vmul.f32 %v11387_v49, %v11394_v14  ;;  %v11401_v49 = vld [vmem:[#allocation28_spill] sm:$0xff]  ;;  %v11405_v38 = vld [vmem:[#allocation17_spill] sm:$0xff] }
 0x482   : > { %5340 = vperm.xlu1 %7091, %v5311_v4   ;;  %v5106_v35 = vmul.f32 %v11391_v3, %v11396_v59  ;;  %v6274_v21 = vadd.f32 %v6266_v12, %v6157_v32  ;;  %v6347_v61 = vmul.f32 %v6301_v42, %v11397_v27  ;;  %v6069_v50 = vmul.f32 %v11399_v23, %v11398_v30  ;;  %v11406_v37 = vld [vmem:[#allocation85_spill] sm:$0xff]  ;;  %v11407_v28 = vld [vmem:[#allocation92_spill] sm:$0xff]  ;;  %v11408_v32 = vld [vmem:[#allocation55_spill] sm:$0xff] }
 0x483   : > { %v5175_v18 = vpop.permute.xlu1 %5174  ;;  %v6379_v48 = vmul.f32 %v6220_v17, %v11397_v27  ;;  %v6371_v40 = vadd.f32 %v6363_v10, %v6189_v16  ;;  %5483 = vperm.xlu0 %7090, %v5279_v36   ;;  %v5960_v58 = vsub.f32 %v5879_v55, %v5952_v31  ;;  %v5082_v62 = vsub.f32 %v5001_v19, %v5074_v45  ;;  %v11409_v19 = vld [vmem:[#allocation51_spill] sm:$0xff] }
 0x484   : > { %v5191_v44 = vmul.f32 %v5175_v18, %v11400_v43  ;;  %v5992_v60 = vadd.f32 %v5984_v11, %v5976_v33  ;;  %v6166_v29 = vmul.f32 %v11401_v49, %v11398_v30  ;;  %v5256_v6 = vpop.permute.xlu0 %5255  ;;  %v5875_v51 = vmul.f32 %v11402_v26, %v11339_v9  ;;  %v11412_v16 = vld [vmem:[#allocation83_spill] sm:$0xff]  ;;  %v11419_v26 = vld [vmem:[#allocation102_spill] sm:$0xff] }
 0x485   : > { %v6387_v52 = vadd.f32 %v6379_v48, %v6371_v40  ;;  %v5114_v3 = vadd.f32 %v5106_v35, %v5098_v63  ;;  %v5288_v46 = vmul.f32 %v5256_v6, %v11400_v43  ;;  %v6070_v2 = vmul.f32 %v11404_v0, %v11403_v20  ;;  %v11411_v63 = vld [vmem:[#allocation86_spill] sm:$0xff]  ;;  %v11414_v27 = vld [vmem:[#allocation71_spill] sm:$0xff]  ;;  %v11417_v48 = vld [vmem:[#allocation41_spill] sm:$0xff] }
 0x486   : > { %v6355_v47 = vsub.f32 %v6274_v21, %v6347_v61  ;;  %v5199_v22 = vadd.f32 %v5191_v44, %v5082_v62  ;;  %v5272_v8 = vmul.f32 %v5256_v6, %v11405_v38  ;;  %v6077_v55 = vadd.f32 %v6069_v50, %v5960_v58  ;;  %v11413_v21 = vld [vmem:[#allocation62_spill] sm:$0xff]  ;;  %v11416_v50 = vld [vmem:[#allocation97_spill] sm:$0xff]  ;;  %v11418_v44 = vld [vmem:[#allocation67_spill] sm:$0xff] }
 0x487   : > { %v10289_v54 = vpop.permute.xlu1 %6056  ;;  %v6150_v17 = vmul.f32 %v11401_v49, %v11406_v37  ;;  %v5304_v14 = vmul.f32 %v5175_v18, %v11405_v38  ;;  %v5296_v9 = vadd.f32 %v5288_v46, %v5114_v3  ;;  %6408 = vperm.xlu1 %7091, %v6387_v52   ;;  %v6174_v31 = vadd.f32 %v6166_v29, %v5992_v60  ;;  %v11420_v46 = vld [vmem:[#allocation66_spill] sm:$0xff] }
 0x488   : > { %v6167_v4 = vmul.f32 %v11407_v28, %v11403_v20  ;;  %6551 = vperm.xlu0 %7090, %v6355_v47   ;;  %v10296_v53 = vpop.permute.xlu0 %6137  ;;  %v6182_v12 = vmul.f32 %v11399_v23, %v11406_v37  ;;  %v11410_v45 = vsub.f32 %v11408_v32, %v11409_v19  ;;  %v6151_v36 = vmul.f32 %v11407_v28, %v11411_v63  ;;  %v11421_v20 = vld [vmem:[#allocation63_spill] sm:$0xff]  ;;  %v11425_v28 = vld [vmem:[#allocation70_spill] sm:$0xff] }
 0x489   : > { %v5312_v33 = vadd.f32 %v5304_v14, %v5296_v9  ;;  %v6071_v10 = vmul.f32 %v10166_v7, %v11412_v16  ;;  %v5280_v11 = vsub.f32 %v5199_v22, %v5272_v8  ;;  %v11415_v61 = vsub.f32 %v11413_v21, %v11414_v27  ;;  %v11423_v47 = vld [vmem:[#allocation87_spill] sm:$0xff]  ;;  %v11424_v14 = vld [vmem:[#allocation98_spill] sm:$0xff] }
 0x48a   : > { %v6078_v42 = vadd.f32 %v6070_v2, %v11410_v45  ;;  %v6158_v30 = vsub.f32 %v6077_v55, %v6150_v17  ;;  %v5956_v40 = vmul.f32 %v11417_v48, %v11347_v15  ;;  %v6175_v58 = vadd.f32 %v6167_v4, %v11418_v44  ;;  %v11426_v45 = vld [vmem:[#allocation103_spill] sm:$0xff]  ;;  %v11430_v48 = vld [vmem:[#allocation45_spill] sm:$0xff] }
 0x48b   : > { %v6227_v35 = vpop.permute.xlu1 %6226  ;;  %v5883_v18 = vadd.f32 %v5875_v51, %v11415_v61  ;;  %5343 = vperm.xlu1 %7091, %v5312_v33   ;;  %v6168_v62 = vmul.f32 %v10182_v5, %v11412_v16  ;;  %v6190_v49 = vadd.f32 %v6182_v12, %v6174_v31  ;;  %v6183_v29 = vmul.f32 %v11404_v0, %v11411_v63  ;;  %v11427_v16 = vld [vmem:[#allocation76_spill] sm:$0xff] }
 0x48c   : > { %v6267_v23 = vmul.f32 %v6227_v35, %v11416_v50  ;;  %5486 = vperm.xlu0 %7090, %v5280_v11   ;;  %v6308_v60 = vpop.permute.xlu0 %6307  ;;  %v6159_v3 = vsub.f32 %v6078_v42, %v6151_v36  ;;  %v11422_v15 = vsub.f32 %v11420_v46, %v11421_v20  ;;  %v6152_v22 = vmul.f32 %v10182_v5, %v11423_v47 }
 0x48d   : > { %v6348_v51 = vmul.f32 %v6308_v60, %v11419_v26  ;;  %v6364_v52 = vmul.f32 %v6308_v60, %v11416_v50  ;;  %v6072_v8 = vmul.f32 %v10244_v56, %v11377_v1  ;;  %v6380_v37 = vmul.f32 %v6227_v35, %v11419_v26 }
 0x48e   : > { %v6275_v6 = vadd.f32 %v6267_v23, %v6158_v30  ;;  %v6079_v2 = vadd.f32 %v6071_v10, %v11422_v15  ;;  %v6184_v31 = vmul.f32 %v10166_v7, %v11423_v47  ;;  %v6176_v4 = vadd.f32 %v6168_v62, %v11425_v28  ;;  %v11428_v10 = vld [vmem:[#allocation57_spill] sm:$0xff]  ;;  %v11431_v15 = vld [vmem:[#allocation15_spill] sm:$0xff] }
 0x48f   : > { %v6234_v55 = vpop.permute.xlu1 %6233  ;;  %v6372_v17 = vadd.f32 %v6364_v52, %v6190_v49  ;;  %v6169_v12 = vmul.f32 %v10252_v13, %v11377_v1  ;;  %v6191_v5 = vadd.f32 %v6183_v29, %v6175_v58  ;;  %v11429_v11 = vsub.f32 %v11427_v16, %v11428_v10 }
 0x490   : > { %v6356_v0 = vsub.f32 %v6275_v6, %v6348_v51  ;;  %v6268_v9 = vmul.f32 %v6234_v55, %v11424_v14  ;;  %v6315_v33 = vpop.permute.xlu0 %6314  ;;  %v6160_v36 = vsub.f32 %v6079_v2, %v6152_v22  ;;  %v6153_v7 = vmul.f32 %v10252_v13, %v11379_v34 }
 0x491   : > { %v6388_v32 = vadd.f32 %v6380_v37, %v6372_v17  ;;  %v6349_v42 = vmul.f32 %v6315_v33, %v11426_v45  ;;  %v6365_v63 = vmul.f32 %v6315_v33, %v11424_v14  ;;  %v6080_v35 = vadd.f32 %v6072_v8, %v11429_v11 }
 0x492   : > { %v6276_v19 = vadd.f32 %v6268_v9, %v6159_v3  ;;  %6554 = vperm.xlu0 %7090, %v6356_v0   ;;  %v6073_v1 = vmul.f32 %v10289_v54, %v11390_v57  ;;  %v6381_v27 = vmul.f32 %v6234_v55, %v11426_v45  ;;  %v5964_v23 = vsub.f32 %v5883_v18, %v5956_v40 }
 0x493   : > { %v6241_v21 = vpop.permute.xlu1 %6240  ;;  %v6373_v30 = vadd.f32 %v6365_v63, %v6191_v5  ;;  %6411 = vperm.xlu1 %7091, %v6388_v32   ;;  %v6177_v44 = vadd.f32 %v6169_v12, %v11430_v48  ;;  %v6170_v58 = vmul.f32 %v10296_v53, %v11390_v57  ;;  %v6192_v60 = vadd.f32 %v6184_v31, %v6176_v4 }
 0x494   : > { %v6357_v61 = vsub.f32 %v6276_v19, %v6349_v42  ;;  %v6269_v50 = vmul.f32 %v6241_v21, %v11369_v25  ;;  %v6322_v62 = vpop.permute.xlu0 %6321  ;;  %v6185_v26 = vmul.f32 %v10244_v56, %v11379_v34  ;;  %v6161_v51 = vsub.f32 %v6080_v35, %v6153_v7 }
 0x495   : > { %v6389_v13 = vadd.f32 %v6381_v27, %v6373_v30  ;;  %v6350_v29 = vmul.f32 %v6322_v62, %v11372_v24  ;;  %v6366_v6 = vmul.f32 %v6322_v62, %v11369_v25  ;;  %v6081_v52 = vadd.f32 %v6073_v1, %v5964_v23  ;;  %v11432_v30 = vld [vmem:[#allocation6_spill] sm:$0xff] }
 0x496   : > { %v6277_v49 = vadd.f32 %v6269_v50, %v6160_v36  ;;  %6557 = vperm.xlu0 %7090, %v6357_v61   ;;  %v6154_v18 = vmul.f32 %v10296_v53, %v11396_v59  ;;  %v6382_v57 = vmul.f32 %v6241_v21, %v11372_v24  ;;  %v6178_v2 = vadd.f32 %v6170_v58, %v11431_v15 }
 0x497   : > { %v6248_v40 = vpop.permute.xlu1 %6247  ;;  %v6374_v46 = vadd.f32 %v6366_v6, %v6192_v60  ;;  %6414 = vperm.xlu1 %7091, %v6389_v13   ;;  %v6193_v47 = vadd.f32 %v6185_v26, %v6177_v44  ;;  %v6186_v53 = vmul.f32 %v10289_v54, %v11396_v59 }
 0x498   : > { %v6358_v3 = vsub.f32 %v6277_v49, %v6350_v29  ;;  %v6270_v20 = vmul.f32 %v6248_v40, %v11385_v41  ;;  %v6329_v25 = vpop.permute.xlu0 %6328  ;;  %v6162_v24 = vsub.f32 %v6081_v52, %v6154_v18  ;;  %v6383_v37 = vmul.f32 %v6248_v40, %v11393_v39 }
 0x499   : > { %v6390_v22 = vadd.f32 %v6382_v57, %v6374_v46  ;;  %v6351_v34 = vmul.f32 %v6329_v25, %v11393_v39  ;;  %v6367_v56 = vmul.f32 %v6329_v25, %v11385_v41  ;;  %v6194_v31 = vadd.f32 %v6186_v53, %v6178_v2 }
 0x49a   : > { %v6278_v8 = vadd.f32 %v6270_v20, %v6161_v51  ;;  %6560 = vperm.xlu0 %7090, %v6358_v3  }
 0x49b   : > { %v6255_v55 = vpop.permute.xlu1 %6254  ;;  %v6375_v17 = vadd.f32 %v6367_v56, %v6193_v47  ;;  %6417 = vperm.xlu1 %7091, %v6390_v22  }
 0x49c   : > { %v6359_v0 = vsub.f32 %v6278_v8, %v6351_v34  ;;  %v6271_v14 = vmul.f32 %v6255_v55, %v11400_v43  ;;  %v6336_v9 = vpop.permute.xlu0 %6335  ;;  %v6384_v59 = vmul.f32 %v6255_v55, %v11405_v38 }
 0x49d   : > { %v6391_v28 = vadd.f32 %v6383_v37, %v6375_v17  ;;  %v6352_v12 = vmul.f32 %v6336_v9, %v11405_v38  ;;  %v6368_v41 = vmul.f32 %v6336_v9, %v11400_v43 }
 0x49e   : > { %v6279_v4 = vadd.f32 %v6271_v14, %v6162_v24  ;;  %6563 = vperm.xlu0 %7090, %v6359_v0   ;;  %v7095_v14 = vld [vmem:[%s10481_s8] sm:$0xff] }
 0x49f   : > { %v6376_v33 = vadd.f32 %v6368_v41, %v6194_v31  ;;  %6420 = vperm.xlu1 %7091, %v6391_v28   ;;  %v7096_v31 = vld [vmem:[%s10480_s7] sm:$0xff]  ;;  %v11433_v28 = vmov 0.0  }
 0x4a0   : > { %v6360_v54 = vsub.f32 %v6279_v4, %v6352_v12 }
 0x4a1   : > { %v6392_v39 = vadd.f32 %v6384_v59, %v6376_v33 }
 0x4a2   : > { %6566 = vperm.xlu0 %7090, %v6360_v54  }
 0x4a3   : > { %6423 = vperm.xlu1 %7091, %v6392_v39  }
 0x4ad   : > { %v5323_v5 = vpop.permute.xlu1 %5322 }
 0x4ae   : > { %v5326_v32 = vpop.permute.xlu0 %5325  ;;  %v5348_v44 = vrot.slane %v5323_v5, %v11432_v30 }
 0x4af   : > { %v5352_v50 = vrot.slane %v5326_v32, %v11432_v30 }
 0x4b1   : > { %v5466_v19 = vpop.permute.xlu1 %5465  ;;  %v5377_v6 = vsel %vm3211_vm3, %v5352_v50, %v5348_v44 }
 0x4b2   : > { %v5469_v45 = vpop.permute.xlu0 %5468  ;;  %v5491_v60 = vrot.slane %v5466_v19, %v11432_v30 }
 0x4b3   : > { %v5495_v23 = vrot.slane %v5469_v45, %v11432_v30 }
 0x4b5   : > { %v5520_v18 = vsel %vm3211_vm3, %v5495_v23, %v5491_v60 }
 0x4c5   : > { %v5472_v63 = vpop.permute.xlu0 %5471 }
 0x4c6   : > { %v5329_v42 = vpop.permute.xlu1 %5328  ;;  %v5499_v58 = vrot.slane %v5472_v63, %v11432_v30 }
 0x4c7   : > { %v5356_v48 = vrot.slane %v5329_v42, %v11432_v30 }
 0x4c8   : > { %v5521_v46 = vsel %vm3213_vm4, %v5499_v58, %v5520_v18 }
 0x4c9   : > { %v5378_v40 = vsel %vm3213_vm4, %v5356_v48, %v5377_v6 }
 0x4d5   : > { %v5475_v16 = vpop.permute.xlu0 %5474 }
 0x4d6   : > { %v5332_v36 = vpop.permute.xlu1 %5331  ;;  %v5503_v13 = vrot.slane %v5475_v16, %v11432_v30 }
 0x4d7   : > { %v5360_v62 = vrot.slane %v5332_v36, %v11432_v30 }
 0x4d8   : > { %v5522_v2 = vsel %vm3215_vm5, %v5503_v13, %v5521_v46 }
 0x4d9   : > { %v5379_v20 = vsel %vm3215_vm5, %v5360_v62, %v5378_v40 }
 0x4e1   : > { %v5478_v11 = vpop.permute.xlu0 %5477 }
 0x4e2   : > { %v5335_v10 = vpop.permute.xlu1 %5334  ;;  %v5507_v26 = vrot.slane %v5478_v11, %v11432_v30 }
 0x4e3   : > { %v5364_v49 = vrot.slane %v5335_v10, %v11432_v30 }
 0x4e4   : > { %v5523_v22 = vsel %vm3217_vm6, %v5507_v26, %v5522_v2 }
 0x4e5   : > { %v5380_v25 = vsel %vm3217_vm6, %v5364_v49, %v5379_v20 }
 0x4e9   : > { %v5481_v35 = vpop.permute.xlu0 %5480 }
 0x4ea   : > { %v5338_v43 = vpop.permute.xlu1 %5337  ;;  %v5511_v57 = vrot.slane %v5481_v35, %v11432_v30 }
 0x4eb   : > { %v5368_v51 = vrot.slane %v5338_v43, %v11432_v30 }
 0x4ec   : > { %v5524_v53 = vsel %vm3219_vm7, %v5511_v57, %v5523_v22  ;;  %v6726_v22 = vld [vmem:[%s9435_s27 + $0x8] sm:$0xff] (%p7209_p5) }
 0x4ed   : > { %v5381_v8 = vsel %vm3219_vm7, %v5368_v51, %v5380_v25  ;;  %6727 = vst [vmem:[%s6689_s15 + $0x10] sm:$0xff] (%p7209_p5), %v6726_v22 }
 0x4f5   : > { %v10366_v7 = vpop.permute.xlu1 %6402 }
 0x4f6   : > { %v10368_v38 = vpop.permute.xlu0 %6405  ;;  %v6428_v36 = vrot.slane %v10366_v7, %v11432_v30 }
 0x4f7   : > { %v6432_v5 = vrot.slane %v10368_v38, %v11432_v30 }
 0x4f9   : > { %v10370_v1 = vpop.permute.xlu1 %6545 }
 0x4fa   : > { %v6549_v21 = vpop.permute.xlu0 %6548  ;;  %v6571_v32 = vrot.slane %v10370_v1, %v11432_v30 }
 0x4fb   : > { %v6575_v54 = vrot.slane %v6549_v21, %v11432_v30  ;;  %v6457_v21 = vsel %vm3211_vm3, %v6432_v5, %v6428_v36 }
 0x4fd   : > { %v5341_v27 = vpop.permute.xlu1 %5340  ;;  %v6600_v16 = vsel %vm3211_vm3, %v6575_v54, %v6571_v32 }
 0x4fe   : > { %v5484_v61 = vpop.permute.xlu0 %5483  ;;  %v5372_v3 = vrot.slane %v5341_v27, %v11432_v30 }
 0x4ff   : > { %v5515_v15 = vrot.slane %v5484_v61, %v11432_v30 }
 0x500   : > { %v5382_v24 = vsel %vm3221_vm8, %v5372_v3, %v5381_v8 }
 0x501   : > { %v5525_v37 = vsel %vm3221_vm8, %v5515_v15, %v5524_v53 }
 0x502   : > { %v6409_v29 = vpop.permute.xlu1 %6408 }
 0x503   : > { %v6552_v52 = vpop.permute.xlu0 %6551  ;;  %v6436_v45 = vrot.slane %v6409_v29, %v11432_v30 }
 0x504   : > { %v6579_v33 = vrot.slane %v6552_v52, %v11432_v30 }
 0x505   : > { %v6458_v7 = vsel %vm3213_vm4, %v6436_v45, %v6457_v21 }
 0x506   : > { %v5344_v47 = vpop.permute.xlu1 %5343  ;;  %v6601_v43 = vsel %vm3213_vm4, %v6579_v33, %v6600_v16 }
 0x507   : > { %v5487_v34 = vpop.permute.xlu0 %5486  ;;  %v5376_v56 = vrot.slane %v5344_v47, %v11432_v30  ;;  %v6724_v47 = vld [vmem:[%s9435_s27] sm:$0xff] (%p7209_p5) }
 0x508   : > { %v5519_v55 = vrot.slane %v5487_v34, %v11432_v30  ;;  %6725 = vst [vmem:[%s6689_s15] sm:$0xff] (%p7209_p5), %v6724_v47 }
 0x509   : > { %v5383_v0 = vsel %vm3223_vm9, %v5376_v56, %v5382_v24 }
 0x50a   : > { %v5526_v17 = vsel %vm3223_vm9, %v5519_v55, %v5525_v37  ;;  %7045 = vmatmul.mubr.msk.f32.vlgmr.msra.gmra.mxu0 %vm1019_vm2, %v5383_v0 }
 0x50b   : > { %7050 = vmatmul.mubr.msk.f32.vlgmr.msra.gmra.mxu1 %vm1019_vm2, %v5526_v17  ;;  %7053 = vmatpush3.msra.mxu0 %v7095_v14 }
 0x50c   : > { %7058 = vmatpush3.msra.mxu1 %v7096_v31  ;;  %7059 = vmatprep.mubr.msk.f32.mxu1 %vm7122_vm1, %v11433_v28 }
 0x50d   : > { %v6555_v9 = vpop.permute.xlu0 %6554  ;;  %7054 = vmatprep.mubr.msk.f32.mxu0 %vm7122_vm1, %v11433_v28 }
 0x50e   : > { %v6412_v4 = vpop.permute.xlu1 %6411  ;;  %v6583_v19 = vrot.slane %v6555_v9, %v11432_v30 }
 0x50f   : > { %v6440_v10 = vrot.slane %v6412_v4, %v11432_v30 }
 0x510   : > { %v6602_v27 = vsel %vm3215_vm5, %v6583_v19, %v6601_v43 }
 0x511   : > { %v6558_v12 = vpop.permute.xlu0 %6557  ;;  %v6459_v44 = vsel %vm3215_vm5, %v6440_v10, %v6458_v7 }
 0x512   : > { %v6415_v41 = vpop.permute.xlu1 %6414  ;;  %v6587_v42 = vrot.slane %v6558_v12, %v11432_v30 }
 0x513   : > { %v6444_v35 = vrot.slane %v6415_v41, %v11432_v30 }
 0x514   : > { %v6603_v50 = vsel %vm3217_vm6, %v6587_v42, %v6602_v27 }
 0x515   : > { %v6561_v59 = vpop.permute.xlu0 %6560  ;;  %v6460_v60 = vsel %vm3217_vm6, %v6444_v35, %v6459_v44 }
 0x516   : > { %v6418_v39 = vpop.permute.xlu1 %6417  ;;  %v6591_v11 = vrot.slane %v6561_v59, %v11432_v30 }
 0x517   : > { %v6448_v61 = vrot.slane %v6418_v39, %v11432_v30 }
 0x518   : > { %v6604_v58 = vsel %vm3219_vm7, %v6591_v11, %v6603_v50 }
 0x519   : > { %v6564_v63 = vpop.permute.xlu0 %6563  ;;  %v6461_v29 = vsel %vm3219_vm7, %v6448_v61, %v6460_v60 }
 0x51a   : > { %v6595_v38 = vrot.slane %v6564_v63, %v11432_v30  ;;  %v6421_v1 = vpop.permute.xlu1 %6420 }
 0x51b   : > { %v6452_v23 = vrot.slane %v6421_v1, %v11432_v30 }
 0x51c   : > { %v6605_v13 = vsel %vm3221_vm8, %v6595_v38, %v6604_v58 }
 0x51d   : > { %v6567_v48 = vpop.permute.xlu0 %6566  ;;  %v6462_v51 = vsel %vm3221_vm8, %v6452_v23, %v6461_v29 }
 0x51e   : > { %v6599_v62 = vrot.slane %v6567_v48, %v11432_v30  ;;  %v6424_v49 = vpop.permute.xlu1 %6423 }
 0x51f   : > { %v6456_v26 = vrot.slane %v6424_v49, %v11432_v30 }
 0x520   : > { %v6606_v6 = vsel %vm3223_vm9, %v6599_v62, %v6605_v13 }
 0x521   : > { %7060 = vmatmul.mubr.msk.f32.vlgmr.msra.gmra.mxu1 %vm1019_vm2, %v6606_v6  ;;  %v6463_v52 = vsel %vm3223_vm9, %v6456_v26, %v6462_v51 }
 0x522   : > { %7055 = vmatmul.mubr.msk.f32.vlgmr.msra.gmra.mxu0 %vm1019_vm2, %v6463_v52 }
 0x5ca   : > { %v5452_v18 = vpop.f32.mrf.mxu0 }
 0x5cb   : > { %v5595_v40 = vpop.f32.mrf.mxu1 }
 0x5cc   : > { %v5596_v57 = vadd.f32 %v5595_v40, %v5452_v18  ;;  %v7046_v3 = vpop.f32.mrf.mxu0 }
 0x5cd   : > { %v7051_v46 = vpop.f32.mrf.mxu1 }
 0x5ce   : > { %6910 = vst.msk [vmem:[%s9435_s27 + $0x10] sm:$0xff] %vm671_vm0, %v5596_v57 }
 0x5d5   : > { %v6728_v8 = vld [vmem:[%s9435_s27 + $0x10] sm:$0xff] (%p7209_p5) }
 0x5d6   : > { %6729 = vst [vmem:[%s6689_s15 + $0x20] sm:$0xff] (%p7209_p5), %v6728_v8 }
 0x5e1   : > { %v6675_v20 = vpop.f32.mrf.mxu1  ;;  %6687 = sbr.rel (!%p7209_p5) target bundleno = 1518 (0x5ee), region = 174 }
 0x5e2   : > { %v6532_v15 = vpop.f32.mrf.mxu0 }
 0x5e3   : > { %v7061_v2 = vpop.f32.mrf.mxu1  ;;  %v6676_v30 = vadd.f32 %v6675_v20, %v6532_v15 }
 0x5e4   : > { %v7056_v25 = vpop.f32.mrf.mxu0 }
 0x5e5   : > { %6921 = vst.msk [vmem:[%s9435_s27 + $0x18] sm:$0xff] %vm671_vm0, %v6676_v30 }
 0x5ec   : > { %v6730_v34 = vld [vmem:[%s9435_s27 + $0x18] sm:$0xff] }
 0x5ed   : > { %6731 = vst [vmem:[%s6689_s15 + $0x30] sm:$0xff] %v6730_v34 }
 0x5ee PF: > { %p16_p11 = scmp.ge.s32.totalorder %s7192_s13, 4   ;;  %s11434_s30 = smov %s7115_s10 }
 0x5ef   : > { %s11435_s10 = smov %s7203_s16  ;;  %s11436_s11 = smov %s7192_s13 }
 0x5f0   :  { %18 = sbr.rel (!%p16_p11) target bundleno = 2 (0x2), region = 301 }

</bundles_post_ra>
